<compile_context>
chip_gen: v6e
topology: v6e:2x2x1
jax: 0.10.0
libtpu: 0.0.40
codegen_flags: <defaults>
</compile_context>

<pallas_src>
import functools
import math

import jax
import jax.numpy as jnp
from jax.experimental import pallas as pl
from jax.experimental.pallas import tpu as pltpu

_EPS = 1e-5                      # torch.nn.LayerNorm default
_INV_SQRT2 = 0.7071067811865476


def _gelu(x):
    # exact (erf) GELU, matching torch.nn.GELU() default.
    # (On v5e a tanh-approx GELU would route to the EUP; kept exact for parity.)
    return 0.5 * x * (1.0 + jax.lax.erf(x * _INV_SQRT2))


def _layernorm(x, g, b):
    # two-pass LayerNorm over the channel dim (matches torch, same op count).
    mu = jnp.mean(x, axis=-1, keepdims=True)
    xm = x - mu
    var = jnp.mean(xm * xm, axis=-1, keepdims=True)
    return xm * jax.lax.rsqrt(var + _EPS) * g + b


# ----------------------------- fused kernel ---------------------------------

def self_attention_kernel(x_ref, g1_ref, b1_ref, wqk_ref, bqk_ref,
                          wcomb_ref, bcomb_ref, g2_ref, b2_ref,
                          wf1_ref, bf1_ref, wf2_ref, bf2_ref,
                          o_ref, *, num_heads):
    # x_ref: (1, C, S) channel-major slab for one batch element.
    x = x_ref[0].T                                   # (S, C) f32, XLU transpose
    S, C = x.shape
    D = C // num_heads
    TQ = 128 if S % 128 == 0 else S                  # query-tile (vreg pressure)

    # ---- LayerNorm -> fused Q/K projection (scale folded into Q weights) ----
    x_ln = _layernorm(x, g1_ref[...], b1_ref[...])   # f32
    x_ln_bf = x_ln.astype(jnp.bfloat16)              # cast once, reused 2x
    qk = jnp.dot(x_ln_bf, wqk_ref[...],
                 preferred_element_type=jnp.float32) + bqk_ref[...]   # (S, 2C)
    qk_bf = qk.astype(jnp.bfloat16)                  # cast once (matmul operands)
    k_bf = qk_bf[:, C:]                              # (S, C)

    # combined V*W_o projection: one lane-dense (S, H*C) matmul
    vproj = jnp.dot(x_ln_bf, wcomb_ref[...],
                    preferred_element_type=jnp.float32).astype(jnp.bfloat16)

    # ---- attention + MLP, tiled over query rows (static unroll) ----
    for q0 in range(0, S, TQ):
        q_bf = qk_bf[q0:q0 + TQ, :C]                 # (TQ, C), scale pre-folded
        attn = jnp.zeros((TQ, C), jnp.float32)
        for h in range(num_heads):
            qh = q_bf[:, h * D:(h + 1) * D]          # (TQ, D)
            kh = k_bf[:, h * D:(h + 1) * D]          # (S, D)
            s = jax.lax.dot_general(qh, kh, (((1,), (1,)), ((), ())),
                                    preferred_element_type=jnp.float32)  # (TQ,S)
            m = jnp.max(s, axis=-1, keepdims=True)
            p = jnp.exp(s - m)                        # unnormalized (deferred)
            l = jnp.sum(p, axis=-1, keepdims=True)    # (TQ, 1)
            o_h = jnp.dot(p.astype(jnp.bfloat16), vproj[:, h * C:(h + 1) * C],
                          preferred_element_type=jnp.float32)            # (TQ,C)
            attn = attn + o_h * pl.reciprocal(l, approx=True)
        attn = attn + bcomb_ref[...]                  # folded (b_v @ W_o + b_o)

        h1 = attn + x[q0:q0 + TQ]                     # residual 1

        # ---- ff_self: LayerNorm -> Linear -> GELU -> Linear, + residual 2 ----
        h_ln = _layernorm(h1, g2_ref[...], b2_ref[...])
        f = _gelu(jnp.dot(h_ln.astype(jnp.bfloat16), wf1_ref[...],
                          preferred_element_type=jnp.float32) + bf1_ref[...])
        f = jnp.dot(f.astype(jnp.bfloat16), wf2_ref[...],
                    preferred_element_type=jnp.float32) + bf2_ref[...]
        out = f + h1                                  # (TQ, C)

        o_ref[0, :, q0:q0 + TQ] = out.T               # lane-dense (C, TQ) store


# ----------------------------- wrapper ---------------------------------------

def _prepare_kernel_params(p, C, num_heads):
    """Fold scale / out-proj / biases into the weights; pre-cast matrices to bf16."""
    D = C // num_heads
    scale = 1.0 / math.sqrt(D)
    hi = jax.lax.Precision.HIGHEST

    wq = p["wqkv"][:, :C] * scale                    # fold 1/sqrt(D) into Q
    wk = p["wqkv"][:, C:2 * C]
    wv = p["wqkv"][:, 2 * C:]
    bq = p["bqkv"][:, :C] * scale
    bk = p["bqkv"][:, C:2 * C]
    bv = p["bqkv"][:, 2 * C:]

    wqk = jnp.concatenate([wq, wk], axis=1)          # (C, 2C)
    bqk = jnp.concatenate([bq, bk], axis=1)          # (1, 2C)

    # fold out-proj into V: W_comb_h = W_v_h @ W_o_h  (per head, once, f32)
    wcomb = jnp.concatenate(
        [jnp.matmul(wv[:, h * D:(h + 1) * D], p["wo"][h * D:(h + 1) * D, :],
                    precision=hi) for h in range(num_heads)],
        axis=1)                                       # (C, H*C)
    # softmax rows sum to 1 => v-bias contribution is exactly b_v @ W_o
    bcomb = jnp.matmul(bv, p["wo"], precision=hi) + p["bo"]   # (1, C)

    bf16 = jnp.bfloat16
    return dict(
        g1=p["g1"], b1=p["b1"],
        wqk=wqk.astype(bf16), bqk=bqk,
        wcomb=wcomb.astype(bf16), bcomb=bcomb,
        g2=p["g2"], b2=p["b2"],
        wf1=p["wf1"].astype(bf16), bf1=p["bf1"],
        wf2=p["wf2"].astype(bf16), bf2=p["bf2"])


def _full_spec(a):
    nd = a.ndim
    return pl.BlockSpec(a.shape, lambda n, _nd=nd: (0,) * _nd)


def self_attention_forward(x_nchw, p, num_heads=4):
    """x_nchw: (N, C, H, W) float32 -> (N, C, H, W) float32."""
    N, C, H, W = x_nchw.shape
    S = H * W
    x = x_nchw.reshape(N, C, S)                      # free view; transpose in-kernel

    kp = _prepare_kernel_params(p, C, num_heads)
    args = (x, kp["g1"], kp["b1"], kp["wqk"], kp["bqk"], kp["wcomb"], kp["bcomb"],
            kp["g2"], kp["b2"], kp["wf1"], kp["bf1"], kp["wf2"], kp["bf2"])

    x_spec = pl.BlockSpec((1, C, S), lambda n: (n, 0, 0))
    in_specs = [x_spec] + [_full_spec(a) for a in args[1:]]
    # NOTE: for v7x with odd/1 batch, promote the in-kernel q-tile loop to a
    # second "parallel" grid axis so both TensorCores get work (N=2 here).

    out = pl.pallas_call(
        functools.partial(self_attention_kernel, num_heads=num_heads),
        out_shape=jax.ShapeDtypeStruct((N, C, S), jnp.float32),
        grid=(N,),
        in_specs=in_specs,
        out_specs=pl.BlockSpec((1, C, S), lambda n: (n, 0, 0)),
        compiler_params=pltpu.CompilerParams(
            dimension_semantics=("parallel",)),
    )(*args)
    return out.reshape(N, C, H, W)


# ----------------------------- pure-f32 reference -----------------------------

def ref_forward(x_nchw, p, num_heads=4):
    """True PyTorch-semantics forward in full f32 (HIGHEST-precision matmuls)."""
    N, C, H, W = x_nchw.shape
    S = H * W
    D = C // num_heads
    hi = jax.lax.Precision.HIGHEST
    x = jnp.transpose(x_nchw.reshape(N, C, S), (0, 2, 1))   # (N, S, C)

    def ln(v, g, b):
        mu = jnp.mean(v, axis=-1, keepdims=True)
        var = jnp.mean((v - mu) ** 2, axis=-1, keepdims=True)
        return (v - mu) * jax.lax.rsqrt(var + _EPS) * g + b

    x_ln = ln(x, p["g1"], p["b1"])
    qkv = jnp.einsum("nsc,cd->nsd", x_ln, p["wqkv"], precision=hi) + p["bqkv"]
    q, k, v = jnp.split(qkv, 3, axis=-1)
    heads = lambda a: jnp.transpose(a.reshape(N, S, num_heads, D), (0, 2, 1, 3))
    qh, kh, vh = heads(q), heads(k), heads(v)

    s = jnp.einsum("nhqd,nhkd->nhqk", qh, kh, precision=hi) / math.sqrt(D)
    a = jax.nn.softmax(s, axis=-1)
    o = jnp.einsum("nhqk,nhkd->nhqd", a, vh, precision=hi)
    o = jnp.transpose(o, (0, 2, 1, 3)).reshape(N, S, C)

    attn = jnp.einsum("nsc,cd->nsd", o, p["wo"], precision=hi) + p["bo"]
    h1 = attn + x
    h_ln = ln(h1, p["g2"], p["b2"])
    f = _gelu(jnp.einsum("nsc,cd->nsd", h_ln, p["wf1"], precision=hi) + p["bf1"])
    f = jnp.einsum("nsc,cd->nsd", f, p["wf2"], precision=hi) + p["bf2"]
    out = f + h1
    return jnp.transpose(out, (0, 2, 1)).reshape(N, C, H, W)


# ----------------------------- main -------------------------------------------

if __name__ == "__main__":
    # SelfAttention(channels=128, size=16) with 4 heads, batch=2
    # (C=128 / S=256 keep all MXU operands / stores lane-dense).
    N, C, SIZE, NUM_HEADS = 2, 128, 16, 4

    key = jax.random.PRNGKey(0)
    ks = jax.random.split(key, 16)

    def w(k, shape, scale=0.1):
        return scale * jax.random.normal(k, shape, jnp.float32)

    params = {
        # LayerNorm 1 (pre-attention)
        "g1": 1.0 + w(ks[0], (1, C)), "b1": w(ks[1], (1, C)),
        # MultiheadAttention fused in-proj (already transposed: y = x @ W + b)
        "wqkv": w(ks[2], (C, 3 * C)), "bqkv": w(ks[3], (1, 3 * C)),
        # MultiheadAttention out-proj
        "wo": w(ks[4], (C, C)), "bo": w(ks[5], (1, C)),
        # ff_self: LayerNorm -> Linear -> GELU -> Linear
        "g2": 1.0 + w(ks[6], (1, C)), "b2": w(ks[7], (1, C)),
        "wf1": w(ks[8], (C, C)), "bf1": w(ks[9], (1, C)),
        "wf2": w(ks[10], (C, C)), "bf2": w(ks[11], (1, C)),
    }

    x = jax.random.normal(ks[12], (N, C, SIZE, SIZE), jnp.float32)

    out = jax.block_until_ready(self_attention_forward(x, params, NUM_HEADS))
    assert out.shape == (N, C, SIZE, SIZE), out.shape

    ref = jax.block_until_ready(ref_forward(x, params, NUM_HEADS))
    err_max = float(jnp.max(jnp.abs(out - ref)))
    err_rel = float(jnp.linalg.norm(out - ref) / jnp.linalg.norm(ref))
    # Accepted tradeoff (documented): the kernel uses bf16-operand /
    # f32-accumulate MXU matmuls while the reference is pure f32, so the
    # deviation is bf16-level.  Expected ~1e-2 max-abs / ~5e-3 relative-L2;
    # thresholds below give >2x headroom.
    assert err_max < 1e-1, f"max abs err {err_max}"
    assert err_rel < 2.5e-2, f"relative L2 err {err_rel}"

    print("KERNEL_OK")
</pallas_src>

<mosaic_0001>
module attributes {stable_mosaic.version = 11 : i64} {
  func.func @self_attention_kernel(%arg0: i32, %arg1: memref<1x128x256xf32, #tpu.memory_space<vmem>>, %arg2: memref<1x128xf32, #tpu.memory_space<vmem>>, %arg3: memref<1x128xf32, #tpu.memory_space<vmem>>, %arg4: memref<128x256xbf16, #tpu.memory_space<vmem>>, %arg5: memref<1x256xf32, #tpu.memory_space<vmem>>, %arg6: memref<128x512xbf16, #tpu.memory_space<vmem>>, %arg7: memref<1x128xf32, #tpu.memory_space<vmem>>, %arg8: memref<1x128xf32, #tpu.memory_space<vmem>>, %arg9: memref<1x128xf32, #tpu.memory_space<vmem>>, %arg10: memref<128x128xbf16, #tpu.memory_space<vmem>>, %arg11: memref<1x128xf32, #tpu.memory_space<vmem>>, %arg12: memref<128x128xbf16, #tpu.memory_space<vmem>>, %arg13: memref<1x128xf32, #tpu.memory_space<vmem>>, %arg14: memref<1x128x256xf32, #tpu.memory_space<vmem>>) attributes {dimension_semantics = [#tpu.dimension_semantics<parallel>], iteration_bounds = array<i64: 2>, scalar_prefetch = 0 : i64, scratch_operands = 0 : i64, tpu.core_type = #tpu.core_type<tc>, window_params = [{transform_indices = @transform_0, window_bounds = array<i64: 1, 128, 256>}, {pipeline_mode = #tpu.pipeline_mode<synchronous>, transform_indices = @transform_1, window_bounds = array<i64: 1, 128>}, {pipeline_mode = #tpu.pipeline_mode<synchronous>, transform_indices = @transform_2, window_bounds = array<i64: 1, 128>}, {pipeline_mode = #tpu.pipeline_mode<synchronous>, transform_indices = @transform_3, window_bounds = array<i64: 128, 256>}, {pipeline_mode = #tpu.pipeline_mode<synchronous>, transform_indices = @transform_4, window_bounds = array<i64: 1, 256>}, {pipeline_mode = #tpu.pipeline_mode<synchronous>, transform_indices = @transform_5, window_bounds = array<i64: 128, 512>}, {pipeline_mode = #tpu.pipeline_mode<synchronous>, transform_indices = @transform_6, window_bounds = array<i64: 1, 128>}, {pipeline_mode = #tpu.pipeline_mode<synchronous>, transform_indices = @transform_7, window_bounds = array<i64: 1, 128>}, {pipeline_mode = #tpu.pipeline_mode<synchronous>, transform_indices = @transform_8, window_bounds = array<i64: 1, 128>}, {pipeline_mode = #tpu.pipeline_mode<synchronous>, transform_indices = @transform_9, window_bounds = array<i64: 128, 128>}, {pipeline_mode = #tpu.pipeline_mode<synchronous>, transform_indices = @transform_10, window_bounds = array<i64: 1, 128>}, {pipeline_mode = #tpu.pipeline_mode<synchronous>, transform_indices = @transform_11, window_bounds = array<i64: 128, 128>}, {pipeline_mode = #tpu.pipeline_mode<synchronous>, transform_indices = @transform_12, window_bounds = array<i64: 1, 128>}, {transform_indices = @transform_13, window_bounds = array<i64: 1, 128, 256>}]} {
    %c0 = arith.constant 0 : index
    %c0_0 = arith.constant 0 : index
    %c0_1 = arith.constant 0 : index
    %0 = vector.load %arg1[%c0, %c0_0, %c0_1] : memref<1x128x256xf32, #tpu.memory_space<vmem>>, vector<1x128x256xf32>
    %1 = vector.shape_cast %0 : vector<1x128x256xf32> to vector<128x256xf32>
    %2 = tpu.transpose %1, [1, 0] : vector<128x256xf32> -> vector<256x128xf32>
    %c0_2 = arith.constant 0 : index
    %c0_3 = arith.constant 0 : index
    %3 = vector.load %arg2[%c0_2, %c0_3] : memref<1x128xf32, #tpu.memory_space<vmem>>, vector<1x128xf32>
    %c0_4 = arith.constant 0 : index
    %c0_5 = arith.constant 0 : index
    %4 = vector.load %arg3[%c0_4, %c0_5] : memref<1x128xf32, #tpu.memory_space<vmem>>, vector<1x128xf32>
    %cst = arith.constant dense<0.000000e+00> : vector<256xf32>
    %5 = vector.multi_reduction <add>, %2, %cst [1] : vector<256x128xf32> to vector<256xf32>
    %6 = vector.shape_cast %5 : vector<256xf32> to vector<256x1xf32>
    %cst_6 = arith.constant 1.280000e+02 : f32
    %7 = vector.broadcast %cst_6 : f32 to vector<256x1xf32>
    %8 = arith.divf %6, %7 : vector<256x1xf32>
    %9 = vector.broadcast %8 : vector<256x1xf32> to vector<256x128xf32>
    %10 = arith.subf %2, %9 : vector<256x128xf32>
    %11 = arith.mulf %10, %10 : vector<256x128xf32>
    %cst_7 = arith.constant dense<0.000000e+00> : vector<256xf32>
    %12 = vector.multi_reduction <add>, %11, %cst_7 [1] : vector<256x128xf32> to vector<256xf32>
    %13 = vector.shape_cast %12 : vector<256xf32> to vector<256x1xf32>
    %cst_8 = arith.constant 1.280000e+02 : f32
    %14 = vector.broadcast %cst_8 : f32 to vector<256x1xf32>
    %15 = arith.divf %13, %14 : vector<256x1xf32>
    %cst_9 = arith.constant 9.99999974E-6 : f32
    %16 = vector.broadcast %cst_9 : f32 to vector<256x1xf32>
    %17 = arith.addf %15, %16 : vector<256x1xf32>
    %18 = math.rsqrt %17 : vector<256x1xf32>
    %19 = vector.broadcast %18 : vector<256x1xf32> to vector<256x128xf32>
    %20 = arith.mulf %10, %19 : vector<256x128xf32>
    %21 = vector.broadcast %3 : vector<1x128xf32> to vector<256x128xf32>
    %22 = arith.mulf %20, %21 : vector<256x128xf32>
    %23 = vector.broadcast %4 : vector<1x128xf32> to vector<256x128xf32>
    %24 = arith.addf %22, %23 : vector<256x128xf32>
    %25 = arith.truncf %24 : vector<256x128xf32> to vector<256x128xbf16>
    %c0_10 = arith.constant 0 : index
    %c0_11 = arith.constant 0 : index
    %26 = vector.load %arg4[%c0_10, %c0_11] : memref<128x256xbf16, #tpu.memory_space<vmem>>, vector<128x256xbf16>
    %cst_12 = arith.constant dense<0.000000e+00> : vector<256x256xf32>
    %27 = tpu.matmul %25, %26, %cst_12 {dimension_numbers = #tpu.dot_dimension_numbers<[1], [0], [0], [1], [0, 0, 1, 1], [], []>} : vector<256x128xbf16>, vector<128x256xbf16>, vector<256x256xf32> -> vector<256x256xf32>
    %c0_13 = arith.constant 0 : index
    %c0_14 = arith.constant 0 : index
    %28 = vector.load %arg5[%c0_13, %c0_14] : memref<1x256xf32, #tpu.memory_space<vmem>>, vector<1x256xf32>
    %29 = vector.broadcast %28 : vector<1x256xf32> to vector<256x256xf32>
    %30 = arith.addf %27, %29 : vector<256x256xf32>
    %31 = arith.truncf %30 : vector<256x256xf32> to vector<256x256xbf16>
    %32 = vector.extract_strided_slice %31 {offsets = [0, 128], sizes = [256, 128], strides = [1, 1]} : vector<256x256xbf16> to vector<256x128xbf16>
    %c0_15 = arith.constant 0 : index
    %c0_16 = arith.constant 0 : index
    %33 = vector.load %arg6[%c0_15, %c0_16] : memref<128x512xbf16, #tpu.memory_space<vmem>>, vector<128x512xbf16>
    %cst_17 = arith.constant dense<0.000000e+00> : vector<256x512xf32>
    %34 = tpu.matmul %25, %33, %cst_17 {dimension_numbers = #tpu.dot_dimension_numbers<[1], [0], [0], [1], [0, 0, 1, 1], [], []>} : vector<256x128xbf16>, vector<128x512xbf16>, vector<256x512xf32> -> vector<256x512xf32>
    %35 = arith.truncf %34 : vector<256x512xf32> to vector<256x512xbf16>
    %36 = vector.extract_strided_slice %31 {offsets = [0, 0], sizes = [128, 128], strides = [1, 1]} : vector<256x256xbf16> to vector<128x128xbf16>
    %cst_18 = arith.constant 0.000000e+00 : f32
    %37 = vector.broadcast %cst_18 : f32 to vector<128x128xf32>
    %38 = vector.extract_strided_slice %36 {offsets = [0, 0], sizes = [128, 32], strides = [1, 1]} : vector<128x128xbf16> to vector<128x32xbf16>
    %39 = vector.extract_strided_slice %32 {offsets = [0, 0], sizes = [256, 32], strides = [1, 1]} : vector<256x128xbf16> to vector<256x32xbf16>
    %cst_19 = arith.constant dense<0.000000e+00> : vector<128x256xf32>
    %40 = tpu.matmul %38, %39, %cst_19 {dimension_numbers = #tpu.dot_dimension_numbers<[1], [1], [0], [0], [0, 0, 1, 0], [], []>} : vector<128x32xbf16>, vector<256x32xbf16>, vector<128x256xf32> -> vector<128x256xf32>
    %cst_20 = arith.constant dense<0xFF800000> : vector<128xf32>
    %41 = vector.multi_reduction <maximumf>, %40, %cst_20 [1] : vector<128x256xf32> to vector<128xf32>
    %42 = vector.shape_cast %41 : vector<128xf32> to vector<128x1xf32>
    %43 = vector.broadcast %42 : vector<128x1xf32> to vector<128x256xf32>
    %44 = arith.subf %40, %43 : vector<128x256xf32>
    %45 = math.exp %44 : vector<128x256xf32>
    %cst_21 = arith.constant dense<0.000000e+00> : vector<128xf32>
    %46 = vector.multi_reduction <add>, %45, %cst_21 [1] : vector<128x256xf32> to vector<128xf32>
    %47 = vector.shape_cast %46 : vector<128xf32> to vector<128x1xf32>
    %48 = arith.truncf %45 : vector<128x256xf32> to vector<128x256xbf16>
    %49 = vector.extract_strided_slice %35 {offsets = [0, 0], sizes = [256, 128], strides = [1, 1]} : vector<256x512xbf16> to vector<256x128xbf16>
    %cst_22 = arith.constant dense<0.000000e+00> : vector<128x128xf32>
    %50 = tpu.matmul %48, %49, %cst_22 {dimension_numbers = #tpu.dot_dimension_numbers<[1], [0], [0], [1], [0, 0, 1, 1], [], []>} : vector<128x256xbf16>, vector<256x128xbf16>, vector<128x128xf32> -> vector<128x128xf32>
    %51 = tpu.reciprocal %47 {approx = true} : vector<128x1xf32> -> vector<128x1xf32>
    %52 = vector.broadcast %51 : vector<128x1xf32> to vector<128x128xf32>
    %53 = arith.mulf %50, %52 : vector<128x128xf32>
    %54 = arith.addf %37, %53 : vector<128x128xf32>
    %55 = vector.extract_strided_slice %36 {offsets = [0, 32], sizes = [128, 32], strides = [1, 1]} : vector<128x128xbf16> to vector<128x32xbf16>
    %56 = vector.extract_strided_slice %32 {offsets = [0, 32], sizes = [256, 32], strides = [1, 1]} : vector<256x128xbf16> to vector<256x32xbf16>
    %cst_23 = arith.constant dense<0.000000e+00> : vector<128x256xf32>
    %57 = tpu.matmul %55, %56, %cst_23 {dimension_numbers = #tpu.dot_dimension_numbers<[1], [1], [0], [0], [0, 0, 1, 0], [], []>} : vector<128x32xbf16>, vector<256x32xbf16>, vector<128x256xf32> -> vector<128x256xf32>
    %cst_24 = arith.constant dense<0xFF800000> : vector<128xf32>
    %58 = vector.multi_reduction <maximumf>, %57, %cst_24 [1] : vector<128x256xf32> to vector<128xf32>
    %59 = vector.shape_cast %58 : vector<128xf32> to vector<128x1xf32>
    %60 = vector.broadcast %59 : vector<128x1xf32> to vector<128x256xf32>
    %61 = arith.subf %57, %60 : vector<128x256xf32>
    %62 = math.exp %61 : vector<128x256xf32>
    %cst_25 = arith.constant dense<0.000000e+00> : vector<128xf32>
    %63 = vector.multi_reduction <add>, %62, %cst_25 [1] : vector<128x256xf32> to vector<128xf32>
    %64 = vector.shape_cast %63 : vector<128xf32> to vector<128x1xf32>
    %65 = arith.truncf %62 : vector<128x256xf32> to vector<128x256xbf16>
    %66 = vector.extract_strided_slice %35 {offsets = [0, 128], sizes = [256, 128], strides = [1, 1]} : vector<256x512xbf16> to vector<256x128xbf16>
    %cst_26 = arith.constant dense<0.000000e+00> : vector<128x128xf32>
    %67 = tpu.matmul %65, %66, %cst_26 {dimension_numbers = #tpu.dot_dimension_numbers<[1], [0], [0], [1], [0, 0, 1, 1], [], []>} : vector<128x256xbf16>, vector<256x128xbf16>, vector<128x128xf32> -> vector<128x128xf32>
    %68 = tpu.reciprocal %64 {approx = true} : vector<128x1xf32> -> vector<128x1xf32>
    %69 = vector.broadcast %68 : vector<128x1xf32> to vector<128x128xf32>
    %70 = arith.mulf %67, %69 : vector<128x128xf32>
    %71 = arith.addf %54, %70 : vector<128x128xf32>
    %72 = vector.extract_strided_slice %36 {offsets = [0, 64], sizes = [128, 32], strides = [1, 1]} : vector<128x128xbf16> to vector<128x32xbf16>
    %73 = vector.extract_strided_slice %32 {offsets = [0, 64], sizes = [256, 32], strides = [1, 1]} : vector<256x128xbf16> to vector<256x32xbf16>
    %cst_27 = arith.constant dense<0.000000e+00> : vector<128x256xf32>
    %74 = tpu.matmul %72, %73, %cst_27 {dimension_numbers = #tpu.dot_dimension_numbers<[1], [1], [0], [0], [0, 0, 1, 0], [], []>} : vector<128x32xbf16>, vector<256x32xbf16>, vector<128x256xf32> -> vector<128x256xf32>
    %cst_28 = arith.constant dense<0xFF800000> : vector<128xf32>
    %75 = vector.multi_reduction <maximumf>, %74, %cst_28 [1] : vector<128x256xf32> to vector<128xf32>
    %76 = vector.shape_cast %75 : vector<128xf32> to vector<128x1xf32>
    %77 = vector.broadcast %76 : vector<128x1xf32> to vector<128x256xf32>
    %78 = arith.subf %74, %77 : vector<128x256xf32>
    %79 = math.exp %78 : vector<128x256xf32>
    %cst_29 = arith.constant dense<0.000000e+00> : vector<128xf32>
    %80 = vector.multi_reduction <add>, %79, %cst_29 [1] : vector<128x256xf32> to vector<128xf32>
    %81 = vector.shape_cast %80 : vector<128xf32> to vector<128x1xf32>
    %82 = arith.truncf %79 : vector<128x256xf32> to vector<128x256xbf16>
    %83 = vector.extract_strided_slice %35 {offsets = [0, 256], sizes = [256, 128], strides = [1, 1]} : vector<256x512xbf16> to vector<256x128xbf16>
    %cst_30 = arith.constant dense<0.000000e+00> : vector<128x128xf32>
    %84 = tpu.matmul %82, %83, %cst_30 {dimension_numbers = #tpu.dot_dimension_numbers<[1], [0], [0], [1], [0, 0, 1, 1], [], []>} : vector<128x256xbf16>, vector<256x128xbf16>, vector<128x128xf32> -> vector<128x128xf32>
    %85 = tpu.reciprocal %81 {approx = true} : vector<128x1xf32> -> vector<128x1xf32>
    %86 = vector.broadcast %85 : vector<128x1xf32> to vector<128x128xf32>
    %87 = arith.mulf %84, %86 : vector<128x128xf32>
    %88 = arith.addf %71, %87 : vector<128x128xf32>
    %89 = vector.extract_strided_slice %36 {offsets = [0, 96], sizes = [128, 32], strides = [1, 1]} : vector<128x128xbf16> to vector<128x32xbf16>
    %90 = vector.extract_strided_slice %32 {offsets = [0, 96], sizes = [256, 32], strides = [1, 1]} : vector<256x128xbf16> to vector<256x32xbf16>
    %cst_31 = arith.constant dense<0.000000e+00> : vector<128x256xf32>
    %91 = tpu.matmul %89, %90, %cst_31 {dimension_numbers = #tpu.dot_dimension_numbers<[1], [1], [0], [0], [0, 0, 1, 0], [], []>} : vector<128x32xbf16>, vector<256x32xbf16>, vector<128x256xf32> -> vector<128x256xf32>
    %cst_32 = arith.constant dense<0xFF800000> : vector<128xf32>
    %92 = vector.multi_reduction <maximumf>, %91, %cst_32 [1] : vector<128x256xf32> to vector<128xf32>
    %93 = vector.shape_cast %92 : vector<128xf32> to vector<128x1xf32>
    %94 = vector.broadcast %93 : vector<128x1xf32> to vector<128x256xf32>
    %95 = arith.subf %91, %94 : vector<128x256xf32>
    %96 = math.exp %95 : vector<128x256xf32>
    %cst_33 = arith.constant dense<0.000000e+00> : vector<128xf32>
    %97 = vector.multi_reduction <add>, %96, %cst_33 [1] : vector<128x256xf32> to vector<128xf32>
    %98 = vector.shape_cast %97 : vector<128xf32> to vector<128x1xf32>
    %99 = arith.truncf %96 : vector<128x256xf32> to vector<128x256xbf16>
    %100 = vector.extract_strided_slice %35 {offsets = [0, 384], sizes = [256, 128], strides = [1, 1]} : vector<256x512xbf16> to vector<256x128xbf16>
    %cst_34 = arith.constant dense<0.000000e+00> : vector<128x128xf32>
    %101 = tpu.matmul %99, %100, %cst_34 {dimension_numbers = #tpu.dot_dimension_numbers<[1], [0], [0], [1], [0, 0, 1, 1], [], []>} : vector<128x256xbf16>, vector<256x128xbf16>, vector<128x128xf32> -> vector<128x128xf32>
    %102 = tpu.reciprocal %98 {approx = true} : vector<128x1xf32> -> vector<128x1xf32>
    %103 = vector.broadcast %102 : vector<128x1xf32> to vector<128x128xf32>
    %104 = arith.mulf %101, %103 : vector<128x128xf32>
    %105 = arith.addf %88, %104 : vector<128x128xf32>
    %c0_35 = arith.constant 0 : index
    %c0_36 = arith.constant 0 : index
    %106 = vector.load %arg7[%c0_35, %c0_36] : memref<1x128xf32, #tpu.memory_space<vmem>>, vector<1x128xf32>
    %107 = vector.broadcast %106 : vector<1x128xf32> to vector<128x128xf32>
    %108 = arith.addf %105, %107 : vector<128x128xf32>
    %109 = vector.extract_strided_slice %2 {offsets = [0, 0], sizes = [128, 128], strides = [1, 1]} : vector<256x128xf32> to vector<128x128xf32>
    %110 = arith.addf %108, %109 : vector<128x128xf32>
    %c0_37 = arith.constant 0 : index
    %c0_38 = arith.constant 0 : index
    %111 = vector.load %arg8[%c0_37, %c0_38] : memref<1x128xf32, #tpu.memory_space<vmem>>, vector<1x128xf32>
    %c0_39 = arith.constant 0 : index
    %c0_40 = arith.constant 0 : index
    %112 = vector.load %arg9[%c0_39, %c0_40] : memref<1x128xf32, #tpu.memory_space<vmem>>, vector<1x128xf32>
    %cst_41 = arith.constant dense<0.000000e+00> : vector<128xf32>
    %113 = vector.multi_reduction <add>, %110, %cst_41 [1] : vector<128x128xf32> to vector<128xf32>
    %114 = vector.shape_cast %113 : vector<128xf32> to vector<128x1xf32>
    %cst_42 = arith.constant 1.280000e+02 : f32
    %115 = vector.broadcast %cst_42 : f32 to vector<128x1xf32>
    %116 = arith.divf %114, %115 : vector<128x1xf32>
    %117 = vector.broadcast %116 : vector<128x1xf32> to vector<128x128xf32>
    %118 = arith.subf %110, %117 : vector<128x128xf32>
    %119 = arith.mulf %118, %118 : vector<128x128xf32>
    %cst_43 = arith.constant dense<0.000000e+00> : vector<128xf32>
    %120 = vector.multi_reduction <add>, %119, %cst_43 [1] : vector<128x128xf32> to vector<128xf32>
    %121 = vector.shape_cast %120 : vector<128xf32> to vector<128x1xf32>
    %cst_44 = arith.constant 1.280000e+02 : f32
    %122 = vector.broadcast %cst_44 : f32 to vector<128x1xf32>
    %123 = arith.divf %121, %122 : vector<128x1xf32>
    %cst_45 = arith.constant 9.99999974E-6 : f32
    %124 = vector.broadcast %cst_45 : f32 to vector<128x1xf32>
    %125 = arith.addf %123, %124 : vector<128x1xf32>
    %126 = math.rsqrt %125 : vector<128x1xf32>
    %127 = vector.broadcast %126 : vector<128x1xf32> to vector<128x128xf32>
    %128 = arith.mulf %118, %127 : vector<128x128xf32>
    %129 = vector.broadcast %111 : vector<1x128xf32> to vector<128x128xf32>
    %130 = arith.mulf %128, %129 : vector<128x128xf32>
    %131 = vector.broadcast %112 : vector<1x128xf32> to vector<128x128xf32>
    %132 = arith.addf %130, %131 : vector<128x128xf32>
    %133 = arith.truncf %132 : vector<128x128xf32> to vector<128x128xbf16>
    %c0_46 = arith.constant 0 : index
    %c0_47 = arith.constant 0 : index
    %134 = vector.load %arg10[%c0_46, %c0_47] : memref<128x128xbf16, #tpu.memory_space<vmem>>, vector<128x128xbf16>
    %cst_48 = arith.constant dense<0.000000e+00> : vector<128x128xf32>
    %135 = tpu.matmul %133, %134, %cst_48 {dimension_numbers = #tpu.dot_dimension_numbers<[1], [0], [0], [1], [0, 0, 1, 1], [], []>} : vector<128x128xbf16>, vector<128x128xbf16>, vector<128x128xf32> -> vector<128x128xf32>
    %c0_49 = arith.constant 0 : index
    %c0_50 = arith.constant 0 : index
    %136 = vector.load %arg11[%c0_49, %c0_50] : memref<1x128xf32, #tpu.memory_space<vmem>>, vector<1x128xf32>
    %137 = vector.broadcast %136 : vector<1x128xf32> to vector<128x128xf32>
    %138 = arith.addf %135, %137 : vector<128x128xf32>
    %cst_51 = arith.constant 5.000000e-01 : f32
    %139 = vector.broadcast %cst_51 : f32 to vector<128x128xf32>
    %140 = arith.mulf %139, %138 : vector<128x128xf32>
    %cst_52 = arith.constant 0.707106769 : f32
    %141 = vector.broadcast %cst_52 : f32 to vector<128x128xf32>
    %142 = arith.mulf %138, %141 : vector<128x128xf32>
    %143 = math.erf %142 : vector<128x128xf32>
    %cst_53 = arith.constant 1.000000e+00 : f32
    %144 = vector.broadcast %cst_53 : f32 to vector<128x128xf32>
    %145 = arith.addf %144, %143 : vector<128x128xf32>
    %146 = arith.mulf %140, %145 : vector<128x128xf32>
    %147 = arith.truncf %146 : vector<128x128xf32> to vector<128x128xbf16>
    %c0_54 = arith.constant 0 : index
    %c0_55 = arith.constant 0 : index
    %148 = vector.load %arg12[%c0_54, %c0_55] : memref<128x128xbf16, #tpu.memory_space<vmem>>, vector<128x128xbf16>
    %cst_56 = arith.constant dense<0.000000e+00> : vector<128x128xf32>
    %149 = tpu.matmul %147, %148, %cst_56 {dimension_numbers = #tpu.dot_dimension_numbers<[1], [0], [0], [1], [0, 0, 1, 1], [], []>} : vector<128x128xbf16>, vector<128x128xbf16>, vector<128x128xf32> -> vector<128x128xf32>
    %c0_57 = arith.constant 0 : index
    %c0_58 = arith.constant 0 : index
    %150 = vector.load %arg13[%c0_57, %c0_58] : memref<1x128xf32, #tpu.memory_space<vmem>>, vector<1x128xf32>
    %151 = vector.broadcast %150 : vector<1x128xf32> to vector<128x128xf32>
    %152 = arith.addf %149, %151 : vector<128x128xf32>
    %153 = arith.addf %152, %110 : vector<128x128xf32>
    %154 = tpu.transpose %153, [1, 0] : vector<128x128xf32> -> vector<128x128xf32>
    %c0_59 = arith.constant 0 : index
    %c0_60 = arith.constant 0 : index
    %c0_61 = arith.constant 0 : index
    %155 = vector.load %arg14[%c0_59, %c0_60, %c0_61] : memref<1x128x256xf32, #tpu.memory_space<vmem>>, vector<1x128x128xf32>
    %156 = vector.shape_cast %155 : vector<1x128x128xf32> to vector<128x128xf32>
    %157 = vector.shape_cast %154 : vector<128x128xf32> to vector<1x128x128xf32>
    tpu.vector_store %arg14[%c0_59, %c0_60, %c0_61], %157 {strides = array<i32>} : memref<1x128x256xf32, #tpu.memory_space<vmem>>, vector<1x128x128xf32>,
    %158 = vector.extract_strided_slice %31 {offsets = [128, 0], sizes = [128, 128], strides = [1, 1]} : vector<256x256xbf16> to vector<128x128xbf16>
    %cst_62 = arith.constant 0.000000e+00 : f32
    %159 = vector.broadcast %cst_62 : f32 to vector<128x128xf32>
    %160 = vector.extract_strided_slice %158 {offsets = [0, 0], sizes = [128, 32], strides = [1, 1]} : vector<128x128xbf16> to vector<128x32xbf16>
    %161 = vector.extract_strided_slice %32 {offsets = [0, 0], sizes = [256, 32], strides = [1, 1]} : vector<256x128xbf16> to vector<256x32xbf16>
    %cst_63 = arith.constant dense<0.000000e+00> : vector<128x256xf32>
    %162 = tpu.matmul %160, %161, %cst_63 {dimension_numbers = #tpu.dot_dimension_numbers<[1], [1], [0], [0], [0, 0, 1, 0], [], []>} : vector<128x32xbf16>, vector<256x32xbf16>, vector<128x256xf32> -> vector<128x256xf32>
    %cst_64 = arith.constant dense<0xFF800000> : vector<128xf32>
    %163 = vector.multi_reduction <maximumf>, %162, %cst_64 [1] : vector<128x256xf32> to vector<128xf32>
    %164 = vector.shape_cast %163 : vector<128xf32> to vector<128x1xf32>
    %165 = vector.broadcast %164 : vector<128x1xf32> to vector<128x256xf32>
    %166 = arith.subf %162, %165 : vector<128x256xf32>
    %167 = math.exp %166 : vector<128x256xf32>
    %cst_65 = arith.constant dense<0.000000e+00> : vector<128xf32>
    %168 = vector.multi_reduction <add>, %167, %cst_65 [1] : vector<128x256xf32> to vector<128xf32>
    %169 = vector.shape_cast %168 : vector<128xf32> to vector<128x1xf32>
    %170 = arith.truncf %167 : vector<128x256xf32> to vector<128x256xbf16>
    %171 = vector.extract_strided_slice %35 {offsets = [0, 0], sizes = [256, 128], strides = [1, 1]} : vector<256x512xbf16> to vector<256x128xbf16>
    %cst_66 = arith.constant dense<0.000000e+00> : vector<128x128xf32>
    %172 = tpu.matmul %170, %171, %cst_66 {dimension_numbers = #tpu.dot_dimension_numbers<[1], [0], [0], [1], [0, 0, 1, 1], [], []>} : vector<128x256xbf16>, vector<256x128xbf16>, vector<128x128xf32> -> vector<128x128xf32>
    %173 = tpu.reciprocal %169 {approx = true} : vector<128x1xf32> -> vector<128x1xf32>
    %174 = vector.broadcast %173 : vector<128x1xf32> to vector<128x128xf32>
    %175 = arith.mulf %172, %174 : vector<128x128xf32>
    %176 = arith.addf %159, %175 : vector<128x128xf32>
    %177 = vector.extract_strided_slice %158 {offsets = [0, 32], sizes = [128, 32], strides = [1, 1]} : vector<128x128xbf16> to vector<128x32xbf16>
    %178 = vector.extract_strided_slice %32 {offsets = [0, 32], sizes = [256, 32], strides = [1, 1]} : vector<256x128xbf16> to vector<256x32xbf16>
    %cst_67 = arith.constant dense<0.000000e+00> : vector<128x256xf32>
    %179 = tpu.matmul %177, %178, %cst_67 {dimension_numbers = #tpu.dot_dimension_numbers<[1], [1], [0], [0], [0, 0, 1, 0], [], []>} : vector<128x32xbf16>, vector<256x32xbf16>, vector<128x256xf32> -> vector<128x256xf32>
    %cst_68 = arith.constant dense<0xFF800000> : vector<128xf32>
    %180 = vector.multi_reduction <maximumf>, %179, %cst_68 [1] : vector<128x256xf32> to vector<128xf32>
    %181 = vector.shape_cast %180 : vector<128xf32> to vector<128x1xf32>
    %182 = vector.broadcast %181 : vector<128x1xf32> to vector<128x256xf32>
    %183 = arith.subf %179, %182 : vector<128x256xf32>
    %184 = math.exp %183 : vector<128x256xf32>
    %cst_69 = arith.constant dense<0.000000e+00> : vector<128xf32>
    %185 = vector.multi_reduction <add>, %184, %cst_69 [1] : vector<128x256xf32> to vector<128xf32>
    %186 = vector.shape_cast %185 : vector<128xf32> to vector<128x1xf32>
    %187 = arith.truncf %184 : vector<128x256xf32> to vector<128x256xbf16>
    %188 = vector.extract_strided_slice %35 {offsets = [0, 128], sizes = [256, 128], strides = [1, 1]} : vector<256x512xbf16> to vector<256x128xbf16>
    %cst_70 = arith.constant dense<0.000000e+00> : vector<128x128xf32>
    %189 = tpu.matmul %187, %188, %cst_70 {dimension_numbers = #tpu.dot_dimension_numbers<[1], [0], [0], [1], [0, 0, 1, 1], [], []>} : vector<128x256xbf16>, vector<256x128xbf16>, vector<128x128xf32> -> vector<128x128xf32>
    %190 = tpu.reciprocal %186 {approx = true} : vector<128x1xf32> -> vector<128x1xf32>
    %191 = vector.broadcast %190 : vector<128x1xf32> to vector<128x128xf32>
    %192 = arith.mulf %189, %191 : vector<128x128xf32>
    %193 = arith.addf %176, %192 : vector<128x128xf32>
    %194 = vector.extract_strided_slice %158 {offsets = [0, 64], sizes = [128, 32], strides = [1, 1]} : vector<128x128xbf16> to vector<128x32xbf16>
    %195 = vector.extract_strided_slice %32 {offsets = [0, 64], sizes = [256, 32], strides = [1, 1]} : vector<256x128xbf16> to vector<256x32xbf16>
    %cst_71 = arith.constant dense<0.000000e+00> : vector<128x256xf32>
    %196 = tpu.matmul %194, %195, %cst_71 {dimension_numbers = #tpu.dot_dimension_numbers<[1], [1], [0], [0], [0, 0, 1, 0], [], []>} : vector<128x32xbf16>, vector<256x32xbf16>, vector<128x256xf32> -> vector<128x256xf32>
    %cst_72 = arith.constant dense<0xFF800000> : vector<128xf32>
    %197 = vector.multi_reduction <maximumf>, %196, %cst_72 [1] : vector<128x256xf32> to vector<128xf32>
    %198 = vector.shape_cast %197 : vector<128xf32> to vector<128x1xf32>
    %199 = vector.broadcast %198 : vector<128x1xf32> to vector<128x256xf32>
    %200 = arith.subf %196, %199 : vector<128x256xf32>
    %201 = math.exp %200 : vector<128x256xf32>
    %cst_73 = arith.constant dense<0.000000e+00> : vector<128xf32>
    %202 = vector.multi_reduction <add>, %201, %cst_73 [1] : vector<128x256xf32> to vector<128xf32>
    %203 = vector.shape_cast %202 : vector<128xf32> to vector<128x1xf32>
    %204 = arith.truncf %201 : vector<128x256xf32> to vector<128x256xbf16>
    %205 = vector.extract_strided_slice %35 {offsets = [0, 256], sizes = [256, 128], strides = [1, 1]} : vector<256x512xbf16> to vector<256x128xbf16>
    %cst_74 = arith.constant dense<0.000000e+00> : vector<128x128xf32>
    %206 = tpu.matmul %204, %205, %cst_74 {dimension_numbers = #tpu.dot_dimension_numbers<[1], [0], [0], [1], [0, 0, 1, 1], [], []>} : vector<128x256xbf16>, vector<256x128xbf16>, vector<128x128xf32> -> vector<128x128xf32>
    %207 = tpu.reciprocal %203 {approx = true} : vector<128x1xf32> -> vector<128x1xf32>
    %208 = vector.broadcast %207 : vector<128x1xf32> to vector<128x128xf32>
    %209 = arith.mulf %206, %208 : vector<128x128xf32>
    %210 = arith.addf %193, %209 : vector<128x128xf32>
    %211 = vector.extract_strided_slice %158 {offsets = [0, 96], sizes = [128, 32], strides = [1, 1]} : vector<128x128xbf16> to vector<128x32xbf16>
    %212 = vector.extract_strided_slice %32 {offsets = [0, 96], sizes = [256, 32], strides = [1, 1]} : vector<256x128xbf16> to vector<256x32xbf16>
    %cst_75 = arith.constant dense<0.000000e+00> : vector<128x256xf32>
    %213 = tpu.matmul %211, %212, %cst_75 {dimension_numbers = #tpu.dot_dimension_numbers<[1], [1], [0], [0], [0, 0, 1, 0], [], []>} : vector<128x32xbf16>, vector<256x32xbf16>, vector<128x256xf32> -> vector<128x256xf32>
    %cst_76 = arith.constant dense<0xFF800000> : vector<128xf32>
    %214 = vector.multi_reduction <maximumf>, %213, %cst_76 [1] : vector<128x256xf32> to vector<128xf32>
    %215 = vector.shape_cast %214 : vector<128xf32> to vector<128x1xf32>
    %216 = vector.broadcast %215 : vector<128x1xf32> to vector<128x256xf32>
    %217 = arith.subf %213, %216 : vector<128x256xf32>
    %218 = math.exp %217 : vector<128x256xf32>
    %cst_77 = arith.constant dense<0.000000e+00> : vector<128xf32>
    %219 = vector.multi_reduction <add>, %218, %cst_77 [1] : vector<128x256xf32> to vector<128xf32>
    %220 = vector.shape_cast %219 : vector<128xf32> to vector<128x1xf32>
    %221 = arith.truncf %218 : vector<128x256xf32> to vector<128x256xbf16>
    %222 = vector.extract_strided_slice %35 {offsets = [0, 384], sizes = [256, 128], strides = [1, 1]} : vector<256x512xbf16> to vector<256x128xbf16>
    %cst_78 = arith.constant dense<0.000000e+00> : vector<128x128xf32>
    %223 = tpu.matmul %221, %222, %cst_78 {dimension_numbers = #tpu.dot_dimension_numbers<[1], [0], [0], [1], [0, 0, 1, 1], [], []>} : vector<128x256xbf16>, vector<256x128xbf16>, vector<128x128xf32> -> vector<128x128xf32>
    %224 = tpu.reciprocal %220 {approx = true} : vector<128x1xf32> -> vector<128x1xf32>
    %225 = vector.broadcast %224 : vector<128x1xf32> to vector<128x128xf32>
    %226 = arith.mulf %223, %225 : vector<128x128xf32>
    %227 = arith.addf %210, %226 : vector<128x128xf32>
    %c0_79 = arith.constant 0 : index
    %c0_80 = arith.constant 0 : index
    %228 = vector.load %arg7[%c0_79, %c0_80] : memref<1x128xf32, #tpu.memory_space<vmem>>, vector<1x128xf32>
    %229 = vector.broadcast %228 : vector<1x128xf32> to vector<128x128xf32>
    %230 = arith.addf %227, %229 : vector<128x128xf32>
    %231 = vector.extract_strided_slice %2 {offsets = [128, 0], sizes = [128, 128], strides = [1, 1]} : vector<256x128xf32> to vector<128x128xf32>
    %232 = arith.addf %230, %231 : vector<128x128xf32>
    %c0_81 = arith.constant 0 : index
    %c0_82 = arith.constant 0 : index
    %233 = vector.load %arg8[%c0_81, %c0_82] : memref<1x128xf32, #tpu.memory_space<vmem>>, vector<1x128xf32>
    %c0_83 = arith.constant 0 : index
    %c0_84 = arith.constant 0 : index
    %234 = vector.load %arg9[%c0_83, %c0_84] : memref<1x128xf32, #tpu.memory_space<vmem>>, vector<1x128xf32>
    %cst_85 = arith.constant dense<0.000000e+00> : vector<128xf32>
    %235 = vector.multi_reduction <add>, %232, %cst_85 [1] : vector<128x128xf32> to vector<128xf32>
    %236 = vector.shape_cast %235 : vector<128xf32> to vector<128x1xf32>
    %cst_86 = arith.constant 1.280000e+02 : f32
    %237 = vector.broadcast %cst_86 : f32 to vector<128x1xf32>
    %238 = arith.divf %236, %237 : vector<128x1xf32>
    %239 = vector.broadcast %238 : vector<128x1xf32> to vector<128x128xf32>
    %240 = arith.subf %232, %239 : vector<128x128xf32>
    %241 = arith.mulf %240, %240 : vector<128x128xf32>
    %cst_87 = arith.constant dense<0.000000e+00> : vector<128xf32>
    %242 = vector.multi_reduction <add>, %241, %cst_87 [1] : vector<128x128xf32> to vector<128xf32>
    %243 = vector.shape_cast %242 : vector<128xf32> to vector<128x1xf32>
    %cst_88 = arith.constant 1.280000e+02 : f32
    %244 = vector.broadcast %cst_88 : f32 to vector<128x1xf32>
    %245 = arith.divf %243, %244 : vector<128x1xf32>
    %cst_89 = arith.constant 9.99999974E-6 : f32
    %246 = vector.broadcast %cst_89 : f32 to vector<128x1xf32>
    %247 = arith.addf %245, %246 : vector<128x1xf32>
    %248 = math.rsqrt %247 : vector<128x1xf32>
    %249 = vector.broadcast %248 : vector<128x1xf32> to vector<128x128xf32>
    %250 = arith.mulf %240, %249 : vector<128x128xf32>
    %251 = vector.broadcast %233 : vector<1x128xf32> to vector<128x128xf32>
    %252 = arith.mulf %250, %251 : vector<128x128xf32>
    %253 = vector.broadcast %234 : vector<1x128xf32> to vector<128x128xf32>
    %254 = arith.addf %252, %253 : vector<128x128xf32>
    %255 = arith.truncf %254 : vector<128x128xf32> to vector<128x128xbf16>
    %c0_90 = arith.constant 0 : index
    %c0_91 = arith.constant 0 : index
    %256 = vector.load %arg10[%c0_90, %c0_91] : memref<128x128xbf16, #tpu.memory_space<vmem>>, vector<128x128xbf16>
    %cst_92 = arith.constant dense<0.000000e+00> : vector<128x128xf32>
    %257 = tpu.matmul %255, %256, %cst_92 {dimension_numbers = #tpu.dot_dimension_numbers<[1], [0], [0], [1], [0, 0, 1, 1], [], []>} : vector<128x128xbf16>, vector<128x128xbf16>, vector<128x128xf32> -> vector<128x128xf32>
    %c0_93 = arith.constant 0 : index
    %c0_94 = arith.constant 0 : index
    %258 = vector.load %arg11[%c0_93, %c0_94] : memref<1x128xf32, #tpu.memory_space<vmem>>, vector<1x128xf32>
    %259 = vector.broadcast %258 : vector<1x128xf32> to vector<128x128xf32>
    %260 = arith.addf %257, %259 : vector<128x128xf32>
    %cst_95 = arith.constant 5.000000e-01 : f32
    %261 = vector.broadcast %cst_95 : f32 to vector<128x128xf32>
    %262 = arith.mulf %261, %260 : vector<128x128xf32>
    %cst_96 = arith.constant 0.707106769 : f32
    %263 = vector.broadcast %cst_96 : f32 to vector<128x128xf32>
    %264 = arith.mulf %260, %263 : vector<128x128xf32>
    %265 = math.erf %264 : vector<128x128xf32>
    %cst_97 = arith.constant 1.000000e+00 : f32
    %266 = vector.broadcast %cst_97 : f32 to vector<128x128xf32>
    %267 = arith.addf %266, %265 : vector<128x128xf32>
    %268 = arith.mulf %262, %267 : vector<128x128xf32>
    %269 = arith.truncf %268 : vector<128x128xf32> to vector<128x128xbf16>
    %c0_98 = arith.constant 0 : index
    %c0_99 = arith.constant 0 : index
    %270 = vector.load %arg12[%c0_98, %c0_99] : memref<128x128xbf16, #tpu.memory_space<vmem>>, vector<128x128xbf16>
    %cst_100 = arith.constant dense<0.000000e+00> : vector<128x128xf32>
    %271 = tpu.matmul %269, %270, %cst_100 {dimension_numbers = #tpu.dot_dimension_numbers<[1], [0], [0], [1], [0, 0, 1, 1], [], []>} : vector<128x128xbf16>, vector<128x128xbf16>, vector<128x128xf32> -> vector<128x128xf32>
    %c0_101 = arith.constant 0 : index
    %c0_102 = arith.constant 0 : index
    %272 = vector.load %arg13[%c0_101, %c0_102] : memref<1x128xf32, #tpu.memory_space<vmem>>, vector<1x128xf32>
    %273 = vector.broadcast %272 : vector<1x128xf32> to vector<128x128xf32>
    %274 = arith.addf %271, %273 : vector<128x128xf32>
    %275 = arith.addf %274, %232 : vector<128x128xf32>
    %276 = tpu.transpose %275, [1, 0] : vector<128x128xf32> -> vector<128x128xf32>
    %c0_103 = arith.constant 0 : index
    %c0_104 = arith.constant 0 : index
    %c128 = arith.constant 128 : index
    %277 = vector.load %arg14[%c0_103, %c0_104, %c128] : memref<1x128x256xf32, #tpu.memory_space<vmem>>, vector<1x128x128xf32>
    %278 = vector.shape_cast %277 : vector<1x128x128xf32> to vector<128x128xf32>
    %279 = vector.shape_cast %276 : vector<128x128xf32> to vector<1x128x128xf32>
    tpu.vector_store %arg14[%c0_103, %c0_104, %c128], %279 {strides = array<i32>} : memref<1x128x256xf32, #tpu.memory_space<vmem>>, vector<1x128x128xf32>,
    return
  }
  func.func @transform_0(%arg0: i32) -> (i32, i32, i32) {
    %c0_i32 = arith.constant 0 : i32
    %c0_i32_0 = arith.constant 0 : i32
    %c0_i32_1 = arith.constant 0 : i32
    return %arg0, %c0_i32, %c0_i32_0 : i32, i32, i32
  }
  func.func @transform_1(%arg0: i32) -> (i32, i32) {
    %c0_i32 = arith.constant 0 : i32
    %c0_i32_0 = arith.constant 0 : i32
    %c0_i32_1 = arith.constant 0 : i32
    return %c0_i32, %c0_i32_0 : i32, i32
  }
  func.func @transform_2(%arg0: i32) -> (i32, i32) {
    %c0_i32 = arith.constant 0 : i32
    %c0_i32_0 = arith.constant 0 : i32
    %c0_i32_1 = arith.constant 0 : i32
    return %c0_i32, %c0_i32_0 : i32, i32
  }
  func.func @transform_3(%arg0: i32) -> (i32, i32) {
    %c0_i32 = arith.constant 0 : i32
    %c0_i32_0 = arith.constant 0 : i32
    %c0_i32_1 = arith.constant 0 : i32
    return %c0_i32, %c0_i32_0 : i32, i32
  }
  func.func @transform_4(%arg0: i32) -> (i32, i32) {
    %c0_i32 = arith.constant 0 : i32
    %c0_i32_0 = arith.constant 0 : i32
    %c0_i32_1 = arith.constant 0 : i32
    return %c0_i32, %c0_i32_0 : i32, i32
  }
  func.func @transform_5(%arg0: i32) -> (i32, i32) {
    %c0_i32 = arith.constant 0 : i32
    %c0_i32_0 = arith.constant 0 : i32
    %c0_i32_1 = arith.constant 0 : i32
    return %c0_i32, %c0_i32_0 : i32, i32
  }
  func.func @transform_6(%arg0: i32) -> (i32, i32) {
    %c0_i32 = arith.constant 0 : i32
    %c0_i32_0 = arith.constant 0 : i32
    %c0_i32_1 = arith.constant 0 : i32
    return %c0_i32, %c0_i32_0 : i32, i32
  }
  func.func @transform_7(%arg0: i32) -> (i32, i32) {
    %c0_i32 = arith.constant 0 : i32
    %c0_i32_0 = arith.constant 0 : i32
    %c0_i32_1 = arith.constant 0 : i32
    return %c0_i32, %c0_i32_0 : i32, i32
  }
  func.func @transform_8(%arg0: i32) -> (i32, i32) {
    %c0_i32 = arith.constant 0 : i32
    %c0_i32_0 = arith.constant 0 : i32
    %c0_i32_1 = arith.constant 0 : i32
    return %c0_i32, %c0_i32_0 : i32, i32
  }
  func.func @transform_9(%arg0: i32) -> (i32, i32) {
    %c0_i32 = arith.constant 0 : i32
    %c0_i32_0 = arith.constant 0 : i32
    %c0_i32_1 = arith.constant 0 : i32
    return %c0_i32, %c0_i32_0 : i32, i32
  }
  func.func @transform_10(%arg0: i32) -> (i32, i32) {
    %c0_i32 = arith.constant 0 : i32
    %c0_i32_0 = arith.constant 0 : i32
    %c0_i32_1 = arith.constant 0 : i32
    return %c0_i32, %c0_i32_0 : i32, i32
  }
  func.func @transform_11(%arg0: i32) -> (i32, i32) {
    %c0_i32 = arith.constant 0 : i32
    %c0_i32_0 = arith.constant 0 : i32
    %c0_i32_1 = arith.constant 0 : i32
    return %c0_i32, %c0_i32_0 : i32, i32
  }
  func.func @transform_12(%arg0: i32) -> (i32, i32) {
    %c0_i32 = arith.constant 0 : i32
    %c0_i32_0 = arith.constant 0 : i32
    %c0_i32_1 = arith.constant 0 : i32
    return %c0_i32, %c0_i32_0 : i32, i32
  }
  func.func @transform_13(%arg0: i32) -> (i32, i32, i32) {
    %c0_i32 = arith.constant 0 : i32
    %c0_i32_0 = arith.constant 0 : i32
    %c0_i32_1 = arith.constant 0 : i32
    return %arg0, %c0_i32, %c0_i32_0 : i32, i32, i32
  }
}

</mosaic_0001>

<bundles_post_ra>
// kernel: tpu_custom_call.1
= control target key start
LH: loop header
LB: loop body
LE: loop exit
PB: predicated region body
PF: predicated region fallthrough
CT: control target
= control target key end

     0   :  { %s15466_s0 = inlined_call_operand.hbm [shape: f32[2,128,256], index: 0, kind: input, shape index: {}]   ;;  %s15467_s1 = inlined_call_operand.vmem [shape: f32[1,128], index: 1, kind: input, shape index: {}]   ;;  %s15468_s2 = inlined_call_operand.hbm [shape: f32[1,128], index: 2, kind: input, shape index: {}]   ;;  %s15469_s3 = inlined_call_operand.hbm [shape: bf16[128,256], index: 3, kind: input, shape index: {}]   ;;  %s15470_s4 = inlined_call_operand.vmem [shape: f32[1,256], index: 4, kind: input, shape index: {}]   ;;  %s15471_s5 = inlined_call_operand.hbm [shape: bf16[128,512], index: 5, kind: input, shape index: {}]   ;;  %s15472_s6 = inlined_call_operand.vmem [shape: f32[1,128], index: 6, kind: input, shape index: {}]   ;;  %s15473_s7 = inlined_call_operand.vmem [shape: f32[1,128], index: 7, kind: input, shape index: {}]   ;;  %s15474_s8 = inlined_call_operand.vmem [shape: f32[1,128], index: 8, kind: input, shape index: {}]   ;;  %s15475_s9 = inlined_call_operand.hbm [shape: bf16[128,128], index: 9, kind: input, shape index: {}]   ;;  %s15476_s10 = inlined_call_operand.vmem [shape: f32[1,128], index: 10, kind: input, shape index: {}]   ;;  %s15477_s11 = inlined_call_operand.hbm [shape: bf16[128,128], index: 11, kind: input, shape index: {}]   ;;  %s15478_s12 = inlined_call_operand.vmem [shape: f32[1,128], index: 12, kind: input, shape index: {}]   ;;  %s15479_s13 = inlined_call_operand.hbm [shape: f32[2,128,256], index: 13, kind: output, shape index: {}]  }
   0x1   :  { %15774 = sst [smem:[#allocation260_spill]] %s15468_s2 }
   0x2   :  { %15775 = sst [smem:[#allocation261_spill]] %s15469_s3 }
   0x3   :  { %15776 = sst [smem:[#allocation262_spill]] %s15471_s5 }
   0x4   :  { %15777 = sst [smem:[#allocation263_spill]] %s15475_s9 }
   0x5   :  { %15778 = sst [smem:[#allocation264_spill]] %s15477_s11 }
   0x6   :  { %18 = vsyncpa [#allocation3], 0 }
   0x7   :  { %20 = vsyncpa [#allocation3 + $0x1], 0 }
   0x8   :  { %21 = vsyncpa [#allocation6], 0 }
   0x9   :  { %22 = vsyncpa [#allocation9], 0 }
   0xa   :  { %23 = vsyncpa [#allocation12], 0 }
   0xb   :  { %24 = vsyncpa [#allocation4], 0 }
   0xc   :  { %26 = vsyncpa [#allocation4 + $0x1], 0  ;;  %s10755_s25 = smov 0   ;;  %s10757_s26 = smov 0  }
   0xd   :  { %s10759_s27 = smov 0   ;;  %s10761_s28 = smov 0  }
   0xe LB: > { %15779 = sst [smem:[#allocation19_spill]] %s10660_s27  ;;  %s10666_s29 = smov [#allocation5]   ;;  %s10664_s28 = sphi %s10761_s28, %s16606_s28   ;;  %s10660_s27 = sphi %s10759_s27, %s16603_s27   ;;  %s10656_s26 = sphi %s10757_s26, %s16605_s26   ;;  %s10652_s25 = sphi %s10755_s25, %s16604_s25  }
   0xf   : > { %s357_s30 = sshll.u32 %s10666_s29, 4  ;;  %s10776_s14 = sadd.s32 4294967295, %s10664_s28   ;;  %s358_s30 = int_to_ptr.vmem [resolvable:$true] %s357_s30 }
  0x10   : > { %p8036_p0 = scmp.ge.s32.totalorder %s10664_s28, 1  ;;  %p15482_p1 = scmp.eq.s32.totalorder %s10776_s14, 0 }
  0x11   : > { %p341_p2 = scmp.lt.s32.totalorder %s10664_s28, 3  ;;  %s10667_s16 = smov [#allocation8]  }
  0x12   : > { %s383_s17 = sshll.u32 %s10667_s16, 4  ;;  %s10668_s19 = smov [#allocation7]   ;;  %s10788_s17 = int_to_ptr.vmem [resolvable:$true] %s383_s17 }
  0x13   : > { %p10781_p3 = pnand %p8036_p0, %p341_p2  ;;  %s367_s20 = sshll.u32 %s10668_s19, 4  ;;  %s10796_s20 = int_to_ptr.vmem [resolvable:$true] %s367_s20 }
  0x14   : > { %s10441_s22 = scalar_lea.vmem %s358_s30, 16  ;;  %s10448_s23 = scalar_lea.vmem %s358_s30, 32 }
  0x15   : > { %s15780_s15 = scalar_select %p10781_p3, 1, 0 }
  0x16   : > { %p9281_p5 = pneg %p10781_p3  ;;  %p10442_p8 = scmp.ne.s32.totalorder %s358_s30, %s10441_s22 }
  0x17   : > { %p10449_p11 = scmp.lt.s32.totalorder %s358_s30, %s358_s30  ;;  %p10450_p12 = scmp.lt.s32.totalorder %s10448_s23, %s10441_s22 }
  0x18   : > { %p10792_p6 = pnand %p9281_p5, %p15482_p1 }
  0x19   : > { %p10451_p13 = por %p10450_p12, %p10449_p11 }
  0x1a   : > { %p10800_p7 = pneg %p10792_p6 }
  0x1c   : > { %p10444_p9 = pnand %p10442_p8, %p10800_p7 }
  0x1e   : > { %p10445_p10 = pneg %p10444_p9 }
  0x20   : > { %p10452_p0 = pnand %p10451_p13, %p10445_p10 }
  0x22   : > { %10455 = shalt.err (!%p10452_p0)
}
  0x23   : > { %s15783_s2 = sld [smem:[#allocation260_spill]]  ;;  %s10467_s16 = scalar_lea.vmem %s10788_s17, 4096 }
  0x24   : > { %p10468_p2 = scmp.ne.s32.totalorder %s10788_s17, %s10467_s16  ;;  %p10475_p9 = scmp.lt.s32.totalorder %s10788_s17, %s10788_s17 }
  0x25   : > { %p10476_p11 = scmp.lt.s32.totalorder %s10467_s16, %s10467_s16 }
  0x26   : > { %p10470_p5 = pnand %p10468_p2, %p10800_p7 }
  0x27   : > { %p10477_p10 = por %p10476_p11, %p10475_p9 }
  0x28   : > { %p10471_p8 = pneg %p10470_p5 }
  0x29   : > { %9284 = dma.hbm_to_vmem [thread:$0]  (!%p10792_p6), %s15783_s2, 16, %s358_s30, [#allocation6]  }
  0x2a   : > { %p10478_p12 = pnand %p10477_p10, %p10471_p8 }
  0x2c   : > { %10481 = shalt.err (!%p10478_p12)
}
  0x2d   : > { %s15480_s19 = smov 256   ;;  %s15481_s22 = smov 16  }
  0x2e   : > { %s15784_s5 = sld [smem:[#allocation262_spill]]  ;;  %s10493_s24 = scalar_lea.vmem %s10796_s20, 2048 }
  0x2f   : > { %p10494_p13 = scmp.ne.s32.totalorder %s10796_s20, %s10493_s24  ;;  %p10501_p5 = scmp.lt.s32.totalorder %s10796_s20, %s10796_s20 }
  0x30   : > { %p10502_p8 = scmp.lt.s32.totalorder %s10493_s24, %s10493_s24 }
  0x31   : > { %p10496_p0 = pnand %p10494_p13, %p10800_p7 }
  0x32   : > { %p10503_p9 = por %p10502_p8, %p10501_p5 }
  0x33   : > { %p10497_p2 = pneg %p10496_p0 }
  0x34   : > { %9290 = dma.hbm_to_vmem [thread:$0]  (!%p10792_p6), %s15784_s5, 4096, %s10788_s17, [#allocation9], %s15480_s19, %s15480_s19, %s15481_s22  }
  0x35   : > { %p10504_p11 = pnand %p10503_p9, %p10497_p2 }
  0x37   : > { %10507 = shalt.err (!%p10504_p11)
}
  0x38   : > { %s10671_s29 = smov 128   ;;  %s10672_s16 = smov 8  }
  0x39   : > { %s15785_s3 = sld [smem:[#allocation261_spill]]  ;;  %s10673_s17 = smov [#allocation10]  }
  0x3a   : > { %s405_s23 = sshll.u32 %s10673_s17, 4  ;;  %s406_s23 = int_to_ptr.vmem [resolvable:$true] %s405_s23 }
  0x3b   : > { %s10519_s19 = scalar_lea.vmem %s406_s23, 1024  ;;  %p10527_p0 = scmp.lt.s32.totalorder %s406_s23, %s406_s23 }
  0x3c   : > { %p10520_p10 = scmp.ne.s32.totalorder %s406_s23, %s10519_s19  ;;  %p10528_p2 = scmp.lt.s32.totalorder %s10519_s19, %s10519_s19 }
  0x3e   : > { %p10522_p12 = pnand %p10520_p10, %p10800_p7  ;;  %p10529_p5 = por %p10528_p2, %p10527_p0 }
  0x3f   : > { %9287 = dma.hbm_to_vmem [thread:$0]  (!%p10792_p6), %s15785_s3, 2048, %s10796_s20, [#allocation6], %s10671_s29, %s10671_s29, %s10672_s16  }
  0x40   : > { %p10523_p13 = pneg %p10522_p12 }
  0x42   : > { %p10530_p8 = pnand %p10529_p5, %p10523_p13 }
  0x44   : > { %10533 = shalt.err (!%p10530_p8)
}
  0x45   : > { %s10674_s24 = smov 64   ;;  %s10675_s22 = smov 4  }
  0x46   : > { %s15786_s9 = sld [smem:[#allocation263_spill]]  ;;  %s10676_s29 = smov [#allocation11]  }
  0x47   : > { %s421_s16 = sshll.u32 %s10676_s29, 4  ;;  %s422_s16 = int_to_ptr.vmem [resolvable:$true] %s421_s16 }
  0x48   : > { %s10545_s30 = scalar_lea.vmem %s422_s16, 1024  ;;  %p10553_p12 = scmp.lt.s32.totalorder %s422_s16, %s422_s16 }
  0x49   : > { %p10546_p9 = scmp.ne.s32.totalorder %s422_s16, %s10545_s30  ;;  %p10554_p13 = scmp.lt.s32.totalorder %s10545_s30, %s10545_s30 }
  0x4b   : > { %p10548_p11 = pnand %p10546_p9, %p10800_p7  ;;  %p10555_p0 = por %p10554_p13, %p10553_p12 }
  0x4c   : > { %9293 = dma.hbm_to_vmem [thread:$0]  (!%p10792_p6), %s15786_s9, 1024, %s406_s23, [#allocation9], %s10674_s24, %s10674_s24, %s10675_s22  }
  0x4d   : > { %p10549_p10 = pneg %p10548_p11 }
  0x4f   : > { %p10556_p2 = pnand %p10555_p0, %p10549_p10 }
  0x51   : > { %10559 = shalt.err (!%p10556_p2)
}
  0x52   : > { %s15787_s11 = sld [smem:[#allocation264_spill]]  ;;  %s8035_s21 = sadd.s32 4294967294, %s10664_s28  }
  0x53   : > { %s10854_s18 = sadd.s32 1, %s10664_s28   ;;  %s39_s23 = sadd.s32 1, %s10660_s27 }
  0x54   : > { %s36_s2 = ssub.s32 %s10664_s28, %s10854_s18  ;;  %p46_p7 = scmp.ne.s32.totalorder %s10660_s27, %s10656_s26 }
  0x55   : > { %p37_p5 = scmp.eq.s32.totalorder %s36_s2, 0  ;;  %p47_p8 = scmp.eq.s32.totalorder %s10664_s28, 0 }
  0x56   : > { %p52_p9 = scmp.ne.s32.totalorder %s10656_s26, %s10652_s25  ;;  %p328_p11 = scmp.eq.s32.totalorder %s10776_s14, 1 }
  0x57   : > { %s10866_s20 = scalar_select %p37_p5, %s10660_s27, %s39_s23  }
  0x58   : > { %9296 = dma.hbm_to_vmem [thread:$0]  (!%p10792_p6), %s15787_s11, 1024, %s422_s16, [#allocation12], %s10674_s24, %s10674_s24, %s10675_s22  }
  0x59   : > { %15788 = sst [smem:[#allocation20_spill]] %s10866_s20  ;;  %p48_p10 = por %p47_p8, %p46_p7 }
  0x5a   : > { %p10870_p12 = por %p15482_p1, %p52_p9  ;;  %p10874_p6 = por %p328_p11, %p46_p7 }
  0x5b   : > { %p334_p13 = scmp.eq.s32.totalorder %s8035_s21, 1  ;;  %p9310_p0 = scmp.lt.s32.totalorder %s10664_s28, 2 }
  0x5c   : > { %s15789_s29 = scalar_select %p10870_p12, 1, 0 }
  0x5d   : > { %s15790_s22 = scalar_select %p10874_p6, 1, 0 }
  0x5e   : > { %s438_s24 = sand.u32 1, %s10660_s27   ;;  %p10880_p2 = por %p334_p13, %p52_p9 }
  0x5f   : > { %s8043_s30 = sshll.u32 %s438_s24, 8  ;;  %s8215_s19 = sshll.u32 %s10664_s28, 12 }
  0x60   : > { %s15791_s16 = scalar_select %p10880_p2, 1, 0 }
  0x61   : > { %s10888_s2 = scalar_lea.hbm %s15466_s0, %s8215_s19  ;;  %s442_s3 = scalar_lea.vmem [#allocation2], %s8043_s30 }
  0x62   : > { %s449_s5 = sshll.u32 %s442_s3, 4  ;;  %p10890_p7 = pnand %p9310_p0, %p48_p10  ;;  %s10894_s5 = int_to_ptr.vmem [resolvable:$true] %s449_s5 }
  0x63   : > { %s10896_s9 = scalar_lea.sflag [#allocation3], %s438_s24  ;;  %s10560_s11 = scalar_lea.hbm %s10888_s2, 4096 }
  0x64   : > { %p10561_p5 = scmp.ne.s32.totalorder %s10888_s2, %s10560_s11  ;;  %p10562_p8 = pneg %p10890_p7 }
  0x65   : > { %s10565_s30 = scalar_lea.hbm %s15466_s0, 8192  ;;  %p10566_p10 = scmp.lt.s32.totalorder %s10888_s2, %s15466_s0 }
  0x66   : > { %p10563_p9 = pnand %p10562_p8, %p10561_p5  ;;  %p10567_p13 = scmp.lt.s32.totalorder %s10565_s30, %s10560_s11 }
  0x68   : > { %p10564_p11 = pneg %p10563_p9  ;;  %p10568_p0 = por %p10567_p13, %p10566_p10 }
  0x6a   : > { %p10569_p4 = pnand %p10568_p0, %p10564_p11 }
  0x6c   : > { %10572 = shalt.err (!%p10569_p4)
}
  0x6d   : > { %s10573_s24 = scalar_lea.vmem %s10894_s5, 4096  ;;  %s10677_s20 = smov [#allocation2]  }
  0x6e   : > { %p10574_p1 = scmp.ne.s32.totalorder %s10894_s5, %s10573_s24  ;;  %s10578_s27 = sshll.u32 %s10677_s20, 4  ;;  %s10579_s27 = int_to_ptr.vmem [resolvable:$false] %s10578_s27 }
  0x6f   : > { %s10580_s19 = scalar_lea.vmem %s10579_s27, 8192  ;;  %p10581_p9 = scmp.lt.s32.totalorder %s10894_s5, %s10579_s27 }
  0x70   : > { %p10576_p2 = pnand %p10574_p1, %p10562_p8  ;;  %p10582_p6 = scmp.lt.s32.totalorder %s10580_s19, %s10573_s24 }
  0x72   : > { %p10577_p5 = pneg %p10576_p2  ;;  %p10583_p12 = por %p10582_p6, %p10581_p9 }
  0x74   : > { %p10584_p3 = pnand %p10583_p12, %p10577_p5 }
  0x76   : > { %10587 = shalt.err (!%p10584_p3)
}
  0x77   : > { %s15793_s11 = smov 16   ;;  %s15794_s17 = smov 256  }
  0x78   : > { %9300 = dma.hbm_to_vmem [thread:$0]  (!%p10890_p7), %s10888_s2, 4096, %s10894_s5, %s10896_s9, %s15794_s17, %s15794_s17, %s15793_s11  }
  0x79   : > { %p15795_p1 = scmp.ne.s32.totalorder %s15780_s15, 0 }
  0x7b   : > { %461 = sbr.rel (%p15795_p1) target bundleno = 4480 (0x1180), region = 72 }
  0x80   : > { %s10923_s20 = sand.u32 1, %s10656_s26   ;;  %p15796_p3 = scmp.ne.s32.totalorder %s15789_s29, 0 }
  0x81   : > { %s8047_s27 = sshll.u32 %s10923_s20, 8  ;;  %s464_s30 = scalar_lea.sflag [#allocation3], %s10923_s20 }
  0x82   : > { %s10929_s21 = scalar_lea.vmem [#allocation2], %s8047_s27 }
  0x83   : > { %10631 = dma.done.wait (%p15796_p3), %s464_s30, 4096  }
  0x84   : > { %10633 = vsyncadd (%p15796_p3), %s464_s30, 4294963200  ;;  %p15797_p4 = scmp.eq.s32.totalorder %s10776_s14, 0 }
  0x86   : > { %10635 = dma.done.wait (%p15797_p4), [#allocation6], 2064   ;;  %p15798_p12 = pmov %p15797_p4 }
  0x87   : > { %p15799_p6 = pmov %p15797_p4 }
  0x88   : > { %10637 = vsyncadd (%p15798_p12), [#allocation6], 4294965232 }
  0x89   : > { %10639 = dma.done.wait (%p15799_p6), [#allocation9], 5120   ;;  %p15800_p2 = pmov %p15797_p4 }
  0x8b   : > { %10641 = vsyncadd (%p15800_p2), [#allocation9], 4294962176  ;;  %p15801_p7 = pmov %p15800_p2 }
  0x8c   : > { %p15802_p8 = pmov %p15800_p2 }
  0x8d   : > { %10643 = dma.done.wait (%p15801_p7), [#allocation12], 1024  }
  0x8e   : > { %10645 = vsyncadd (%p15802_p8), [#allocation12], 4294966272  ;;  %v531_v0 = vld [vmem:[%s10929_s21] sm:$0xff]  ;;  %v533_v1 = vld [vmem:[%s10929_s21 + $0x10] sm:$0xff]  ;;  %vm2049_vm0 = vcmask 261120   ;;  %s10679_s2 = smov 96  }
  0x8f   : > { %563 = vxpose.xlu0.b32.start [1/16] %v531_v0, 128  ;;  %v535_v2 = vld [vmem:[%s10929_s21 + $0x20] sm:$0xff]  ;;  %v537_v3 = vld [vmem:[%s10929_s21 + $0x30] sm:$0xff]  ;;  %v532_v24 = vld [vmem:[%s10929_s21 + $0x8] sm:$0xff]  ;;  %s10680_s3 = smov 64   ;;  %s10681_s23 = smov 32  }
  0x90   : > { %v539_v4 = vld [vmem:[%s10929_s21 + $0x40] sm:$0xff]  ;;  %v541_v5 = vld [vmem:[%s10929_s21 + $0x50] sm:$0xff]  ;;  %v534_v25 = vld [vmem:[%s10929_s21 + $0x18] sm:$0xff]  ;;  %s15352_s9 = scalar_lea.vmem [#allocation13], %s8047_s27  ;;  %s8216_s27 = sshll.u32 %s10776_s14, 12 }
  0x91   : > { %v543_v6 = vld [vmem:[%s10929_s21 + $0x60] sm:$0xff]  ;;  %v545_v7 = vld [vmem:[%s10929_s21 + $0x70] sm:$0xff]  ;;  %v536_v26 = vld [vmem:[%s10929_s21 + $0x28] sm:$0xff]  ;;  %s7914_s15 = sshll.u32 %s15352_s9, 4  ;;  %p16599_p10 = scmp.ne.s32.totalorder %s15790_s22, 0  ;;  %s15422_s15 = int_to_ptr.vmem [resolvable:$true] %s7914_s15 }
  0x92   : > { %v547_v8 = vld [vmem:[%s10929_s21 + $0x80] sm:$0xff]  ;;  %v549_v9 = vld [vmem:[%s10929_s21 + $0x90] sm:$0xff]  ;;  %v538_v27 = vld [vmem:[%s10929_s21 + $0x38] sm:$0xff]  ;;  %s10588_s24 = scalar_lea.vmem %s15422_s15, 4096  ;;  %s10682_s14 = smov [#allocation13]  }
  0x93   : > { %564 = vxpose.xlu0.b32.cont [2/16] %v533_v1, 128  ;;  %v551_v10 = vld [vmem:[%s10929_s21 + $0xa0] sm:$0xff]  ;;  %v553_v11 = vld [vmem:[%s10929_s21 + $0xb0] sm:$0xff]  ;;  %v540_v28 = vld [vmem:[%s10929_s21 + $0x48] sm:$0xff]  ;;  %p10589_p11 = scmp.ne.s32.totalorder %s15422_s15, %s10588_s24  ;;  %s10592_s19 = sshll.u32 %s10682_s14, 4  ;;  %s10593_s19 = int_to_ptr.vmem [resolvable:$false] %s10592_s19 }
  0x94   : > { %v555_v12 = vld [vmem:[%s10929_s21 + $0xc0] sm:$0xff]  ;;  %v557_v13 = vld [vmem:[%s10929_s21 + $0xd0] sm:$0xff]  ;;  %v542_v29 = vld [vmem:[%s10929_s21 + $0x58] sm:$0xff]  ;;  %s10594_s11 = scalar_lea.vmem %s10593_s19, 8192  ;;  %p10595_p5 = scmp.lt.s32.totalorder %s15422_s15, %s10593_s19 }
  0x95   : > { %v559_v14 = vld [vmem:[%s10929_s21 + $0xe0] sm:$0xff]  ;;  %v561_v15 = vld [vmem:[%s10929_s21 + $0xf0] sm:$0xff]  ;;  %v544_v30 = vld [vmem:[%s10929_s21 + $0x68] sm:$0xff]  ;;  %p10590_p13 = pnand %p10589_p11, %p16599_p10  ;;  %p10596_p9 = scmp.lt.s32.totalorder %s10594_s11, %s10588_s24 }
  0x96   : > { %v546_v31 = vld [vmem:[%s10929_s21 + $0x78] sm:$0xff]  ;;  %v548_v32 = vld [vmem:[%s10929_s21 + $0x88] sm:$0xff] }
  0x97   : > { %565 = vxpose.xlu0.b32.cont [3/16] %v535_v2, 128  ;;  %v550_v33 = vld [vmem:[%s10929_s21 + $0x98] sm:$0xff]  ;;  %v552_v34 = vld [vmem:[%s10929_s21 + $0xa8] sm:$0xff]  ;;  %p10591_p0 = pneg %p10590_p13  ;;  %p10597_p1 = por %p10596_p9, %p10595_p5 }
  0x98   : > { %v554_v35 = vld [vmem:[%s10929_s21 + $0xb8] sm:$0xff]  ;;  %v556_v36 = vld [vmem:[%s10929_s21 + $0xc8] sm:$0xff] }
  0x99   : > { %v558_v37 = vld [vmem:[%s10929_s21 + $0xd8] sm:$0xff]  ;;  %v560_v38 = vld [vmem:[%s10929_s21 + $0xe8] sm:$0xff]  ;;  %p10598_p3 = pnand %p10597_p1, %p10591_p0 }
  0x9a   : > { %v562_v39 = vld [vmem:[%s10929_s21 + $0xf8] sm:$0xff] }
  0x9b   : > { %566 = vxpose.xlu0.b32.cont [4/16] %v537_v3, 128 }
  0x9f   : > { %567 = vxpose.xlu0.b32.cont [5/16] %v539_v4, 128 }
  0xa3   : > { %568 = vxpose.xlu0.b32.cont [6/16] %v541_v5, 128 }
  0xa7   : > { %569 = vxpose.xlu0.b32.cont [7/16] %v543_v6, 128 }
  0xab   : > { %570 = vxpose.xlu0.b32.cont [8/16] %v545_v7, 128 }
  0xaf   : > { %571 = vxpose.xlu0.b32.cont [9/16] %v547_v8, 128 }
  0xb3   : > { %572 = vxpose.xlu0.b32.cont [10/16] %v549_v9, 128 }
  0xb7   : > { %573 = vxpose.xlu0.b32.cont [11/16] %v551_v10, 128 }
  0xbb   : > { %574 = vxpose.xlu0.b32.cont [12/16] %v553_v11, 128 }
  0xbf   : > { %575 = vxpose.xlu0.b32.cont [13/16] %v555_v12, 128 }
  0xc3   : > { %576 = vxpose.xlu0.b32.cont [14/16] %v557_v13, 128 }
  0xc7   : > { %577 = vxpose.xlu0.b32.cont [15/16] %v559_v14, 128 }
  0xcb   : > { %578 = vxpose.xlu0.b32.end [16/16] %v561_v15, 128 }
 0x10b   : > { %v10963_v16 = vpop.trf.xlu0 }
 0x10c   : > { %15803 = vst [vmem:[#allocation21_spill] sm:$0xff] %v10963_v16  ;;  %629 = vadd.xlane.f32.xlu1 %v10963_v16 }
 0x10f   : > { %v10966_v17 = vpop.trf.xlu0 }
 0x110   : > { %15804 = vst [vmem:[#allocation22_spill] sm:$0xff] %v10966_v17  ;;  %631 = vadd.xlane.f32.xlu1 %v10966_v17 }
 0x113   : > { %v10969_v18 = vpop.trf.xlu0 }
 0x114   : > { %15805 = vst [vmem:[#allocation23_spill] sm:$0xff] %v10969_v18  ;;  %633 = vadd.xlane.f32.xlu1 %v10969_v18 }
 0x117   : > { %v10972_v19 = vpop.trf.xlu0 }
 0x118   : > { %15806 = vst [vmem:[#allocation24_spill] sm:$0xff] %v10972_v19  ;;  %635 = vadd.xlane.f32.xlu1 %v10972_v19 }
 0x11b   : > { %v10975_v20 = vpop.trf.xlu0 }
 0x11c   : > { %15807 = vst [vmem:[#allocation25_spill] sm:$0xff] %v10975_v20  ;;  %637 = vadd.xlane.f32.xlu1 %v10975_v20 }
 0x11f   : > { %v10978_v21 = vpop.trf.xlu0 }
 0x120   : > { %15808 = vst [vmem:[#allocation26_spill] sm:$0xff] %v10978_v21  ;;  %639 = vadd.xlane.f32.xlu1 %v10978_v21 }
 0x123   : > { %v10981_v22 = vpop.trf.xlu0 }
 0x124   : > { %15809 = vst [vmem:[#allocation27_spill] sm:$0xff] %v10981_v22  ;;  %641 = vadd.xlane.f32.xlu1 %v10981_v22 }
 0x127   : > { %v10984_v23 = vpop.trf.xlu0 }
 0x128   : > { %15810 = vst [vmem:[#allocation28_spill] sm:$0xff] %v10984_v23  ;;  %643 = vadd.xlane.f32.xlu1 %v10984_v23 }
 0x12b   : > { %v11009_v49 = vpop.trf.xlu0 }
 0x12c   : > { %15812 = vst [vmem:[#allocation30_spill] sm:$0xff] %v11009_v49 }
 0x12f   : > { %v11015_v52 = vpop.trf.xlu0 }
 0x130   : > { %15814 = vst [vmem:[#allocation32_spill] sm:$0xff] %v11015_v52 }
 0x133   : > { %v11027_v57 = vpop.trf.xlu0 }
 0x134   : > { %15817 = vst [vmem:[#allocation35_spill] sm:$0xff] %v11027_v57 }
 0x137   : > { %v11033_v59 = vpop.trf.xlu0 }
 0x138   : > { %15819 = vst [vmem:[#allocation37_spill] sm:$0xff] %v11033_v59 }
 0x13b   : > { %v11040_v62 = vpop.trf.xlu0 }
 0x13c   : > { %15822 = vst [vmem:[#allocation40_spill] sm:$0xff] %v11040_v62 }
 0x13f   : > { %v11046_v0 = vpop.trf.xlu0 }
 0x140   : > { %15824 = vst [vmem:[#allocation42_spill] sm:$0xff] %v11046_v0 }
 0x143   : > { %v11056_v5 = vpop.trf.xlu0 }
 0x144   : > { %15827 = vst [vmem:[#allocation45_spill] sm:$0xff] %v11056_v5 }
 0x147   : > { %v11065_v8 = vpop.trf.xlu0 }
 0x148   : > { %15829 = vst [vmem:[#allocation47_spill] sm:$0xff] %v11065_v8 }
 0x15b   : > { %595 = vxpose.xlu1.b32.start [1/16] %v532_v24, 128 }
 0x15f   : > { %596 = vxpose.xlu1.b32.cont [2/16] %v534_v25, 128 }
 0x163   : > { %597 = vxpose.xlu1.b32.cont [3/16] %v536_v26, 128 }
 0x167   : > { %598 = vxpose.xlu1.b32.cont [4/16] %v538_v27, 128 }
 0x16b   : > { %599 = vxpose.xlu1.b32.cont [5/16] %v540_v28, 128 }
 0x16f   : > { %600 = vxpose.xlu1.b32.cont [6/16] %v542_v29, 128  ;;  %v9366_v29 = vld [vmem:[#allocation7 + $0x74] ss:$8 sps:$4 sm:$0xff]  }
 0x170   : > { %1182 = vmatprep.subr.bf16.mxu0 %v9366_v29  ;;  %v9401_v29 = vld [vmem:[#allocation8 + $0x40] ss:$16 sps:$4 sm:$0xff]  }
 0x173   : > { %601 = vxpose.xlu1.b32.cont [7/16] %v544_v30, 128  ;;  %v9368_v30 = vld [vmem:[#allocation8 + $0xe4] ss:$16 sps:$4 sm:$0xff]  }
 0x174   : > { %1599 = vmatprep.subr.bf16.mxu1 %v9368_v30  ;;  %v9402_v30 = vld [vmem:[#allocation7 + $0x14] ss:$8 sps:$4 sm:$0xff]  }
 0x177   : > { %602 = vxpose.xlu1.b32.cont [8/16] %v546_v31, 128  ;;  %v9370_v31 = vld [vmem:[#allocation7 + $0x70] ss:$8 sps:$4 sm:$0xff]  }
 0x178   : > { %1183 = vmatpush1.bf16.msra.mxu0 %v9370_v31  ;;  %v9404_v31 = vld [vmem:[#allocation8 + $0x24] ss:$16 sps:$4 sm:$0xff]  }
 0x17b   : > { %603 = vxpose.xlu1.b32.cont [9/16] %v548_v32, 128  ;;  %v9371_v32 = vld [vmem:[#allocation8 + $0xe0] ss:$16 sps:$4 sm:$0xff]  }
 0x17c   : > { %1600 = vmatpush1.bf16.msra.mxu1 %v9371_v32  ;;  %v9406_v32 = vld [vmem:[#allocation7 + $0x10] ss:$8 sps:$4 sm:$0xff]  }
 0x17f   : > { %604 = vxpose.xlu1.b32.cont [10/16] %v550_v33, 128 }
 0x183   : > { %605 = vxpose.xlu1.b32.cont [11/16] %v552_v34, 128 }
 0x187   : > { %606 = vxpose.xlu1.b32.cont [12/16] %v554_v35, 128  ;;  %v9372_v35 = vld [vmem:[#allocation7 + $0x64] ss:$8 sps:$4 sm:$0xff]  }
 0x188   : > { %1184 = vmatprep.subr.bf16.mxu0 %v9372_v35  ;;  %v9410_v35 = vld [vmem:[#allocation8 + $0x4] ss:$16 sps:$4 sm:$0xff]  }
 0x18b   : > { %607 = vxpose.xlu1.b32.cont [13/16] %v556_v36, 128  ;;  %v9374_v36 = vld [vmem:[#allocation8 + $0xc4] ss:$16 sps:$4 sm:$0xff]  }
 0x18c   : > { %1601 = vmatprep.subr.bf16.mxu1 %v9374_v36  ;;  %v9412_v36 = vld [vmem:[#allocation7] ss:$8 sps:$4 sm:$0xff]  }
 0x18f   : > { %608 = vxpose.xlu1.b32.cont [14/16] %v558_v37, 128  ;;  %v9376_v37 = vld [vmem:[#allocation7 + $0x60] ss:$8 sps:$4 sm:$0xff]  }
 0x190   : > { %1185 = vmatpush1.bf16.msra.mxu0 %v9376_v37  ;;  %v9413_v37 = vld [vmem:[#allocation8] ss:$16 sps:$4 sm:$0xff]  }
 0x193   : > { %609 = vxpose.xlu1.b32.cont [15/16] %v560_v38, 128  ;;  %v9377_v38 = vld [vmem:[#allocation8 + $0xc0] ss:$16 sps:$4 sm:$0xff]  }
 0x194   : > { %1602 = vmatpush1.bf16.msra.mxu1 %v9377_v38  ;;  %v15487_v38 = vmov 0  }
 0x195   : > { %v630_v40 = vpop.xlane.xlu1 %629  ;;  %1214 = vmatprep.mubr.bf16.mxu0 %v15487_v38  ;;  %1631 = vmatprep.mubr.bf16.mxu1 %v15487_v38 }
 0x196   : > { %v694_v10 = vmul.f32 0.0078125, %v630_v40  ;;  %v9378_v40 = vld [vmem:[#allocation7 + $0x54] ss:$8 sps:$4 sm:$0xff]  }
 0x197   : > { %610 = vxpose.xlu1.b32.end [16/16] %v562_v39, 128  ;;  %1186 = vmatprep.subr.bf16.mxu0 %v9378_v40 }
 0x198   : > { %v11074_v12 = vsub.f32 %v10963_v16, %v694_v10  ;;  %v9390_v10 = vld [vmem:[#allocation7 + $0x34] ss:$8 sps:$4 sm:$0xff]  }
 0x199   : > { %v632_v41 = vpop.xlane.xlu1 %631 }
 0x19a   : > { %v695_v11 = vmul.f32 0.0078125, %v632_v41  ;;  %v758_v14 = vmul.f32 %v11074_v12, %v11074_v12  ;;  %v9380_v41 = vld [vmem:[#allocation8 + $0xa4] ss:$16 sps:$4 sm:$0xff]  }
 0x19b   : > { %1603 = vmatprep.subr.bf16.mxu1 %v9380_v41 }
 0x19c   : > { %v11080_v15 = vsub.f32 %v10966_v17, %v695_v11  ;;  %v9392_v11 = vld [vmem:[#allocation8 + $0x64] ss:$16 sps:$4 sm:$0xff]  }
 0x19d   : > { %v634_v42 = vpop.xlane.xlu1 %633 }
 0x19e   : > { %v696_v13 = vmul.f32 0.0078125, %v634_v42  ;;  %v759_v25 = vmul.f32 %v11080_v15, %v11080_v15  ;;  %v9382_v42 = vld [vmem:[#allocation7 + $0x50] ss:$8 sps:$4 sm:$0xff]  }
 0x19f   : > { %1187 = vmatpush1.bf16.msra.mxu0 %v9382_v42 }
 0x1a0   : > { %v11085_v26 = vsub.f32 %v10969_v18, %v696_v13  ;;  %v9394_v13 = vld [vmem:[#allocation7 + $0x30] ss:$8 sps:$4 sm:$0xff]  }
 0x1a1   : > { %v636_v43 = vpop.xlane.xlu1 %635 }
 0x1a2   : > { %v697_v24 = vmul.f32 0.0078125, %v636_v43  ;;  %v760_v27 = vmul.f32 %v11085_v26, %v11085_v26  ;;  %v9383_v43 = vld [vmem:[#allocation8 + $0xa0] ss:$16 sps:$4 sm:$0xff]  }
 0x1a3   : > { %1604 = vmatpush1.bf16.msra.mxu1 %v9383_v43 }
 0x1a4   : > { %v11090_v28 = vsub.f32 %v10972_v19, %v697_v24  ;;  %v9396_v24 = vld [vmem:[#allocation7 + $0x24] ss:$8 sps:$4 sm:$0xff]  }
 0x1a5   : > { %v11003_v44 = vpop.xlane.xlu1 %637 }
 0x1a6   : > { %v698_v33 = vmul.f32 0.0078125, %v11003_v44  ;;  %v761_v34 = vmul.f32 %v11090_v28, %v11090_v28 }
 0x1a8   : > { %v11096_v39 = vsub.f32 %v10975_v20, %v698_v33  ;;  %v9407_v33 = vld [vmem:[#allocation8 + $0x20] ss:$16 sps:$4 sm:$0xff]  }
 0x1a9   : > { %v640_v45 = vpop.xlane.xlu1 %639 }
 0x1aa   : > { %v699_v50 = vmul.f32 0.0078125, %v640_v45  ;;  %v762_v45 = vmul.f32 %v11096_v39, %v11096_v39 }
 0x1ac   : > { %v11018_v53 = vsub.f32 %v10978_v21, %v699_v50  ;;  %v9386_v50 = vld [vmem:[#allocation8 + $0x84] ss:$16 sps:$4 sm:$0xff]  }
 0x1ad   : > { %v11005_v46 = vpop.xlane.xlu1 %641  ;;  %1605 = vmatprep.subr.bf16.mxu1 %v9386_v50 }
 0x1ae   : > { %v763_v55 = vmul.f32 %v11018_v53, %v11018_v53  ;;  %v700_v44 = vmul.f32 0.0078125, %v11005_v46  ;;  %v9395_v46 = vld [vmem:[#allocation8 + $0x60] ss:$16 sps:$4 sm:$0xff]  }
 0x1b1   : > { %v644_v47 = vpop.xlane.xlu1 %643 }
 0x1b2   : > { %v701_v1 = vmul.f32 0.0078125, %v644_v47  ;;  %v9384_v47 = vld [vmem:[#allocation7 + $0x44] ss:$8 sps:$4 sm:$0xff]  }
 0x1b3   : > { %1188 = vmatprep.subr.bf16.mxu0 %v9384_v47 }
 0x1b4   : > { %v11052_v3 = vsub.f32 %v10984_v23, %v701_v1  ;;  %v9389_v1 = vld [vmem:[#allocation8 + $0x80] ss:$16 sps:$4 sm:$0xff]  }
 0x1b5   : > { %1606 = vmatpush1.bf16.msra.mxu1 %v9389_v1 }
 0x1b6   : > { %v765_v6 = vmul.f32 %v11052_v3, %v11052_v3  ;;  %1607 = vmatprep.subr.bf16.mxu1 %v9392_v11 }
 0x1b9   : > { %1608 = vmatpush1.bf16.msra.mxu1 %v9395_v46 }
 0x1d7   : > { %v11007_v48 = vpop.trf.xlu1 }
 0x1d8   : > { %15811 = vst [vmem:[#allocation29_spill] sm:$0xff] %v11007_v48  ;;  %661 = vadd.xlane.f32.xlu0 %v11007_v48 }
 0x1db   : > { %v11012_v51 = vpop.trf.xlu1 }
 0x1dc   : > { %15813 = vst [vmem:[#allocation31_spill] sm:$0xff] %v11012_v51  ;;  %663 = vadd.xlane.f32.xlu0 %v11012_v51 }
 0x1df   : > { %v11020_v54 = vpop.trf.xlu1 }
 0x1e0   : > { %15815 = vst [vmem:[#allocation33_spill] sm:$0xff] %v11020_v54  ;;  %665 = vadd.xlane.f32.xlu1 %v11020_v54 }
 0x1e3   : > { %v11025_v56 = vpop.trf.xlu1 }
 0x1e4   : > { %15816 = vst [vmem:[#allocation34_spill] sm:$0xff] %v11025_v56  ;;  %800 = vadd.xlane.f32.xlu1 %v763_v55  ;;  %667 = vadd.xlane.f32.xlu0 %v11025_v56  ;;  %v9388_v55 = vld [vmem:[#allocation7 + $0x40] ss:$8 sps:$4 sm:$0xff]  }
 0x1e5   : > { %1189 = vmatpush1.bf16.msra.mxu0 %v9388_v55 }
 0x1e6   : > { %1190 = vmatprep.subr.bf16.mxu0 %v9390_v10 }
 0x1e7   : > { %v11030_v58 = vpop.trf.xlu1 }
 0x1e8   : > { %15818 = vst [vmem:[#allocation36_spill] sm:$0xff] %v11030_v58  ;;  %645 = vadd.xlane.f32.xlu0 %v11009_v49 }
 0x1e9   : > { %1191 = vmatpush1.bf16.msra.mxu0 %v9394_v13 }
 0x1ea   : > { %1192 = vmatprep.subr.bf16.mxu0 %v9396_v24 }
 0x1eb   : > { %v11035_v60 = vpop.trf.xlu1 }
 0x1ec   : > { %15820 = vst [vmem:[#allocation38_spill] sm:$0xff] %v11035_v60  ;;  %647 = vadd.xlane.f32.xlu0 %v11015_v52 }
 0x1ef   : > { %v11038_v61 = vpop.trf.xlu1 }
 0x1f0   : > { %15821 = vst [vmem:[#allocation39_spill] sm:$0xff] %v11038_v61  ;;  %649 = vadd.xlane.f32.xlu0 %v11027_v57 }
 0x1f3   : > { %v11043_v63 = vpop.trf.xlu1 }
 0x1f4   : > { %15823 = vst [vmem:[#allocation41_spill] sm:$0xff] %v11043_v63  ;;  %651 = vadd.xlane.f32.xlu0 %v11033_v59 }
 0x1f7   : > { %v11048_v2 = vpop.trf.xlu1 }
 0x1f8   : > { %15825 = vst [vmem:[#allocation43_spill] sm:$0xff] %v11048_v2  ;;  %653 = vadd.xlane.f32.xlu0 %v11040_v62 }
 0x1fb   : > { %v11054_v4 = vpop.trf.xlu1 }
 0x1fc   : > { %15826 = vst [vmem:[#allocation44_spill] sm:$0xff] %v11054_v4  ;;  %679 = vadd.xlane.f32.xlu1 %v11054_v4  ;;  %655 = vadd.xlane.f32.xlu0 %v11046_v0 }
 0x1ff   : > { %v11062_v7 = vpop.trf.xlu1 }
 0x200   : > { %15828 = vst [vmem:[#allocation46_spill] sm:$0xff] %v11062_v7  ;;  %804 = vadd.xlane.f32.xlu1 %v765_v6  ;;  %657 = vadd.xlane.f32.xlu0 %v11056_v5  ;;  %v11103_v6 = vsub.f32 %v10981_v22, %v700_v44 }
 0x203   : > { %v11067_v9 = vpop.trf.xlu1 }
 0x204   : > { %15830 = vst [vmem:[#allocation48_spill] sm:$0xff] %v11067_v9  ;;  %683 = vadd.xlane.f32.xlu1 %v11067_v9  ;;  %659 = vadd.xlane.f32.xlu0 %v11065_v8 }
 0x208   : > { %669 = vadd.xlane.f32.xlu0 %v11030_v58 }
 0x20c   : > { %671 = vadd.xlane.f32.xlu0 %v11035_v60 }
 0x210   : > { %673 = vadd.xlane.f32.xlu0 %v11038_v61 }
 0x214   : > { %790 = vadd.xlane.f32.xlu0 %v758_v14  ;;  %v764_v14 = vmul.f32 %v11103_v6, %v11103_v6 }
 0x218   : > { %792 = vadd.xlane.f32.xlu0 %v759_v25  ;;  %v9398_v25 = vld [vmem:[#allocation8 + $0x44] ss:$16 sps:$4 sm:$0xff]  }
 0x219   : > { %1609 = vmatprep.subr.bf16.mxu1 %v9398_v25 }
 0x21a   : > { %1610 = vmatpush1.bf16.msra.mxu1 %v9401_v29 }
 0x21b   : > { %1611 = vmatprep.subr.bf16.mxu1 %v9404_v31 }
 0x21c   : > { %794 = vadd.xlane.f32.xlu0 %v760_v27  ;;  %v9400_v27 = vld [vmem:[#allocation7 + $0x20] ss:$8 sps:$4 sm:$0xff]  }
 0x21d   : > { %1193 = vmatpush1.bf16.msra.mxu0 %v9400_v27 }
 0x21e   : > { %1194 = vmatprep.subr.bf16.mxu0 %v9402_v30  ;;  %1612 = vmatpush1.bf16.msra.mxu1 %v9407_v33 }
 0x21f   : > { %1613 = vmatprep.subr.bf16.mxu1 %v9410_v35 }
 0x220   : > { %796 = vadd.xlane.f32.xlu0 %v761_v34  ;;  %v9408_v34 = vld [vmem:[#allocation7 + $0x4] ss:$8 sps:$4 sm:$0xff]  }
 0x221   : > { %1195 = vmatpush1.bf16.msra.mxu0 %v9406_v32 }
 0x222   : > { %1196 = vmatprep.subr.bf16.mxu0 %v9408_v34  ;;  %1614 = vmatpush1.bf16.msra.mxu1 %v9413_v37 }
 0x224   : > { %675 = vadd.xlane.f32.xlu0 %v11043_v63 }
 0x225   : > { %1197 = vmatpush1.bf16.msra.mxu0 %v9412_v36 }
 0x228   : > { %798 = vadd.xlane.f32.xlu0 %v762_v45  ;;  %v11111_v45 = vpop.trf.xlu1 }
 0x229   : > { %15831 = vst [vmem:[#allocation49_spill] sm:$0xff] %v11111_v45 }
 0x22c   : > { %677 = vadd.xlane.f32.xlu0 %v11048_v2  ;;  %v11121_v11 = vpop.trf.xlu1 }
 0x22d   : > { %15832 = vst [vmem:[#allocation50_spill] sm:$0xff] %v11121_v11 }
 0x230   : > { %802 = vadd.xlane.f32.xlu0 %v764_v14  ;;  %v11131_v30 = vpop.trf.xlu1 }
 0x231   : > { %15833 = vst [vmem:[#allocation51_spill] sm:$0xff] %v11131_v30 }
 0x234   : > { %681 = vadd.xlane.f32.xlu0 %v11062_v7  ;;  %v11143_v36 = vpop.trf.xlu1 }
 0x235   : > { %15834 = vst [vmem:[#allocation52_spill] sm:$0xff] %v11143_v36 }
 0x261   : > { %v662_v40 = vpop.xlane.xlu0 %661 }
 0x265   : > { %v664_v41 = vpop.xlane.xlu0 %663 }
 0x26d   : > { %v668_v42 = vpop.xlane.xlu0 %667 }
 0x271   : > { %v646_v43 = vpop.xlane.xlu0 %645 }
 0x272   : > { %v702_v44 = vmul.f32 0.0078125, %v646_v43 }
 0x274   : > { %v11114_v47 = vsub.f32 %v11009_v49, %v702_v44 }
 0x275   : > { %v648_v50 = vpop.xlane.xlu0 %647 }
 0x276   : > { %v703_v55 = vmul.f32 0.0078125, %v648_v50  ;;  %v766_v1 = vmul.f32 %v11114_v47, %v11114_v47 }
 0x278   : > { %806 = vadd.xlane.f32.xlu0 %v766_v1  ;;  %v11119_v10 = vsub.f32 %v11015_v52, %v703_v55  ;;  %v710_v55 = vmul.f32 0.0078125, %v662_v40 }
 0x279   : > { %v650_v13 = vpop.xlane.xlu0 %649 }
 0x27a   : > { %v704_v46 = vmul.f32 0.0078125, %v650_v13  ;;  %v767_v14 = vmul.f32 %v11119_v10, %v11119_v10 }
 0x27c   : > { %685 = vadd.xlane.f32.xlu0 %v11111_v45  ;;  %808 = vadd.xlane.f32.xlu1 %v767_v14  ;;  %v11127_v24 = vsub.f32 %v11027_v57, %v704_v46  ;;  %v666_v14 = vpop.xlane.xlu1 %665 }
 0x27d   : > { %v652_v25 = vpop.xlane.xlu0 %651 }
 0x27e   : > { %v705_v27 = vmul.f32 0.0078125, %v652_v25  ;;  %v768_v29 = vmul.f32 %v11127_v24, %v11127_v24 }
 0x280   : > { %687 = vadd.xlane.f32.xlu1 %v11121_v11  ;;  %810 = vadd.xlane.f32.xlu0 %v768_v29  ;;  %v11135_v31 = vsub.f32 %v11033_v59, %v705_v27  ;;  %v711_v27 = vmul.f32 0.0078125, %v664_v41  ;;  %v713_v41 = vmul.f32 0.0078125, %v668_v42 }
 0x281   : > { %v654_v32 = vpop.xlane.xlu0 %653 }
 0x282   : > { %v706_v33 = vmul.f32 0.0078125, %v654_v32  ;;  %v769_v34 = vmul.f32 %v11135_v31, %v11135_v31  ;;  %v11157_v32 = vsub.f32 %v11007_v48, %v710_v55 }
 0x284   : > { %689 = vadd.xlane.f32.xlu0 %v11131_v30  ;;  %812 = vadd.xlane.f32.xlu1 %v769_v34  ;;  %v11141_v35 = vsub.f32 %v11040_v62, %v706_v33  ;;  %v712_v33 = vmul.f32 0.0078125, %v666_v14 }
 0x285   : > { %v656_v37 = vpop.xlane.xlu0 %655 }
 0x286   : > { %v707_v43 = vmul.f32 0.0078125, %v656_v37  ;;  %v770_v44 = vmul.f32 %v11141_v35, %v11141_v35 }
 0x288   : > { %691 = vadd.xlane.f32.xlu1 %v11143_v36  ;;  %814 = vadd.xlane.f32.xlu0 %v770_v44  ;;  %v11149_v50 = vsub.f32 %v11046_v0, %v707_v43  ;;  %v774_v44 = vmul.f32 %v11157_v32, %v11157_v32 }
 0x289   : > { %v658_v1 = vpop.xlane.xlu0 %657 }
 0x28a   : > { %v708_v13 = vmul.f32 0.0078125, %v658_v1  ;;  %v771_v46 = vmul.f32 %v11149_v50, %v11149_v50  ;;  %v11167_v1 = vsub.f32 %v11012_v51, %v711_v27  ;;  %v11179_v27 = vsub.f32 %v11025_v56, %v713_v41 }
 0x28c   : > { %816 = vadd.xlane.f32.xlu1 %v771_v46  ;;  %v11154_v25 = vsub.f32 %v11056_v5, %v708_v13  ;;  %v11172_v46 = vsub.f32 %v11020_v54, %v712_v33 }
 0x28d   : > { %v660_v29 = vpop.xlane.xlu0 %659 }
 0x28e   : > { %v709_v34 = vmul.f32 0.0078125, %v660_v29  ;;  %v772_v40 = vmul.f32 %v11154_v25, %v11154_v25  ;;  %v775_v29 = vmul.f32 %v11167_v1, %v11167_v1 }
 0x290   : > { %818 = vadd.xlane.f32.xlu0 %v772_v40  ;;  %v11162_v37 = vsub.f32 %v11065_v8, %v709_v34  ;;  %v776_v40 = vmul.f32 %v11172_v46, %v11172_v46 }
 0x291   : > { %v670_v43 = vpop.xlane.xlu0 %669 }
 0x292   : > { %v714_v13 = vmul.f32 0.0078125, %v670_v43  ;;  %v773_v55 = vmul.f32 %v11162_v37, %v11162_v37 }
 0x294   : > { %822 = vadd.xlane.f32.xlu0 %v774_v44  ;;  %820 = vadd.xlane.f32.xlu1 %v773_v55  ;;  %v11182_v42 = vsub.f32 %v11030_v58, %v714_v13  ;;  %v777_v44 = vmul.f32 %v11179_v27, %v11179_v27 }
 0x295   : > { %v672_v14 = vpop.xlane.xlu0 %671 }
 0x296   : > { %v715_v34 = vmul.f32 0.0078125, %v672_v14  ;;  %v778_v55 = vmul.f32 %v11182_v42, %v11182_v42 }
 0x298   : > { %826 = vadd.xlane.f32.xlu0 %v776_v40  ;;  %824 = vadd.xlane.f32.xlu1 %v775_v29  ;;  %v11189_v14 = vsub.f32 %v11035_v60, %v715_v34 }
 0x299   : > { %v674_v33 = vpop.xlane.xlu0 %673 }
 0x29a   : > { %v716_v43 = vmul.f32 0.0078125, %v674_v33  ;;  %v779_v29 = vmul.f32 %v11189_v14, %v11189_v14  ;;  %v801_v33 = vpop.xlane.xlu1 %800 }
 0x29c   : > { %828 = vadd.xlane.f32.xlu1 %v777_v44  ;;  %830 = vadd.xlane.f32.xlu0 %v778_v55  ;;  %v11192_v41 = vsub.f32 %v11038_v61, %v716_v43  ;;  %v859_v61 = vmul.f32 0.0078125, %v801_v33 }
 0x29d   : > { %v791_v13 = vpop.xlane.xlu0 %790 }
 0x29e   : > { %v854_v38 = vmul.f32 0.0078125, %v791_v13  ;;  %v780_v40 = vmul.f32 %v11192_v41, %v11192_v41  ;;  %v680_v44 = vpop.xlane.xlu1 %679  ;;  %v891_v8 = vadd.f32 1e-05, %v859_v61 }
 0x2a0   : > { %v886_v58 = vadd.f32 1e-05, %v854_v38  ;;  %832 = vadd.xlane.f32.xlu1 %v779_v29  ;;  %834 = vadd.xlane.f32.xlu0 %v780_v40  ;;  %v719_v38 = vmul.f32 0.0078125, %v680_v44 }
 0x2a1   : > { %v793_v56 = vpop.xlane.xlu0 %792 }
 0x2a2   : > { %9470 = vrsqrt.f32 %v886_v58  ;;  %v855_v34 = vmul.f32 0.0078125, %v793_v56  ;;  %v805_v51 = vpop.xlane.xlu1 %804 }
 0x2a3   : > { %v861_v58 = vmul.f32 0.0078125, %v805_v51  ;;  %v11210_v51 = vld [vmem:[%s15467_s1] ss:$0 sm:$0xff] }
 0x2a4   : > { %v887_v55 = vadd.f32 1e-05, %v855_v34 }
 0x2a5   : > { %v795_v60 = vpop.xlane.xlu0 %794 }
 0x2a6   : > { %9472 = vrsqrt.f32 %v887_v55  ;;  %v856_v43 = vmul.f32 0.0078125, %v795_v60  ;;  %v684_v56 = vpop.xlane.xlu1 %683 }
 0x2a8   : > { %v888_v13 = vadd.f32 1e-05, %v856_v43 }
 0x2a9   : > { %v797_v54 = vpop.xlane.xlu0 %796 }
 0x2aa   : > { %9474 = vrsqrt.f32 %v888_v13  ;;  %v857_v48 = vmul.f32 0.0078125, %v797_v54 }
 0x2ac   : > { %v889_v5 = vadd.f32 1e-05, %v857_v48  ;;  %v11205_v48 = vsub.f32 %v11054_v4, %v719_v38 }
 0x2ad   : > { %v676_v0 = vpop.xlane.xlu0 %675 }
 0x2ae   : > { %9476 = vrsqrt.f32 %v889_v5  ;;  %v717_v29 = vmul.f32 0.0078125, %v676_v0  ;;  %v893_v5 = vadd.f32 1e-05, %v861_v58  ;;  %v721_v0 = vmul.f32 0.0078125, %v684_v56  ;;  %v11217_v58 = vld [vmem:[#allocation5] ss:$0 sm:$0xff] }
 0x2af   : > { %v9471_v40 = vpop.eup %9470  ;;  %9478 = vrsqrt.f32 %v891_v8  ;;  %v783_v38 = vmul.f32 %v11205_v48, %v11205_v48 }
 0x2b0   : > { %v11199_v34 = vsub.f32 %v11043_v63, %v717_v29  ;;  %v950_v60 = vmul.f32 %v9471_v40, %v11074_v12  ;;  %v11220_v56 = vsub.f32 %v11067_v9, %v721_v0 }
 0x2b1   : > { %v799_v33 = vpop.xlane.xlu0 %798 }
 0x2b2   : > { %v858_v55 = vmul.f32 0.0078125, %v799_v33  ;;  %v781_v54 = vmul.f32 %v11199_v34, %v11199_v34  ;;  %v988_v44 = vmul.f32 %v11210_v51, %v950_v60  ;;  %v785_v0 = vmul.f32 %v11220_v56, %v11220_v56 }
 0x2b3   : > { %v9473_v61 = vpop.eup %9472 }
 0x2b4   : > { %v890_v8 = vadd.f32 1e-05, %v858_v55  ;;  %836 = vadd.xlane.f32.xlu1 %v781_v54  ;;  %v951_v12 = vmul.f32 %v9473_v61, %v11080_v15  ;;  %v1026_v15 = vadd.f32 %v11217_v58, %v988_v44 }
 0x2b5   : > { %v678_v43 = vpop.xlane.xlu0 %677 }
 0x2b6   : > { %9480 = vrsqrt.f32 %v890_v8  ;;  %v718_v13 = vmul.f32 0.0078125, %v678_v43  ;;  %v989_v29 = vmul.f32 %v11210_v51, %v951_v12 }
 0x2b7   : > { %v9475_v40 = vpop.eup %9474  ;;  %9482 = vrsqrt.f32 %v893_v5 }
 0x2b8   : > { %v11223_v33 = vsub.f32 %v11048_v2, %v718_v13  ;;  %840 = vadd.xlane.f32.xlu1 %v783_v38  ;;  %v1027_v60 = vadd.f32 %v11217_v58, %v989_v29  ;;  %v952_v55 = vmul.f32 %v9475_v40, %v11085_v26  ;;  %v15835_v40 = vmov 0  }
 0x2b9   : > { %v803_v54 = vpop.xlane.xlu0 %802 }
 0x2ba   : > { %v860_v61 = vmul.f32 0.0078125, %v803_v54  ;;  %v11228_v8 = vpack.c.bf16 %v1027_v60, %v1026_v15  ;;  %v782_v5 = vmul.f32 %v11223_v33, %v11223_v33  ;;  %v990_v26 = vmul.f32 %v11210_v51, %v952_v55 }
 0x2bb   : > { %v9477_v12 = vpop.eup %9476 }
 0x2bc   : > { %v892_v43 = vadd.f32 1e-05, %v860_v61  ;;  %1215 = vmatmul.mubr.bf16.vlgmr.msra.gmra.mxu0 %v11228_v8  ;;  %1632 = vmatmul.mubr.bf16.vlgmr.msra.gmra.mxu1 %v11228_v8  ;;  %v953_v44 = vmul.f32 %v9477_v12, %v11090_v28  ;;  %v9479_v13 = vpop.eup %9478  ;;  %v1028_v54 = vadd.f32 %v11217_v58, %v990_v26 }
 0x2bd   : > { %844 = vadd.xlane.f32.xlu1 %v785_v0  ;;  %838 = vadd.xlane.f32.xlu0 %v782_v5  ;;  %v682_v38 = vpop.xlane.xlu0 %681  ;;  %v955_v55 = vmul.f32 %v9479_v13, %v11018_v53 }
 0x2be   : > { %9484 = vrsqrt.f32 %v892_v43  ;;  %v720_v29 = vmul.f32 0.0078125, %v682_v38  ;;  %1224 = vmatprep.mubr.bf16.mxu0 %v15835_v40  ;;  %1641 = vmatprep.mubr.bf16.mxu1 %v15835_v40  ;;  %v991_v15 = vmul.f32 %v11210_v51, %v953_v44 }
 0x2bf   : > { %v993_v44 = vmul.f32 %v11210_v51, %v955_v55 }
 0x2c0   : > { %v11242_v60 = vsub.f32 %v11062_v7, %v720_v29  ;;  %v1029_v28 = vadd.f32 %v11217_v58, %v991_v15 }
 0x2c1   : > { %v1031_v13 = vadd.f32 %v11217_v58, %v993_v44 }
 0x2c2   : > { %v11247_v61 = vpack.c.bf16 %v1029_v28, %v1028_v54  ;;  %v784_v5 = vmul.f32 %v11242_v60, %v11242_v60 }
 0x2c3   : > { %v9481_v12 = vpop.eup %9480 }
 0x2c4   : > { %v9483_v0 = vpop.eup %9482  ;;  %1225 = vmatmul.mubr.bf16.gmra.mxu0 %v11247_v61  ;;  %1642 = vmatmul.mubr.bf16.gmra.mxu1 %v11247_v61  ;;  %v954_v43 = vmul.f32 %v9481_v12, %v11096_v39 }
 0x2c5   : > { %842 = vadd.xlane.f32.xlu0 %v784_v5  ;;  %1234 = vmatprep.mubr.bf16.mxu0 %v15835_v40  ;;  %v957_v38 = vmul.f32 %v9483_v0, %v11052_v3 }
 0x2c6   : > { %1651 = vmatprep.mubr.bf16.mxu1 %v15835_v40  ;;  %v992_v53 = vmul.f32 %v11210_v51, %v954_v43  ;;  %v11284_v43 = vld [vmem:[%s15470_s4] sm:$0x3] }
 0x2c7   : > { %v995_v54 = vmul.f32 %v11210_v51, %v957_v38 }
 0x2c8   : > { %v1030_v26 = vadd.f32 %v11217_v58, %v992_v53 }
 0x2c9   : > { %v1033_v3 = vadd.f32 %v11217_v58, %v995_v54 }
 0x2ca   : > { %v11261_v29 = vpack.c.bf16 %v1031_v13, %v1030_v26 }
 0x2cb   : > { %v9485_v15 = vpop.eup %9484 }
 0x2cc   : > { %1235 = vmatmul.mubr.bf16.gmra.mxu0 %v11261_v29  ;;  %1652 = vmatmul.mubr.bf16.gmra.mxu1 %v11261_v29  ;;  %v956_v39 = vmul.f32 %v9485_v15, %v11103_v6  ;;  %v1092_v6 = vlaneseq }
 0x2cd   : > { %1244 = vmatprep.mubr.bf16.mxu0 %v15835_v40  ;;  %1661 = vmatprep.mubr.bf16.mxu1 %v15835_v40 }
 0x2ce   : > { %v994_v28 = vmul.f32 %v11210_v51, %v956_v39  ;;  %v11278_v12 = vshrl.u32 %v1092_v6, 7 }
 0x2d0   : > { %v1032_v55 = vadd.f32 %v11217_v58, %v994_v28  ;;  %v1098_v0 = vsub.s32 1, %v11278_v12 }
 0x2d2   : > { %v11272_v5 = vpack.c.bf16 %v1033_v3, %v1032_v55  ;;  %v11287_v44 = vrot.slane %v11284_v43, %v1098_v0 }
 0x2d4   : > { %1245 = vmatmul.mubr.bf16.gmra.mxu0 %v11272_v5  ;;  %1662 = vmatmul.mubr.bf16.gmra.mxu1 %v11272_v5 }
 0x2d5   : > { %1254 = vmatprep.mubr.bf16.mxu0 %v15835_v40  ;;  %1671 = vmatprep.mubr.bf16.mxu1 %v15835_v40 }
 0x301   : > { %v807_v53 = vpop.xlane.xlu0 %806 }
 0x302   : > { %v862_v26 = vmul.f32 0.0078125, %v807_v53 }
 0x304   : > { %v894_v13 = vadd.f32 1e-05, %v862_v26 }
 0x305   : > { %v809_v38 = vpop.xlane.xlu1 %808  ;;  %v686_v15 = vpop.xlane.xlu0 %685 }
 0x306   : > { %9486 = vrsqrt.f32 %v894_v13  ;;  %v863_v39 = vmul.f32 0.0078125, %v809_v38  ;;  %v722_v54 = vmul.f32 0.0078125, %v686_v15 }
 0x308   : > { %v895_v28 = vadd.f32 1e-05, %v863_v39  ;;  %v11290_v55 = vsub.f32 %v11111_v45, %v722_v54 }
 0x309   : > { %v688_v3 = vpop.xlane.xlu1 %687  ;;  %v811_v6 = vpop.xlane.xlu0 %810 }
 0x30a   : > { %9488 = vrsqrt.f32 %v895_v28  ;;  %v723_v9 = vmul.f32 0.0078125, %v688_v3  ;;  %v864_v7 = vmul.f32 0.0078125, %v811_v6  ;;  %v786_v0 = vmul.f32 %v11290_v55, %v11290_v55 }
 0x30c   : > { %v896_v4 = vadd.f32 1e-05, %v864_v7  ;;  %846 = vadd.xlane.f32.xlu0 %v786_v0  ;;  %v11295_v53 = vsub.f32 %v11121_v11, %v723_v9 }
 0x30d   : > { %v813_v26 = vpop.xlane.xlu1 %812  ;;  %v690_v13 = vpop.xlane.xlu0 %689 }
 0x30e   : > { %9490 = vrsqrt.f32 %v896_v4  ;;  %v865_v38 = vmul.f32 0.0078125, %v813_v26  ;;  %v724_v15 = vmul.f32 0.0078125, %v690_v13  ;;  %v787_v39 = vmul.f32 %v11295_v53, %v11295_v53 }
 0x310   : > { %v897_v54 = vadd.f32 1e-05, %v865_v38  ;;  %v11300_v28 = vsub.f32 %v11131_v30, %v724_v15  ;;  %848 = vadd.xlane.f32.xlu1 %v787_v39 }
 0x311   : > { %v692_v3 = vpop.xlane.xlu1 %691  ;;  %v815_v6 = vpop.xlane.xlu0 %814 }
 0x312   : > { %9492 = vrsqrt.f32 %v897_v54  ;;  %v725_v7 = vmul.f32 0.0078125, %v692_v3  ;;  %v866_v0 = vmul.f32 0.0078125, %v815_v6  ;;  %v788_v9 = vmul.f32 %v11300_v28, %v11300_v28 }
 0x313   : > { %v9487_v11 = vpop.eup %9486 }
 0x314   : > { %v898_v4 = vadd.f32 1e-05, %v866_v0  ;;  %850 = vadd.xlane.f32.xlu0 %v788_v9  ;;  %v11305_v26 = vsub.f32 %v11143_v36, %v725_v7  ;;  %v958_v13 = vmul.f32 %v9487_v11, %v11114_v47 }
 0x315   : > { %v817_v38 = vpop.xlane.xlu1 %816 }
 0x316   : > { %9494 = vrsqrt.f32 %v898_v4  ;;  %v867_v15 = vmul.f32 0.0078125, %v817_v38  ;;  %v789_v39 = vmul.f32 %v11305_v26, %v11305_v26  ;;  %v996_v30 = vmul.f32 %v11210_v51, %v958_v13 }
 0x317   : > { %v9489_v54 = vpop.eup %9488 }
 0x318   : > { %v899_v3 = vadd.f32 1e-05, %v867_v15  ;;  %852 = vadd.xlane.f32.xlu1 %v789_v39  ;;  %v959_v6 = vmul.f32 %v9489_v54, %v11119_v10  ;;  %v1034_v11 = vadd.f32 %v11217_v58, %v996_v30 }
 0x319   : > { %v819_v0 = vpop.xlane.xlu0 %818 }
 0x31a   : > { %9496 = vrsqrt.f32 %v899_v3  ;;  %v868_v9 = vmul.f32 0.0078125, %v819_v0  ;;  %v997_v7 = vmul.f32 %v11210_v51, %v959_v6 }
 0x31b   : > { %v9491_v36 = vpop.eup %9490 }
 0x31c   : > { %v900_v47 = vadd.f32 1e-05, %v868_v9  ;;  %v1035_v4 = vadd.f32 %v11217_v58, %v997_v7  ;;  %v960_v38 = vmul.f32 %v9491_v36, %v11127_v24 }
 0x31d   : > { %v821_v45 = vpop.xlane.xlu1 %820  ;;  %v823_v15 = vpop.xlane.xlu0 %822 }
 0x31e   : > { %9498 = vrsqrt.f32 %v900_v47  ;;  %v869_v39 = vmul.f32 0.0078125, %v821_v45  ;;  %v870_v10 = vmul.f32 0.0078125, %v823_v15  ;;  %v11316_v54 = vpack.c.bf16 %v1035_v4, %v1034_v11  ;;  %v9416_v15 = vld [vmem:[#allocation8 + $0xec] ss:$16 sps:$4 sm:$0xff]  }
 0x31f   : > { %v9493_v13 = vpop.eup %9492  ;;  %v998_v3 = vmul.f32 %v11210_v51, %v960_v38  ;;  %1792 = vmatprep.subr.bf16.mxu0 %v9416_v15  ;;  %v9420_v15 = vld [vmem:[#allocation8 + $0xa8] ss:$16 sps:$4 sm:$0xff]  }
 0x320   : > { %v901_v0 = vadd.f32 1e-05, %v869_v39  ;;  %v902_v6 = vadd.f32 1e-05, %v870_v10  ;;  %1255 = vmatmul.mubr.bf16.gmra.mxu0 %v11316_v54  ;;  %1672 = vmatmul.mubr.bf16.gmra.mxu1 %v11316_v54  ;;  %v961_v30 = vmul.f32 %v9493_v13, %v11135_v31  ;;  %v9414_v10 = vld [vmem:[#allocation8 + $0xe8] ss:$16 sps:$4 sm:$0xff]  }
 0x321   : > { %v825_v9 = vpop.xlane.xlu1 %824  ;;  %v827_v24 = vpop.xlane.xlu0 %826  ;;  %1264 = vmatprep.mubr.bf16.mxu0 %v15835_v40  ;;  %1681 = vmatprep.mubr.bf16.mxu1 %v15835_v40  ;;  %v1036_v11 = vadd.f32 %v11217_v58, %v998_v3 }
 0x322   : > { %9500 = vrsqrt.f32 %v901_v0  ;;  %v871_v45 = vmul.f32 0.0078125, %v825_v9  ;;  %v999_v36 = vmul.f32 %v11210_v51, %v961_v30  ;;  %v872_v47 = vmul.f32 0.0078125, %v827_v24  ;;  %v9419_v0 = vld [vmem:[#allocation8 + $0xcc] ss:$16 sps:$4 sm:$0xff]   ;;  %1793 = vmatpush1.bf16.msra.mxu0 %v9414_v10  ;;  %v9417_v9 = vld [vmem:[#allocation8 + $0xc8] ss:$16 sps:$4 sm:$0xff]  }
 0x323   : > { %v9495_v7 = vpop.eup %9494  ;;  %9502 = vrsqrt.f32 %v902_v6  ;;  %1794 = vmatprep.subr.bf16.mxu0 %v9419_v0  ;;  %v9423_v0 = vld [vmem:[#allocation8 + $0x88] ss:$16 sps:$4 sm:$0xff]  }
 0x324   : > { %v903_v4 = vadd.f32 1e-05, %v871_v45  ;;  %v1037_v38 = vadd.f32 %v11217_v58, %v999_v36  ;;  %v962_v31 = vmul.f32 %v9495_v7, %v11141_v35  ;;  %v904_v24 = vadd.f32 1e-05, %v872_v47  ;;  %v9422_v36 = vld [vmem:[#allocation8 + $0xac] ss:$16 sps:$4 sm:$0xff]  }
 0x325   : > { %v829_v39 = vpop.xlane.xlu1 %828  ;;  %v831_v6 = vpop.xlane.xlu0 %830 }
 0x326   : > { %9504 = vrsqrt.f32 %v903_v4  ;;  %v873_v13 = vmul.f32 0.0078125, %v829_v39  ;;  %v11328_v2 = vpack.c.bf16 %v1037_v38, %v1036_v11  ;;  %v1000_v45 = vmul.f32 %v11210_v51, %v962_v31  ;;  %1795 = vmatpush1.bf16.msra.mxu0 %v9417_v9 }
 0x327   : > { %v9497_v30 = vpop.eup %9496  ;;  %v874_v38 = vmul.f32 0.0078125, %v831_v6  ;;  %1796 = vmatprep.subr.bf16.mxu0 %v9422_v36 }
 0x328   : > { %v905_v3 = vadd.f32 1e-05, %v873_v13  ;;  %1265 = vmatmul.mubr.bf16.gmra.mxu0 %v11328_v2  ;;  %1682 = vmatmul.mubr.bf16.gmra.mxu1 %v11328_v2  ;;  %v963_v35 = vmul.f32 %v9497_v30, %v11149_v50  ;;  %v1038_v50 = vadd.f32 %v11217_v58, %v1000_v45  ;;  %v9425_v30 = vld [vmem:[#allocation8 + $0x8c] ss:$16 sps:$4 sm:$0xff]  }
 0x329   : > { %v833_v7 = vpop.xlane.xlu1 %832  ;;  %1274 = vmatprep.mubr.bf16.mxu0 %v15835_v40  ;;  %1691 = vmatprep.mubr.bf16.mxu1 %v15835_v40 }
 0x32a   : > { %9506 = vrsqrt.f32 %v905_v3  ;;  %v875_v11 = vmul.f32 0.0078125, %v833_v7  ;;  %v1001_v47 = vmul.f32 %v11210_v51, %v963_v35  ;;  %v906_v7 = vadd.f32 1e-05, %v874_v38  ;;  %1797 = vmatpush1.bf16.msra.mxu0 %v9420_v15  ;;  %v835_v35 = vpop.xlane.xlu0 %834  ;;  %v9426_v38 = vld [vmem:[#allocation8 + $0x68] ss:$16 sps:$4 sm:$0xff]  }
 0x32b   : > { %v9499_v4 = vpop.eup %9498  ;;  %9508 = vrsqrt.f32 %v904_v24  ;;  %1798 = vmatprep.subr.bf16.mxu0 %v9425_v30  ;;  %v876_v36 = vmul.f32 0.0078125, %v835_v35  ;;  %v9428_v15 = vld [vmem:[#allocation8 + $0x6c] ss:$16 sps:$4 sm:$0xff]   ;;  %v9429_v30 = vld [vmem:[#allocation8 + $0x48] ss:$16 sps:$4 sm:$0xff]  }
 0x32c   : > { %v1039_v31 = vadd.f32 %v11217_v58, %v1001_v47  ;;  %v964_v39 = vmul.f32 %v9499_v4, %v11154_v25  ;;  %v907_v10 = vadd.f32 1e-05, %v875_v11 }
 0x32e   : > { %v11340_v13 = vpack.c.bf16 %v1039_v31, %v1038_v50  ;;  %v1002_v24 = vmul.f32 %v11210_v51, %v964_v39  ;;  %9510 = vrsqrt.f32 %v907_v10  ;;  %1799 = vmatpush1.bf16.msra.mxu0 %v9423_v0  ;;  %v9431_v39 = vld [vmem:[#allocation8 + $0x4c] ss:$16 sps:$4 sm:$0xff]  }
 0x32f   : > { %v9501_v3 = vpop.eup %9500  ;;  %9512 = vrsqrt.f32 %v906_v7  ;;  %1800 = vmatprep.subr.bf16.mxu0 %v9428_v15 }
 0x330   : > { %1275 = vmatmul.mubr.bf16.gmra.mxu0 %v11340_v13  ;;  %1692 = vmatmul.mubr.bf16.gmra.mxu1 %v11340_v13  ;;  %v965_v9 = vmul.f32 %v9501_v3, %v11162_v37  ;;  %v9503_v6 = vpop.eup %9502  ;;  %v1040_v11 = vadd.f32 %v11217_v58, %v1002_v24  ;;  %v908_v3 = vadd.f32 1e-05, %v876_v36  ;;  %v9432_v24 = vld [vmem:[#allocation8 + $0x28] ss:$16 sps:$4 sm:$0xff]  }
 0x331   : > { %1284 = vmatprep.mubr.bf16.mxu0 %v15835_v40  ;;  %1701 = vmatprep.mubr.bf16.mxu1 %v15835_v40  ;;  %v966_v37 = vmul.f32 %v9503_v6, %v11157_v32  ;;  %v9434_v6 = vld [vmem:[#allocation8 + $0x2c] ss:$16 sps:$4 sm:$0xff]  }
 0x332   : > { %v1003_v25 = vmul.f32 %v11210_v51, %v965_v9  ;;  %1801 = vmatpush1.bf16.msra.mxu0 %v9426_v38  ;;  %9514 = vrsqrt.f32 %v908_v3 }
 0x333   : > { %v9505_v45 = vpop.eup %9504  ;;  %v1004_v32 = vmul.f32 %v11210_v51, %v966_v37  ;;  %1802 = vmatprep.subr.bf16.mxu0 %v9431_v39 }
 0x334   : > { %v1041_v47 = vadd.f32 %v11217_v58, %v1003_v25  ;;  %v967_v4 = vmul.f32 %v9505_v45, %v11167_v1 }
 0x335   : > { %v1042_v35 = vadd.f32 %v11217_v58, %v1004_v32 }
 0x336   : > { %v11353_v50 = vpack.c.bf16 %v1041_v47, %v1040_v11  ;;  %v1005_v31 = vmul.f32 %v11210_v51, %v967_v4  ;;  %1803 = vmatpush1.bf16.msra.mxu0 %v9429_v30  ;;  %v9437_v47 = vld [vmem:[#allocation8 + $0xc] ss:$16 sps:$4 sm:$0xff]  }
 0x337   : > { %v9507_v10 = vpop.eup %9506  ;;  %1804 = vmatprep.subr.bf16.mxu0 %v9434_v6 }
 0x338   : > { %1285 = vmatmul.mubr.bf16.gmra.mxu0 %v11353_v50  ;;  %1702 = vmatmul.mubr.bf16.gmra.mxu1 %v11353_v50  ;;  %v9509_v7 = vpop.eup %9508  ;;  %v1043_v1 = vadd.f32 %v11217_v58, %v1005_v31  ;;  %v969_v0 = vmul.f32 %v9507_v10, %v11179_v27  ;;  %v9435_v27 = vld [vmem:[#allocation8 + $0x8] ss:$16 sps:$4 sm:$0xff]  }
 0x339   : > { %1294 = vmatprep.mubr.bf16.mxu0 %v15835_v40  ;;  %1711 = vmatprep.mubr.bf16.mxu1 %v15835_v40  ;;  %v968_v9 = vmul.f32 %v9509_v7, %v11172_v46 }
 0x33a   : > { %v11365_v36 = vpack.c.bf16 %v1043_v1, %v1042_v35  ;;  %v1007_v11 = vmul.f32 %v11210_v51, %v969_v0  ;;  %1805 = vmatpush1.bf16.msra.mxu0 %v9432_v24 }
 0x33b   : > { %v9511_v37 = vpop.eup %9510  ;;  %v1006_v46 = vmul.f32 %v11210_v51, %v968_v9  ;;  %1806 = vmatprep.subr.bf16.mxu0 %v9437_v47 }
 0x33c   : > { %v9513_v4 = vpop.eup %9512  ;;  %v1045_v39 = vadd.f32 %v11217_v58, %v1007_v11  ;;  %v971_v10 = vmul.f32 %v9511_v37, %v11189_v14 }
 0x33d   : > { %v837_v25 = vpop.xlane.xlu1 %836  ;;  %v1044_v3 = vadd.f32 %v11217_v58, %v1006_v46  ;;  %v970_v32 = vmul.f32 %v9513_v4, %v11182_v42 }
 0x33e   : > { %v877_v45 = vmul.f32 0.0078125, %v837_v25  ;;  %1807 = vmatpush1.bf16.msra.mxu0 %v9435_v27  ;;  %v1009_v35 = vmul.f32 %v11210_v51, %v971_v10 }
 0x33f   : > { %v11377_v0 = vpack.c.bf16 %v1045_v39, %v1044_v3  ;;  %v1008_v14 = vmul.f32 %v11210_v51, %v970_v32  ;;  %v9515_v6 = vpop.eup %9514 }
 0x340   : > { %v909_v38 = vadd.f32 1e-05, %v877_v45  ;;  %1295 = vmatmul.mubr.bf16.gmra.mxu0 %v11365_v36  ;;  %1712 = vmatmul.mubr.bf16.gmra.mxu1 %v11365_v36  ;;  %v1047_v42 = vadd.f32 %v11217_v58, %v1009_v35  ;;  %v972_v47 = vmul.f32 %v9515_v6, %v11192_v41 }
 0x341   : > { %v841_v15 = vpop.xlane.xlu1 %840  ;;  %1304 = vmatprep.mubr.bf16.mxu0 %v15835_v40  ;;  %1721 = vmatprep.mubr.bf16.mxu1 %v15835_v40  ;;  %v1046_v11 = vadd.f32 %v11217_v58, %v1008_v14 }
 0x342   : > { %9516 = vrsqrt.f32 %v909_v38  ;;  %v879_v31 = vmul.f32 0.0078125, %v841_v15  ;;  %v1010_v15 = vmul.f32 %v11210_v51, %v972_v47 }
 0x343   : > { %v11388_v27 = vpack.c.bf16 %v1047_v42, %v1046_v11 }
 0x344   : > { %v911_v30 = vadd.f32 1e-05, %v879_v31  ;;  %v1048_v10 = vadd.f32 %v11217_v58, %v1010_v15 }
 0x346   : > { %9518 = vrsqrt.f32 %v911_v30  ;;  %v845_v7 = vpop.xlane.xlu1 %844  ;;  %v839_v1 = vpop.xlane.xlu0 %838 }
 0x347   : > { %v881_v9 = vmul.f32 0.0078125, %v845_v7  ;;  %v878_v24 = vmul.f32 0.0078125, %v839_v1 }
 0x348   : > { %1305 = vmatmul.mubr.bf16.gmra.mxu0 %v11377_v0  ;;  %1722 = vmatmul.mubr.bf16.gmra.mxu1 %v11377_v0 }
 0x349   : > { %v913_v25 = vadd.f32 1e-05, %v881_v9  ;;  %v910_v45 = vadd.f32 1e-05, %v878_v24  ;;  %1314 = vmatprep.mubr.bf16.mxu0 %v15835_v40  ;;  %1731 = vmatprep.mubr.bf16.mxu1 %v15835_v40 }
 0x34b   : > { %9520 = vrsqrt.f32 %v910_v45 }
 0x34c   : > { %9522 = vrsqrt.f32 %v913_v25 }
 0x34e   : > { %v843_v37 = vpop.xlane.xlu0 %842 }
 0x34f   : > { %v9517_v4 = vpop.eup %9516  ;;  %v880_v38 = vmul.f32 0.0078125, %v843_v37 }
 0x350   : > { %1315 = vmatmul.mubr.bf16.gmra.mxu0 %v11388_v27  ;;  %1732 = vmatmul.mubr.bf16.gmra.mxu1 %v11388_v27  ;;  %v973_v46 = vmul.f32 %v9517_v4, %v11199_v34 }
 0x351   : > { %v912_v31 = vadd.f32 1e-05, %v880_v38  ;;  %1324 = vmatprep.mubr.bf16.mxu0 %v15835_v40  ;;  %1741 = vmatprep.mubr.bf16.mxu1 %v15835_v40 }
 0x352   : > { %v1011_v41 = vmul.f32 %v11210_v51, %v973_v46 }
 0x353   : > { %v9519_v39 = vpop.eup %9518  ;;  %9524 = vrsqrt.f32 %v912_v31 }
 0x354   : > { %v1049_v30 = vadd.f32 %v11217_v58, %v1011_v41  ;;  %v975_v32 = vmul.f32 %v9519_v39, %v11205_v48 }
 0x356   : > { %v11399_v3 = vpack.c.bf16 %v1049_v30, %v1048_v10  ;;  %v1013_v35 = vmul.f32 %v11210_v51, %v975_v32  ;;  %v1094_v10 = vsub.s32 0, %v11278_v12 }
 0x358   : > { %1325 = vmatmul.mubr.bf16.gmra.mxu0 %v11399_v3  ;;  %1742 = vmatmul.mubr.bf16.gmra.mxu1 %v11399_v3  ;;  %v9521_v34 = vpop.eup %9520  ;;  %v1051_v14 = vadd.f32 %v11217_v58, %v1013_v35 }
 0x359   : > { %1334 = vmatprep.mubr.bf16.mxu0 %v15835_v40  ;;  %1751 = vmatprep.mubr.bf16.mxu1 %v15835_v40  ;;  %v9523_v7 = vpop.eup %9522  ;;  %v974_v1 = vmul.f32 %v9521_v34, %v11223_v33 }
 0x35a   : > { %v977_v24 = vmul.f32 %v9523_v7, %v11220_v56 }
 0x35b   : > { %v1012_v9 = vmul.f32 %v11210_v51, %v974_v1  ;;  %v11449_v1 = vrot.slane %v11284_v43, %v1094_v10 }
 0x35c   : > { %v1015_v42 = vmul.f32 %v11210_v51, %v977_v24 }
 0x35d   : > { %v1050_v48 = vadd.f32 %v11217_v58, %v1012_v9 }
 0x35e   : > { %v1053_v11 = vadd.f32 %v11217_v58, %v1015_v42 }
 0x35f   : > { %v11412_v25 = vpack.c.bf16 %v1051_v14, %v1050_v48 }
 0x360   : > { %v9525_v6 = vpop.eup %9524 }
 0x361   : > { %v976_v45 = vmul.f32 %v9525_v6, %v11242_v60  ;;  %1335 = vmatmul.mubr.bf16.gmra.mxu0 %v11412_v25  ;;  %1752 = vmatmul.mubr.bf16.gmra.mxu1 %v11412_v25 }
 0x362   : > { %1344 = vmatprep.mubr.bf16.mxu0 %v15835_v40  ;;  %1761 = vmatprep.mubr.bf16.mxu1 %v15835_v40 }
 0x363   : > { %v1014_v56 = vmul.f32 %v11210_v51, %v976_v45 }
 0x365   : > { %v1052_v33 = vadd.f32 %v11217_v58, %v1014_v56 }
 0x367   : > { %v11423_v47 = vpack.c.bf16 %v1053_v11, %v1052_v33 }
 0x369   : > { %1345 = vmatmul.mubr.bf16.gmra.mxu0 %v11423_v47  ;;  %1762 = vmatmul.mubr.bf16.gmra.mxu1 %v11423_v47 }
 0x36a   : > { %1354 = vmatprep.mubr.bf16.mxu0 %v15835_v40  ;;  %1771 = vmatprep.mubr.bf16.mxu1 %v15835_v40 }
 0x37c   : > { %v11429_v60 = vpop.f32.mrf.mxu0  ;;  %v1633_v37 = vpop.f32.mrf.mxu1 }
 0x37e   : > { %v11431_v4 = vpop.f32.mrf.mxu0  ;;  %v11433_v38 = vpop.f32.mrf.mxu1 }
 0x37f   : > { %15836 = vst [vmem:[#allocation53_spill] sm:$0xff] %v11433_v38 }
 0x380   : > { %v11435_v46 = vpop.f32.mrf.mxu0  ;;  %v1637_v15 = vpop.f32.mrf.mxu1 }
 0x381   : > { %v11437_v31 = vpack.c.bf16 %v1637_v15, %v1633_v37 }
 0x382   : > { %v11439_v41 = vpop.f32.mrf.mxu0  ;;  %v11441_v39 = vpop.f32.mrf.mxu1 }
 0x383   : > { %15837 = vst [vmem:[#allocation54_spill] sm:$0xff] %v11437_v31  ;;  %15838 = vst [vmem:[#allocation55_spill] sm:$0xff] %v11441_v39 }
 0x384   : > { %v1226_v30 = vpop.f32.mrf.mxu0  ;;  %v1643_v32 = vpop.f32.mrf.mxu1 }
 0x385   : > { %v1227_v24 = vadd.f32 %v1226_v30, %v11449_v1 }
 0x386   : > { %v11444_v34 = vpop.f32.mrf.mxu0  ;;  %v11446_v7 = vpop.f32.mrf.mxu1 }
 0x387   : > { %15839 = vst [vmem:[#allocation56_spill] sm:$0xff] %v11446_v7 }
 0x388   : > { %v1230_v35 = vpop.f32.mrf.mxu0  ;;  %v1647_v9 = vpop.f32.mrf.mxu1 }
 0x389   : > { %v1231_v48 = vadd.f32 %v1230_v35, %v11449_v1  ;;  %v11453_v14 = vpack.c.bf16 %v1647_v9, %v1643_v32 }
 0x38a   : > { %v11455_v6 = vpop.f32.mrf.mxu0  ;;  %v11457_v12 = vpop.f32.mrf.mxu1 }
 0x38b   : > { %15840 = vst [vmem:[#allocation57_spill] sm:$0xff] %v11453_v14  ;;  %15841 = vst [vmem:[#allocation58_spill] sm:$0xff] %v11457_v12  ;;  %v11459_v45 = vpack.c.bf16 %v1231_v48, %v1227_v24 }
 0x38c   : > { %v1236_v42 = vpop.f32.mrf.mxu0  ;;  %v1653_v56 = vpop.f32.mrf.mxu1 }
 0x38d   : > { %v1237_v15 = vadd.f32 %v1236_v42, %v11449_v1 }
 0x38e   : > { %v11461_v33 = vpop.f32.mrf.mxu0  ;;  %v11463_v43 = vpop.f32.mrf.mxu1 }
 0x38f   : > { %15842 = vst [vmem:[#allocation59_spill] sm:$0xff] %v11463_v43 }
 0x390   : > { %v1240_v11 = vpop.f32.mrf.mxu0  ;;  %v1657_v37 = vpop.f32.mrf.mxu1 }
 0x391   : > { %v1241_v10 = vadd.f32 %v1240_v11, %v11449_v1  ;;  %v11467_v30 = vpack.c.bf16 %v1657_v37, %v1653_v56 }
 0x392   : > { %v11469_v32 = vpop.f32.mrf.mxu0  ;;  %v11471_v35 = vpop.f32.mrf.mxu1 }
 0x393   : > { %15843 = vst [vmem:[#allocation60_spill] sm:$0xff] %v11467_v30  ;;  %15844 = vst [vmem:[#allocation61_spill] sm:$0xff] %v11471_v35  ;;  %v11473_v9 = vpack.c.bf16 %v1241_v10, %v1237_v15 }
 0x394   : > { %v1246_v24 = vpop.f32.mrf.mxu0  ;;  %v1663_v48 = vpop.f32.mrf.mxu1 }
 0x395   : > { %v847_v63 = vpop.xlane.xlu0 %846  ;;  %v1247_v56 = vadd.f32 %v1246_v24, %v11449_v1 }
 0x396   : > { %v882_v62 = vmul.f32 0.0078125, %v847_v63  ;;  %v11475_v59 = vpop.f32.mrf.mxu0  ;;  %v11477_v57 = vpop.f32.mrf.mxu1 }
 0x397   : > { %15845 = vst [vmem:[#allocation62_spill] sm:$0xff] %v11477_v57 }
 0x398   : > { %v914_v52 = vadd.f32 1e-05, %v882_v62  ;;  %v1250_v42 = vpop.f32.mrf.mxu0  ;;  %v1667_v49 = vpop.f32.mrf.mxu1 }
 0x399   : > { %v1251_v11 = vadd.f32 %v1250_v42, %v11449_v1  ;;  %v11481_v37 = vpack.c.bf16 %v1667_v49, %v1663_v48  ;;  %v849_v23 = vpop.xlane.xlu1 %848 }
 0x39a   : > { %9526 = vrsqrt.f32 %v914_v52  ;;  %v883_v15 = vmul.f32 0.0078125, %v849_v23 }
 0x39b   : > { %15846 = vst [vmem:[#allocation63_spill] sm:$0xff] %v11481_v37  ;;  %v11483_v10 = vpack.c.bf16 %v1251_v11, %v1247_v56 }
 0x39c   : > { %v915_v22 = vadd.f32 1e-05, %v883_v15 }
 0x39d   : > { %v851_v63 = vpop.xlane.xlu0 %850 }
 0x39e   : > { %9528 = vrsqrt.f32 %v915_v22  ;;  %v884_v21 = vmul.f32 0.0078125, %v851_v63 }
 0x3a0   : > { %v916_v20 = vadd.f32 1e-05, %v884_v21 }
 0x3a1   : > { %v853_v19 = vpop.xlane.xlu1 %852 }
 0x3a2   : > { %9530 = vrsqrt.f32 %v916_v20  ;;  %v885_v62 = vmul.f32 0.0078125, %v853_v19 }
 0x3a4   : > { %v917_v18 = vadd.f32 1e-05, %v885_v62  ;;  %v1217_v62 = vadd.f32 %v11429_v60, %v11449_v1 }
 0x3a6   : > { %9532 = vrsqrt.f32 %v917_v18 }
 0x3a7   : > { %v9527_v24 = vpop.eup %9526 }
 0x3a8   : > { %v978_v42 = vmul.f32 %v9527_v24, %v11290_v55 }
 0x3aa   : > { %v1016_v23 = vmul.f32 %v11210_v51, %v978_v42 }
 0x3ab   : > { %v9529_v49 = vpop.eup %9528 }
 0x3ac   : > { %v979_v48 = vmul.f32 %v9529_v49, %v11295_v53  ;;  %v1054_v22 = vadd.f32 %v11217_v58, %v1016_v23 }
 0x3ae   : > { %v1017_v52 = vmul.f32 %v11210_v51, %v979_v48 }
 0x3af   : > { %v9531_v56 = vpop.eup %9530 }
 0x3b0   : > { %v1055_v21 = vadd.f32 %v11217_v58, %v1017_v52  ;;  %v980_v20 = vmul.f32 %v9531_v56, %v11300_v28  ;;  %v1221_v28 = vadd.f32 %v11435_v46, %v11449_v1 }
 0x3b2   : > { %v11492_v19 = vpack.c.bf16 %v1055_v21, %v1054_v22  ;;  %v1018_v53 = vmul.f32 %v11210_v51, %v980_v20 }
 0x3b3   : > { %v9533_v18 = vpop.eup %9532 }
 0x3b4   : > { %1355 = vmatmul.mubr.bf16.gmra.mxu0 %v11492_v19  ;;  %1772 = vmatmul.mubr.bf16.gmra.mxu1 %v11492_v19  ;;  %v981_v55 = vmul.f32 %v9533_v18, %v11305_v26  ;;  %v1056_v15 = vadd.f32 %v11217_v58, %v1018_v53  ;;  %v11509_v26 = vpack.c.bf16 %v1221_v28, %v1217_v62 }
 0x3b5   : > { %1364 = vmatprep.mubr.bf16.mxu0 %v15835_v40  ;;  %1781 = vmatprep.mubr.bf16.mxu1 %v15835_v40 }
 0x3b6   : > { %v1019_v11 = vmul.f32 %v11210_v51, %v981_v55  ;;  %v11524_v51 = vpop.f32.mrf.mxu0 }
 0x3b8   : > { %v1057_v63 = vadd.f32 %v11217_v58, %v1019_v11  ;;  %v11526_v58 = vpop.f32.mrf.mxu1 }
 0x3b9   : > { %15847 = vst [vmem:[#allocation64_spill] sm:$0xff] %v11526_v58 }
 0x3ba   : > { %v11507_v24 = vpack.c.bf16 %v1057_v63, %v1056_v15 }
 0x3bc   : > { %1365 = vmatmul.mubr.bf16.gmra.mxu0 %v11507_v24  ;;  %1782 = vmatmul.mubr.bf16.gmra.mxu1 %v11507_v24 }
 0x3bd   : > { %8233 = vmatprep.mubr.msk.bf16.mxu1 %vm2049_vm0, %v11509_v26  ;;  %1824 = vmatprep.mubr.bf16.mxu0 %v15835_v40 }
 0x3c4   : > { %1825 = vmatmul.mubr.bf16.vlgmr.msra.gmra.mxu0 %v11228_v8 }
 0x3c5   : > { %1834 = vmatprep.mubr.bf16.mxu0 %v15835_v40 }
 0x3cc   : > { %1835 = vmatmul.mubr.bf16.gmra.mxu0 %v11247_v61 }
 0x3cd   : > { %1844 = vmatprep.mubr.bf16.mxu0 %v15835_v40 }
 0x3d4   : > { %1845 = vmatmul.mubr.bf16.gmra.mxu0 %v11261_v29 }
 0x3d5   : > { %1854 = vmatprep.mubr.bf16.mxu0 %v15835_v40 }
 0x3dc   : > { %1855 = vmatmul.mubr.bf16.gmra.mxu0 %v11272_v5 }
 0x3dd   : > { %1864 = vmatprep.mubr.bf16.mxu0 %v15835_v40 }
 0x3e0   : > { %v1256_v60 = vpop.f32.mrf.mxu0  ;;  %v1673_v8 = vpop.f32.mrf.mxu1 }
 0x3e1   : > { %v1257_v29 = vadd.f32 %v1256_v60, %v11449_v1 }
 0x3e2   : > { %v11528_v46 = vpop.f32.mrf.mxu0  ;;  %v11530_v42 = vpop.f32.mrf.mxu1 }
 0x3e3   : > { %15848 = vst [vmem:[#allocation65_spill] sm:$0xff] %v11530_v42 }
 0x3e4   : > { %v1260_v61 = vpop.f32.mrf.mxu0  ;;  %v1677_v49 = vpop.f32.mrf.mxu1  ;;  %1865 = vmatmul.mubr.bf16.gmra.mxu0 %v11316_v54 }
 0x3e5   : > { %v1261_v5 = vadd.f32 %v1260_v61, %v11449_v1  ;;  %v11535_v48 = vpack.c.bf16 %v1677_v49, %v1673_v8  ;;  %1874 = vmatprep.mubr.bf16.mxu0 %v15835_v40 }
 0x3e6   : > { %v11538_v23 = vpop.f32.mrf.mxu0  ;;  %v11540_v52 = vpop.f32.mrf.mxu1 }
 0x3e7   : > { %15849 = vst [vmem:[#allocation66_spill] sm:$0xff] %v11535_v48  ;;  %15850 = vst [vmem:[#allocation67_spill] sm:$0xff] %v11540_v52  ;;  %v11542_v56 = vpack.c.bf16 %v1261_v5, %v1257_v29 }
 0x3e8   : > { %v1266_v22 = vpop.f32.mrf.mxu0  ;;  %v1683_v21 = vpop.f32.mrf.mxu1 }
 0x3e9   : > { %v1267_v53 = vadd.f32 %v1266_v22, %v11449_v1 }
 0x3ea   : > { %v11544_v20 = vpop.f32.mrf.mxu0  ;;  %v11546_v18 = vpop.f32.mrf.mxu1 }
 0x3eb   : > { %15851 = vst [vmem:[#allocation68_spill] sm:$0xff] %v11546_v18 }
 0x3ec   : > { %v1270_v54 = vpop.f32.mrf.mxu0  ;;  %v1687_v55 = vpop.f32.mrf.mxu1  ;;  %1875 = vmatmul.mubr.bf16.gmra.mxu0 %v11328_v2 }
 0x3ed   : > { %v1271_v11 = vadd.f32 %v1270_v54, %v11449_v1  ;;  %v11551_v28 = vpack.c.bf16 %v1687_v55, %v1683_v21  ;;  %1884 = vmatprep.mubr.bf16.mxu0 %v15835_v40 }
 0x3ee   : > { %v11554_v15 = vpop.f32.mrf.mxu0  ;;  %v11556_v63 = vpop.f32.mrf.mxu1 }
 0x3ef   : > { %15852 = vst [vmem:[#allocation69_spill] sm:$0xff] %v11551_v28  ;;  %15853 = vst [vmem:[#allocation70_spill] sm:$0xff] %v11556_v63  ;;  %v11558_v62 = vpack.c.bf16 %v1271_v11, %v1267_v53 }
 0x3f0   : > { %v1276_v60 = vpop.f32.mrf.mxu0  ;;  %v1693_v8 = vpop.f32.mrf.mxu1 }
 0x3f1   : > { %v1277_v5 = vadd.f32 %v1276_v60, %v11449_v1 }
 0x3f2   : > { %v11560_v61 = vpop.f32.mrf.mxu0  ;;  %v11562_v49 = vpop.f32.mrf.mxu1 }
 0x3f3   : > { %15854 = vst [vmem:[#allocation71_spill] sm:$0xff] %v11562_v49 }
 0x3f4   : > { %v1280_v2 = vpop.f32.mrf.mxu0  ;;  %v1697_v29 = vpop.f32.mrf.mxu1  ;;  %1885 = vmatmul.mubr.bf16.gmra.mxu0 %v11340_v13 }
 0x3f5   : > { %v1281_v22 = vadd.f32 %v1280_v2, %v11449_v1  ;;  %v11567_v21 = vpack.c.bf16 %v1697_v29, %v1693_v8  ;;  %1894 = vmatprep.mubr.bf16.mxu0 %v15835_v40 }
 0x3f6   : > { %v11570_v54 = vpop.f32.mrf.mxu0  ;;  %v11572_v55 = vpop.f32.mrf.mxu1 }
 0x3f7   : > { %15855 = vst [vmem:[#allocation72_spill] sm:$0xff] %v11567_v21  ;;  %15856 = vst [vmem:[#allocation73_spill] sm:$0xff] %v11572_v55  ;;  %v11574_v53 = vpack.c.bf16 %v1281_v22, %v1277_v5 }
 0x3f8   : > { %v1286_v11 = vpop.f32.mrf.mxu0  ;;  %v1703_v17 = vpop.f32.mrf.mxu1 }
 0x3f9   : > { %v1287_v60 = vadd.f32 %v1286_v11, %v11449_v1 }
 0x3fa   : > { %v1288_v16 = vpop.f32.mrf.mxu0  ;;  %v11576_v39 = vpop.f32.mrf.mxu1 }
 0x3fb   : > { %15857 = vst [vmem:[#allocation74_spill] sm:$0xff] %v11576_v39  ;;  %v1289_v22 = vadd.f32 %v1288_v16, %v11287_v44 }
 0x3fc   : > { %v1290_v13 = vpop.f32.mrf.mxu0  ;;  %v1707_v38 = vpop.f32.mrf.mxu1  ;;  %1895 = vmatmul.mubr.bf16.gmra.mxu0 %v11353_v50 }
 0x3fd   : > { %v1291_v8 = vadd.f32 %v1290_v13, %v11449_v1  ;;  %v11581_v2 = vpack.c.bf16 %v1707_v38, %v1703_v17  ;;  %1904 = vmatprep.mubr.bf16.mxu0 %v15835_v40 }
 0x3fe   : > { %v1292_v29 = vpop.f32.mrf.mxu0  ;;  %v11584_v5 = vpop.f32.mrf.mxu1 }
 0x3ff   : > { %15858 = vst [vmem:[#allocation75_spill] sm:$0xff] %v11581_v2  ;;  %15859 = vst [vmem:[#allocation76_spill] sm:$0xff] %v11584_v5  ;;  %v11587_v12 = vpack.c.bf16 %v1291_v8, %v1287_v60  ;;  %v1293_v7 = vadd.f32 %v1292_v29, %v11287_v44 }
 0x400   : > { %v1296_v35 = vpop.f32.mrf.mxu0  ;;  %v1713_v43 = vpop.f32.mrf.mxu1 }
 0x401   : > { %v11590_v50 = vpack.c.bf16 %v1293_v7, %v1289_v22  ;;  %v1297_v16 = vadd.f32 %v1296_v35, %v11449_v1 }
 0x402   : > { %v11592_v11 = vpop.f32.mrf.mxu0  ;;  %v11594_v13 = vpop.f32.mrf.mxu1 }
 0x403   : > { %15860 = vst [vmem:[#allocation77_spill] sm:$0xff] %v11594_v13  ;;  %2642 = vrot.lane.b32.xlu0 %v11590_v50, %s10679_s2 }
 0x404   : > { %v1300_v17 = vpop.f32.mrf.mxu0  ;;  %v1717_v38 = vpop.f32.mrf.mxu1  ;;  %1905 = vmatmul.mubr.bf16.gmra.mxu0 %v11365_v36 }
 0x405   : > { %v1301_v60 = vadd.f32 %v1300_v17, %v11449_v1  ;;  %v11601_v8 = vpack.c.bf16 %v1717_v38, %v1713_v43  ;;  %1914 = vmatprep.mubr.bf16.mxu0 %v15835_v40 }
 0x406   : > { %v11604_v7 = vpop.f32.mrf.mxu0  ;;  %v11606_v29 = vpop.f32.mrf.mxu1 }
 0x407   : > { %15861 = vst [vmem:[#allocation78_spill] sm:$0xff] %v11601_v8  ;;  %15862 = vst [vmem:[#allocation79_spill] sm:$0xff] %v11606_v29  ;;  %v11608_v22 = vpack.c.bf16 %v1301_v60, %v1297_v16 }
 0x408   : > { %v1306_v13 = vpop.f32.mrf.mxu0  ;;  %v1723_v58 = vpop.f32.mrf.mxu1 }
 0x409   : > { %15863 = vst [vmem:[#allocation80_spill] sm:$0xff] %v11608_v22  ;;  %v1307_v43 = vadd.f32 %v1306_v13, %v11449_v1 }
 0x40a   : > { %v11610_v57 = vpop.f32.mrf.mxu0  ;;  %v11612_v52 = vpop.f32.mrf.mxu1 }
 0x40b   : > { %15864 = vst [vmem:[#allocation81_spill] sm:$0xff] %v11612_v52 }
 0x40c   : > { %v1310_v36 = vpop.f32.mrf.mxu0  ;;  %v1727_v35 = vpop.f32.mrf.mxu1  ;;  %1915 = vmatmul.mubr.bf16.gmra.mxu0 %v11377_v0 }
 0x40d   : > { %v1311_v17 = vadd.f32 %v1310_v36, %v11449_v1  ;;  %v11617_v38 = vpack.c.bf16 %v1727_v35, %v1723_v58  ;;  %1924 = vmatprep.mubr.bf16.mxu0 %v15835_v40 }
 0x40e   : > { %v11620_v16 = vpop.f32.mrf.mxu0  ;;  %v11622_v60 = vpop.f32.mrf.mxu1 }
 0x40f   : > { %15865 = vst [vmem:[#allocation82_spill] sm:$0xff] %v11617_v38  ;;  %15866 = vst [vmem:[#allocation83_spill] sm:$0xff] %v11622_v60  ;;  %v11624_v22 = vpack.c.bf16 %v1311_v17, %v1307_v43 }
 0x410   : > { %v1316_v29 = vpop.f32.mrf.mxu0  ;;  %v1733_v52 = vpop.f32.mrf.mxu1 }
 0x411   : > { %15867 = vst [vmem:[#allocation84_spill] sm:$0xff] %v11624_v22  ;;  %v1317_v58 = vadd.f32 %v1316_v29, %v11449_v1 }
 0x412   : > { %v11626_v42 = vpop.f32.mrf.mxu0  ;;  %v11628_v63 = vpop.f32.mrf.mxu1 }
 0x413   : > { %15868 = vst [vmem:[#allocation85_spill] sm:$0xff] %v11628_v63 }
 0x414   : > { %v1320_v0 = vpop.f32.mrf.mxu0  ;;  %v1737_v13 = vpop.f32.mrf.mxu1  ;;  %1925 = vmatmul.mubr.bf16.gmra.mxu0 %v11388_v27 }
 0x415   : > { %v1321_v36 = vadd.f32 %v1320_v0, %v11449_v1  ;;  %v11633_v35 = vpack.c.bf16 %v1737_v13, %v1733_v52  ;;  %1934 = vmatprep.mubr.bf16.mxu0 %v15835_v40 }
 0x416   : > { %v11636_v43 = vpop.f32.mrf.mxu0 }
 0x417   : > { %15869 = vst [vmem:[#allocation86_spill] sm:$0xff] %v11633_v35  ;;  %v11638_v17 = vpack.c.bf16 %v1321_v36, %v1317_v58 }
 0x418   : > { %v1326_v22 = vpop.f32.mrf.mxu0 }
 0x419   : > { %15870 = vst [vmem:[#allocation87_spill] sm:$0xff] %v11638_v17  ;;  %v1327_v27 = vadd.f32 %v1326_v22, %v11449_v1 }
 0x41a   : > { %v11640_v60 = vpop.f32.mrf.mxu0 }
 0x41c   : > { %v1330_v63 = vpop.f32.mrf.mxu0  ;;  %1935 = vmatmul.mubr.bf16.gmra.mxu0 %v11399_v3 }
 0x41d   : > { %v1331_v29 = vadd.f32 %v1330_v63, %v11449_v1  ;;  %1944 = vmatprep.mubr.bf16.mxu0 %v15835_v40 }
 0x41e   : > { %v1332_v52 = vpop.f32.mrf.mxu0 }
 0x41f   : > { %v11646_v0 = vpack.c.bf16 %v1331_v29, %v1327_v27 }
 0x421   : > { %15871 = vst [vmem:[#allocation88_spill] sm:$0xff] %v11646_v0  ;;  %v1336_v13 = vpop.f32.mrf.mxu0 }
 0x422   : > { %v1337_v36 = vadd.f32 %v1336_v13, %v11449_v1 }
 0x423   : > { %v1338_v18 = vpop.f32.mrf.mxu0 }
 0x424   : > { %1945 = vmatmul.mubr.bf16.gmra.mxu0 %v11412_v25 }
 0x425   : > { %1954 = vmatprep.mubr.bf16.mxu0 %v15835_v40  ;;  %v1340_v58 = vpop.f32.mrf.mxu0 }
 0x426   : > { %v1341_v3 = vadd.f32 %v1340_v58, %v11449_v1  ;;  %v11663_v58 = vpop.f32.mrf.mxu1 }
 0x427   : > { %v1342_v17 = vpop.f32.mrf.mxu0  ;;  %15874 = vst [vmem:[#allocation91_spill] sm:$0xff] %v11663_v58 }
 0x428   : > { %v11652_v22 = vpack.c.bf16 %v1341_v3, %v1337_v36  ;;  %v11665_v3 = vpop.f32.mrf.mxu1 }
 0x429   : > { %v1346_v63 = vpop.f32.mrf.mxu0 }
 0x42a   : > { %15872 = vst [vmem:[#allocation89_spill] sm:$0xff] %v11652_v22  ;;  %v1347_v29 = vadd.f32 %v1346_v63, %v11449_v1 }
 0x42b   : > { %v1348_v55 = vpop.f32.mrf.mxu0 }
 0x42c   : > { %1955 = vmatmul.mubr.bf16.gmra.mxu0 %v11423_v47 }
 0x42d   : > { %1964 = vmatprep.mubr.bf16.mxu0 %v15835_v40  ;;  %v1350_v27 = vpop.f32.mrf.mxu0 }
 0x42e   : > { %v1351_v25 = vadd.f32 %v1350_v27, %v11449_v1 }
 0x42f   : > { %v1352_v13 = vpop.f32.mrf.mxu0 }
 0x430   : > { %v11658_v0 = vpack.c.bf16 %v1351_v25, %v1347_v29  ;;  %v11669_v25 = vpop.f32.mrf.mxu1  ;;  %v1353_v58 = vadd.f32 %v1352_v13, %v11287_v44 }
 0x431   : > { %15875 = vst [vmem:[#allocation92_spill] sm:$0xff] %v11669_v25 }
 0x432   : > { %15873 = vst [vmem:[#allocation90_spill] sm:$0xff] %v11658_v0  ;;  %v11678_v39 = vpop.f32.mrf.mxu1 }
 0x434   : > { %1965 = vmatmul.mubr.bf16.gmra.mxu0 %v11492_v19 }
 0x435   : > { %1974 = vmatprep.mubr.bf16.mxu0 %v15835_v40 }
 0x43c   : > { %1975 = vmatmul.mubr.bf16.gmra.mxu0 %v11507_v24 }
 0x474   : > { %v1356_v36 = vpop.f32.mrf.mxu0 }
 0x475   : > { %v1357_v63 = vadd.f32 %v1356_v36, %v11449_v1  ;;  %v1349_v36 = vadd.f32 %v1348_v55, %v11287_v44 }
 0x476   : > { %v1358_v47 = vpop.f32.mrf.mxu0 }
 0x477   : > { %v1359_v19 = vadd.f32 %v1358_v47, %v11287_v44  ;;  %v1343_v47 = vadd.f32 %v1342_v17, %v11287_v44 }
 0x478   : > { %v1360_v22 = vpop.f32.mrf.mxu0 }
 0x479   : > { %v1361_v27 = vadd.f32 %v1360_v22, %v11449_v1 }
 0x47a   : > { %v1362_v29 = vpop.f32.mrf.mxu0 }
 0x47b   : > { %v11672_v40 = vpack.c.bf16 %v1361_v27, %v1357_v63  ;;  %v1363_v24 = vadd.f32 %v1362_v29, %v11287_v44  ;;  %v11684_v63 = vpack.c.bf16 %v1353_v58, %v1349_v36 }
 0x47c   : > { %v1366_v0 = vpop.f32.mrf.mxu0 }
 0x47d   : > { %15876 = vst [vmem:[#allocation93_spill] sm:$0xff] %v11672_v40  ;;  %v11676_v49 = vpack.c.bf16 %v1363_v24, %v1359_v19  ;;  %15878 = vst [vmem:[#allocation95_spill] sm:$0xff] %v11684_v63  ;;  %v1367_v27 = vadd.f32 %v1366_v0, %v11449_v1  ;;  %v11688_v19 = vpop.f32.mrf.mxu1  ;;  %v1339_v24 = vadd.f32 %v1338_v18, %v11287_v44 }
 0x47e   : > { %v1368_v5 = vpop.f32.mrf.mxu0  ;;  %v1283_v0 = vadd.f32 %v11570_v54, %v11287_v44  ;;  %v1273_v54 = vadd.f32 %v11554_v15, %v11287_v44 }
 0x47f   : > { %15877 = vst [vmem:[#allocation94_spill] sm:$0xff] %v11676_v49  ;;  %2656 = vrot.lane.b32.xlu0 %v11676_v49, %s10679_s2  ;;  %v1369_v40 = vadd.f32 %v1368_v5, %v11287_v44  ;;  %v11700_v58 = vpack.c.bf16 %v1343_v47, %v1339_v24  ;;  %v1279_v5 = vadd.f32 %v11560_v61, %v11287_v44  ;;  %v11722_v61 = vsel %vm2049_vm0, %v11590_v50, 0 }
 0x480   : > { %v1370_v22 = vpop.f32.mrf.mxu0  ;;  %15882 = vst [vmem:[#allocation99_spill] sm:$0xff] %v11722_v61 }
 0x481   : > { %v1371_v29 = vadd.f32 %v1370_v22, %v11449_v1  ;;  %v1333_v1 = vadd.f32 %v1332_v52, %v11287_v44  ;;  %15880 = vst [vmem:[#allocation97_spill] sm:$0xff] %v11700_v58  ;;  %v1329_v22 = vadd.f32 %v11640_v60, %v11287_v44  ;;  %v11724_v60 = vpack.c.bf16 %v1283_v0, %v1279_v5 }
 0x482   : > { %v1372_v13 = vpop.f32.mrf.mxu0  ;;  %v1259_v5 = vadd.f32 %v11528_v46, %v11287_v44 }
 0x483   : > { %v11692_v55 = vpack.c.bf16 %v1371_v29, %v1367_v27  ;;  %v1373_v25 = vadd.f32 %v1372_v13, %v11287_v44  ;;  %2654 = vrot.lane.b32.xlu0 %v11684_v63, %s10679_s2  ;;  %v11710_v27 = vpop.f32.mrf.mxu1  ;;  %v1269_v29 = vadd.f32 %v11544_v20, %v11287_v44  ;;  %v1319_v13 = vadd.f32 %v11626_v42, %v11287_v44 }
 0x484   : > { %v1826_v17 = vpop.f32.mrf.mxu0  ;;  %v1313_v20 = vadd.f32 %v11620_v16, %v11287_v44 }
 0x485   : > { %15879 = vst [vmem:[#allocation96_spill] sm:$0xff] %v11692_v55  ;;  %v11702_v36 = vpack.c.bf16 %v1373_v25, %v1369_v40  ;;  %v1323_v25 = vadd.f32 %v11636_v43, %v11287_v44  ;;  %v11728_v40 = vpack.c.bf16 %v1333_v1, %v1329_v22  ;;  %v11741_v24 = vpop.f32.mrf.mxu1  ;;  %v11749_v0 = vpack.c.bf16 %v1273_v54, %v1269_v29 }
 0x486   : > { %v11704_v18 = vpop.f32.mrf.mxu0  ;;  %v1309_v22 = vadd.f32 %v11610_v57, %v11287_v44  ;;  %v11771_v54 = vsel %vm2049_vm0, %v11724_v60, 0  ;;  %v1303_v57 = vadd.f32 %v11604_v7, %v11287_v44 }
 0x487   : > { %15881 = vst [vmem:[#allocation98_spill] sm:$0xff] %v11704_v18  ;;  %2652 = vrot.lane.b32.xlu0 %v11700_v58, %s10679_s2  ;;  %2658 = vrot.lane.b32.xlu1 %v11702_v36, %s10679_s2  ;;  %15883 = vst [vmem:[#allocation100_spill] sm:$0xff] %v11728_v40  ;;  %v11753_v1 = vpack.c.bf16 %v1323_v25, %v1319_v13  ;;  %v1249_v13 = vadd.f32 %v11475_v59, %v11287_v44 }
 0x488   : > { %9193 = vmatprep.subr.msk.bf16.mxu1 %vm2049_vm0, %v11702_v36  ;;  %v1830_v52 = vpop.f32.mrf.mxu0  ;;  %15888 = vst [vmem:[#allocation105_spill] sm:$0xff] %v11771_v54  ;;  %v11777_v25 = vpack.c.bf16 %v1313_v20, %v1309_v22 }
 0x489   : > { %v11730_v47 = vpack.c.bf16 %v1830_v52, %v1826_v17  ;;  %8218 = vmatpush3.bf16.xpose.msra.mxu1 %v11722_v61  ;;  %v1263_v17 = vadd.f32 %v11538_v23, %v11287_v44  ;;  %15886 = vst [vmem:[#allocation103_spill] sm:$0xff] %v11753_v1  ;;  %v11761_v52 = vpop.f32.mrf.mxu1  ;;  %v1253_v23 = vadd.f32 %v11524_v51, %v11287_v44 }
 0x48a   : > { %9194 = vmatprep.subr.msk.bf16.mxu1 %vm2049_vm0, %v11676_v49  ;;  %v11735_v15 = vpop.f32.mrf.mxu0  ;;  %15889 = vst [vmem:[#allocation106_spill] sm:$0xff] %v11777_v25 }
 0x48b   : > { %15884 = vst [vmem:[#allocation101_spill] sm:$0xff] %v11730_v47  ;;  %15885 = vst [vmem:[#allocation102_spill] sm:$0xff] %v11735_v15  ;;  %2650 = vrot.lane.b32.xlu0 %v11728_v40, %s10679_s2  ;;  %2640 = vrot.lane.b32.xlu1 %v11724_v60, %s10679_s2  ;;  %v11773_v46 = vpack.c.bf16 %v1263_v17, %v1259_v5  ;;  %v1299_v17 = vadd.f32 %v11592_v11, %v11287_v44  ;;  %v11790_v5 = vpop.f32.mrf.mxu1 }
 0x48c   : > { %v1836_v43 = vpop.f32.mrf.mxu0  ;;  %v11798_v20 = vpack.c.bf16 %v1253_v23, %v1249_v13  ;;  %v1239_v11 = vadd.f32 %v11461_v33, %v11287_v44  ;;  %v1233_v23 = vadd.f32 %v11455_v6, %v11287_v44 }
 0x48d   : > { %v11800_v22 = vpack.c.bf16 %v1303_v57, %v1299_v17  ;;  %v1229_v17 = vadd.f32 %v11444_v34, %v11287_v44  ;;  %v1219_v34 = vadd.f32 %v11431_v4, %v11287_v44  ;;  %v11851_v61 = vsel %vm2049_vm0, %v11773_v46, 0 }
 0x48e   : > { %v11755_v42 = vpop.f32.mrf.mxu0  ;;  %15898 = vst [vmem:[#allocation115_spill] sm:$0xff] %v11851_v61 }
 0x48f   : > { %15887 = vst [vmem:[#allocation104_spill] sm:$0xff] %v11755_v42  ;;  %2648 = vrot.lane.b32.xlu0 %v11753_v1, %s10679_s2  ;;  %2638 = vrot.lane.b32.xlu1 %v11749_v0, %s10679_s2  ;;  %15892 = vst [vmem:[#allocation109_spill] sm:$0xff] %v11800_v22 }
 0x490   : > { %v1840_v16 = vpop.f32.mrf.mxu0 }
 0x491   : > { %v11779_v29 = vpack.c.bf16 %v1840_v16, %v1836_v43  ;;  %8220 = vmatpush3.bf16.xpose.msra.mxu1 %v11771_v54  ;;  %v1243_v43 = vadd.f32 %v11469_v32, %v11287_v44  ;;  %v11806_v16 = vpop.f32.mrf.mxu1  ;;  %v11814_v32 = vsel %vm2049_vm0, %v11749_v0, 0 }
 0x492   : > { %9195 = vmatprep.subr.msk.bf16.mxu1 %vm2049_vm0, %v11684_v63  ;;  %v11784_v51 = vpop.f32.mrf.mxu0  ;;  %15894 = vst [vmem:[#allocation111_spill] sm:$0xff] %v11814_v32 }
 0x493   : > { %15890 = vst [vmem:[#allocation107_spill] sm:$0xff] %v11779_v29  ;;  %15891 = vst [vmem:[#allocation108_spill] sm:$0xff] %v11784_v51  ;;  %2646 = vrot.lane.b32.xlu0 %v11777_v25, %s10679_s2  ;;  %2636 = vrot.lane.b32.xlu1 %v11773_v46, %s10679_s2  ;;  %v11818_v57 = vpack.c.bf16 %v1243_v43, %v1239_v11  ;;  %v11829_v54 = vpop.f32.mrf.mxu1 }
 0x494   : > { %v1846_v7 = vpop.f32.mrf.mxu0 }
 0x495   : > { %v11843_v11 = vpop.f32.mrf.mxu1 }
 0x496   : > { %v11802_v59 = vpop.f32.mrf.mxu0 }
 0x497   : > { %15893 = vst [vmem:[#allocation110_spill] sm:$0xff] %v11802_v59  ;;  %2644 = vrot.lane.b32.xlu0 %v11800_v22, %s10679_s2  ;;  %2634 = vrot.lane.b32.xlu1 %v11798_v20, %s10679_s2  ;;  %v11862_v4 = vpop.f32.mrf.mxu1 }
 0x498   : > { %v1850_v55 = vpop.f32.mrf.mxu0 }
 0x499   : > { %v11820_v13 = vpack.c.bf16 %v1850_v55, %v1846_v7  ;;  %8222 = vmatpush3.bf16.xpose.msra.mxu1 %v11814_v32  ;;  %v1223_v55 = vadd.f32 %v11439_v41, %v11287_v44  ;;  %v11837_v7 = vpack.c.bf16 %v1233_v23, %v1229_v17 }
 0x49a   : > { %9196 = vmatprep.subr.msk.bf16.mxu1 %vm2049_vm0, %v11700_v58  ;;  %v11825_v33 = vpop.f32.mrf.mxu0 }
 0x49b   : > { %15895 = vst [vmem:[#allocation112_spill] sm:$0xff] %v11820_v13  ;;  %15896 = vst [vmem:[#allocation113_spill] sm:$0xff] %v11825_v33  ;;  %3228 = vrot.lane.b32.xlu0 %v11590_v50, %s10680_s3  ;;  %2632 = vrot.lane.b32.xlu1 %v11818_v57, %s10679_s2  ;;  %v11853_v41 = vpack.c.bf16 %v1223_v55, %v1219_v34  ;;  %v1773_v55 = vpop.f32.mrf.mxu1 }
 0x49c   : > { %v1856_v6 = vpop.f32.mrf.mxu0 }
 0x49e   : > { %v11839_v43 = vpop.f32.mrf.mxu0 }
 0x49f   : > { %15897 = vst [vmem:[#allocation114_spill] sm:$0xff] %v11839_v43  ;;  %2598 = vrot.lane.b32.xlu0 %v11459_v45, %s10679_s2  ;;  %2630 = vrot.lane.b32.xlu1 %v11837_v7, %s10679_s2 }
 0x4a0   : > { %v1860_v32 = vpop.f32.mrf.mxu0 }
 0x4a1   : > { %v11855_v23 = vpack.c.bf16 %v1860_v32, %v1856_v6  ;;  %8224 = vmatpush3.bf16.xpose.msra.mxu1 %v11851_v61  ;;  %v11876_v6 = vsel %vm2049_vm0, %v11798_v20, 0  ;;  %v11878_v61 = vpop.f32.mrf.mxu1 }
 0x4a2   : > { %9197 = vmatprep.subr.msk.bf16.mxu1 %vm2049_vm0, %v11728_v40  ;;  %v11860_v44 = vpop.f32.mrf.mxu0  ;;  %15902 = vst [vmem:[#allocation119_spill] sm:$0xff] %v11876_v6 }
 0x4a3   : > { %15899 = vst [vmem:[#allocation116_spill] sm:$0xff] %v11855_v23  ;;  %15900 = vst [vmem:[#allocation117_spill] sm:$0xff] %v11860_v44  ;;  %3242 = vrot.lane.b32.xlu0 %v11676_v49, %s10680_s3  ;;  %2628 = vrot.lane.b32.xlu1 %v11853_v41, %s10679_s2  ;;  %v1777_v42 = vpop.f32.mrf.mxu1 }
 0x4a4   : > { %v1866_v17 = vpop.f32.mrf.mxu0 }
 0x4a6   : > { %v11868_v34 = vpop.f32.mrf.mxu0 }
 0x4a7   : > { %15901 = vst [vmem:[#allocation118_spill] sm:$0xff] %v11868_v34  ;;  %3224 = vrot.lane.b32.xlu0 %v11749_v0, %s10680_s3  ;;  %2596 = vrot.lane.b32.xlu1 %v11509_v26, %s10679_s2 }
 0x4a8   : > { %v1870_v32 = vpop.f32.mrf.mxu0 }
 0x4a9   : > { %v11880_v15 = vpack.c.bf16 %v1870_v32, %v1866_v17  ;;  %8226 = vmatpush3.bf16.xpose.msra.mxu1 %v11876_v6  ;;  %v11899_v32 = vsel %vm2049_vm0, %v11818_v57, 0  ;;  %v11901_v6 = vpop.f32.mrf.mxu1 }
 0x4aa   : > { %9198 = vmatprep.subr.msk.bf16.mxu1 %vm2049_vm0, %v11753_v1  ;;  %v11885_v18 = vpop.f32.mrf.mxu0  ;;  %15906 = vst [vmem:[#allocation123_spill] sm:$0xff] %v11899_v32 }
 0x4ab   : > { %15903 = vst [vmem:[#allocation120_spill] sm:$0xff] %v11880_v15  ;;  %15904 = vst [vmem:[#allocation121_spill] sm:$0xff] %v11885_v18  ;;  %2602 = vrot.lane.b32.xlu0 %v11483_v10, %s10679_s2  ;;  %3244 = vrot.lane.b32.xlu1 %v11702_v36, %s10680_s3  ;;  %v1783_v18 = vpop.f32.mrf.mxu1 }
 0x4ac   : > { %v1876_v51 = vpop.f32.mrf.mxu0 }
 0x4ae   : > { %v11891_v33 = vpop.f32.mrf.mxu0 }
 0x4af   : > { %15905 = vst [vmem:[#allocation122_spill] sm:$0xff] %v11891_v33  ;;  %3238 = vrot.lane.b32.xlu0 %v11700_v58, %s10680_s3  ;;  %3226 = vrot.lane.b32.xlu1 %v11724_v60, %s10680_s3 }
 0x4b0   : > { %v1880_v17 = vpop.f32.mrf.mxu0 }
 0x4b1   : > { %v11903_v59 = vpack.c.bf16 %v1880_v17, %v1876_v51  ;;  %8228 = vmatpush3.bf16.xpose.msra.mxu1 %v11899_v32  ;;  %v11922_v17 = vsel %vm2049_vm0, %v11837_v7, 0  ;;  %v11924_v32 = vpop.f32.mrf.mxu1 }
 0x4b2   : > { %9199 = vmatprep.subr.msk.bf16.mxu1 %vm2049_vm0, %v11777_v25  ;;  %v11908_v44 = vpop.f32.mrf.mxu0  ;;  %15910 = vst [vmem:[#allocation127_spill] sm:$0xff] %v11922_v17 }
 0x4b3   : > { %15907 = vst [vmem:[#allocation124_spill] sm:$0xff] %v11903_v59  ;;  %15908 = vst [vmem:[#allocation125_spill] sm:$0xff] %v11908_v44  ;;  %3220 = vrot.lane.b32.xlu0 %v11798_v20, %s10680_s3  ;;  %2600 = vrot.lane.b32.xlu1 %v11473_v9, %s10679_s2  ;;  %v1787_v47 = vpop.f32.mrf.mxu1 }
 0x4b4   : > { %v1886_v43 = vpop.f32.mrf.mxu0 }
 0x4b6   : > { %v11914_v34 = vpop.f32.mrf.mxu0 }
 0x4b7   : > { %15909 = vst [vmem:[#allocation126_spill] sm:$0xff] %v11914_v34  ;;  %2606 = vrot.lane.b32.xlu0 %v11558_v62, %s10679_s2  ;;  %3240 = vrot.lane.b32.xlu1 %v11684_v63, %s10680_s3 }
 0x4b8   : > { %v1890_v51 = vpop.f32.mrf.mxu0 }
 0x4b9   : > { %v11926_v44 = vpack.c.bf16 %v1890_v51, %v1886_v43  ;;  %8230 = vmatpush3.bf16.xpose.msra.mxu1 %v11922_v17  ;;  %v11943_v43 = vpack.c.bf16 %v1787_v47, %v1783_v18  ;;  %v11947_v17 = vsel %vm2049_vm0, %v11853_v41, 0 }
 0x4ba   : > { %9200 = vmatprep.subr.msk.bf16.mxu1 %vm2049_vm0, %v11800_v22  ;;  %v11931_v33 = vpop.f32.mrf.mxu0  ;;  %15915 = vst [vmem:[#allocation132_spill] sm:$0xff] %v11947_v17 }
 0x4bb   : > { %15911 = vst [vmem:[#allocation128_spill] sm:$0xff] %v11926_v44  ;;  %15912 = vst [vmem:[#allocation129_spill] sm:$0xff] %v11931_v33  ;;  %3234 = vrot.lane.b32.xlu0 %v11753_v1, %s10680_s3  ;;  %3222 = vrot.lane.b32.xlu1 %v11773_v46, %s10680_s3 }
 0x4bc   : > { %v1896_v34 = vpop.f32.mrf.mxu0  ;;  %15914 = vst [vmem:[#allocation131_spill] sm:$0xff] %v11943_v43 }
 0x4be   : > { %v11937_v29 = vpop.f32.mrf.mxu0 }
 0x4bf   : > { %15913 = vst [vmem:[#allocation130_spill] sm:$0xff] %v11937_v29  ;;  %3216 = vrot.lane.b32.xlu0 %v11837_v7, %s10680_s3  ;;  %2604 = vrot.lane.b32.xlu1 %v11542_v56, %s10679_s2 }
 0x4c0   : > { %v1900_v51 = vpop.f32.mrf.mxu0 }
 0x4c1   : > { %v11949_v33 = vpack.c.bf16 %v1900_v51, %v1896_v34  ;;  %8232 = vmatpush3.bf16.xpose.msra.mxu1 %v11947_v17  ;;  %v11965_v34 = vpack.c.bf16 %v1777_v42, %v1773_v55  ;;  %v11983_v42 = vpack.c.bf16 %v11843_v11, %v11806_v16 }
 0x4c2   : > { %8249 = vmatprep.subr.bf16.mxu1 %v11943_v43  ;;  %v11953_v29 = vpop.f32.mrf.mxu0 }
 0x4c3   : > { %15916 = vst [vmem:[#allocation133_spill] sm:$0xff] %v11949_v33  ;;  %15917 = vst [vmem:[#allocation134_spill] sm:$0xff] %v11953_v29  ;;  %2610 = vrot.lane.b32.xlu0 %v11587_v12, %s10679_s2  ;;  %3236 = vrot.lane.b32.xlu1 %v11728_v40, %s10680_s3 }
 0x4c4   : > { %v1906_v18 = vpop.f32.mrf.mxu0  ;;  %15919 = vst [vmem:[#allocation136_spill] sm:$0xff] %v11965_v34  ;;  %15922 = vst [vmem:[#allocation139_spill] sm:$0xff] %v11983_v42 }
 0x4c6   : > { %v11959_v47 = vpop.f32.mrf.mxu0 }
 0x4c7   : > { %15918 = vst [vmem:[#allocation135_spill] sm:$0xff] %v11959_v47  ;;  %3230 = vrot.lane.b32.xlu0 %v11800_v22, %s10680_s3  ;;  %3218 = vrot.lane.b32.xlu1 %v11818_v57, %s10680_s3 }
 0x4c8   : > { %8234 = vmatmul.mubr.msk.bf16.vlgmr.msra.gmra.mxu1 %vm2049_vm0, %v11509_v26  ;;  %v1910_v51 = vpop.f32.mrf.mxu0 }
 0x4c9   : > { %v11969_v17 = vpack.c.bf16 %v1910_v51, %v1906_v18  ;;  %8235 = vmatprep.mubr.msk.bf16.mxu1 %vm2049_vm0, %v11459_v45  ;;  %8250 = vmatpush3.bf16.msra.mxu1 %v11581_v2 }
 0x4ca   : > { %8251 = vmatprep.subr.bf16.mxu1 %v11965_v34  ;;  %v11975_v43 = vpop.f32.mrf.mxu0 }
 0x4cb   : > { %15920 = vst [vmem:[#allocation137_spill] sm:$0xff] %v11969_v17  ;;  %15921 = vst [vmem:[#allocation138_spill] sm:$0xff] %v11975_v43  ;;  %3814 = vrot.lane.b32.xlu0 %v11590_v50, %s10681_s23  ;;  %2608 = vrot.lane.b32.xlu1 %v11574_v53, %s10679_s2  ;;  %v11995_v50 = vpack.c.bf16 %v11761_v52, %v11710_v27  ;;  %v12013_v27 = vpack.c.bf16 %v11678_v39, %v11665_v3 }
 0x4cc   : > { %v1916_v55 = vpop.f32.mrf.mxu0 }
 0x4cd   : > { %8252 = vmatpush3.bf16.msra.mxu1 %v11567_v21  ;;  %15924 = vst [vmem:[#allocation141_spill] sm:$0xff] %v11995_v50  ;;  %15927 = vst [vmem:[#allocation144_spill] sm:$0xff] %v12013_v27 }
 0x4ce   : > { %8253 = vmatprep.subr.bf16.mxu1 %v11983_v42  ;;  %v11987_v18 = vpop.f32.mrf.mxu0 }
 0x4cf   : > { %15923 = vst [vmem:[#allocation140_spill] sm:$0xff] %v11987_v18  ;;  %3200 = vrot.lane.b32.xlu0 %v11459_v45, %s10680_s3  ;;  %3232 = vrot.lane.b32.xlu1 %v11777_v25, %s10680_s3 }
 0x4d0   : > { %8236 = vmatmul.mubr.msk.bf16.gmra.mxu1 %vm2049_vm0, %v11459_v45  ;;  %v1920_v16 = vpop.f32.mrf.mxu0 }
 0x4d1   : > { %v11999_v11 = vpack.c.bf16 %v1920_v16, %v1916_v55  ;;  %8237 = vmatprep.mubr.msk.bf16.mxu1 %vm2049_vm0, %v11473_v9  ;;  %8254 = vmatpush3.bf16.msra.mxu1 %v11551_v28 }
 0x4d2   : > { %8255 = vmatprep.subr.bf16.mxu1 %v11995_v50  ;;  %v12005_v51 = vpop.f32.mrf.mxu0 }
 0x4d3   : > { %15925 = vst [vmem:[#allocation142_spill] sm:$0xff] %v11999_v11  ;;  %15926 = vst [vmem:[#allocation143_spill] sm:$0xff] %v12005_v51  ;;  %3828 = vrot.lane.b32.xlu0 %v11676_v49, %s10681_s23  ;;  %3214 = vrot.lane.b32.xlu1 %v11853_v41, %s10680_s3 }
 0x4d4   : > { %v1926_v52 = vpop.f32.mrf.mxu0 }
 0x4d5   : > { %8256 = vmatpush3.bf16.msra.mxu1 %v11535_v48 }
 0x4d6   : > { %8257 = vmatprep.subr.bf16.mxu1 %v12013_v27  ;;  %v12017_v55 = vpop.f32.mrf.mxu0 }
 0x4d7   : > { %15928 = vst [vmem:[#allocation145_spill] sm:$0xff] %v12017_v55  ;;  %3810 = vrot.lane.b32.xlu0 %v11749_v0, %s10681_s23  ;;  %3198 = vrot.lane.b32.xlu1 %v11509_v26, %s10680_s3  ;;  %v9439_v55 = vld [vmem:[#allocation10 + $0x30] sm:$0xff]  }
 0x4d8   : > { %8238 = vmatmul.mubr.msk.bf16.gmra.mxu1 %vm2049_vm0, %v11473_v9  ;;  %v1930_v16 = vpop.f32.mrf.mxu0 }
 0x4d9   : > { %v12025_v50 = vpack.c.bf16 %v1930_v16, %v1926_v52  ;;  %8239 = vmatprep.mubr.msk.bf16.mxu1 %vm2049_vm0, %v11483_v10  ;;  %8258 = vmatpush3.bf16.msra.mxu1 %v11481_v37  ;;  %v1789_v16 = vpop.f32.mrf.mxu1 }
 0x4da   : > { %8259 = vmatprep.subr.bf16.mxu1 %v11633_v35  ;;  %v12031_v39 = vpop.f32.mrf.mxu0 }
 0x4db   : > { %15929 = vst [vmem:[#allocation146_spill] sm:$0xff] %v12025_v50  ;;  %15930 = vst [vmem:[#allocation147_spill] sm:$0xff] %v12031_v39  ;;  %3204 = vrot.lane.b32.xlu0 %v11483_v10, %s10680_s3  ;;  %3830 = vrot.lane.b32.xlu1 %v11702_v36, %s10681_s23 }
 0x4dc   : > { %v1936_v3 = vpop.f32.mrf.mxu0 }
 0x4dd   : > { %8260 = vmatpush3.bf16.msra.mxu1 %v11467_v30 }
 0x4de   : > { %8261 = vmatprep.subr.bf16.mxu1 %v11617_v38  ;;  %v12039_v0 = vpop.f32.mrf.mxu0 }
 0x4df   : > { %15931 = vst [vmem:[#allocation148_spill] sm:$0xff] %v12039_v0  ;;  %3824 = vrot.lane.b32.xlu0 %v11700_v58, %s10681_s23  ;;  %3812 = vrot.lane.b32.xlu1 %v11724_v60, %s10681_s23  ;;  %v12060_v60 = vpack.c.bf16 %v1789_v16, %v11924_v32 }
 0x4e0   : > { %8240 = vmatmul.mubr.msk.bf16.gmra.mxu1 %vm2049_vm0, %v11483_v10  ;;  %v1940_v52 = vpop.f32.mrf.mxu0 }
 0x4e1   : > { %v12047_v35 = vpack.c.bf16 %v1940_v52, %v1936_v3  ;;  %8241 = vmatprep.mubr.msk.bf16.mxu1 %vm2049_vm0, %v11542_v56  ;;  %8262 = vmatpush3.bf16.msra.mxu1 %v11453_v14  ;;  %15934 = vst [vmem:[#allocation151_spill] sm:$0xff] %v12060_v60 }
 0x4e2   : > { %8263 = vmatprep.subr.bf16.mxu1 %v11601_v8  ;;  %v12053_v38 = vpop.f32.mrf.mxu0 }
 0x4e3   : > { %15932 = vst [vmem:[#allocation149_spill] sm:$0xff] %v12047_v35  ;;  %15933 = vst [vmem:[#allocation150_spill] sm:$0xff] %v12053_v38  ;;  %3806 = vrot.lane.b32.xlu0 %v11798_v20, %s10681_s23  ;;  %3202 = vrot.lane.b32.xlu1 %v11473_v9, %s10680_s3 }
 0x4e4   : > { %v1946_v3 = vpop.f32.mrf.mxu0 }
 0x4e5   : > { %8264 = vmatpush3.bf16.msra.mxu1 %v11437_v31 }
 0x4e6   : > { %8345 = vmatprep.subr.bf16.mxu1 %v12060_v60  ;;  %v12064_v52 = vpop.f32.mrf.mxu0 }
 0x4e7   : > { %15935 = vst [vmem:[#allocation152_spill] sm:$0xff] %v12064_v52  ;;  %3208 = vrot.lane.b32.xlu0 %v11558_v62, %s10680_s3  ;;  %3826 = vrot.lane.b32.xlu1 %v11684_v63, %s10681_s23 }
 0x4e8   : > { %8242 = vmatmul.mubr.msk.bf16.gmra.mxu1 %vm2049_vm0, %v11542_v56  ;;  %v1950_v20 = vpop.f32.mrf.mxu0 }
 0x4e9   : > { %v12072_v8 = vpack.c.bf16 %v1950_v20, %v1946_v3  ;;  %8243 = vmatprep.mubr.msk.bf16.mxu1 %vm2049_vm0, %v11558_v62 }
 0x4ea   : > { %v12076_v32 = vpop.f32.mrf.mxu0 }
 0x4eb   : > { %15936 = vst [vmem:[#allocation153_spill] sm:$0xff] %v12072_v8  ;;  %15937 = vst [vmem:[#allocation154_spill] sm:$0xff] %v12076_v32  ;;  %3820 = vrot.lane.b32.xlu0 %v11753_v1, %s10681_s23  ;;  %3808 = vrot.lane.b32.xlu1 %v11773_v46, %s10681_s23  ;;  %v2643_v46 = vpop.permute.xlu0 %2642 }
 0x4ec   : > { %v1956_v16 = vpop.f32.mrf.mxu0 }
 0x4ee   : > { %v12082_v31 = vpop.f32.mrf.mxu0 }
 0x4ef   : > { %15938 = vst [vmem:[#allocation155_spill] sm:$0xff] %v12082_v31  ;;  %3802 = vrot.lane.b32.xlu0 %v11837_v7, %s10681_s23  ;;  %3206 = vrot.lane.b32.xlu1 %v11542_v56, %s10680_s3 }
 0x4f0   : > { %8244 = vmatmul.mubr.msk.bf16.gmra.mxu1 %vm2049_vm0, %v11558_v62  ;;  %v1960_v3 = vpop.f32.mrf.mxu0 }
 0x4f1   : > { %v12090_v20 = vpack.c.bf16 %v1960_v3, %v1956_v16  ;;  %8245 = vmatprep.mubr.msk.bf16.mxu1 %vm2049_vm0, %v11574_v53  ;;  %v12106_v16 = vpop.permute.xlu0 %2656 }
 0x4f2   : > { %v12094_v14 = vpop.f32.mrf.mxu0  ;;  %15942 = vst [vmem:[#allocation159_spill] sm:$0xff] %v12106_v16 }
 0x4f3   : > { %15939 = vst [vmem:[#allocation156_spill] sm:$0xff] %v12090_v20  ;;  %15940 = vst [vmem:[#allocation157_spill] sm:$0xff] %v12094_v14  ;;  %3212 = vrot.lane.b32.xlu0 %v11587_v12, %s10680_s3  ;;  %3822 = vrot.lane.b32.xlu1 %v11728_v40, %s10681_s23  ;;  %v9441_v14 = vld [vmem:[#allocation10 + $0x20] sm:$0xff]  }
 0x4f4   : > { %v1966_v7 = vpop.f32.mrf.mxu0 }
 0x4f5   : > { %v12130_v28 = vpop.permute.xlu0 %2654 }
 0x4f6   : > { %v12100_v30 = vpop.f32.mrf.mxu0  ;;  %15947 = vst [vmem:[#allocation164_spill] sm:$0xff] %v12130_v28 }
 0x4f7   : > { %15941 = vst [vmem:[#allocation158_spill] sm:$0xff] %v12100_v30  ;;  %3816 = vrot.lane.b32.xlu0 %v11800_v22, %s10681_s23  ;;  %3804 = vrot.lane.b32.xlu1 %v11818_v57, %s10681_s23  ;;  %v12121_v57 = vsel %vm2049_vm0, %v2643_v46, 0  ;;  %v9443_v30 = vld [vmem:[#allocation10 + $0x10] sm:$0xff]  }
 0x4f8   : > { %8246 = vmatmul.mubr.msk.bf16.gmra.mxu1 %vm2049_vm0, %v11574_v53  ;;  %v1970_v3 = vpop.f32.mrf.mxu0  ;;  %15946 = vst [vmem:[#allocation163_spill] sm:$0xff] %v12121_v57 }
 0x4f9   : > { %v12110_v37 = vpack.c.bf16 %v1970_v3, %v1966_v7  ;;  %8247 = vmatprep.mubr.msk.bf16.mxu1 %vm2049_vm0, %v11587_v12  ;;  %v12114_v27 = vpop.permute.xlu1 %2658 }
 0x4fa   : > { %15944 = vst [vmem:[#allocation161_spill] sm:$0xff] %v12114_v27  ;;  %v12116_v48 = vpop.f32.mrf.mxu0  ;;  %9201 = vmatprep.subr.msk.bf16.mxu0 %vm2049_vm0, %v12114_v27 }
 0x4fb   : > { %15943 = vst [vmem:[#allocation160_spill] sm:$0xff] %v12110_v37  ;;  %15945 = vst [vmem:[#allocation162_spill] sm:$0xff] %v12116_v48  ;;  %3786 = vrot.lane.b32.xlu0 %v11459_v45, %s10681_s23  ;;  %3210 = vrot.lane.b32.xlu1 %v11574_v53, %s10680_s3  ;;  %v9442_v48 = vld [vmem:[#allocation10 + $0x18] sm:$0xff]  }
 0x4fc   : > { %8314 = vmatpush3.bf16.xpose.msra.mxu0 %v12121_v57  ;;  %v1976_v7 = vpop.f32.mrf.mxu0 }
 0x4fd   : > { %9202 = vmatprep.subr.msk.bf16.mxu0 %vm2049_vm0, %v12106_v16  ;;  %v2641_v3 = vpop.permute.xlu1 %2640 }
 0x4fe   : > { %v12132_v42 = vpop.f32.mrf.mxu0  ;;  %v12143_v16 = vsel %vm2049_vm0, %v2641_v3, 0 }
 0x4ff   : > { %15948 = vst [vmem:[#allocation165_spill] sm:$0xff] %v12132_v42  ;;  %3790 = vrot.lane.b32.xlu0 %v11483_v10, %s10681_s23  ;;  %3818 = vrot.lane.b32.xlu1 %v11777_v25, %s10681_s23  ;;  %15950 = vst [vmem:[#allocation167_spill] sm:$0xff] %v12143_v16  ;;  %v12149_v10 = vpop.permute.xlu0 %2652 }
 0x500   : > { %8248 = vmatmul.mubr.msk.bf16.gmra.mxu1 %vm2049_vm0, %v11587_v12  ;;  %v1980_v45 = vpop.f32.mrf.mxu0  ;;  %15951 = vst [vmem:[#allocation168_spill] sm:$0xff] %v12149_v10 }
 0x501   : > { %v12140_v46 = vpack.c.bf16 %v1980_v45, %v1976_v7  ;;  %v2639_v57 = vpop.permute.xlu1 %2638 }
 0x503   : > { %15949 = vst [vmem:[#allocation166_spill] sm:$0xff] %v12140_v46  ;;  %3794 = vrot.lane.b32.xlu0 %v11558_v62, %s10681_s23  ;;  %3800 = vrot.lane.b32.xlu1 %v11853_v41, %s10681_s23  ;;  %v12158_v3 = vpop.permute.xlu0 %2650  ;;  %v12161_v62 = vsel %vm2049_vm0, %v2639_v57, 0 }
 0x504   : > { %8316 = vmatpush3.bf16.xpose.msra.mxu0 %v12143_v16  ;;  %15952 = vst [vmem:[#allocation169_spill] sm:$0xff] %v12158_v3  ;;  %15953 = vst [vmem:[#allocation170_spill] sm:$0xff] %v12161_v62 }
 0x505   : > { %9203 = vmatprep.subr.msk.bf16.mxu0 %vm2049_vm0, %v12130_v28  ;;  %v2637_v27 = vpop.permute.xlu1 %2636 }
 0x506   : > { %v12173_v45 = vsel %vm2049_vm0, %v2637_v27, 0 }
 0x507   : > { %3798 = vrot.lane.b32.xlu0 %v11587_v12, %s10681_s23  ;;  %3784 = vrot.lane.b32.xlu1 %v11509_v26, %s10681_s23  ;;  %v12170_v12 = vpop.permute.xlu0 %2648  ;;  %15955 = vst [vmem:[#allocation172_spill] sm:$0xff] %v12173_v45 }
 0x508   : > { %15954 = vst [vmem:[#allocation171_spill] sm:$0xff] %v12170_v12 }
 0x509   : > { %v2635_v7 = vpop.permute.xlu1 %2634 }
 0x50b   : > { %3788 = vrot.lane.b32.xlu1 %v11473_v9, %s10681_s23  ;;  %v12180_v57 = vpop.permute.xlu0 %2646 }
 0x50c   : > { %8318 = vmatpush3.bf16.xpose.msra.mxu0 %v12161_v62  ;;  %15956 = vst [vmem:[#allocation173_spill] sm:$0xff] %v12180_v57 }
 0x50d   : > { %9204 = vmatprep.subr.msk.bf16.mxu0 %vm2049_vm0, %v12149_v10  ;;  %v2633_v41 = vpop.permute.xlu1 %2632 }
 0x50e   : > { %v12192_v27 = vsel %vm2049_vm0, %v2633_v41, 0 }
 0x50f   : > { %3792 = vrot.lane.b32.xlu1 %v11542_v56, %s10681_s23  ;;  %v12184_v56 = vsel %vm2049_vm0, %v2635_v7, 0  ;;  %v12186_v62 = vpop.permute.xlu0 %2644  ;;  %15959 = vst [vmem:[#allocation176_spill] sm:$0xff] %v12192_v27 }
 0x510   : > { %15957 = vst [vmem:[#allocation174_spill] sm:$0xff] %v12184_v56  ;;  %15958 = vst [vmem:[#allocation175_spill] sm:$0xff] %v12186_v62 }
 0x511   : > { %v2631_v26 = vpop.permute.xlu1 %2630 }
 0x513   : > { %3796 = vrot.lane.b32.xlu1 %v11574_v53, %s10681_s23  ;;  %v3229_v53 = vpop.permute.xlu0 %3228 }
 0x514   : > { %8320 = vmatpush3.bf16.xpose.msra.mxu0 %v12173_v45  ;;  %v12200_v45 = vsel %vm2049_vm0, %v2631_v26, 0 }
 0x515   : > { %9205 = vmatprep.subr.msk.bf16.mxu0 %vm2049_vm0, %v12158_v3  ;;  %v2629_v9 = vpop.permute.xlu1 %2628  ;;  %15961 = vst [vmem:[#allocation178_spill] sm:$0xff] %v12200_v45 }
 0x517   : > { %v2599_v7 = vpop.permute.xlu0 %2598 }
 0x519   : > { %v2597_v10 = vpop.permute.xlu1 %2596 }
 0x51a   : > { %8329 = vmatprep.mubr.msk.bf16.mxu0 %vm2049_vm0, %v2597_v10 }
 0x51c   : > { %8322 = vmatpush3.bf16.xpose.msra.mxu0 %v12184_v56 }
 0x51d   : > { %9206 = vmatprep.subr.msk.bf16.mxu0 %vm2049_vm0, %v12170_v12  ;;  %v12197_v3 = vpop.permute.xlu1 %3244  ;;  %v12205_v12 = vpop.permute.xlu0 %3242 }
 0x51e   : > { %15960 = vst [vmem:[#allocation177_spill] sm:$0xff] %v12197_v3  ;;  %15962 = vst [vmem:[#allocation179_spill] sm:$0xff] %v12205_v12 }
 0x521   : > { %v3227_v28 = vpop.permute.xlu1 %3226  ;;  %v3225_v56 = vpop.permute.xlu0 %3224 }
 0x524   : > { %8324 = vmatpush3.bf16.xpose.msra.mxu0 %v12192_v27  ;;  %v12208_v27 = vsel %vm2049_vm0, %v2629_v9, 0 }
 0x525   : > { %9207 = vmatprep.subr.msk.bf16.mxu0 %vm2049_vm0, %v12180_v57  ;;  %v2601_v41 = vpop.permute.xlu1 %2600  ;;  %15963 = vst [vmem:[#allocation180_spill] sm:$0xff] %v12208_v27  ;;  %v2603_v57 = vpop.permute.xlu0 %2602 }
 0x529   : > { %v12213_v26 = vpop.permute.xlu1 %3240 }
 0x52a   : > { %15964 = vst [vmem:[#allocation181_spill] sm:$0xff] %v12213_v26 }
 0x52c   : > { %8326 = vmatpush3.bf16.xpose.msra.mxu0 %v12200_v45  ;;  %v12216_v45 = vsel %vm2049_vm0, %v3229_v53, 0 }
 0x52d   : > { %9208 = vmatprep.subr.msk.bf16.mxu0 %vm2049_vm0, %v12186_v62  ;;  %15965 = vst [vmem:[#allocation182_spill] sm:$0xff] %v12216_v45  ;;  %v3223_v9 = vpop.permute.xlu1 %3222 }
 0x531   : > { %v2605_v62 = vpop.permute.xlu1 %2604 }
 0x534   : > { %8328 = vmatpush3.bf16.xpose.msra.mxu0 %v12208_v27  ;;  %v12223_v27 = vpop.permute.xlu0 %3238 }
 0x535   : > { %9209 = vmatprep.subr.msk.bf16.mxu0 %vm2049_vm0, %v12197_v3  ;;  %15966 = vst [vmem:[#allocation183_spill] sm:$0xff] %v12223_v27  ;;  %v12226_v3 = vsel %vm2049_vm0, %v3227_v28, 0  ;;  %v12233_v53 = vpop.permute.xlu1 %3236 }
 0x536   : > { %15967 = vst [vmem:[#allocation184_spill] sm:$0xff] %v12226_v3  ;;  %15968 = vst [vmem:[#allocation185_spill] sm:$0xff] %v12233_v53 }
 0x53b   : > { %8330 = vmatmul.mubr.msk.bf16.vlgmr.msra.gmra.mxu0 %vm2049_vm0, %v2597_v10  ;;  %v3221_v10 = vpop.permute.xlu0 %3220 }
 0x53c   : > { %8331 = vmatprep.mubr.msk.bf16.mxu0 %vm2049_vm0, %v2599_v7  ;;  %8410 = vmatpush3.bf16.xpose.msra.mxu0 %v12216_v45 }
 0x53d   : > { %9210 = vmatprep.subr.msk.bf16.mxu0 %vm2049_vm0, %v12205_v12  ;;  %v12236_v12 = vsel %vm2049_vm0, %v3225_v56, 0 }
 0x53e   : > { %15969 = vst [vmem:[#allocation186_spill] sm:$0xff] %v12236_v12 }
 0x53f   : > { %v2607_v28 = vpop.permute.xlu0 %2606 }
 0x543   : > { %8332 = vmatmul.mubr.msk.bf16.gmra.mxu0 %vm2049_vm0, %v2599_v7  ;;  %v3219_v7 = vpop.permute.xlu1 %3218 }
 0x544   : > { %8333 = vmatprep.mubr.msk.bf16.mxu0 %vm2049_vm0, %v2601_v41  ;;  %8412 = vmatpush3.bf16.xpose.msra.mxu0 %v12226_v3  ;;  %v12243_v3 = vpop.permute.xlu0 %3234 }
 0x545   : > { %9211 = vmatprep.subr.msk.bf16.mxu0 %vm2049_vm0, %v12213_v26  ;;  %15970 = vst [vmem:[#allocation187_spill] sm:$0xff] %v12243_v3  ;;  %v12246_v26 = vsel %vm2049_vm0, %v3223_v9, 0 }
 0x546   : > { %15971 = vst [vmem:[#allocation188_spill] sm:$0xff] %v12246_v26 }
 0x547   : > { %v2609_v56 = vpop.permute.xlu1 %2608 }
 0x54b   : > { %8334 = vmatmul.mubr.msk.bf16.gmra.mxu0 %vm2049_vm0, %v2601_v41  ;;  %v3217_v41 = vpop.permute.xlu0 %3216 }
 0x54c   : > { %8335 = vmatprep.mubr.msk.bf16.mxu0 %vm2049_vm0, %v2603_v57  ;;  %8414 = vmatpush3.bf16.xpose.msra.mxu0 %v12236_v12  ;;  %v12254_v12 = vsel %vm2049_vm0, %v3221_v10, 0 }
 0x54d   : > { %9212 = vmatprep.subr.msk.bf16.mxu0 %vm2049_vm0, %v12223_v27  ;;  %15972 = vst [vmem:[#allocation189_spill] sm:$0xff] %v12254_v12  ;;  %v12257_v27 = vpop.permute.xlu1 %3232 }
 0x54e   : > { %15973 = vst [vmem:[#allocation190_spill] sm:$0xff] %v12257_v27 }
 0x551   : > { %v3215_v9 = vpop.permute.xlu1 %3214 }
 0x553   : > { %8336 = vmatmul.mubr.msk.bf16.gmra.mxu0 %vm2049_vm0, %v2603_v57  ;;  %v2611_v57 = vpop.permute.xlu0 %2610 }
 0x554   : > { %8337 = vmatprep.mubr.msk.bf16.mxu0 %vm2049_vm0, %v2605_v62  ;;  %8416 = vmatpush3.bf16.xpose.msra.mxu0 %v12246_v26 }
 0x555   : > { %9213 = vmatprep.subr.msk.bf16.mxu0 %vm2049_vm0, %v12233_v53  ;;  %v12264_v53 = vsel %vm2049_vm0, %v3219_v7, 0 }
 0x556   : > { %15974 = vst [vmem:[#allocation191_spill] sm:$0xff] %v12264_v53 }
 0x557   : > { %v12267_v10 = vpop.permute.xlu0 %3230 }
 0x558   : > { %15975 = vst [vmem:[#allocation192_spill] sm:$0xff] %v12267_v10 }
 0x55b   : > { %8338 = vmatmul.mubr.msk.bf16.gmra.mxu0 %vm2049_vm0, %v2605_v62  ;;  %v3199_v62 = vpop.permute.xlu1 %3198 }
 0x55c   : > { %8339 = vmatprep.mubr.msk.bf16.mxu0 %vm2049_vm0, %v2607_v28  ;;  %8418 = vmatpush3.bf16.xpose.msra.mxu0 %v12254_v12  ;;  %v3815_v12 = vpop.permute.xlu0 %3814 }
 0x55d   : > { %9214 = vmatprep.subr.msk.bf16.mxu0 %vm2049_vm0, %v12243_v3  ;;  %v12274_v3 = vsel %vm2049_vm0, %v3217_v41, 0 }
 0x55e   : > { %15976 = vst [vmem:[#allocation193_spill] sm:$0xff] %v12274_v3 }
 0x560   : > { %v3201_v7 = vpop.permute.xlu0 %3200 }
 0x563   : > { %8340 = vmatmul.mubr.msk.bf16.gmra.mxu0 %vm2049_vm0, %v2607_v28  ;;  %v12281_v28 = vpop.permute.xlu1 %3830 }
 0x564   : > { %8341 = vmatprep.mubr.msk.bf16.mxu0 %vm2049_vm0, %v2609_v56  ;;  %8420 = vmatpush3.bf16.xpose.msra.mxu0 %v12264_v53  ;;  %15977 = vst [vmem:[#allocation194_spill] sm:$0xff] %v12281_v28  ;;  %v12284_v53 = vsel %vm2049_vm0, %v3215_v9, 0 }
 0x565   : > { %9215 = vmatprep.subr.msk.bf16.mxu0 %vm2049_vm0, %v12257_v27  ;;  %15978 = vst [vmem:[#allocation195_spill] sm:$0xff] %v12284_v53 }
 0x567   : > { %v3813_v27 = vpop.permute.xlu1 %3812 }
 0x56b   : > { %8342 = vmatmul.mubr.msk.bf16.gmra.mxu0 %vm2049_vm0, %v2609_v56  ;;  %v12291_v56 = vpop.permute.xlu0 %3828  ;;  %v3203_v41 = vpop.permute.xlu1 %3202 }
 0x56c   : > { %8343 = vmatprep.mubr.msk.bf16.mxu0 %vm2049_vm0, %v2611_v57  ;;  %8422 = vmatpush3.bf16.xpose.msra.mxu0 %v12274_v3  ;;  %15979 = vst [vmem:[#allocation196_spill] sm:$0xff] %v12291_v56 }
 0x56d   : > { %9216 = vmatprep.subr.msk.bf16.mxu0 %vm2049_vm0, %v12267_v10  ;;  %v12294_v10 = vsel %vm2049_vm0, %v3815_v12, 0 }
 0x56e   : > { %15980 = vst [vmem:[#allocation197_spill] sm:$0xff] %v12294_v10 }
 0x56f   : > { %v3811_v9 = vpop.permute.xlu0 %3810 }
 0x570   : > { %v12318_v3 = vsel %vm2049_vm0, %v3811_v9, 0 }
 0x571   : > { %15984 = vst [vmem:[#allocation201_spill] sm:$0xff] %v12318_v3 }
 0x573   : > { %8344 = vmatmul.mubr.msk.bf16.gmra.mxu0 %vm2049_vm0, %v2611_v57  ;;  %v12301_v57 = vpop.permute.xlu1 %3826 }
 0x574   : > { %8424 = vmatpush3.bf16.xpose.msra.mxu0 %v12284_v53  ;;  %8425 = vmatprep.mubr.msk.bf16.mxu0 %vm2049_vm0, %v3199_v62  ;;  %15981 = vst [vmem:[#allocation198_spill] sm:$0xff] %v12301_v57  ;;  %v3205_v53 = vpop.permute.xlu0 %3204 }
 0x575   : > { %9217 = vmatprep.subr.msk.bf16.mxu0 %vm2049_vm0, %v12281_v28  ;;  %v12304_v28 = vsel %vm2049_vm0, %v3813_v27, 0 }
 0x576   : > { %15982 = vst [vmem:[#allocation199_spill] sm:$0xff] %v12304_v28 }
 0x577   : > { %v3809_v12 = vpop.permute.xlu1 %3808 }
 0x578   : > { %v12340_v21 = vsel %vm2049_vm0, %v3809_v12, 0 }
 0x579   : > { %15986 = vst [vmem:[#allocation203_spill] sm:$0xff] %v12340_v21 }
 0x57b   : > { %8426 = vmatmul.mubr.msk.bf16.vlgmr.msra.gmra.mxu0 %vm2049_vm0, %v3199_v62  ;;  %v12311_v62 = vpop.permute.xlu0 %3824 }
 0x57c   : > { %8427 = vmatprep.mubr.msk.bf16.mxu0 %vm2049_vm0, %v3201_v7  ;;  %8506 = vmatpush3.bf16.xpose.msra.mxu0 %v12294_v10  ;;  %15983 = vst [vmem:[#allocation200_spill] sm:$0xff] %v12311_v62 }
 0x57d   : > { %9218 = vmatprep.subr.msk.bf16.mxu0 %vm2049_vm0, %v12291_v56 }
 0x583   : > { %8428 = vmatmul.mubr.msk.bf16.gmra.mxu0 %vm2049_vm0, %v3201_v7  ;;  %v3207_v7 = vpop.permute.xlu1 %3206 }
 0x584   : > { %8429 = vmatprep.mubr.msk.bf16.mxu0 %vm2049_vm0, %v3203_v41  ;;  %8508 = vmatpush3.bf16.xpose.msra.mxu0 %v12304_v28 }
 0x585   : > { %9219 = vmatprep.subr.msk.bf16.mxu0 %vm2049_vm0, %v12301_v57  ;;  %v3807_v57 = vpop.permute.xlu0 %3806 }
 0x586   : > { %v12362_v22 = vsel %vm2049_vm0, %v3807_v57, 0 }
 0x587   : > { %15988 = vst [vmem:[#allocation205_spill] sm:$0xff] %v12362_v22 }
 0x588   : > { %v12313_v10 = vpop.f32.mrf.mxu1 }
 0x58a   : > { %v12315_v56 = vpop.f32.mrf.mxu1 }
 0x58b   : > { %v2235_v27 = vmax.f32 %v12313_v10, %v12315_v56  ;;  %8430 = vmatmul.mubr.msk.bf16.gmra.mxu0 %vm2049_vm0, %v3203_v41  ;;  %v12335_v41 = vpop.permute.xlu1 %3822 }
 0x58c   : > { %v12323_v28 = vpop.f32.mrf.mxu1  ;;  %8431 = vmatprep.mubr.msk.bf16.mxu0 %vm2049_vm0, %v3205_v53  ;;  %8510 = vmatpush3.bf16.xpose.msra.mxu0 %v12318_v3  ;;  %15985 = vst [vmem:[#allocation202_spill] sm:$0xff] %v12335_v41 }
 0x58d   : > { %2236 = vmax.xlane.f32.xlu1 %v2235_v27  ;;  %9220 = vmatprep.subr.msk.bf16.mxu0 %vm2049_vm0, %v12311_v62  ;;  %v3209_v62 = vpop.permute.xlu0 %3208 }
 0x58e   : > { %v12329_v26 = vpop.f32.mrf.mxu1 }
 0x58f   : > { %v2238_v9 = vmax.f32 %v12323_v28, %v12329_v26  ;;  %v3805_v34 = vpop.permute.xlu1 %3804 }
 0x590   : > { %v12333_v45 = vpop.f32.mrf.mxu1  ;;  %v12382_v40 = vsel %vm2049_vm0, %v3805_v34, 0 }
 0x591   : > { %2239 = vmax.xlane.f32.xlu0 %v2238_v9  ;;  %15989 = vst [vmem:[#allocation206_spill] sm:$0xff] %v12382_v40 }
 0x592   : > { %v12337_v16 = vpop.f32.mrf.mxu1 }
 0x593   : > { %v2241_v27 = vmax.f32 %v12333_v45, %v12337_v16  ;;  %8432 = vmatmul.mubr.msk.bf16.gmra.mxu0 %vm2049_vm0, %v3205_v53  ;;  %v12357_v53 = vpop.permute.xlu0 %3820 }
 0x594   : > { %v12345_v3 = vpop.f32.mrf.mxu1  ;;  %8433 = vmatprep.mubr.msk.bf16.mxu0 %vm2049_vm0, %v3207_v7  ;;  %8512 = vmatpush3.bf16.xpose.msra.mxu0 %v12340_v21  ;;  %15987 = vst [vmem:[#allocation204_spill] sm:$0xff] %v12357_v53 }
 0x595   : > { %2242 = vmax.xlane.f32.xlu0 %v2241_v27  ;;  %9221 = vmatprep.subr.msk.bf16.mxu0 %vm2049_vm0, %v12335_v41 }
 0x596   : > { %v12351_v9 = vpop.f32.mrf.mxu1 }
 0x597   : > { %v2244_v12 = vmax.f32 %v12345_v3, %v12351_v9  ;;  %v3803_v25 = vpop.permute.xlu0 %3802 }
 0x598   : > { %v12355_v2 = vpop.f32.mrf.mxu1  ;;  %v12404_v49 = vsel %vm2049_vm0, %v3803_v25, 0 }
 0x599   : > { %2245 = vmax.xlane.f32.xlu1 %v2244_v12  ;;  %v3211_v12 = vpop.permute.xlu1 %3210  ;;  %15991 = vst [vmem:[#allocation208_spill] sm:$0xff] %v12404_v49 }
 0x59a   : > { %v12359_v60 = vpop.f32.mrf.mxu1 }
 0x59b   : > { %v2247_v27 = vmax.f32 %v12355_v2, %v12359_v60  ;;  %8434 = vmatmul.mubr.msk.bf16.gmra.mxu0 %vm2049_vm0, %v3207_v7 }
 0x59c   : > { %v12367_v41 = vpop.f32.mrf.mxu1  ;;  %8435 = vmatprep.mubr.msk.bf16.mxu0 %vm2049_vm0, %v3209_v62  ;;  %8514 = vmatpush3.bf16.xpose.msra.mxu0 %v12362_v22 }
 0x59d   : > { %2248 = vmax.xlane.f32.xlu0 %v2247_v27  ;;  %9222 = vmatprep.subr.msk.bf16.mxu0 %vm2049_vm0, %v12357_v53  ;;  %v12387_v53 = vpop.permute.xlu1 %3818 }
 0x59e   : > { %v12373_v21 = vpop.f32.mrf.mxu1  ;;  %15990 = vst [vmem:[#allocation207_spill] sm:$0xff] %v12387_v53 }
 0x59f   : > { %v2250_v57 = vmax.f32 %v12367_v41, %v12373_v21 }
 0x5a0   : > { %v12377_v1 = vpop.f32.mrf.mxu1 }
 0x5a1   : > { %2251 = vmax.xlane.f32.xlu1 %v2250_v57  ;;  %v3213_v57 = vpop.permute.xlu0 %3212  ;;  %v3801_v43 = vpop.permute.xlu1 %3800 }
 0x5a2   : > { %v12379_v7 = vpop.f32.mrf.mxu1  ;;  %v12426_v18 = vsel %vm2049_vm0, %v3801_v43, 0 }
 0x5a3   : > { %v2253_v27 = vmax.f32 %v12377_v1, %v12379_v7  ;;  %8436 = vmatmul.mubr.msk.bf16.gmra.mxu0 %vm2049_vm0, %v3209_v62  ;;  %15993 = vst [vmem:[#allocation210_spill] sm:$0xff] %v12426_v18 }
 0x5a4   : > { %v12389_v22 = vpop.f32.mrf.mxu1  ;;  %8437 = vmatprep.mubr.msk.bf16.mxu0 %vm2049_vm0, %v3211_v12  ;;  %8516 = vmatpush3.bf16.xpose.msra.mxu0 %v12382_v40 }
 0x5a5   : > { %2254 = vmax.xlane.f32.xlu0 %v2253_v27  ;;  %9223 = vmatprep.subr.msk.bf16.mxu0 %vm2049_vm0, %v12387_v53  ;;  %v12409_v53 = vpop.permute.xlu0 %3816 }
 0x5a6   : > { %v12395_v34 = vpop.f32.mrf.mxu1  ;;  %15992 = vst [vmem:[#allocation209_spill] sm:$0xff] %v12409_v53 }
 0x5a7   : > { %v2256_v58 = vmax.f32 %v12389_v22, %v12395_v34 }
 0x5a8   : > { %v12399_v63 = vpop.f32.mrf.mxu1 }
 0x5a9   : > { %2257 = vmax.xlane.f32.xlu1 %v2256_v58 }
 0x5aa   : > { %v12401_v62 = vpop.f32.mrf.mxu1 }
 0x5ab   : > { %v2259_v27 = vmax.f32 %v12399_v63, %v12401_v62  ;;  %8438 = vmatmul.mubr.msk.bf16.gmra.mxu0 %vm2049_vm0, %v3211_v12  ;;  %v9438_v12 = vld [vmem:[#allocation10 + $0x38] sm:$0xff]  }
 0x5ac   : > { %v12411_v40 = vpop.f32.mrf.mxu1  ;;  %8439 = vmatprep.mubr.msk.bf16.mxu0 %vm2049_vm0, %v3213_v57  ;;  %8518 = vmatpush3.bf16.xpose.msra.mxu0 %v12404_v49  ;;  %v3785_v49 = vpop.permute.xlu1 %3784 }
 0x5ad   : > { %2260 = vmax.xlane.f32.xlu0 %v2259_v27  ;;  %9224 = vmatprep.subr.msk.bf16.mxu0 %vm2049_vm0, %v12409_v53 }
 0x5ae   : > { %v12417_v58 = vpop.f32.mrf.mxu1 }
 0x5af   : > { %v2262_v25 = vmax.f32 %v12411_v40, %v12417_v58 }
 0x5b0   : > { %v12421_v47 = vpop.f32.mrf.mxu1  ;;  %v3789_v31 = vpop.permute.xlu1 %3788 }
 0x5b1   : > { %2263 = vmax.xlane.f32.xlu1 %v2262_v25 }
 0x5b2   : > { %v12423_v51 = vpop.f32.mrf.mxu1 }
 0x5b3   : > { %v2265_v27 = vmax.f32 %v12421_v47, %v12423_v51  ;;  %8440 = vmatmul.mubr.msk.bf16.gmra.mxu0 %vm2049_vm0, %v3213_v57  ;;  %v3787_v57 = vpop.permute.xlu0 %3786 }
 0x5b4   : > { %v12431_v53 = vpop.f32.mrf.mxu1  ;;  %8520 = vmatpush3.bf16.xpose.msra.mxu0 %v12426_v18  ;;  %8521 = vmatprep.mubr.msk.bf16.mxu0 %vm2049_vm0, %v3785_v49 }
 0x5b5   : > { %2266 = vmax.xlane.f32.xlu0 %v2265_v27  ;;  %9049 = vmatprep.subr.bf16.mxu0 %v9438_v12  ;;  %v9440_v27 = vld [vmem:[#allocation10 + $0x28] sm:$0xff]  }
 0x5b6   : > { %v12435_v25 = vpop.f32.mrf.mxu1 }
 0x5b7   : > { %v2268_v43 = vmax.f32 %v12431_v53, %v12435_v25  ;;  %v3791_v29 = vpop.permute.xlu0 %3790 }
 0x5b8   : > { %v12439_v39 = vpop.f32.mrf.mxu1 }
 0x5b9   : > { %2269 = vmax.xlane.f32.xlu1 %v2268_v43 }
 0x5ba   : > { %v12441_v38 = vpop.f32.mrf.mxu1 }
 0x5bb   : > { %v2271_v0 = vmax.f32 %v12439_v39, %v12441_v38  ;;  %8522 = vmatmul.mubr.msk.bf16.vlgmr.msra.gmra.mxu0 %vm2049_vm0, %v3785_v49 }
 0x5bc   : > { %v12446_v18 = vpop.f32.mrf.mxu1  ;;  %8523 = vmatprep.mubr.msk.bf16.mxu0 %vm2049_vm0, %v3787_v57  ;;  %9050 = vmatpush3.bf16.msra.mxu0 %v9438_v12 }
 0x5bd   : > { %2272 = vmax.xlane.f32.xlu0 %v2271_v0  ;;  %9051 = vmatprep.subr.bf16.mxu0 %v9439_v55 }
 0x5be   : > { %v12449_v32 = vpop.f32.mrf.mxu1 }
 0x5bf   : > { %v2274_v43 = vmax.f32 %v12446_v18, %v12449_v32 }
 0x5c0   : > { %v12453_v52 = vpop.f32.mrf.mxu1  ;;  %9052 = vmatpush3.bf16.msra.mxu0 %v9439_v55 }
 0x5c1   : > { %2275 = vmax.xlane.f32.xlu1 %v2274_v43  ;;  %9053 = vmatprep.subr.bf16.mxu0 %v9440_v27 }
 0x5c2   : > { %v12455_v49 = vpop.f32.mrf.mxu1 }
 0x5c3   : > { %v2277_v12 = vmax.f32 %v12453_v52, %v12455_v49  ;;  %8524 = vmatmul.mubr.msk.bf16.gmra.mxu0 %vm2049_vm0, %v3787_v57  ;;  %v9444_v57 = vld [vmem:[#allocation10 + $0x8] sm:$0xff]  }
 0x5c4   : > { %v12460_v0 = vpop.f32.mrf.mxu1  ;;  %8525 = vmatprep.mubr.msk.bf16.mxu0 %vm2049_vm0, %v3789_v31  ;;  %9054 = vmatpush3.bf16.msra.mxu0 %v9440_v27  ;;  %v9445_v27 = vld [vmem:[#allocation10] sm:$0xff]  }
 0x5c5   : > { %2278 = vmax.xlane.f32.xlu0 %v2277_v12  ;;  %9055 = vmatprep.subr.bf16.mxu0 %v9441_v14  ;;  %v3793_v12 = vpop.permute.xlu1 %3792 }
 0x5c6   : > { %v12463_v55 = vpop.f32.mrf.mxu1 }
 0x5c7   : > { %v2280_v43 = vmax.f32 %v12460_v0, %v12463_v55 }
 0x5c8   : > { %9056 = vmatpush3.bf16.msra.mxu0 %v9441_v14 }
 0x5c9   : > { %2281 = vmax.xlane.f32.xlu1 %v2280_v43  ;;  %9057 = vmatprep.subr.bf16.mxu0 %v9442_v48  ;;  %v3797_v14 = vpop.permute.xlu1 %3796 }
 0x5cb   : > { %8526 = vmatmul.mubr.msk.bf16.gmra.mxu0 %vm2049_vm0, %v3789_v31  ;;  %v3795_v31 = vpop.permute.xlu0 %3794 }
 0x5cc   : > { %8527 = vmatprep.mubr.msk.bf16.mxu0 %vm2049_vm0, %v3791_v29  ;;  %9058 = vmatpush3.bf16.msra.mxu0 %v9442_v48  ;;  %v12480_v48 = vpop.f32.mrf.mxu0 }
 0x5cd   : > { %9059 = vmatprep.subr.bf16.mxu0 %v9443_v30  ;;  %15994 = vst [vmem:[#allocation211_spill] sm:$0xff] %v12480_v48 }
 0x5d0   : > { %9060 = vmatpush3.bf16.msra.mxu0 %v9443_v30  ;;  %v3799_v30 = vpop.permute.xlu0 %3798 }
 0x5d1   : > { %9061 = vmatprep.subr.bf16.mxu0 %v9444_v57 }
 0x5d3   : > { %8528 = vmatmul.mubr.msk.bf16.gmra.mxu0 %vm2049_vm0, %v3791_v29 }
 0x5d4   : > { %8529 = vmatprep.mubr.msk.bf16.mxu0 %vm2049_vm0, %v3793_v12  ;;  %9062 = vmatpush3.bf16.msra.mxu0 %v9444_v57 }
 0x5d5   : > { %9063 = vmatprep.subr.bf16.mxu0 %v9445_v27 }
 0x5d8   : > { %9064 = vmatpush3.bf16.msra.mxu0 %v9445_v27 }
 0x5d9   : > { %9225 = vmatprep.subr.msk.bf16.mxu0 %vm2049_vm0, %v11702_v36 }
 0x5db   : > { %8530 = vmatmul.mubr.msk.bf16.gmra.mxu0 %vm2049_vm0, %v3793_v12 }
 0x5dc   : > { %8531 = vmatprep.mubr.msk.bf16.mxu0 %vm2049_vm0, %v3795_v31 }
 0x5e3   : > { %8532 = vmatmul.mubr.msk.bf16.gmra.mxu0 %vm2049_vm0, %v3795_v31 }
 0x5e4   : > { %8533 = vmatprep.mubr.msk.bf16.mxu0 %vm2049_vm0, %v3797_v14 }
 0x5eb   : > { %8534 = vmatmul.mubr.msk.bf16.gmra.mxu0 %vm2049_vm0, %v3797_v14 }
 0x5ec   : > { %8535 = vmatprep.mubr.msk.bf16.mxu0 %vm2049_vm0, %v3799_v30 }
 0x5f3   : > { %8536 = vmatmul.mubr.msk.bf16.gmra.mxu0 %vm2049_vm0, %v3799_v30 }
 0x5fb   : > { %v12482_v36 = vpop.f32.mrf.mxu0 }
 0x5fd   : > { %v12484_v29 = vpop.f32.mrf.mxu0 }
 0x5fe   : > { %v2845_v43 = vmax.f32 %v12482_v36, %v12484_v29 }
 0x5ff   : > { %v12488_v57 = vpop.f32.mrf.mxu0 }
 0x600   : > { %2846 = vmax.xlane.f32.xlu0 %v2845_v43 }
 0x601   : > { %v12490_v27 = vpop.f32.mrf.mxu0 }
 0x602   : > { %v2848_v12 = vmax.f32 %v12488_v57, %v12490_v27 }
 0x603   : > { %v12494_v31 = vpop.f32.mrf.mxu0 }
 0x604   : > { %2849 = vmax.xlane.f32.xlu1 %v2848_v12 }
 0x605   : > { %v12496_v14 = vpop.f32.mrf.mxu0 }
 0x606   : > { %v2851_v30 = vmax.f32 %v12494_v31, %v12496_v14 }
 0x607   : > { %v12500_v48 = vpop.f32.mrf.mxu0 }
 0x608   : > { %2852 = vmax.xlane.f32.xlu0 %v2851_v30 }
 0x609   : > { %v12502_v42 = vpop.f32.mrf.mxu0 }
 0x60a   : > { %v2854_v43 = vmax.f32 %v12500_v48, %v12502_v42 }
 0x60b   : > { %v12506_v17 = vpop.f32.mrf.mxu0 }
 0x60c   : > { %2855 = vmax.xlane.f32.xlu1 %v2854_v43 }
 0x60d   : > { %v12508_v11 = vpop.f32.mrf.mxu0 }
 0x60e   : > { %v2857_v12 = vmax.f32 %v12506_v17, %v12508_v11 }
 0x60f   : > { %v12512_v13 = vpop.f32.mrf.mxu0 }
 0x610   : > { %2858 = vmax.xlane.f32.xlu0 %v2857_v12 }
 0x611   : > { %v12514_v50 = vpop.f32.mrf.mxu0 }
 0x612   : > { %15995 = vst [vmem:[#allocation212_spill] sm:$0xff] %v12514_v50  ;;  %v2860_v30 = vmax.f32 %v12512_v13, %v12514_v50 }
 0x613   : > { %v12518_v23 = vpop.f32.mrf.mxu0 }
 0x614   : > { %15996 = vst [vmem:[#allocation213_spill] sm:$0xff] %v12518_v23  ;;  %2861 = vmax.xlane.f32.xlu1 %v2860_v30 }
 0x615   : > { %v12520_v35 = vpop.f32.mrf.mxu0 }
 0x616   : > { %15997 = vst [vmem:[#allocation214_spill] sm:$0xff] %v12520_v35  ;;  %v2863_v43 = vmax.f32 %v12518_v23, %v12520_v35  ;;  %v2237_v15 = vpop.xlane.xlu1 %2236 }
 0x617   : > { %v2283_v8 = vsub.f32 %v12313_v10, %v2237_v15  ;;  %v2284_v59 = vsub.f32 %v12315_v56, %v2237_v15  ;;  %v12526_v20 = vpop.f32.mrf.mxu0 }
 0x618   : > { %2864 = vmax.xlane.f32.xlu0 %v2863_v43 }
 0x619   : > { %v2315_v12 = vmul.f32 1.442695, %v2283_v8  ;;  %v2317_v44 = vmul.f32 1.442695, %v2284_v59  ;;  %v12528_v37 = vpop.f32.mrf.mxu0 }
 0x61a   : > { %v2866_v30 = vmax.f32 %v12526_v20, %v12528_v37  ;;  %v2240_v33 = vpop.xlane.xlu0 %2239 }
 0x61b   : > { %9534 = vpow2.f32 %v2315_v12  ;;  %v2285_v50 = vsub.f32 %v12323_v28, %v2240_v33  ;;  %v2286_v35 = vsub.f32 %v12329_v26, %v2240_v33  ;;  %v12534_v23 = vpop.f32.mrf.mxu0 }
 0x61c   : > { %9536 = vpow2.f32 %v2317_v44  ;;  %2867 = vmax.xlane.f32.xlu1 %v2866_v30 }
 0x61d   : > { %v2319_v15 = vmul.f32 1.442695, %v2285_v50  ;;  %v2321_v10 = vmul.f32 1.442695, %v2286_v35  ;;  %v12536_v56 = vpop.f32.mrf.mxu0 }
 0x61e   : > { %v2869_v8 = vmax.f32 %v12534_v23, %v12536_v56  ;;  %v2243_v59 = vpop.xlane.xlu0 %2242 }
 0x61f   : > { %9538 = vpow2.f32 %v2319_v15  ;;  %v2287_v43 = vsub.f32 %v12333_v45, %v2243_v59  ;;  %v2288_v12 = vsub.f32 %v12337_v16, %v2243_v59  ;;  %v12542_v28 = vpop.f32.mrf.mxu0 }
 0x620   : > { %9540 = vpow2.f32 %v2321_v10  ;;  %2870 = vmax.xlane.f32.xlu0 %v2869_v8 }
 0x621   : > { %v2323_v33 = vmul.f32 1.442695, %v2287_v43  ;;  %v2325_v44 = vmul.f32 1.442695, %v2288_v12  ;;  %v12544_v26 = vpop.f32.mrf.mxu0 }
 0x622   : > { %15998 = vst [vmem:[#allocation215_spill] sm:$0xff] %v12544_v26  ;;  %v2872_v35 = vmax.f32 %v12542_v28, %v12544_v26  ;;  %v2246_v50 = vpop.xlane.xlu1 %2245 }
 0x623   : > { %9542 = vpow2.f32 %v2323_v33  ;;  %v2289_v30 = vsub.f32 %v12345_v3, %v2246_v50  ;;  %v2290_v15 = vsub.f32 %v12351_v9, %v2246_v50  ;;  %v12550_v45 = vpop.f32.mrf.mxu0 }
 0x624   : > { %15999 = vst [vmem:[#allocation216_spill] sm:$0xff] %v12550_v45  ;;  %9544 = vpow2.f32 %v2325_v44  ;;  %2873 = vmax.xlane.f32.xlu1 %v2872_v35 }
 0x625   : > { %v2327_v16 = vmul.f32 1.442695, %v2289_v30  ;;  %v2329_v10 = vmul.f32 1.442695, %v2290_v15  ;;  %v12552_v8 = vpop.f32.mrf.mxu0 }
 0x626   : > { %16000 = vst [vmem:[#allocation217_spill] sm:$0xff] %v12552_v8  ;;  %v2875_v59 = vmax.f32 %v12550_v45, %v12552_v8  ;;  %v2249_v43 = vpop.xlane.xlu0 %2248 }
 0x627   : > { %9546 = vpow2.f32 %v2327_v16  ;;  %v2291_v12 = vsub.f32 %v12355_v2, %v2249_v43  ;;  %v2292_v33 = vsub.f32 %v12359_v60, %v2249_v43  ;;  %v12558_v3 = vpop.f32.mrf.mxu0 }
 0x628   : > { %16001 = vst [vmem:[#allocation218_spill] sm:$0xff] %v12558_v3  ;;  %v9535_v9 = vpop.eup %9534  ;;  %9548 = vpow2.f32 %v2329_v10  ;;  %2876 = vmax.xlane.f32.xlu0 %v2875_v59 }
 0x629   : > { %v9537_v44 = vpop.eup %9536  ;;  %v2331_v35 = vmul.f32 1.442695, %v2291_v12  ;;  %v2333_v50 = vmul.f32 1.442695, %v2292_v33  ;;  %v12560_v30 = vpop.f32.mrf.mxu0 }
 0x62a   : > { %16002 = vst [vmem:[#allocation219_spill] sm:$0xff] %v12560_v30  ;;  %v2878_v15 = vmax.f32 %v12558_v3, %v12560_v30  ;;  %v2252_v8 = vpop.xlane.xlu1 %2251  ;;  %v12564_v45 = vadd.f32 %v9537_v44, %v9535_v9 }
 0x62b   : > { %9550 = vpow2.f32 %v2331_v35  ;;  %v2293_v2 = vsub.f32 %v12367_v41, %v2252_v8  ;;  %v2294_v60 = vsub.f32 %v12373_v21, %v2252_v8  ;;  %v12568_v16 = vpop.f32.mrf.mxu0 }
 0x62c   : > { %16003 = vst [vmem:[#allocation220_spill] sm:$0xff] %v12564_v45  ;;  %v9539_v10 = vpop.eup %9538  ;;  %9552 = vpow2.f32 %v2333_v50  ;;  %2879 = vmax.xlane.f32.xlu1 %v2878_v15  ;;  %v16004_v15 = vld [vmem:[#allocation74_spill] sm:$0xff] }
 0x62d   : > { %v9541_v59 = vpop.eup %9540  ;;  %v2335_v43 = vmul.f32 1.442695, %v2293_v2  ;;  %v2337_v12 = vmul.f32 1.442695, %v2294_v60  ;;  %v12570_v33 = vpop.f32.mrf.mxu0  ;;  %v2427_v26 = vpack.c.bf16 %v9539_v10, %v9535_v9  ;;  %v16005_v2 = vld [vmem:[#allocation76_spill] sm:$0xff] }
 0x62e   : > { %v2881_v30 = vmax.f32 %v12568_v16, %v12570_v33  ;;  %v2255_v45 = vpop.xlane.xlu0 %2254  ;;  %v2428_v35 = vpack.c.bf16 %v9541_v59, %v9537_v44  ;;  %v12574_v3 = vadd.f32 %v9541_v59, %v9539_v10  ;;  %v12582_v60 = vpack.c.bf16 %v16005_v2, %v16004_v15 }
 0x62f   : > { %9554 = vpow2.f32 %v2335_v43  ;;  %v2295_v21 = vsub.f32 %v12377_v1, %v2255_v45  ;;  %v2296_v41 = vsub.f32 %v12379_v7, %v2255_v45  ;;  %v12578_v8 = vpop.f32.mrf.mxu0  ;;  %v12586_v44 = vpack.c.bf16 %v11901_v6, %v11878_v61 }
 0x630   : > { %v9543_v50 = vpop.eup %9542  ;;  %16006 = vst [vmem:[#allocation74_spill] sm:$0xff] %v12582_v60  ;;  %9556 = vpow2.f32 %v2337_v12  ;;  %2475 = vmatprep.mubr.bf16.mxu1 %v2428_v35  ;;  %2882 = vmax.xlane.f32.xlu0 %v2881_v30  ;;  %v16008_v12 = vld [vmem:[#allocation71_spill] sm:$0xff]  ;;  %v16009_v35 = vld [vmem:[#allocation73_spill] sm:$0xff]  ;;  %v12606_v15 = vpack.c.bf16 %v11862_v4, %v11829_v54 }
 0x631   : > { %v9545_v9 = vpop.eup %9544  ;;  %16007 = vst [vmem:[#allocation76_spill] sm:$0xff] %v12586_v44  ;;  %v2339_v10 = vmul.f32 1.442695, %v2295_v21  ;;  %v2341_v59 = vmul.f32 1.442695, %v2296_v41  ;;  %2476 = vmatmul.mubr.bf16.vlgmr.msra.gmra.mxu1 %v2427_v26  ;;  %v12588_v1 = vpop.f32.mrf.mxu0  ;;  %v12602_v21 = vpack.c.bf16 %v16009_v35, %v16008_v12 }
 0x632   : > { %8346 = vmatpush3.bf16.msra.mxu1 %v12582_v60  ;;  %v2884_v7 = vmax.f32 %v12578_v8, %v12588_v1  ;;  %v2258_v45 = vpop.xlane.xlu1 %2257  ;;  %v12593_v43 = vadd.f32 %v9545_v9, %v9543_v50  ;;  %16011 = vst [vmem:[#allocation73_spill] sm:$0xff] %v12606_v15 }
 0x633   : > { %9558 = vpow2.f32 %v2339_v10  ;;  %8347 = vmatprep.subr.bf16.mxu1 %v12586_v44  ;;  %v2297_v30 = vsub.f32 %v12389_v22, %v2258_v45  ;;  %v2298_v61 = vsub.f32 %v12395_v34, %v2258_v45  ;;  %v12598_v6 = vpop.f32.mrf.mxu0  ;;  %16010 = vst [vmem:[#allocation71_spill] sm:$0xff] %v12602_v21 }
 0x634   : > { %v9547_v26 = vpop.eup %9546  ;;  %9560 = vpow2.f32 %v2341_v59  ;;  %2885 = vmax.xlane.f32.xlu1 %v2884_v7 }
 0x635   : > { %v9549_v41 = vpop.eup %9548  ;;  %v2343_v2 = vmul.f32 1.442695, %v2297_v30  ;;  %v2345_v10 = vmul.f32 1.442695, %v2298_v61  ;;  %v12608_v44 = vpop.f32.mrf.mxu0  ;;  %v2429_v22 = vpack.c.bf16 %v9547_v26, %v9543_v50  ;;  %v16012_v50 = vld [vmem:[#allocation68_spill] sm:$0xff]  ;;  %v16013_v30 = vld [vmem:[#allocation70_spill] sm:$0xff] }
 0x636   : > { %8348 = vmatpush3.bf16.msra.mxu1 %v12602_v21  ;;  %v2887_v34 = vmax.f32 %v12598_v6, %v12608_v44  ;;  %v2261_v45 = vpop.xlane.xlu0 %2260  ;;  %v2430_v12 = vpack.c.bf16 %v9549_v41, %v9545_v9  ;;  %v12613_v35 = vadd.f32 %v9549_v41, %v9547_v26  ;;  %v12622_v61 = vpack.c.bf16 %v16013_v30, %v16012_v50  ;;  %v16019_v30 = vld [vmem:[#allocation92_spill] sm:$0xff] }
 0x637   : > { %9562 = vpow2.f32 %v2343_v2  ;;  %8349 = vmatprep.subr.bf16.mxu1 %v12606_v15  ;;  %v2299_v54 = vsub.f32 %v12399_v63, %v2261_v45  ;;  %v2300_v4 = vsub.f32 %v12401_v62, %v2261_v45  ;;  %v12618_v59 = vpop.f32.mrf.mxu0  ;;  %v12626_v26 = vpack.c.bf16 %v11790_v5, %v11741_v24 }
 0x638   : > { %v9551_v7 = vpop.eup %9550  ;;  %16014 = vst [vmem:[#allocation68_spill] sm:$0xff] %v12622_v61  ;;  %9564 = vpow2.f32 %v2345_v10  ;;  %2483 = vmatprep.mubr.bf16.mxu1 %v2430_v12  ;;  %2888 = vmax.xlane.f32.xlu0 %v2887_v34  ;;  %v16016_v34 = vld [vmem:[#allocation65_spill] sm:$0xff]  ;;  %v16017_v12 = vld [vmem:[#allocation67_spill] sm:$0xff] }
 0x639   : > { %v9553_v9 = vpop.eup %9552  ;;  %16015 = vst [vmem:[#allocation70_spill] sm:$0xff] %v12626_v26  ;;  %v2347_v41 = vmul.f32 1.442695, %v2299_v54  ;;  %v2349_v2 = vmul.f32 1.442695, %v2300_v4  ;;  %2484 = vmatmul.mubr.bf16.gmra.mxu1 %v2429_v22  ;;  %v12628_v63 = vpop.f32.mrf.mxu0  ;;  %v12642_v54 = vpack.c.bf16 %v16017_v12, %v16016_v34 }
 0x63a   : > { %8350 = vmatpush3.bf16.msra.mxu1 %v12622_v61  ;;  %v2890_v62 = vmax.f32 %v12618_v59, %v12628_v63  ;;  %v2264_v45 = vpop.xlane.xlu1 %2263  ;;  %v12633_v50 = vadd.f32 %v9553_v9, %v9551_v7  ;;  %v12646_v61 = vpack.c.bf16 %v11688_v19, %v16019_v30 }
 0x63b   : > { %9566 = vpow2.f32 %v2347_v41  ;;  %8351 = vmatprep.subr.bf16.mxu1 %v12626_v26  ;;  %v2301_v10 = vsub.f32 %v12411_v40, %v2264_v45  ;;  %v2302_v24 = vsub.f32 %v12417_v58, %v2264_v45  ;;  %v12638_v5 = vpop.f32.mrf.mxu0  ;;  %16018 = vst [vmem:[#allocation65_spill] sm:$0xff] %v12642_v54 }
 0x63c   : > { %v9555_v22 = vpop.eup %9554  ;;  %9568 = vpow2.f32 %v2349_v2  ;;  %2891 = vmax.xlane.f32.xlu1 %v2890_v62  ;;  %16020 = vst [vmem:[#allocation67_spill] sm:$0xff] %v12646_v61 }
 0x63d   : > { %v9557_v4 = vpop.eup %9556  ;;  %v2351_v41 = vmul.f32 1.442695, %v2301_v10  ;;  %v2353_v26 = vmul.f32 1.442695, %v2302_v24  ;;  %v12648_v15 = vpop.f32.mrf.mxu0  ;;  %v2431_v40 = vpack.c.bf16 %v9555_v22, %v9551_v7  ;;  %v16021_v7 = vld [vmem:[#allocation62_spill] sm:$0xff]  ;;  %v16022_v24 = vld [vmem:[#allocation64_spill] sm:$0xff] }
 0x63e   : > { %8352 = vmatpush3.bf16.msra.mxu1 %v12642_v54  ;;  %v3431_v58 = vmax.f32 %v12638_v5, %v12648_v15  ;;  %v2267_v45 = vpop.xlane.xlu0 %2266  ;;  %v2432_v34 = vpack.c.bf16 %v9557_v4, %v9553_v9  ;;  %v12653_v12 = vadd.f32 %v9557_v4, %v9555_v22  ;;  %v12662_v30 = vpack.c.bf16 %v16022_v24, %v16021_v7  ;;  %v16024_v22 = vld [vmem:[#allocation85_spill] sm:$0xff]  ;;  %v16025_v4 = vld [vmem:[#allocation91_spill] sm:$0xff] }
 0x63f   : > { %9570 = vpow2.f32 %v2351_v41  ;;  %8353 = vmatprep.subr.bf16.mxu1 %v12646_v61  ;;  %v2303_v19 = vsub.f32 %v12421_v47, %v2267_v45  ;;  %v2304_v2 = vsub.f32 %v12423_v51, %v2267_v45  ;;  %v12658_v62 = vpop.f32.mrf.mxu0  ;;  %v12666_v41 = vpack.c.bf16 %v16025_v4, %v16024_v22  ;;  %v16030_v4 = vld [vmem:[#allocation81_spill] sm:$0xff] }
 0x640   : > { %v9559_v10 = vpop.eup %9558  ;;  %16023 = vst [vmem:[#allocation92_spill] sm:$0xff] %v12662_v30  ;;  %9572 = vpow2.f32 %v2353_v26  ;;  %2491 = vmatprep.mubr.bf16.mxu1 %v2432_v34  ;;  %3432 = vmax.xlane.f32.xlu0 %v3431_v58 }
 0x641   : > { %v9561_v9 = vpop.eup %9560  ;;  %16026 = vst [vmem:[#allocation62_spill] sm:$0xff] %v12666_v41  ;;  %v2355_v61 = vmul.f32 1.442695, %v2303_v19  ;;  %v2357_v54 = vmul.f32 1.442695, %v2304_v2  ;;  %2492 = vmatmul.mubr.bf16.gmra.mxu1 %v2431_v40  ;;  %v12668_v47 = vpop.f32.mrf.mxu0  ;;  %v16027_v19 = vld [vmem:[#allocation59_spill] sm:$0xff] }
 0x642   : > { %8354 = vmatpush3.bf16.msra.mxu1 %v12662_v30  ;;  %v3434_v51 = vmax.f32 %v12658_v62, %v12668_v47  ;;  %v2270_v45 = vpop.xlane.xlu1 %2269  ;;  %v12673_v7 = vadd.f32 %v9561_v9, %v9559_v10  ;;  %v16028_v2 = vld [vmem:[#allocation61_spill] sm:$0xff]  ;;  %v16031_v30 = vld [vmem:[#allocation83_spill] sm:$0xff] }
 0x643   : > { %9574 = vpow2.f32 %v2355_v61  ;;  %8355 = vmatprep.subr.bf16.mxu1 %v12666_v41  ;;  %v2305_v26 = vsub.f32 %v12431_v53, %v2270_v45  ;;  %v2306_v58 = vsub.f32 %v12435_v25, %v2270_v45  ;;  %v12678_v34 = vpop.f32.mrf.mxu0  ;;  %v12682_v24 = vpack.c.bf16 %v16028_v2, %v16027_v19 }
 0x644   : > { %v9563_v40 = vpop.eup %9562  ;;  %9576 = vpow2.f32 %v2357_v54  ;;  %3435 = vmax.xlane.f32.xlu1 %v3434_v51  ;;  %v12686_v21 = vpack.c.bf16 %v16031_v30, %v16030_v4 }
 0x645   : > { %16029 = vst [vmem:[#allocation64_spill] sm:$0xff] %v12682_v24  ;;  %v9565_v22 = vpop.eup %9564  ;;  %v2359_v61 = vmul.f32 1.442695, %v2305_v26  ;;  %v2361_v41 = vmul.f32 1.442695, %v2306_v58  ;;  %v12688_v60 = vpop.f32.mrf.mxu0  ;;  %v2433_v53 = vpack.c.bf16 %v9563_v40, %v9559_v10  ;;  %v16033_v10 = vld [vmem:[#allocation56_spill] sm:$0xff] }
 0x646   : > { %16032 = vst [vmem:[#allocation85_spill] sm:$0xff] %v12686_v21  ;;  %8356 = vmatpush3.bf16.msra.mxu1 %v12682_v24  ;;  %v3437_v25 = vmax.f32 %v12678_v34, %v12688_v60  ;;  %v2273_v45 = vpop.xlane.xlu0 %2272  ;;  %v2434_v19 = vpack.c.bf16 %v9565_v22, %v9561_v9  ;;  %v12693_v2 = vadd.f32 %v9565_v22, %v9563_v40  ;;  %v16034_v58 = vld [vmem:[#allocation58_spill] sm:$0xff]  ;;  %v16036_v40 = vld [vmem:[#allocation77_spill] sm:$0xff]  ;;  %v16037_v22 = vld [vmem:[#allocation79_spill] sm:$0xff] }
 0x647   : > { %9578 = vpow2.f32 %v2359_v61  ;;  %8357 = vmatprep.subr.bf16.mxu1 %v12686_v21  ;;  %v2307_v54 = vsub.f32 %v12439_v39, %v2273_v45  ;;  %v2308_v30 = vsub.f32 %v12441_v38, %v2273_v45  ;;  %v12698_v51 = vpop.f32.mrf.mxu0  ;;  %v12702_v4 = vpack.c.bf16 %v16034_v58, %v16033_v10 }
 0x648   : > { %v9567_v26 = vpop.eup %9566  ;;  %9580 = vpow2.f32 %v2361_v41  ;;  %2499 = vmatprep.mubr.bf16.mxu1 %v2434_v19  ;;  %3438 = vmax.xlane.f32.xlu0 %v3437_v25  ;;  %v12706_v61 = vpack.c.bf16 %v16037_v22, %v16036_v40 }
 0x649   : > { %16035 = vst [vmem:[#allocation91_spill] sm:$0xff] %v12702_v4  ;;  %v9569_v9 = vpop.eup %9568  ;;  %v2363_v21 = vmul.f32 1.442695, %v2307_v54  ;;  %v2365_v24 = vmul.f32 1.442695, %v2308_v30  ;;  %2500 = vmatmul.mubr.bf16.gmra.mxu1 %v2433_v53  ;;  %v12708_v39 = vpop.f32.mrf.mxu0  ;;  %v16040_v54 = vld [vmem:[#allocation53_spill] sm:$0xff] }
 0x64a   : > { %16038 = vst [vmem:[#allocation59_spill] sm:$0xff] %v12706_v61  ;;  %8358 = vmatpush3.bf16.msra.mxu1 %v12702_v4  ;;  %v3440_v38 = vmax.f32 %v12698_v51, %v12708_v39  ;;  %v2276_v45 = vpop.xlane.xlu1 %2275  ;;  %v12713_v10 = vadd.f32 %v9569_v9, %v9567_v26  ;;  %v16041_v30 = vld [vmem:[#allocation55_spill] sm:$0xff] }
 0x64b   : > { %9582 = vpow2.f32 %v2363_v21  ;;  %8359 = vmatprep.subr.bf16.mxu1 %v12706_v61  ;;  %v2309_v41 = vsub.f32 %v12446_v18, %v2276_v45  ;;  %v2310_v25 = vsub.f32 %v12449_v32, %v2276_v45  ;;  %v12718_v19 = vpop.f32.mrf.mxu0  ;;  %v12722_v58 = vpack.c.bf16 %v16041_v30, %v16040_v54 }
 0x64c   : > { %16039 = vst [vmem:[#allocation61_spill] sm:$0xff] %v12713_v10  ;;  %v9571_v53 = vpop.eup %9570  ;;  %9584 = vpow2.f32 %v2365_v24  ;;  %3441 = vmax.xlane.f32.xlu1 %v3440_v38 }
 0x64d   : > { %16042 = vst [vmem:[#allocation81_spill] sm:$0xff] %v12722_v58  ;;  %v9573_v40 = vpop.eup %9572  ;;  %v2367_v22 = vmul.f32 1.442695, %v2309_v41  ;;  %v2369_v4 = vmul.f32 1.442695, %v2310_v25  ;;  %v12724_v10 = vpop.f32.mrf.mxu0  ;;  %v2435_v21 = vpack.c.bf16 %v9571_v53, %v9567_v26 }
 0x64e   : > { %8360 = vmatpush3.bf16.msra.mxu1 %v12722_v58  ;;  %v3443_v18 = vmax.f32 %v12718_v19, %v12724_v10  ;;  %v2279_v32 = vpop.xlane.xlu0 %2278  ;;  %v2436_v45 = vpack.c.bf16 %v9573_v40, %v9569_v9  ;;  %v12729_v61 = vadd.f32 %v9573_v40, %v9571_v53 }
 0x64f   : > { %9586 = vpow2.f32 %v2367_v22  ;;  %8441 = vmatprep.subr.bf16.mxu1 %v12140_v46  ;;  %v2311_v24 = vsub.f32 %v12453_v52, %v2279_v32  ;;  %v2312_v38 = vsub.f32 %v12455_v49, %v2279_v32  ;;  %v12734_v41 = vpop.f32.mrf.mxu0 }
 0x650   : > { %v9575_v25 = vpop.eup %9574  ;;  %9588 = vpow2.f32 %v2369_v4  ;;  %2507 = vmatprep.mubr.bf16.mxu1 %v2436_v45  ;;  %3444 = vmax.xlane.f32.xlu0 %v3443_v18 }
 0x651   : > { %v9577_v26 = vpop.eup %9576  ;;  %v2371_v54 = vmul.f32 1.442695, %v2311_v24  ;;  %v2373_v30 = vmul.f32 1.442695, %v2312_v38  ;;  %2508 = vmatmul.mubr.bf16.gmra.mxu1 %v2435_v21  ;;  %v12736_v9 = vpop.f32.mrf.mxu0 }
 0x652   : > { %v3446_v53 = vmax.f32 %v12734_v41, %v12736_v9  ;;  %v2282_v40 = vpop.xlane.xlu1 %2281  ;;  %v12740_v22 = vadd.f32 %v9577_v26, %v9575_v25 }
 0x653   : > { %9590 = vpow2.f32 %v2371_v54  ;;  %v2313_v52 = vsub.f32 %v12460_v0, %v2282_v40  ;;  %v2314_v49 = vsub.f32 %v12463_v55, %v2282_v40  ;;  %v12744_v4 = vpop.f32.mrf.mxu0 }
 0x654   : > { %v9579_v18 = vpop.eup %9578  ;;  %9592 = vpow2.f32 %v2373_v30  ;;  %3447 = vmax.xlane.f32.xlu1 %v3446_v53 }
 0x655   : > { %v9581_v32 = vpop.eup %9580  ;;  %v2375_v21 = vmul.f32 1.442695, %v2313_v52  ;;  %v2377_v45 = vmul.f32 1.442695, %v2314_v49  ;;  %v12746_v24 = vpop.f32.mrf.mxu0  ;;  %v2437_v38 = vpack.c.bf16 %v9579_v18, %v9575_v25 }
 0x656   : > { %v3449_v46 = vmax.f32 %v12744_v4, %v12746_v24  ;;  %v2438_v58 = vpack.c.bf16 %v9581_v32, %v9577_v26  ;;  %v12750_v54 = vadd.f32 %v9581_v32, %v9579_v18 }
 0x657   : > { %9594 = vpow2.f32 %v2375_v21  ;;  %v12752_v0 = vpop.f32.mrf.mxu0 }
 0x658   : > { %16043 = vst [vmem:[#allocation83_spill] sm:$0xff] %v12752_v0  ;;  %v9583_v55 = vpop.eup %9582  ;;  %9596 = vpow2.f32 %v2377_v45  ;;  %2515 = vmatprep.mubr.bf16.mxu1 %v2438_v58  ;;  %3450 = vmax.xlane.f32.xlu0 %v3449_v46 }
 0x659   : > { %v9585_v30 = vpop.eup %9584  ;;  %2516 = vmatmul.mubr.bf16.gmra.mxu1 %v2437_v38  ;;  %v12754_v53 = vpop.f32.mrf.mxu0 }
 0x65a   : > { %16044 = vst [vmem:[#allocation56_spill] sm:$0xff] %v12754_v53  ;;  %v3452_v25 = vmax.f32 %v12752_v0, %v12754_v53  ;;  %v12758_v40 = vadd.f32 %v9585_v30, %v9583_v55 }
 0x65b   : > { %v12760_v52 = vpop.f32.mrf.mxu0 }
 0x65c   : > { %16045 = vst [vmem:[#allocation58_spill] sm:$0xff] %v12758_v40  ;;  %16046 = vst [vmem:[#allocation77_spill] sm:$0xff] %v12760_v52  ;;  %v9587_v26 = vpop.eup %9586  ;;  %3453 = vmax.xlane.f32.xlu1 %v3452_v25 }
 0x65d   : > { %v9589_v49 = vpop.eup %9588  ;;  %v12762_v18 = vpop.f32.mrf.mxu0  ;;  %v2439_v32 = vpack.c.bf16 %v9587_v26, %v9583_v55 }
 0x65e   : > { %16047 = vst [vmem:[#allocation79_spill] sm:$0xff] %v12762_v18  ;;  %v3455_v46 = vmax.f32 %v12760_v52, %v12762_v18  ;;  %v2440_v58 = vpack.c.bf16 %v9589_v49, %v9585_v30  ;;  %v12766_v21 = vadd.f32 %v9589_v49, %v9587_v26  ;;  %v16117_v52 = vld [vmem:[#allocation107_spill] sm:$0xff] }
 0x65f   : > { %v12768_v45 = vpop.f32.mrf.mxu0 }
 0x660   : > { %16048 = vst [vmem:[#allocation53_spill] sm:$0xff] %v12766_v21  ;;  %16049 = vst [vmem:[#allocation55_spill] sm:$0xff] %v12768_v45  ;;  %v9591_v38 = vpop.eup %9590  ;;  %2523 = vmatprep.mubr.bf16.mxu1 %v2440_v58  ;;  %3456 = vmax.xlane.f32.xlu0 %v3455_v46 }
 0x661   : > { %v9593_v40 = vpop.eup %9592  ;;  %2524 = vmatmul.mubr.bf16.gmra.mxu1 %v2439_v32  ;;  %v12770_v53 = vpop.f32.mrf.mxu0 }
 0x662   : > { %16050 = vst [vmem:[#allocation221_spill] sm:$0xff] %v12770_v53  ;;  %v3458_v25 = vmax.f32 %v12768_v45, %v12770_v53  ;;  %v12774_v0 = vadd.f32 %v9593_v40, %v9591_v38 }
 0x663   : > { %v12776_v55 = vpop.f32.mrf.mxu0 }
 0x664   : > { %16051 = vst [vmem:[#allocation222_spill] sm:$0xff] %v12774_v0  ;;  %16052 = vst [vmem:[#allocation223_spill] sm:$0xff] %v12776_v55  ;;  %v9595_v18 = vpop.eup %9594  ;;  %3459 = vmax.xlane.f32.xlu1 %v3458_v25 }
 0x665   : > { %v9597_v30 = vpop.eup %9596  ;;  %v12778_v26 = vpop.f32.mrf.mxu0  ;;  %v2441_v49 = vpack.c.bf16 %v9595_v18, %v9591_v38 }
 0x666   : > { %16053 = vst [vmem:[#allocation224_spill] sm:$0xff] %v12778_v26  ;;  %v3461_v46 = vmax.f32 %v12776_v55, %v12778_v26  ;;  %v2442_v58 = vpack.c.bf16 %v9597_v30, %v9593_v40  ;;  %v12782_v32 = vadd.f32 %v9597_v30, %v9595_v18 }
 0x667   : > { %v12784_v21 = vpop.f32.mrf.mxu0 }
 0x668   : > { %16054 = vst [vmem:[#allocation225_spill] sm:$0xff] %v12782_v32  ;;  %16055 = vst [vmem:[#allocation226_spill] sm:$0xff] %v12784_v21  ;;  %2531 = vmatprep.mubr.bf16.mxu1 %v2442_v58  ;;  %3462 = vmax.xlane.f32.xlu0 %v3461_v46 }
 0x669   : > { %2532 = vmatmul.mubr.bf16.gmra.mxu1 %v2441_v49  ;;  %v12786_v0 = vpop.f32.mrf.mxu0 }
 0x66a   : > { %16056 = vst [vmem:[#allocation227_spill] sm:$0xff] %v12786_v0  ;;  %v3464_v25 = vmax.f32 %v12784_v21, %v12786_v0 }
 0x66b   : > { %v12790_v53 = vpop.f32.mrf.mxu0 }
 0x66c   : > { %16057 = vst [vmem:[#allocation228_spill] sm:$0xff] %v12790_v53  ;;  %3465 = vmax.xlane.f32.xlu1 %v3464_v25 }
 0x66d   : > { %v12792_v38 = vpop.f32.mrf.mxu0 }
 0x66e   : > { %16058 = vst [vmem:[#allocation229_spill] sm:$0xff] %v12792_v38  ;;  %v3467_v40 = vmax.f32 %v12790_v53, %v12792_v38 }
 0x66f   : > { %v12796_v18 = vpop.f32.mrf.mxu0 }
 0x670   : > { %16059 = vst [vmem:[#allocation230_spill] sm:$0xff] %v12796_v18  ;;  %3468 = vmax.xlane.f32.xlu0 %v3467_v40 }
 0x671   : > { %v12798_v30 = vpop.f32.mrf.mxu0 }
 0x672   : > { %16060 = vst [vmem:[#allocation231_spill] sm:$0xff] %v12798_v30  ;;  %v3470_v49 = vmax.f32 %v12796_v18, %v12798_v30 }
 0x673   : > { %v12802_v46 = vpop.f32.mrf.mxu0 }
 0x674   : > { %16061 = vst [vmem:[#allocation232_spill] sm:$0xff] %v12802_v46  ;;  %3471 = vmax.xlane.f32.xlu1 %v3470_v49 }
 0x675   : > { %v12804_v58 = vpop.f32.mrf.mxu0 }
 0x676   : > { %16062 = vst [vmem:[#allocation233_spill] sm:$0xff] %v12804_v58  ;;  %v3473_v25 = vmax.f32 %v12802_v46, %v12804_v58 }
 0x677   : > { %v12808_v32 = vpop.f32.mrf.mxu0 }
 0x678   : > { %16063 = vst [vmem:[#allocation234_spill] sm:$0xff] %v12808_v32  ;;  %3474 = vmax.xlane.f32.xlu0 %v3473_v25 }
 0x679   : > { %v12810_v38 = vpop.f32.mrf.mxu0 }
 0x67a   : > { %16064 = vst [vmem:[#allocation235_spill] sm:$0xff] %v12810_v38  ;;  %v3476_v40 = vmax.f32 %v12808_v32, %v12810_v38 }
 0x67b   : > { %v12814_v53 = vpop.f32.mrf.mxu0 }
 0x67c   : > { %16065 = vst [vmem:[#allocation236_spill] sm:$0xff] %v12814_v53  ;;  %3477 = vmax.xlane.f32.xlu1 %v3476_v40 }
 0x67d   : > { %v12816_v30 = vpop.f32.mrf.mxu0 }
 0x67e   : > { %16066 = vst [vmem:[#allocation237_spill] sm:$0xff] %v12816_v30  ;;  %v4017_v49 = vmax.f32 %v12814_v53, %v12816_v30 }
 0x67f   : > { %v12820_v18 = vpop.f32.mrf.mxu0 }
 0x680   : > { %16067 = vst [vmem:[#allocation238_spill] sm:$0xff] %v12820_v18  ;;  %4018 = vmax.xlane.f32.xlu0 %v4017_v49 }
 0x681   : > { %v12822_v58 = vpop.f32.mrf.mxu0 }
 0x682   : > { %16068 = vst [vmem:[#allocation239_spill] sm:$0xff] %v12822_v58  ;;  %v4020_v25 = vmax.f32 %v12820_v18, %v12822_v58 }
 0x683   : > { %v12826_v46 = vpop.f32.mrf.mxu0 }
 0x684   : > { %16069 = vst [vmem:[#allocation240_spill] sm:$0xff] %v12826_v46  ;;  %4021 = vmax.xlane.f32.xlu1 %v4020_v25 }
 0x685   : > { %v12828_v38 = vpop.f32.mrf.mxu0 }
 0x686   : > { %16070 = vst [vmem:[#allocation241_spill] sm:$0xff] %v12828_v38  ;;  %v4023_v40 = vmax.f32 %v12826_v46, %v12828_v38 }
 0x687   : > { %v12832_v32 = vpop.f32.mrf.mxu0 }
 0x688   : > { %16071 = vst [vmem:[#allocation242_spill] sm:$0xff] %v12832_v32  ;;  %4024 = vmax.xlane.f32.xlu0 %v4023_v40 }
 0x689   : > { %v12834_v30 = vpop.f32.mrf.mxu0  ;;  %v2847_v53 = vpop.xlane.xlu0 %2846 }
 0x68a   : > { %16072 = vst [vmem:[#allocation243_spill] sm:$0xff] %v12834_v30  ;;  %v4026_v49 = vmax.f32 %v12832_v32, %v12834_v30  ;;  %v2893_v0 = vsub.f32 %v12482_v36, %v2847_v53  ;;  %v2894_v58 = vsub.f32 %v12484_v29, %v2847_v53 }
 0x68b   : > { %v12840_v18 = vpop.f32.mrf.mxu0 }
 0x68c   : > { %16073 = vst [vmem:[#allocation244_spill] sm:$0xff] %v12840_v18  ;;  %v2925_v25 = vmul.f32 1.442695, %v2893_v0  ;;  %4027 = vmax.xlane.f32.xlu1 %v4026_v49  ;;  %v2927_v21 = vmul.f32 1.442695, %v2894_v58 }
 0x68d   : > { %v2850_v26 = vpop.xlane.xlu1 %2849  ;;  %v12842_v38 = vpop.f32.mrf.mxu0 }
 0x68e   : > { %16074 = vst [vmem:[#allocation245_spill] sm:$0xff] %v12842_v38  ;;  %v2895_v40 = vsub.f32 %v12488_v57, %v2850_v26  ;;  %v2896_v46 = vsub.f32 %v12490_v27, %v2850_v26  ;;  %v4029_v55 = vmax.f32 %v12840_v18, %v12842_v38  ;;  %9598 = vpow2.f32 %v2925_v25 }
 0x68f   : > { %v12848_v30 = vpop.f32.mrf.mxu0  ;;  %9600 = vpow2.f32 %v2927_v21 }
 0x690   : > { %16075 = vst [vmem:[#allocation246_spill] sm:$0xff] %v12848_v30  ;;  %v2929_v36 = vmul.f32 1.442695, %v2895_v40  ;;  %v2931_v29 = vmul.f32 1.442695, %v2896_v46  ;;  %4030 = vmax.xlane.f32.xlu0 %v4029_v55 }
 0x691   : > { %v12850_v0 = vpop.f32.mrf.mxu0  ;;  %v2853_v53 = vpop.xlane.xlu0 %2852 }
 0x692   : > { %16076 = vst [vmem:[#allocation247_spill] sm:$0xff] %v12850_v0  ;;  %9602 = vpow2.f32 %v2929_v36  ;;  %v4032_v58 = vmax.f32 %v12848_v30, %v12850_v0  ;;  %v2897_v57 = vsub.f32 %v12494_v31, %v2853_v53  ;;  %v2898_v27 = vsub.f32 %v12496_v14, %v2853_v53 }
 0x693   : > { %9604 = vpow2.f32 %v2931_v29  ;;  %v12856_v26 = vpop.f32.mrf.mxu0 }
 0x694   : > { %16077 = vst [vmem:[#allocation248_spill] sm:$0xff] %v12856_v26  ;;  %v2933_v49 = vmul.f32 1.442695, %v2897_v57  ;;  %4033 = vmax.xlane.f32.xlu1 %v4032_v58  ;;  %v2935_v25 = vmul.f32 1.442695, %v2898_v27 }
 0x695   : > { %v2856_v46 = vpop.xlane.xlu1 %2855  ;;  %v12858_v55 = vpop.f32.mrf.mxu0 }
 0x696   : > { %16078 = vst [vmem:[#allocation249_spill] sm:$0xff] %v12858_v55  ;;  %v2899_v21 = vsub.f32 %v12500_v48, %v2856_v46  ;;  %v2900_v40 = vsub.f32 %v12502_v42, %v2856_v46  ;;  %v4035_v36 = vmax.f32 %v12856_v26, %v12858_v55  ;;  %9606 = vpow2.f32 %v2933_v49  ;;  %v16089_v26 = vld [vmem:[#allocation133_spill] sm:$0xff] }
 0x697   : > { %v12864_v0 = vpop.f32.mrf.mxu0  ;;  %9608 = vpow2.f32 %v2935_v25 }
 0x698   : > { %16079 = vst [vmem:[#allocation250_spill] sm:$0xff] %v12864_v0  ;;  %v2937_v31 = vmul.f32 1.442695, %v2899_v21  ;;  %v2939_v14 = vmul.f32 1.442695, %v2900_v40  ;;  %4036 = vmax.xlane.f32.xlu0 %v4035_v36 }
 0x699   : > { %v12866_v29 = vpop.f32.mrf.mxu0  ;;  %v2859_v53 = vpop.xlane.xlu0 %2858 }
 0x69a   : > { %16080 = vst [vmem:[#allocation251_spill] sm:$0xff] %v12866_v29  ;;  %9610 = vpow2.f32 %v2937_v31  ;;  %v4038_v58 = vmax.f32 %v12864_v0, %v12866_v29  ;;  %v2901_v48 = vsub.f32 %v12506_v17, %v2859_v53  ;;  %v2902_v42 = vsub.f32 %v12508_v11, %v2859_v53  ;;  %v16083_v31 = vld [vmem:[#allocation212_spill] sm:$0xff] }
 0x69b   : > { %9612 = vpow2.f32 %v2939_v14  ;;  %v12872_v57 = vpop.f32.mrf.mxu0  ;;  %v12874_v49 = vpop.eup %9598 }
 0x69c   : > { %16081 = vst [vmem:[#allocation252_spill] sm:$0xff] %v12872_v57  ;;  %v2941_v27 = vmul.f32 1.442695, %v2901_v48  ;;  %4039 = vmax.xlane.f32.xlu1 %v4038_v58  ;;  %v2943_v46 = vmul.f32 1.442695, %v2902_v42  ;;  %v12878_v40 = vpop.eup %9600 }
 0x69d   : > { %v2862_v25 = vpop.xlane.xlu1 %2861  ;;  %v12876_v21 = vpop.f32.mrf.mxu0 }
 0x69e   : > { %16082 = vst [vmem:[#allocation253_spill] sm:$0xff] %v12876_v21  ;;  %v2903_v36 = vsub.f32 %v12512_v13, %v2862_v25  ;;  %v2904_v29 = vsub.f32 %v16083_v31, %v2862_v25  ;;  %v4041_v17 = vmax.f32 %v12872_v57, %v12876_v21  ;;  %9614 = vpow2.f32 %v2941_v27  ;;  %v16086_v57 = vld [vmem:[#allocation213_spill] sm:$0xff]  ;;  %v16087_v27 = vld [vmem:[#allocation214_spill] sm:$0xff] }
 0x69f   : > { %v12884_v11 = vpop.eup %9602  ;;  %v12886_v14 = vpop.f32.mrf.mxu0  ;;  %9616 = vpow2.f32 %v2943_v46 }
 0x6a0   : > { %16084 = vst [vmem:[#allocation212_spill] sm:$0xff] %v12886_v14  ;;  %v12888_v53 = vpop.eup %9604  ;;  %v2945_v58 = vmul.f32 1.442695, %v2903_v36  ;;  %v2947_v48 = vmul.f32 1.442695, %v2904_v29  ;;  %4042 = vmax.xlane.f32.xlu0 %v4041_v17  ;;  %v3037_v42 = vpack.c.bf16 %v12884_v11, %v12874_v49 }
 0x6a1   : > { %v12892_v13 = vpop.f32.mrf.mxu0  ;;  %v2865_v25 = vpop.xlane.xlu0 %2864  ;;  %v3038_v31 = vpack.c.bf16 %v12888_v53, %v12878_v40 }
 0x6a2   : > { %16085 = vst [vmem:[#allocation254_spill] sm:$0xff] %v12892_v13  ;;  %9618 = vpow2.f32 %v2945_v58  ;;  %v4044_v21 = vmax.f32 %v12886_v14, %v12892_v13  ;;  %v2905_v0 = vsub.f32 %v16086_v57, %v2865_v25  ;;  %v2906_v36 = vsub.f32 %v16087_v27, %v2865_v25  ;;  %v16091_v57 = vld [vmem:[#allocation160_spill] sm:$0xff] }
 0x6a3   : > { %9620 = vpow2.f32 %v2947_v48  ;;  %3085 = vmatprep.mubr.bf16.mxu1 %v3038_v31  ;;  %v12900_v29 = vpop.f32.mrf.mxu0  ;;  %v12902_v46 = vpop.eup %9606 }
 0x6a4   : > { %16088 = vst [vmem:[#allocation213_spill] sm:$0xff] %v12900_v29  ;;  %v2949_v17 = vmul.f32 1.442695, %v2905_v0  ;;  %3086 = vmatmul.mubr.bf16.vlgmr.msra.gmra.mxu1 %v3037_v42  ;;  %4045 = vmax.xlane.f32.xlu1 %v4044_v21  ;;  %v2951_v55 = vmul.f32 1.442695, %v2906_v36  ;;  %v12907_v13 = vpop.eup %9608 }
 0x6a5   : > { %8442 = vmatpush3.bf16.msra.mxu1 %v16089_v26  ;;  %v2868_v58 = vpop.xlane.xlu1 %2867  ;;  %v12905_v30 = vpop.f32.mrf.mxu0 }
 0x6a6   : > { %16090 = vst [vmem:[#allocation214_spill] sm:$0xff] %v12905_v30  ;;  %8443 = vmatprep.subr.bf16.mxu1 %v16091_v57  ;;  %v2907_v48 = vsub.f32 %v12526_v20, %v2868_v58  ;;  %v2908_v25 = vsub.f32 %v12528_v37, %v2868_v58  ;;  %v4047_v0 = vmax.f32 %v12900_v29, %v12905_v30  ;;  %9622 = vpow2.f32 %v2949_v17  ;;  %v16093_v20 = vld [vmem:[#allocation128_spill] sm:$0xff] }
 0x6a7   : > { %v12914_v21 = vpop.eup %9610  ;;  %v12916_v42 = vpop.f32.mrf.mxu0  ;;  %9624 = vpow2.f32 %v2951_v55  ;;  %v16095_v30 = vld [vmem:[#allocation156_spill] sm:$0xff] }
 0x6a8   : > { %16092 = vst [vmem:[#allocation255_spill] sm:$0xff] %v12916_v42  ;;  %v12918_v31 = vpop.eup %9612  ;;  %v2953_v27 = vmul.f32 1.442695, %v2907_v48  ;;  %v2955_v36 = vmul.f32 1.442695, %v2908_v25  ;;  %4048 = vmax.xlane.f32.xlu0 %v4047_v0  ;;  %v3039_v57 = vpack.c.bf16 %v12914_v21, %v12902_v46 }
 0x6a9   : > { %8444 = vmatpush3.bf16.msra.mxu1 %v16093_v20  ;;  %v12923_v37 = vpop.f32.mrf.mxu0  ;;  %v2871_v58 = vpop.xlane.xlu0 %2870  ;;  %v3040_v26 = vpack.c.bf16 %v12918_v31, %v12907_v13 }
 0x6aa   : > { %16094 = vst [vmem:[#allocation256_spill] sm:$0xff] %v12923_v37  ;;  %9626 = vpow2.f32 %v2953_v27  ;;  %8445 = vmatprep.subr.bf16.mxu1 %v16095_v30  ;;  %v4050_v17 = vmax.f32 %v12916_v42, %v12923_v37  ;;  %v2909_v48 = vsub.f32 %v12534_v23, %v2871_v58  ;;  %v2910_v25 = vsub.f32 %v12536_v56, %v2871_v58  ;;  %v16097_v27 = vld [vmem:[#allocation124_spill] sm:$0xff]  ;;  %v16099_v23 = vld [vmem:[#allocation153_spill] sm:$0xff] }
 0x6ab   : > { %9628 = vpow2.f32 %v2955_v36  ;;  %3093 = vmatprep.mubr.bf16.mxu1 %v3040_v26  ;;  %v12932_v55 = vpop.f32.mrf.mxu0  ;;  %v12934_v20 = vpop.eup %9614  ;;  %v16100_v26 = vld [vmem:[#allocation215_spill] sm:$0xff] }
 0x6ac   : > { %16096 = vst [vmem:[#allocation257_spill] sm:$0xff] %v12932_v55  ;;  %v2957_v0 = vmul.f32 1.442695, %v2909_v48  ;;  %3094 = vmatmul.mubr.bf16.gmra.mxu1 %v3039_v57  ;;  %4051 = vmax.xlane.f32.xlu1 %v4050_v17  ;;  %v2959_v29 = vmul.f32 1.442695, %v2910_v25  ;;  %v12939_v37 = vpop.eup %9616 }
 0x6ad   : > { %8446 = vmatpush3.bf16.msra.mxu1 %v16097_v27  ;;  %v2874_v30 = vpop.xlane.xlu1 %2873  ;;  %v12937_v14 = vpop.f32.mrf.mxu0 }
 0x6ae   : > { %16098 = vst [vmem:[#allocation258_spill] sm:$0xff] %v12937_v14  ;;  %8447 = vmatprep.subr.bf16.mxu1 %v16099_v23  ;;  %v2911_v56 = vsub.f32 %v12542_v28, %v2874_v30  ;;  %v2912_v36 = vsub.f32 %v16100_v26, %v2874_v30  ;;  %v4053_v57 = vmax.f32 %v12932_v55, %v12937_v14  ;;  %9630 = vpow2.f32 %v2957_v0  ;;  %v16102_v28 = vld [vmem:[#allocation120_spill] sm:$0xff]  ;;  %v16104_v55 = vld [vmem:[#allocation149_spill] sm:$0xff] }
 0x6af   : > { %v12946_v58 = vpop.eup %9618  ;;  %v12948_v17 = vpop.f32.mrf.mxu0  ;;  %9632 = vpow2.f32 %v2959_v29 }
 0x6b0   : > { %16101 = vst [vmem:[#allocation215_spill] sm:$0xff] %v12948_v17  ;;  %v12950_v48 = vpop.eup %9620  ;;  %v2961_v25 = vmul.f32 1.442695, %v2911_v56  ;;  %v2963_v27 = vmul.f32 1.442695, %v2912_v36  ;;  %4054 = vmax.xlane.f32.xlu0 %v4053_v57  ;;  %v3041_v23 = vpack.c.bf16 %v12946_v58, %v12934_v20  ;;  %v16105_v56 = vld [vmem:[#allocation216_spill] sm:$0xff] }
 0x6b1   : > { %8448 = vmatpush3.bf16.msra.mxu1 %v16102_v28  ;;  %v12955_v30 = vpop.f32.mrf.mxu0  ;;  %v2877_v26 = vpop.xlane.xlu0 %2876  ;;  %v3042_v14 = vpack.c.bf16 %v12950_v48, %v12939_v37  ;;  %v16106_v57 = vld [vmem:[#allocation217_spill] sm:$0xff] }
 0x6b2   : > { %16103 = vst [vmem:[#allocation259_spill] sm:$0xff] %v12955_v30  ;;  %9634 = vpow2.f32 %v2961_v25  ;;  %8449 = vmatprep.subr.bf16.mxu1 %v16104_v55  ;;  %v4056_v0 = vmax.f32 %v12948_v17, %v12955_v30  ;;  %v2913_v36 = vsub.f32 %v16105_v56, %v2877_v26  ;;  %v2914_v42 = vsub.f32 %v16106_v57, %v2877_v26  ;;  %v16108_v25 = vld [vmem:[#allocation116_spill] sm:$0xff]  ;;  %v16110_v56 = vld [vmem:[#allocation146_spill] sm:$0xff] }
 0x6b3   : > { %9636 = vpow2.f32 %v2963_v27  ;;  %3101 = vmatprep.mubr.bf16.mxu1 %v3042_v14  ;;  %v12964_v29 = vpop.f32.mrf.mxu0  ;;  %v12966_v38 = vpop.eup %9622  ;;  %v16111_v26 = vld [vmem:[#allocation218_spill] sm:$0xff]  ;;  %v16112_v14 = vld [vmem:[#allocation219_spill] sm:$0xff] }
 0x6b4   : > { %16107 = vst [vmem:[#allocation216_spill] sm:$0xff] %v12964_v29  ;;  %v2965_v28 = vmul.f32 1.442695, %v2913_v36  ;;  %3102 = vmatmul.mubr.bf16.gmra.mxu1 %v3041_v23  ;;  %4057 = vmax.xlane.f32.xlu1 %v4056_v0  ;;  %v2967_v18 = vmul.f32 1.442695, %v2914_v42  ;;  %v12971_v30 = vpop.eup %9624 }
 0x6b5   : > { %8450 = vmatpush3.bf16.msra.mxu1 %v16108_v25  ;;  %v2880_v55 = vpop.xlane.xlu1 %2879  ;;  %v12969_v32 = vpop.f32.mrf.mxu0 }
 0x6b6   : > { %16109 = vst [vmem:[#allocation217_spill] sm:$0xff] %v12969_v32  ;;  %8451 = vmatprep.subr.bf16.mxu1 %v16110_v56  ;;  %v2915_v27 = vsub.f32 %v16111_v26, %v2880_v55  ;;  %v2916_v57 = vsub.f32 %v16112_v14, %v2880_v55  ;;  %v4059_v23 = vmax.f32 %v12964_v29, %v12969_v32  ;;  %9638 = vpow2.f32 %v2965_v28  ;;  %v16113_v26 = vld [vmem:[#allocation112_spill] sm:$0xff]  ;;  %v16115_v29 = vld [vmem:[#allocation142_spill] sm:$0xff] }
 0x6b7   : > { %v12978_v0 = vpop.eup %9626  ;;  %v12980_v36 = vpop.f32.mrf.mxu0  ;;  %9640 = vpow2.f32 %v2967_v18 }
 0x6b8   : > { %v12982_v42 = vpop.eup %9628  ;;  %v2969_v25 = vmul.f32 1.442695, %v2915_v27  ;;  %v2971_v17 = vmul.f32 1.442695, %v2916_v57  ;;  %4060 = vmax.xlane.f32.xlu0 %v4059_v23  ;;  %v3043_v56 = vpack.c.bf16 %v12978_v0, %v12966_v38 }
 0x6b9   : > { %8452 = vmatpush3.bf16.msra.mxu1 %v16113_v26  ;;  %v12987_v55 = vpop.f32.mrf.mxu0  ;;  %v2883_v14 = vpop.xlane.xlu0 %2882  ;;  %v3044_v32 = vpack.c.bf16 %v12982_v42, %v12971_v30  ;;  %v16116_v26 = vld [vmem:[#allocation220_spill] sm:$0xff] }
 0x6ba   : > { %16114 = vst [vmem:[#allocation218_spill] sm:$0xff] %v12987_v55  ;;  %9642 = vpow2.f32 %v2969_v25  ;;  %8453 = vmatprep.subr.bf16.mxu1 %v16115_v29  ;;  %v4062_v28 = vmax.f32 %v12980_v36, %v12987_v55  ;;  %v2917_v27 = vsub.f32 %v12568_v16, %v2883_v14  ;;  %v2918_v57 = vsub.f32 %v12570_v33, %v2883_v14  ;;  %v16118_v55 = vld [vmem:[#allocation137_spill] sm:$0xff]  ;;  %v16120_v14 = vld [vmem:[#allocation211_spill] sm:$0xff] }
 0x6bb   : > { %9644 = vpow2.f32 %v2971_v17  ;;  %3109 = vmatprep.mubr.bf16.mxu1 %v3044_v32  ;;  %v12997_v45 = vpop.eup %9630  ;;  %v2989_v32 = vadd.f32 %v12878_v40, %v12874_v49 }
 0x6bc   : > { %v2973_v18 = vmul.f32 1.442695, %v2917_v27  ;;  %v2975_v23 = vmul.f32 1.442695, %v2918_v57  ;;  %3110 = vmatmul.mubr.bf16.gmra.mxu1 %v3043_v56  ;;  %2380 = vadd.xlane.f32.xlu0 %v16116_v26  ;;  %v13000_v29 = vpop.eup %9632  ;;  %v16119_v26 = vld [vmem:[#allocation165_spill] sm:$0xff] }
 0x6bd   : > { %8454 = vmatpush3.bf16.msra.mxu1 %v16117_v52  ;;  %4063 = vmax.xlane.f32.xlu1 %v4062_v28  ;;  %v2886_v25 = vpop.xlane.xlu1 %2885  ;;  %v13013_v28 = vpack.c.bf16 %v16120_v14, %v16119_v26  ;;  %v2995_v14 = vadd.f32 %v12907_v13, %v12902_v46  ;;  %v9449_v52 = vld [vmem:[#allocation11 + $0x20] sm:$0xff]  }
 0x6be   : > { %9646 = vpow2.f32 %v2973_v18  ;;  %8455 = vmatprep.subr.bf16.mxu1 %v16118_v55  ;;  %v2919_v16 = vsub.f32 %v12578_v8, %v2886_v25  ;;  %v2920_v33 = vsub.f32 %v12588_v1, %v2886_v25  ;;  %v16122_v18 = vld [vmem:[#allocation101_spill] sm:$0xff]  ;;  %v2992_v25 = vadd.f32 %v12888_v53, %v12884_v11 }
 0x6bf   : > { %v13007_v17 = vpop.eup %9634  ;;  %9648 = vpow2.f32 %v2975_v23  ;;  %16121 = vst [vmem:[#allocation219_spill] sm:$0xff] %v13013_v28 }
 0x6c0   : > { %v13009_v56 = vpop.eup %9636  ;;  %v2977_v27 = vmul.f32 1.442695, %v2919_v16  ;;  %v2979_v57 = vmul.f32 1.442695, %v2920_v33  ;;  %2990 = vadd.xlane.f32.xlu0 %v2989_v32  ;;  %v3045_v8 = vpack.c.bf16 %v13007_v17, %v12997_v45 }
 0x6c1   : > { %8456 = vmatpush3.bf16.msra.mxu1 %v16122_v18  ;;  %2383 = vadd.xlane.f32.xlu1 %v12574_v3  ;;  %v2889_v1 = vpop.xlane.xlu0 %2888  ;;  %v3046_v49 = vpack.c.bf16 %v13009_v56, %v13000_v29 }
 0x6c2   : > { %9650 = vpow2.f32 %v2977_v27  ;;  %8537 = vmatprep.subr.bf16.mxu1 %v13013_v28  ;;  %v2921_v40 = vsub.f32 %v12598_v6, %v2889_v1  ;;  %v2922_v23 = vsub.f32 %v12608_v44, %v2889_v1  ;;  %v2998_v1 = vadd.f32 %v12918_v31, %v12914_v21 }
 0x6c3   : > { %9652 = vpow2.f32 %v2979_v57  ;;  %3117 = vmatprep.mubr.bf16.mxu1 %v3046_v49  ;;  %v13027_v3 = vpop.eup %9638 }
 0x6c4   : > { %v2981_v16 = vmul.f32 1.442695, %v2921_v40  ;;  %v2983_v33 = vmul.f32 1.442695, %v2922_v23  ;;  %3118 = vmatmul.mubr.bf16.gmra.mxu1 %v3045_v8  ;;  %2386 = vadd.xlane.f32.xlu0 %v12593_v43  ;;  %v13029_v26 = vpop.eup %9640 }
 0x6c5   : > { %2993 = vadd.xlane.f32.xlu1 %v2992_v25  ;;  %v2892_v32 = vpop.xlane.xlu1 %2891 }
 0x6c6   : > { %9654 = vpow2.f32 %v2981_v16  ;;  %v2923_v6 = vsub.f32 %v12618_v59, %v2892_v32  ;;  %v2924_v44 = vsub.f32 %v12628_v63, %v2892_v32  ;;  %v3001_v16 = vadd.f32 %v12939_v37, %v12934_v20 }
 0x6c7   : > { %v13035_v11 = vpop.eup %9642  ;;  %9656 = vpow2.f32 %v2983_v33  ;;  %v3004_v37 = vadd.f32 %v12950_v48, %v12946_v58 }
 0x6c8   : > { %v13037_v53 = vpop.eup %9644  ;;  %v2985_v43 = vmul.f32 1.442695, %v2923_v6  ;;  %v2987_v27 = vmul.f32 1.442695, %v2924_v44  ;;  %2996 = vadd.xlane.f32.xlu0 %v2995_v14  ;;  %v3047_v57 = vpack.c.bf16 %v13035_v11, %v13027_v3 }
 0x6c9   : > { %2389 = vadd.xlane.f32.xlu1 %v12613_v35  ;;  %v3433_v8 = vpop.xlane.xlu0 %3432  ;;  %v3048_v59 = vpack.c.bf16 %v13037_v53, %v13029_v26 }
 0x6ca   : > { %9658 = vpow2.f32 %v2985_v43  ;;  %v3479_v63 = vsub.f32 %v12638_v5, %v3433_v8  ;;  %v3480_v13 = vsub.f32 %v12648_v15, %v3433_v8 }
 0x6cb   : > { %v9647_v46 = vpop.eup %9646  ;;  %9660 = vpow2.f32 %v2987_v27  ;;  %3125 = vmatprep.mubr.bf16.mxu1 %v3048_v59  ;;  %v3007_v59 = vadd.f32 %v12971_v30, %v12966_v38  ;;  %v3010_v38 = vadd.f32 %v12982_v42, %v12978_v0 }
 0x6cc   : > { %v9649_v49 = vpop.eup %9648  ;;  %v3511_v40 = vmul.f32 1.442695, %v3479_v63  ;;  %3126 = vmatmul.mubr.bf16.gmra.mxu1 %v3047_v57  ;;  %2392 = vadd.xlane.f32.xlu0 %v12633_v50  ;;  %v3513_v35 = vmul.f32 1.442695, %v3480_v13 }
 0x6cd   : > { %2999 = vadd.xlane.f32.xlu1 %v2998_v1  ;;  %v3436_v23 = vpop.xlane.xlu1 %3435  ;;  %v13049_v25 = vadd.f32 %v9649_v49, %v9647_v46 }
 0x6ce   : > { %v3481_v5 = vsub.f32 %v12658_v62, %v3436_v23  ;;  %v3482_v15 = vsub.f32 %v12668_v47, %v3436_v23  ;;  %9662 = vpow2.f32 %v3511_v40  ;;  %v16123_v40 = vld [vmem:[#allocation61_spill] sm:$0xff] }
 0x6cf   : > { %v9651_v33 = vpop.eup %9650  ;;  %9664 = vpow2.f32 %v3513_v35 }
 0x6d0   : > { %v9653_v32 = vpop.eup %9652  ;;  %v3515_v21 = vmul.f32 1.442695, %v3481_v5  ;;  %v3517_v31 = vmul.f32 1.442695, %v3482_v15  ;;  %3002 = vadd.xlane.f32.xlu0 %v3001_v16  ;;  %v3049_v6 = vpack.c.bf16 %v9651_v33, %v9647_v46 }
 0x6d1   : > { %2395 = vadd.xlane.f32.xlu1 %v12653_v12  ;;  %v3439_v50 = vpop.xlane.xlu0 %3438  ;;  %v3050_v44 = vpack.c.bf16 %v9653_v32, %v9649_v49  ;;  %v13056_v14 = vadd.f32 %v9653_v32, %v9651_v33 }
 0x6d2   : > { %9666 = vpow2.f32 %v3515_v21  ;;  %v3483_v62 = vsub.f32 %v12678_v34, %v3439_v50  ;;  %v3484_v47 = vsub.f32 %v12688_v60, %v3439_v50  ;;  %v16125_v50 = vld [vmem:[#allocation134_spill] sm:$0xff] }
 0x6d3   : > { %v9655_v20 = vpop.eup %9654  ;;  %9668 = vpow2.f32 %v3517_v31  ;;  %3133 = vmatprep.mubr.bf16.mxu1 %v3050_v44  ;;  %v3013_v31 = vadd.f32 %v13000_v29, %v12997_v45  ;;  %v16130_v29 = vld [vmem:[#allocation83_spill] sm:$0xff] }
 0x6d4   : > { %v9657_v43 = vpop.eup %9656  ;;  %v3519_v27 = vmul.f32 1.442695, %v3483_v62  ;;  %3134 = vmatmul.mubr.bf16.gmra.mxu1 %v3049_v6  ;;  %2398 = vadd.xlane.f32.xlu0 %v12673_v7  ;;  %v3521_v12 = vmul.f32 1.442695, %v3484_v47  ;;  %v16124_v6 = vld [vmem:[#allocation130_spill] sm:$0xff] }
 0x6d5   : > { %3005 = vadd.xlane.f32.xlu1 %v3004_v37  ;;  %v3442_v57 = vpop.xlane.xlu1 %3441  ;;  %v13063_v8 = vadd.f32 %v9657_v43, %v9655_v20  ;;  %v13093_v44 = vpack.c.bf16 %v16125_v50, %v16124_v6  ;;  %v16128_v62 = vld [vmem:[#allocation162_spill] sm:$0xff]  ;;  %v16149_v50 = vld [vmem:[#allocation121_spill] sm:$0xff] }
 0x6d6   : > { %v3485_v34 = vsub.f32 %v12698_v51, %v3442_v57  ;;  %v3486_v60 = vsub.f32 %v12708_v39, %v3442_v57  ;;  %9670 = vpow2.f32 %v3519_v27  ;;  %v16148_v6 = vld [vmem:[#allocation118_spill] sm:$0xff] }
 0x6d7   : > { %v9659_v63 = vpop.eup %9658  ;;  %9672 = vpow2.f32 %v3521_v12  ;;  %16126 = vst [vmem:[#allocation220_spill] sm:$0xff] %v13093_v44  ;;  %v3019_v12 = vadd.f32 %v13029_v26, %v13027_v3 }
 0x6d8   : > { %v9661_v13 = vpop.eup %9660  ;;  %v3523_v58 = vmul.f32 1.442695, %v3485_v34  ;;  %v3525_v48 = vmul.f32 1.442695, %v3486_v60  ;;  %3008 = vadd.xlane.f32.xlu0 %v3007_v59  ;;  %v3051_v46 = vpack.c.bf16 %v9659_v63, %v9655_v20  ;;  %v16132_v34 = vld [vmem:[#allocation126_spill] sm:$0xff]  ;;  %v16133_v60 = vld [vmem:[#allocation129_spill] sm:$0xff] }
 0x6d9   : > { %2401 = vadd.xlane.f32.xlu1 %v12693_v2  ;;  %v3445_v7 = vpop.xlane.xlu0 %3444  ;;  %v3052_v1 = vpack.c.bf16 %v9661_v13, %v9657_v43  ;;  %v13070_v49 = vadd.f32 %v9661_v13, %v9659_v63  ;;  %v16131_v43 = vld [vmem:[#allocation56_spill] sm:$0xff]  ;;  %v13110_v59 = vpack.c.bf16 %v16133_v60, %v16132_v34  ;;  %v16135_v13 = vld [vmem:[#allocation155_spill] sm:$0xff] }
 0x6da   : > { %9674 = vpow2.f32 %v3523_v58  ;;  %v3487_v51 = vsub.f32 %v12718_v19, %v3445_v7  ;;  %v3488_v39 = vsub.f32 %v12724_v10, %v3445_v7  ;;  %v16136_v58 = vld [vmem:[#allocation157_spill] sm:$0xff]  ;;  %v16154_v34 = vld [vmem:[#allocation223_spill] sm:$0xff] }
 0x6db   : > { %9676 = vpow2.f32 %v3525_v48  ;;  %3141 = vmatprep.mubr.bf16.mxu1 %v3052_v1  ;;  %v9663_v35 = vpop.eup %9662  ;;  %16134 = vst [vmem:[#allocation211_spill] sm:$0xff] %v13110_v59  ;;  %v13116_v48 = vpack.c.bf16 %v16136_v58, %v16135_v13  ;;  %v16156_v58 = vld [vmem:[#allocation114_spill] sm:$0xff] }
 0x6dc   : > { %v3527_v30 = vmul.f32 1.442695, %v3487_v51  ;;  %3142 = vmatmul.mubr.bf16.gmra.mxu1 %v3051_v46  ;;  %2404 = vadd.xlane.f32.xlu0 %v16123_v40  ;;  %v3529_v2 = vmul.f32 1.442695, %v3488_v39  ;;  %v9665_v5 = vpop.eup %9664  ;;  %v16138_v51 = vld [vmem:[#allocation77_spill] sm:$0xff] }
 0x6dd   : > { %3011 = vadd.xlane.f32.xlu1 %v3010_v38  ;;  %v3448_v23 = vpop.xlane.xlu1 %3447  ;;  %16137 = vst [vmem:[#allocation61_spill] sm:$0xff] %v13116_v48  ;;  %v3575_v38 = vadd.f32 %v9665_v5, %v9663_v35  ;;  %v16141_v40 = vld [vmem:[#allocation125_spill] sm:$0xff] }
 0x6de   : > { %v3489_v15 = vsub.f32 %v12734_v41, %v3448_v23  ;;  %v3490_v19 = vsub.f32 %v12736_v9, %v3448_v23  ;;  %9678 = vpow2.f32 %v3527_v30  ;;  %v16140_v30 = vld [vmem:[#allocation122_spill] sm:$0xff]  ;;  %v3022_v23 = vadd.f32 %v13037_v53, %v13035_v11 }
 0x6df   : > { %v13079_v16 = vpop.eup %9666  ;;  %9680 = vpow2.f32 %v3529_v2  ;;  %v13125_v2 = vpack.c.bf16 %v16141_v40, %v16140_v30 }
 0x6e0   : > { %v13081_v10 = vpop.eup %9668  ;;  %v3531_v33 = vmul.f32 1.442695, %v3489_v15  ;;  %v3533_v0 = vmul.f32 1.442695, %v3490_v19  ;;  %2410 = vadd.xlane.f32.xlu0 %v12740_v22  ;;  %v3623_v42 = vpack.c.bf16 %v13079_v16, %v9663_v35  ;;  %v16127_v22 = vld [vmem:[#allocation158_spill] sm:$0xff]  ;;  %v16143_v15 = vld [vmem:[#allocation152_spill] sm:$0xff] }
 0x6e1   : > { %2407 = vadd.xlane.f32.xlu1 %v12729_v61  ;;  %v3451_v32 = vpop.xlane.xlu0 %3450  ;;  %v3624_v21 = vpack.c.bf16 %v13081_v10, %v9665_v5  ;;  %v13097_v61 = vpack.c.bf16 %v16128_v62, %v16127_v22  ;;  %16142 = vst [vmem:[#allocation130_spill] sm:$0xff] %v13125_v2  ;;  %v16144_v19 = vld [vmem:[#allocation154_spill] sm:$0xff]  ;;  %v13139_v22 = vpack.c.bf16 %v16149_v50, %v16148_v6  ;;  %v16151_v62 = vld [vmem:[#allocation148_spill] sm:$0xff] }
 0x6e2   : > { %9682 = vpow2.f32 %v3531_v33  ;;  %v3491_v41 = vsub.f32 %v12744_v4, %v3451_v32  ;;  %v3492_v9 = vsub.f32 %v12746_v24, %v3451_v32  ;;  %v13131_v33 = vpack.c.bf16 %v16144_v19, %v16143_v15  ;;  %v16163_v15 = vld [vmem:[#allocation227_spill] sm:$0xff] }
 0x6e3   : > { %9684 = vpow2.f32 %v3533_v0  ;;  %3671 = vmatprep.mubr.bf16.mxu1 %v3624_v21  ;;  %16129 = vst [vmem:[#allocation165_spill] sm:$0xff] %v13097_v61  ;;  %v9671_v4 = vpop.eup %9670  ;;  %v16146_v21 = vld [vmem:[#allocation55_spill] sm:$0xff]  ;;  %16150 = vst [vmem:[#allocation158_spill] sm:$0xff] %v13139_v22 }
 0x6e4   : > { %v3535_v47 = vmul.f32 1.442695, %v3491_v41  ;;  %v3537_v20 = vmul.f32 1.442695, %v3492_v9  ;;  %3672 = vmatmul.mubr.bf16.vlgmr.msra.gmra.mxu1 %v3623_v42  ;;  %3014 = vadd.xlane.f32.xlu0 %v3013_v31  ;;  %v9673_v45 = vpop.eup %9672  ;;  %16145 = vst [vmem:[#allocation134_spill] sm:$0xff] %v13131_v33  ;;  %v16147_v9 = vld [vmem:[#allocation221_spill] sm:$0xff] }
 0x6e5   : > { %8538 = vmatpush3.bf16.msra.mxu1 %v13093_v44  ;;  %2413 = vadd.xlane.f32.xlu1 %v12750_v54  ;;  %v3454_v24 = vpop.xlane.xlu1 %3453  ;;  %v3016_v54 = vadd.f32 %v13009_v56, %v13007_v17  ;;  %v16139_v56 = vld [vmem:[#allocation79_spill] sm:$0xff]  ;;  %v3581_v53 = vadd.f32 %v9673_v45, %v9671_v4 }
 0x6e6   : > { %9686 = vpow2.f32 %v3535_v47  ;;  %8539 = vmatprep.subr.bf16.mxu1 %v13097_v61  ;;  %v3493_v37 = vsub.f32 %v16130_v29, %v3454_v24  ;;  %v3494_v27 = vsub.f32 %v16131_v43, %v3454_v24  ;;  %v16152_v47 = vld [vmem:[#allocation150_spill] sm:$0xff]  ;;  %v3578_v24 = vadd.f32 %v13081_v10, %v13079_v16  ;;  %v16199_v61 = vld [vmem:[#allocation248_spill] sm:$0xff] }
 0x6e7   : > { %v13106_v57 = vpop.eup %9674  ;;  %9688 = vpow2.f32 %v3537_v20  ;;  %v13143_v20 = vpack.c.bf16 %v16152_v47, %v16151_v62 }
 0x6e8   : > { %v9677_v63 = vpop.eup %9676  ;;  %v3539_v46 = vmul.f32 1.442695, %v3493_v37  ;;  %v3541_v7 = vmul.f32 1.442695, %v3494_v27  ;;  %3020 = vadd.xlane.f32.xlu0 %v3019_v12  ;;  %v3625_v3 = vpack.c.bf16 %v13106_v57, %v9671_v4 }
 0x6e9   : > { %8540 = vmatpush3.bf16.msra.mxu1 %v13110_v59  ;;  %3017 = vadd.xlane.f32.xlu1 %v3016_v54  ;;  %v3457_v26 = vpop.xlane.xlu0 %3456  ;;  %v3626_v1 = vpack.c.bf16 %v9677_v63, %v9673_v45  ;;  %16153 = vst [vmem:[#allocation162_spill] sm:$0xff] %v13143_v20  ;;  %v16155_v54 = vld [vmem:[#allocation224_spill] sm:$0xff] }
 0x6ea   : > { %9690 = vpow2.f32 %v3539_v46  ;;  %8541 = vmatprep.subr.bf16.mxu1 %v13116_v48  ;;  %v3495_v17 = vsub.f32 %v16138_v51, %v3457_v26  ;;  %v3496_v39 = vsub.f32 %v16139_v56, %v3457_v26  ;;  %v16157_v46 = vld [vmem:[#allocation117_spill] sm:$0xff]  ;;  %v3584_v26 = vadd.f32 %v9677_v63, %v13106_v57  ;;  %v16162_v57 = vld [vmem:[#allocation226_spill] sm:$0xff]  ;;  %v16198_v48 = vld [vmem:[#allocation247_spill] sm:$0xff] }
 0x6eb   : > { %9692 = vpow2.f32 %v3541_v7  ;;  %3679 = vmatprep.mubr.bf16.mxu1 %v3626_v1  ;;  %v9679_v42 = vpop.eup %9678  ;;  %v13153_v7 = vpack.c.bf16 %v16157_v46, %v16156_v58  ;;  %v16159_v51 = vld [vmem:[#allocation145_spill] sm:$0xff] }
 0x6ec   : > { %v3543_v0 = vmul.f32 1.442695, %v3495_v17  ;;  %3680 = vmatmul.mubr.bf16.gmra.mxu1 %v3625_v3  ;;  %3576 = vadd.xlane.f32.xlu0 %v3575_v38  ;;  %v3545_v32 = vmul.f32 1.442695, %v3496_v39  ;;  %v9681_v5 = vpop.eup %9680  ;;  %v16160_v17 = vld [vmem:[#allocation147_spill] sm:$0xff] }
 0x6ed   : > { %8542 = vmatpush3.bf16.msra.mxu1 %v13125_v2  ;;  %3023 = vadd.xlane.f32.xlu1 %v3022_v23  ;;  %v3460_v35 = vpop.xlane.xlu1 %3459  ;;  %v3587_v10 = vadd.f32 %v9681_v5, %v9679_v42  ;;  %16158 = vst [vmem:[#allocation83_spill] sm:$0xff] %v13153_v7  ;;  %v13158_v56 = vpack.c.bf16 %v16160_v17, %v16159_v51  ;;  %v16197_v2 = vld [vmem:[#allocation246_spill] sm:$0xff] }
 0x6ee   : > { %8543 = vmatprep.subr.bf16.mxu1 %v13131_v33  ;;  %v3497_v41 = vsub.f32 %v16146_v21, %v3460_v35  ;;  %v3498_v11 = vsub.f32 %v16147_v9, %v3460_v35  ;;  %9694 = vpow2.f32 %v3543_v0  ;;  %v16165_v35 = vld [vmem:[#allocation113_spill] sm:$0xff]  ;;  %v16167_v21 = vld [vmem:[#allocation140_spill] sm:$0xff] }
 0x6ef   : > { %v9683_v31 = vpop.eup %9682  ;;  %9696 = vpow2.f32 %v3545_v32  ;;  %16161 = vst [vmem:[#allocation56_spill] sm:$0xff] %v13158_v56  ;;  %v16164_v32 = vld [vmem:[#allocation110_spill] sm:$0xff] }
 0x6f0   : > { %v9685_v29 = vpop.eup %9684  ;;  %v3547_v37 = vmul.f32 1.442695, %v3497_v41  ;;  %v3549_v43 = vmul.f32 1.442695, %v3498_v11  ;;  %3582 = vadd.xlane.f32.xlu0 %v3581_v53  ;;  %v3627_v27 = vpack.c.bf16 %v9683_v31, %v9679_v42  ;;  %v16168_v41 = vld [vmem:[#allocation143_spill] sm:$0xff] }
 0x6f1   : > { %8544 = vmatpush3.bf16.msra.mxu1 %v13139_v22  ;;  %v8265_v4 = vpop.f32.mrf.mxu1  ;;  %3579 = vadd.xlane.f32.xlu1 %v3578_v24  ;;  %v3463_v45 = vpop.xlane.xlu0 %3462  ;;  %v3628_v12 = vpack.c.bf16 %v9685_v29, %v9681_v5  ;;  %v13170_v5 = vpack.c.bf16 %v16165_v35, %v16164_v32  ;;  %v13174_v9 = vpack.c.bf16 %v16168_v41, %v16167_v21 }
 0x6f2   : > { %9698 = vpow2.f32 %v3547_v37  ;;  %8545 = vmatprep.subr.bf16.mxu1 %v13143_v20  ;;  %v3499_v60 = vsub.f32 %v16154_v34, %v3463_v45  ;;  %v3500_v16 = vsub.f32 %v16155_v54, %v3463_v45  ;;  %v3590_v53 = vadd.f32 %v9685_v29, %v9683_v31  ;;  %v16171_v45 = vld [vmem:[#allocation229_spill] sm:$0xff]  ;;  %v16172_v29 = vld [vmem:[#allocation104_spill] sm:$0xff] }
 0x6f3   : > { %v9687_v13 = vpop.eup %9686  ;;  %9700 = vpow2.f32 %v3549_v43  ;;  %v8266_v3 = vpop.f32.mrf.mxu1  ;;  %3687 = vmatprep.mubr.bf16.mxu1 %v3628_v12  ;;  %16166 = vst [vmem:[#allocation126_spill] sm:$0xff] %v13170_v5  ;;  %16169 = vst [vmem:[#allocation129_spill] sm:$0xff] %v13174_v9  ;;  %v16173_v12 = vld [vmem:[#allocation108_spill] sm:$0xff] }
 0x6f4   : > { %v9689_v1 = vpop.eup %9688  ;;  %v3551_v39 = vmul.f32 1.442695, %v3499_v60  ;;  %v13160_v38 = vadd.f32 %v8266_v3, %v8265_v4  ;;  %3688 = vmatmul.mubr.bf16.gmra.mxu1 %v3627_v27  ;;  %3588 = vadd.xlane.f32.xlu0 %v3587_v10  ;;  %v3553_v30 = vmul.f32 1.442695, %v3500_v16  ;;  %v16170_v27 = vld [vmem:[#allocation228_spill] sm:$0xff]  ;;  %v13184_v34 = vpack.c.bf16 %v16173_v12, %v16172_v29  ;;  %v16175_v16 = vld [vmem:[#allocation135_spill] sm:$0xff] }
 0x6f5   : > { %8546 = vmatpush3.bf16.msra.mxu1 %v13153_v7  ;;  %v13163_v40 = vpop.f32.mrf.mxu1  ;;  %3585 = vadd.xlane.f32.xlu1 %v3584_v26  ;;  %v3466_v23 = vpop.xlane.xlu1 %3465  ;;  %v3593_v0 = vadd.f32 %v9689_v1, %v9687_v13  ;;  %v16176_v10 = vld [vmem:[#allocation138_spill] sm:$0xff] }
 0x6f6   : > { %8547 = vmatprep.subr.bf16.mxu1 %v13158_v56  ;;  %v3501_v63 = vsub.f32 %v16162_v57, %v3466_v23  ;;  %v3502_v19 = vsub.f32 %v16163_v15, %v3466_v23  ;;  %9702 = vpow2.f32 %v3551_v39  ;;  %16174 = vst [vmem:[#allocation155_spill] sm:$0xff] %v13184_v34  ;;  %v16178_v39 = vld [vmem:[#allocation230_spill] sm:$0xff]  ;;  %v16179_v23 = vld [vmem:[#allocation231_spill] sm:$0xff] }
 0x6f7   : > { %v9691_v42 = vpop.eup %9690  ;;  %v13176_v11 = vpop.f32.mrf.mxu1  ;;  %9704 = vpow2.f32 %v3553_v30 }
 0x6f8   : > { %v9693_v6 = vpop.eup %9692  ;;  %v3555_v50 = vmul.f32 1.442695, %v3501_v63  ;;  %v3557_v62 = vmul.f32 1.442695, %v3502_v19  ;;  %3594 = vadd.xlane.f32.xlu0 %v3593_v0  ;;  %v3629_v47 = vpack.c.bf16 %v9691_v42, %v9687_v13  ;;  %v13188_v13 = vpack.c.bf16 %v16176_v10, %v16175_v16  ;;  %v13202_v63 = vld [vmem:[#allocation11 + $0x38] sm:$0xff]   ;;  %v16180_v19 = vld [vmem:[#allocation98_spill] sm:$0xff] }
 0x6f9   : > { %8548 = vmatpush3.bf16.msra.mxu1 %v13170_v5  ;;  %3591 = vadd.xlane.f32.xlu1 %v3590_v53  ;;  %v8271_v24 = vpop.f32.mrf.mxu1  ;;  %v3469_v37 = vpop.xlane.xlu0 %3468  ;;  %v3630_v43 = vpack.c.bf16 %v9693_v6, %v9689_v1  ;;  %v3596_v54 = vadd.f32 %v9693_v6, %v9691_v42  ;;  %v16181_v0 = vld [vmem:[#allocation102_spill] sm:$0xff] }
 0x6fa   : > { %9706 = vpow2.f32 %v3555_v50  ;;  %8549 = vmatprep.subr.bf16.mxu1 %v13174_v9  ;;  %v3503_v4 = vsub.f32 %v16170_v27, %v3469_v37  ;;  %v3504_v31 = vsub.f32 %v16171_v45, %v3469_v37  ;;  %16177 = vst [vmem:[#allocation157_spill] sm:$0xff] %v13188_v13  ;;  %v13208_v42 = vpack.c.bf16 %v16181_v0, %v16180_v19  ;;  %v16184_v37 = vld [vmem:[#allocation233_spill] sm:$0xff]  ;;  %v16185_v16 = vld [vmem:[#allocation234_spill] sm:$0xff] }
 0x6fb   : > { %9708 = vpow2.f32 %v3557_v62  ;;  %v8272_v60 = vpop.f32.mrf.mxu1  ;;  %3695 = vmatprep.mubr.bf16.mxu1 %v3630_v43  ;;  %v13192_v3 = vpop.eup %9694 }
 0x6fc   : > { %v3559_v58 = vmul.f32 1.442695, %v3503_v4  ;;  %v13190_v46 = vadd.f32 %v8272_v60, %v8271_v24  ;;  %3696 = vmatmul.mubr.bf16.gmra.mxu1 %v3629_v47  ;;  %v3561_v26 = vmul.f32 1.442695, %v3504_v31  ;;  %v13197_v17 = vpop.eup %9696  ;;  %16182 = vst [vmem:[#allocation77_spill] sm:$0xff] %v13208_v42  ;;  %v16183_v47 = vld [vmem:[#allocation232_spill] sm:$0xff] }
 0x6fd   : > { %8550 = vmatpush3.bf16.msra.mxu1 %v13184_v34  ;;  %3597 = vadd.xlane.f32.xlu1 %v3596_v54  ;;  %v13195_v1 = vpop.f32.mrf.mxu1  ;;  %v3472_v51 = vpop.xlane.xlu1 %3471 }
 0x6fe   : > { %8551 = vmatprep.subr.bf16.mxu1 %v13188_v13  ;;  %v3505_v30 = vsub.f32 %v16178_v39, %v3472_v51  ;;  %v3506_v57 = vsub.f32 %v16179_v23, %v3472_v51  ;;  %9710 = vpow2.f32 %v3559_v58  ;;  %v16186_v58 = vld [vmem:[#allocation235_spill] sm:$0xff] }
 0x6ff   : > { %v13204_v15 = vpop.eup %9698  ;;  %v13210_v32 = vpop.f32.mrf.mxu1  ;;  %9712 = vpow2.f32 %v3561_v26 }
 0x700   : > { %v13212_v35 = vpop.eup %9700  ;;  %v3563_v21 = vmul.f32 1.442695, %v3505_v30  ;;  %v3565_v41 = vmul.f32 1.442695, %v3506_v57  ;;  %v3631_v53 = vpack.c.bf16 %v13204_v15, %v13192_v3 }
 0x701   : > { %8552 = vmatpush3.bf16.msra.mxu1 %v13208_v42  ;;  %v8277_v6 = vpop.f32.mrf.mxu1  ;;  %v3475_v50 = vpop.xlane.xlu0 %3474  ;;  %v3632_v62 = vpack.c.bf16 %v13212_v35, %v13197_v17 }
 0x702   : > { %9714 = vpow2.f32 %v3563_v21  ;;  %v3507_v24 = vsub.f32 %v16183_v47, %v3475_v50  ;;  %v3508_v43 = vsub.f32 %v16184_v37, %v3475_v50  ;;  %9081 = vmatprep.subr.bf16.mxu1 %v13202_v63  ;;  %v16188_v50 = vld [vmem:[#allocation237_spill] sm:$0xff] }
 0x703   : > { %9716 = vpow2.f32 %v3565_v41  ;;  %v8278_v27 = vpop.f32.mrf.mxu1  ;;  %3703 = vmatprep.mubr.bf16.mxu1 %v3632_v62  ;;  %v13224_v31 = vpop.eup %9702 }
 0x704   : > { %v3567_v4 = vmul.f32 1.442695, %v3507_v24  ;;  %v13222_v45 = vadd.f32 %v8278_v27, %v8277_v6  ;;  %3704 = vmatmul.mubr.bf16.gmra.mxu1 %v3631_v53  ;;  %v3569_v29 = vmul.f32 1.442695, %v3508_v43  ;;  %v13228_v54 = vpop.eup %9704  ;;  %v16187_v53 = vld [vmem:[#allocation236_spill] sm:$0xff] }
 0x705   : > { %v13226_v12 = vpop.f32.mrf.mxu1  ;;  %v3478_v60 = vpop.xlane.xlu1 %3477 }
 0x706   : > { %v3509_v10 = vsub.f32 %v16185_v16, %v3478_v60  ;;  %v3510_v26 = vsub.f32 %v16186_v58, %v3478_v60  ;;  %9718 = vpow2.f32 %v3567_v4  ;;  %v16189_v16 = vld [vmem:[#allocation238_spill] sm:$0xff]  ;;  %v16190_v58 = vld [vmem:[#allocation239_spill] sm:$0xff] }
 0x707   : > { %v13232_v51 = vpop.eup %9706  ;;  %v13234_v39 = vpop.f32.mrf.mxu1  ;;  %9720 = vpow2.f32 %v3569_v29 }
 0x708   : > { %v13236_v30 = vpop.eup %9708  ;;  %v3571_v23 = vmul.f32 1.442695, %v3509_v10  ;;  %v3573_v57 = vmul.f32 1.442695, %v3510_v26  ;;  %v3633_v19 = vpack.c.bf16 %v13232_v51, %v13224_v31 }
 0x709   : > { %v8283_v0 = vpop.f32.mrf.mxu1  ;;  %v4019_v21 = vpop.xlane.xlu0 %4018  ;;  %v3634_v41 = vpack.c.bf16 %v13236_v30, %v13228_v54 }
 0x70a   : > { %9722 = vpow2.f32 %v3571_v23  ;;  %v4065_v6 = vsub.f32 %v16187_v53, %v4019_v21  ;;  %v4066_v62 = vsub.f32 %v16188_v50, %v4019_v21 }
 0x70b   : > { %9724 = vpow2.f32 %v3573_v57  ;;  %v8284_v47 = vpop.f32.mrf.mxu1  ;;  %3711 = vmatprep.mubr.bf16.mxu1 %v3634_v41  ;;  %v13246_v27 = vpop.eup %9710 }
 0x70c   : > { %v4097_v24 = vmul.f32 1.442695, %v4065_v6  ;;  %v4099_v37 = vmul.f32 1.442695, %v4066_v62  ;;  %v13244_v43 = vadd.f32 %v8284_v47, %v8283_v0  ;;  %3712 = vmatmul.mubr.bf16.gmra.mxu1 %v3633_v19  ;;  %v13250_v60 = vpop.eup %9712  ;;  %v16191_v47 = vld [vmem:[#allocation240_spill] sm:$0xff] }
 0x70d   : > { %v13248_v4 = vpop.f32.mrf.mxu1  ;;  %v4022_v29 = vpop.xlane.xlu1 %4021 }
 0x70e   : > { %9726 = vpow2.f32 %v4097_v24  ;;  %v4067_v10 = vsub.f32 %v16189_v16, %v4022_v29  ;;  %v4068_v26 = vsub.f32 %v16190_v58, %v4022_v29  ;;  %v16192_v16 = vld [vmem:[#allocation241_spill] sm:$0xff] }
 0x70f   : > { %v9715_v23 = vpop.eup %9714  ;;  %9728 = vpow2.f32 %v4099_v37  ;;  %v13254_v57 = vpop.f32.mrf.mxu1 }
 0x710   : > { %v9717_v21 = vpop.eup %9716  ;;  %v4101_v0 = vmul.f32 1.442695, %v4067_v10  ;;  %v4103_v41 = vmul.f32 1.442695, %v4068_v26  ;;  %v3635_v19 = vpack.c.bf16 %v9715_v23, %v13246_v27 }
 0x711   : > { %v8289_v53 = vpop.f32.mrf.mxu1  ;;  %v4025_v6 = vpop.xlane.xlu0 %4024  ;;  %v3636_v50 = vpack.c.bf16 %v9717_v21, %v13250_v60  ;;  %v13258_v62 = vadd.f32 %v9717_v21, %v9715_v23  ;;  %v16193_v21 = vld [vmem:[#allocation242_spill] sm:$0xff] }
 0x712   : > { %9730 = vpow2.f32 %v4101_v0  ;;  %v4069_v24 = vsub.f32 %v16191_v47, %v4025_v6  ;;  %v4070_v29 = vsub.f32 %v16192_v16, %v4025_v6  ;;  %v16194_v47 = vld [vmem:[#allocation243_spill] sm:$0xff] }
 0x713   : > { %9732 = vpow2.f32 %v4103_v41  ;;  %v8290_v37 = vpop.f32.mrf.mxu1  ;;  %3719 = vmatprep.mubr.bf16.mxu1 %v3636_v50  ;;  %v13264_v26 = vpop.eup %9718 }
 0x714   : > { %v4105_v58 = vmul.f32 1.442695, %v4069_v24  ;;  %v4107_v42 = vmul.f32 1.442695, %v4070_v29  ;;  %v13262_v10 = vadd.f32 %v8290_v37, %v8289_v53  ;;  %3720 = vmatmul.mubr.bf16.gmra.mxu1 %v3635_v19  ;;  %v13268_v23 = vpop.eup %9720 }
 0x715   : > { %v13266_v13 = vpop.f32.mrf.mxu1  ;;  %v4028_v34 = vpop.xlane.xlu1 %4027 }
 0x716   : > { %9734 = vpow2.f32 %v4105_v58  ;;  %v4071_v0 = vsub.f32 %v16193_v21, %v4028_v34  ;;  %v4072_v6 = vsub.f32 %v16194_v47, %v4028_v34  ;;  %v16195_v21 = vld [vmem:[#allocation244_spill] sm:$0xff]  ;;  %v16196_v47 = vld [vmem:[#allocation245_spill] sm:$0xff] }
 0x717   : > { %v13272_v41 = vpop.eup %9722  ;;  %9736 = vpow2.f32 %v4107_v42  ;;  %v13274_v50 = vpop.f32.mrf.mxu1 }
 0x718   : > { %v13276_v53 = vpop.eup %9724  ;;  %v4109_v19 = vmul.f32 1.442695, %v4071_v0  ;;  %v4111_v24 = vmul.f32 1.442695, %v4072_v6  ;;  %v3637_v16 = vpack.c.bf16 %v13272_v41, %v13264_v26 }
 0x719   : > { %v8295_v29 = vpop.f32.mrf.mxu1  ;;  %v4031_v37 = vpop.xlane.xlu0 %4030  ;;  %v3638_v58 = vpack.c.bf16 %v13276_v53, %v13268_v23 }
 0x71a   : > { %9738 = vpow2.f32 %v4109_v19  ;;  %v4073_v34 = vsub.f32 %v16195_v21, %v4031_v37  ;;  %v4074_v9 = vsub.f32 %v16196_v47, %v4031_v37 }
 0x71b   : > { %v9727_v42 = vpop.eup %9726  ;;  %9740 = vpow2.f32 %v4111_v24  ;;  %v8296_v5 = vpop.f32.mrf.mxu1  ;;  %3727 = vmatprep.mubr.bf16.mxu1 %v3638_v58 }
 0x71c   : > { %v9729_v56 = vpop.eup %9728  ;;  %v4113_v0 = vmul.f32 1.442695, %v4073_v34  ;;  %v13284_v6 = vadd.f32 %v8296_v5, %v8295_v29  ;;  %3728 = vmatmul.mubr.bf16.gmra.mxu1 %v3637_v16  ;;  %v4115_v7 = vmul.f32 1.442695, %v4074_v9 }
 0x71d   : > { %v13286_v20 = vpop.f32.mrf.mxu1  ;;  %v4034_v22 = vpop.xlane.xlu1 %4033  ;;  %v4161_v33 = vadd.f32 %v9729_v56, %v9727_v42 }
 0x71e   : > { %v4075_v19 = vsub.f32 %v16197_v2, %v4034_v22  ;;  %v4076_v21 = vsub.f32 %v16198_v48, %v4034_v22  ;;  %9742 = vpow2.f32 %v4113_v0  ;;  %v16200_v2 = vld [vmem:[#allocation249_spill] sm:$0xff]  ;;  %v9447_v48 = vld [vmem:[#allocation11 + $0x30] sm:$0xff]  }
 0x71f   : > { %v9731_v59 = vpop.eup %9730  ;;  %v13290_v37 = vpop.f32.mrf.mxu1  ;;  %4162 = vadd.xlane.f32.xlu0 %v4161_v33  ;;  %9744 = vpow2.f32 %v4115_v7 }
 0x720   : > { %v9733_v24 = vpop.eup %9732  ;;  %v4117_v58 = vmul.f32 1.442695, %v4075_v19  ;;  %v4119_v34 = vmul.f32 1.442695, %v4076_v21  ;;  %v4209_v5 = vpack.c.bf16 %v9731_v59, %v9727_v42  ;;  %v16201_v42 = vld [vmem:[#allocation250_spill] sm:$0xff] }
 0x721   : > { %v8301_v16 = vpop.f32.mrf.mxu1  ;;  %v4037_v9 = vpop.xlane.xlu0 %4036  ;;  %v4164_v29 = vadd.f32 %v9733_v24, %v9731_v59  ;;  %v4210_v47 = vpack.c.bf16 %v9733_v24, %v9729_v56 }
 0x722   : > { %9746 = vpow2.f32 %v4117_v58  ;;  %v4077_v44 = vsub.f32 %v16199_v61, %v4037_v9  ;;  %v4078_v28 = vsub.f32 %v16200_v2, %v4037_v9  ;;  %v16202_v58 = vld [vmem:[#allocation251_spill] sm:$0xff] }
 0x723   : > { %v9735_v22 = vpop.eup %9734  ;;  %9748 = vpow2.f32 %v4119_v34  ;;  %4165 = vadd.xlane.f32.xlu1 %v4164_v29  ;;  %v8302_v33 = vpop.f32.mrf.mxu1  ;;  %4257 = vmatprep.mubr.bf16.mxu1 %v4210_v47  ;;  %v9448_v34 = vld [vmem:[#allocation11 + $0x28] sm:$0xff]  }
 0x724   : > { %v9737_v0 = vpop.eup %9736  ;;  %v4121_v19 = vmul.f32 1.442695, %v4077_v44  ;;  %v13294_v21 = vadd.f32 %v8302_v33, %v8301_v16  ;;  %4258 = vmatmul.mubr.bf16.vlgmr.msra.gmra.mxu1 %v4209_v5  ;;  %v4123_v7 = vmul.f32 1.442695, %v4078_v28 }
 0x725   : > { %9082 = vmatpush3.bf16.msra.mxu1 %v13202_v63  ;;  %v13297_v59 = vpop.f32.mrf.mxu1  ;;  %v4040_v56 = vpop.xlane.xlu1 %4039  ;;  %v4167_v61 = vadd.f32 %v9737_v0, %v9735_v22 }
 0x726   : > { %v4079_v24 = vsub.f32 %v16201_v42, %v4040_v56  ;;  %v4080_v9 = vsub.f32 %v16202_v58, %v4040_v56  ;;  %9083 = vmatprep.subr.bf16.mxu1 %v9447_v48  ;;  %9750 = vpow2.f32 %v4121_v19  ;;  %v16203_v42 = vld [vmem:[#allocation252_spill] sm:$0xff]  ;;  %v16204_v58 = vld [vmem:[#allocation253_spill] sm:$0xff] }
 0x727   : > { %v9739_v29 = vpop.eup %9738  ;;  %v13301_v47 = vpop.f32.mrf.mxu1  ;;  %4168 = vadd.xlane.f32.xlu0 %v4167_v61  ;;  %9752 = vpow2.f32 %v4123_v7  ;;  %v3599_v61 = vadd.f32 %v13197_v17, %v13192_v3  ;;  %v16205_v3 = vld [vmem:[#allocation212_spill] sm:$0xff] }
 0x728   : > { %v9741_v44 = vpop.eup %9740  ;;  %v4125_v5 = vmul.f32 1.442695, %v4079_v24  ;;  %v4127_v28 = vmul.f32 1.442695, %v4080_v9  ;;  %v4211_v16 = vpack.c.bf16 %v9739_v29, %v9735_v22  ;;  %v3602_v9 = vadd.f32 %v13212_v35, %v13204_v15 }
 0x729   : > { %9084 = vmatpush3.bf16.msra.mxu1 %v9447_v48  ;;  %v8307_v63 = vpop.f32.mrf.mxu1  ;;  %v4043_v2 = vpop.xlane.xlu0 %4042  ;;  %v4170_v33 = vadd.f32 %v9741_v44, %v9739_v29  ;;  %v4212_v18 = vpack.c.bf16 %v9741_v44, %v9737_v0  ;;  %v16206_v44 = vld [vmem:[#allocation254_spill] sm:$0xff] }
 0x72a   : > { %9754 = vpow2.f32 %v4125_v5  ;;  %v4081_v56 = vsub.f32 %v16203_v42, %v4043_v2  ;;  %v4082_v55 = vsub.f32 %v16204_v58, %v4043_v2  ;;  %9085 = vmatprep.subr.bf16.mxu1 %v9448_v34  ;;  %v3608_v2 = vadd.f32 %v13236_v30, %v13232_v51  ;;  %v16208_v42 = vld [vmem:[#allocation214_spill] sm:$0xff]  ;;  %v9451_v58 = vld [vmem:[#allocation11 + $0x10] sm:$0xff]  }
 0x72b   : > { %9756 = vpow2.f32 %v4127_v28  ;;  %4171 = vadd.xlane.f32.xlu1 %v4170_v33  ;;  %v8308_v19 = vpop.f32.mrf.mxu1  ;;  %4265 = vmatprep.mubr.bf16.mxu1 %v4212_v18  ;;  %v13309_v0 = vpop.eup %9742  ;;  %v3605_v18 = vadd.f32 %v13228_v54, %v13224_v31  ;;  %v9450_v28 = vld [vmem:[#allocation11 + $0x18] sm:$0xff]   ;;  %v16207_v54 = vld [vmem:[#allocation213_spill] sm:$0xff] }
 0x72c   : > { %v4129_v22 = vmul.f32 1.442695, %v4081_v56  ;;  %v13307_v48 = vadd.f32 %v8308_v19, %v8307_v63  ;;  %3600 = vadd.xlane.f32.xlu0 %v3599_v61  ;;  %4266 = vmatmul.mubr.bf16.gmra.mxu1 %v4211_v16  ;;  %v4131_v7 = vmul.f32 1.442695, %v4082_v55  ;;  %v13313_v29 = vpop.eup %9744  ;;  %v16209_v19 = vld [vmem:[#allocation58_spill] sm:$0xff] }
 0x72d   : > { %9086 = vmatpush3.bf16.msra.mxu1 %v9448_v34  ;;  %v4046_v24 = vpop.xlane.xlu1 %4045 }
 0x72e   : > { %v4083_v17 = vsub.f32 %v16205_v3, %v4046_v24  ;;  %v4084_v5 = vsub.f32 %v16206_v44, %v4046_v24  ;;  %9087 = vmatprep.subr.bf16.mxu1 %v9449_v52  ;;  %9758 = vpow2.f32 %v4129_v22 }
 0x72f   : > { %v13319_v16 = vpop.eup %9746  ;;  %3603 = vadd.xlane.f32.xlu1 %v3602_v9  ;;  %9760 = vpow2.f32 %v4131_v7  ;;  %v16210_v7 = vld [vmem:[#allocation255_spill] sm:$0xff]  ;;  %v16211_v9 = vld [vmem:[#allocation256_spill] sm:$0xff] }
 0x730   : > { %v13321_v55 = vpop.eup %9748  ;;  %v4133_v34 = vmul.f32 1.442695, %v4083_v17  ;;  %v4135_v63 = vmul.f32 1.442695, %v4084_v5  ;;  %3606 = vadd.xlane.f32.xlu0 %v3605_v18  ;;  %v4213_v15 = vpack.c.bf16 %v13319_v16, %v13309_v0  ;;  %v9452_v17 = vld [vmem:[#allocation11 + $0x8] sm:$0xff]   ;;  %v16212_v5 = vld [vmem:[#allocation53_spill] sm:$0xff] }
 0x731   : > { %9088 = vmatpush3.bf16.msra.mxu1 %v9449_v52  ;;  %v4049_v35 = vpop.xlane.xlu0 %4048  ;;  %v4214_v31 = vpack.c.bf16 %v13321_v55, %v13313_v29 }
 0x732   : > { %9762 = vpow2.f32 %v4133_v34  ;;  %v4085_v33 = vsub.f32 %v16207_v54, %v4049_v35  ;;  %v4086_v56 = vsub.f32 %v16208_v42, %v4049_v35  ;;  %9089 = vmatprep.subr.bf16.mxu1 %v9450_v28  ;;  %v16214_v54 = vld [vmem:[#allocation258_spill] sm:$0xff]  ;;  %v9453_v42 = vld [vmem:[#allocation11] sm:$0xff]  }
 0x733   : > { %9764 = vpow2.f32 %v4135_v63  ;;  %3609 = vadd.xlane.f32.xlu1 %v3608_v2  ;;  %4273 = vmatprep.mubr.bf16.mxu1 %v4214_v31  ;;  %v13332_v52 = vpop.eup %9750  ;;  %v16213_v2 = vld [vmem:[#allocation257_spill] sm:$0xff] }
 0x734   : > { %v4137_v61 = vmul.f32 1.442695, %v4085_v33  ;;  %2416 = vadd.xlane.f32.xlu0 %v16209_v19  ;;  %4274 = vmatmul.mubr.bf16.gmra.mxu1 %v4213_v15  ;;  %v4139_v51 = vmul.f32 1.442695, %v4086_v56  ;;  %v13334_v22 = vpop.eup %9752  ;;  %v16215_v56 = vld [vmem:[#allocation222_spill] sm:$0xff] }
 0x735   : > { %9090 = vmatpush3.bf16.msra.mxu1 %v9450_v28  ;;  %v4052_v30 = vpop.xlane.xlu1 %4051 }
 0x736   : > { %v4087_v24 = vsub.f32 %v16210_v7, %v4052_v30  ;;  %v4088_v3 = vsub.f32 %v16211_v9, %v4052_v30  ;;  %9091 = vmatprep.subr.bf16.mxu1 %v9451_v58  ;;  %9766 = vpow2.f32 %v4137_v61  ;;  %v16216_v30 = vld [vmem:[#allocation215_spill] sm:$0xff] }
 0x737   : > { %v13338_v44 = vpop.eup %9754  ;;  %2419 = vadd.xlane.f32.xlu1 %v16212_v5  ;;  %9768 = vpow2.f32 %v4139_v51 }
 0x738   : > { %v13341_v18 = vpop.eup %9756  ;;  %v4141_v34 = vmul.f32 1.442695, %v4087_v24  ;;  %v4143_v63 = vmul.f32 1.442695, %v4088_v3  ;;  %3026 = vadd.xlane.f32.xlu0 %v13049_v25  ;;  %v4215_v28 = vpack.c.bf16 %v13338_v44, %v13332_v52  ;;  %v16217_v24 = vld [vmem:[#allocation259_spill] sm:$0xff] }
 0x739   : > { %9092 = vmatpush3.bf16.msra.mxu1 %v9451_v58  ;;  %v4055_v15 = vpop.xlane.xlu0 %4054  ;;  %v4216_v35 = vpack.c.bf16 %v13341_v18, %v13334_v22 }
 0x73a   : > { %9770 = vpow2.f32 %v4141_v34  ;;  %v4089_v31 = vsub.f32 %v16213_v2, %v4055_v15  ;;  %v4090_v33 = vsub.f32 %v16214_v54, %v4055_v15  ;;  %9093 = vmatprep.subr.bf16.mxu1 %v9452_v17  ;;  %v16220_v2 = vld [vmem:[#allocation216_spill] sm:$0xff]  ;;  %v16221_v54 = vld [vmem:[#allocation217_spill] sm:$0xff] }
 0x73b   : > { %9772 = vpow2.f32 %v4143_v63  ;;  %3029 = vadd.xlane.f32.xlu1 %v13056_v14  ;;  %4281 = vmatprep.mubr.bf16.mxu1 %v4216_v35  ;;  %v13352_v58 = vpop.eup %9758  ;;  %v16218_v14 = vld [vmem:[#allocation225_spill] sm:$0xff]  ;;  %v16219_v35 = vld [vmem:[#allocation131_spill] sm:$0xff] }
 0x73c   : > { %v4145_v25 = vmul.f32 1.442695, %v4089_v31  ;;  %2422 = vadd.xlane.f32.xlu0 %v16215_v56  ;;  %4282 = vmatmul.mubr.bf16.gmra.mxu1 %v4215_v28  ;;  %v4147_v61 = vmul.f32 1.442695, %v4090_v33  ;;  %v13354_v51 = vpop.eup %9760 }
 0x73d   : > { %9094 = vmatpush3.bf16.msra.mxu1 %v9452_v17  ;;  %v4058_v19 = vpop.xlane.xlu1 %4057 }
 0x73e   : > { %v4091_v7 = vsub.f32 %v16216_v30, %v4058_v19  ;;  %v4092_v9 = vsub.f32 %v16217_v24, %v4058_v19  ;;  %9095 = vmatprep.subr.bf16.mxu1 %v9453_v42  ;;  %9774 = vpow2.f32 %v4145_v25  ;;  %v3611_v25 = vadd.f32 %v13250_v60, %v13246_v27 }
 0x73f   : > { %v13358_v3 = vpop.eup %9762  ;;  %2425 = vadd.xlane.f32.xlu1 %v16218_v14  ;;  %9776 = vpow2.f32 %v4147_v61  ;;  %v16222_v14 = vld [vmem:[#allocation218_spill] sm:$0xff]  ;;  %v3620_v60 = vadd.f32 %v13276_v53, %v13272_v41  ;;  %v4176_v41 = vadd.f32 %v13321_v55, %v13319_v16 }
 0x740   : > { %v13361_v5 = vpop.eup %9764  ;;  %v4149_v34 = vmul.f32 1.442695, %v4091_v7  ;;  %v4151_v63 = vmul.f32 1.442695, %v4092_v9  ;;  %3032 = vadd.xlane.f32.xlu0 %v13063_v8  ;;  %v4217_v17 = vpack.c.bf16 %v13358_v3, %v13352_v58  ;;  %v3617_v7 = vadd.f32 %v13268_v23, %v13264_v26 }
 0x741   : > { %9096 = vmatpush3.bf16.msra.mxu1 %v9453_v42  ;;  %v4061_v28 = vpop.xlane.xlu0 %4060  ;;  %v4218_v15 = vpack.c.bf16 %v13361_v5, %v13354_v51  ;;  %v4188_v55 = vadd.f32 %v13361_v5, %v13358_v3  ;;  %v13393_v5 = vpop.f32.mrf.mxu1 }
 0x742   : > { %9778 = vpow2.f32 %v4149_v34  ;;  %8665 = vmatprep.subr.bf16.mxu1 %v16219_v35  ;;  %v4093_v31 = vsub.f32 %v16220_v2, %v4061_v28  ;;  %v4094_v33 = vsub.f32 %v16221_v54, %v4061_v28  ;;  %v4179_v2 = vadd.f32 %v13334_v22, %v13332_v52 }
 0x743   : > { %9780 = vpow2.f32 %v4151_v63  ;;  %3035 = vadd.xlane.f32.xlu1 %v13070_v49  ;;  %4289 = vmatprep.mubr.bf16.mxu1 %v4218_v15  ;;  %v9767_v8 = vpop.eup %9766 }
 0x744   : > { %3612 = vadd.xlane.f32.xlu0 %v3611_v25  ;;  %4290 = vmatmul.mubr.bf16.gmra.mxu1 %v4217_v17  ;;  %v4153_v42 = vmul.f32 1.442695, %v4093_v31  ;;  %v9769_v61 = vpop.eup %9768  ;;  %v4155_v19 = vmul.f32 1.442695, %v4094_v33  ;;  %v4182_v33 = vadd.f32 %v13341_v18, %v13338_v44 }
 0x745   : > { %v2381_v56 = vpop.xlane.xlu0 %2380 }
 0x746   : > { %v4064_v30 = vpop.xlane.xlu1 %4063  ;;  %9782 = vpow2.f32 %v4153_v42 }
 0x747   : > { %v9771_v24 = vpop.eup %9770  ;;  %v4095_v9 = vsub.f32 %v12980_v36, %v4064_v30  ;;  %v4096_v27 = vsub.f32 %v16222_v14, %v4064_v30  ;;  %3615 = vadd.xlane.f32.xlu1 %v13258_v62  ;;  %9784 = vpow2.f32 %v4155_v19  ;;  %v4173_v36 = vadd.f32 %v13313_v29, %v13309_v0 }
 0x748   : > { %v9773_v49 = vpop.eup %9772  ;;  %3618 = vadd.xlane.f32.xlu0 %v3617_v7  ;;  %v4219_v34 = vpack.c.bf16 %v9771_v24, %v9767_v8  ;;  %v4185_v19 = vadd.f32 %v13354_v51, %v13352_v58  ;;  %v4191_v30 = vadd.f32 %v9769_v61, %v9767_v8 }
 0x749   : > { %v4157_v63 = vmul.f32 1.442695, %v4095_v9  ;;  %v4159_v17 = vmul.f32 1.442695, %v4096_v27  ;;  %v2991_v28 = vpop.xlane.xlu0 %2990  ;;  %v4220_v15 = vpack.c.bf16 %v9773_v49, %v9769_v61  ;;  %v4194_v18 = vadd.f32 %v9773_v49, %v9771_v24  ;;  %v13395_v49 = vpop.f32.mrf.mxu1 }
 0x74a   : > { %v2384_v26 = vpop.xlane.xlu1 %2383 }
 0x74b   : > { %9786 = vpow2.f32 %v4157_v63  ;;  %3621 = vadd.xlane.f32.xlu1 %v3620_v60  ;;  %4297 = vmatprep.mubr.bf16.mxu1 %v4220_v15  ;;  %v9775_v62 = vpop.eup %9774 }
 0x74c   : > { %9788 = vpow2.f32 %v4159_v17  ;;  %4174 = vadd.xlane.f32.xlu0 %v4173_v36  ;;  %4298 = vmatmul.mubr.bf16.gmra.mxu1 %v4219_v34  ;;  %v9777_v53 = vpop.eup %9776 }
 0x74d   : > { %v2387_v23 = vpop.xlane.xlu0 %2386  ;;  %9790 = vrcp.f32 %v2381_v56  ;;  %v4197_v27 = vadd.f32 %v9777_v53, %v9775_v62 }
 0x74e   : > { %v2994_v35 = vpop.xlane.xlu1 %2993  ;;  %9792 = vrcp.f32 %v2991_v28 }
 0x74f   : > { %v9779_v31 = vpop.eup %9778  ;;  %4177 = vadd.xlane.f32.xlu1 %v4176_v41  ;;  %9794 = vrcp.f32 %v2384_v26 }
 0x750   : > { %v9781_v54 = vpop.eup %9780  ;;  %4180 = vadd.xlane.f32.xlu0 %v4179_v2  ;;  %v4221_v0 = vpack.c.bf16 %v9779_v31, %v9775_v62  ;;  %9796 = vrcp.f32 %v2994_v35 }
 0x751   : > { %v2997_v29 = vpop.xlane.xlu0 %2996  ;;  %v4222_v25 = vpack.c.bf16 %v9781_v54, %v9777_v53  ;;  %v4200_v3 = vadd.f32 %v9781_v54, %v9779_v31  ;;  %9798 = vrcp.f32 %v2387_v23  ;;  %v8270_v31 = vadd.f32 %v13176_v11, %v13163_v40 }
 0x752   : > { %v2390_v42 = vpop.xlane.xlu1 %2389  ;;  %9800 = vrcp.f32 %v2997_v29 }
 0x753   : > { %4183 = vadd.xlane.f32.xlu1 %v4182_v33  ;;  %4305 = vmatprep.mubr.bf16.mxu1 %v4222_v25  ;;  %v9783_v52 = vpop.eup %9782  ;;  %9802 = vrcp.f32 %v2390_v42 }
 0x754   : > { %4186 = vadd.xlane.f32.xlu0 %v4185_v19  ;;  %4306 = vmatmul.mubr.bf16.gmra.mxu1 %v4221_v0  ;;  %v9785_v7 = vpop.eup %9784 }
 0x755   : > { %v2393_v16 = vpop.xlane.xlu0 %2392  ;;  %v4203_v61 = vadd.f32 %v9785_v7, %v9783_v52 }
 0x756   : > { %v3000_v22 = vpop.xlane.xlu1 %2999 }
 0x757   : > { %4189 = vadd.xlane.f32.xlu1 %v4188_v55  ;;  %9804 = vrcp.f32 %v3000_v22 }
 0x758   : > { %v9787_v9 = vpop.eup %9786  ;;  %4192 = vadd.xlane.f32.xlu0 %v4191_v30  ;;  %9806 = vrcp.f32 %v2393_v16 }
 0x759   : > { %v9789_v44 = vpop.eup %9788  ;;  %v4223_v14 = vpack.c.bf16 %v9787_v9, %v9783_v52  ;;  %v3003_v51 = vpop.xlane.xlu0 %3002 }
 0x75a   : > { %v2396_v58 = vpop.xlane.xlu1 %2395  ;;  %v4224_v60 = vpack.c.bf16 %v9789_v44, %v9785_v7  ;;  %v4206_v24 = vadd.f32 %v9789_v44, %v9787_v9  ;;  %v9791_v17 = vpop.eup %9790  ;;  %9808 = vrcp.f32 %v3003_v51 }
 0x75b   : > { %4195 = vadd.xlane.f32.xlu1 %v4194_v18  ;;  %v9793_v36 = vpop.eup %9792  ;;  %v2556_v41 = vmul.f32 %v9791_v17, %v13160_v38  ;;  %9810 = vrcp.f32 %v2396_v58 }
 0x75c   : > { %4198 = vadd.xlane.f32.xlu0 %v4197_v27  ;;  %4313 = vmatprep.mubr.bf16.mxu1 %v4224_v60  ;;  %v9795_v23 = vpop.eup %9794 }
 0x75d   : > { %4314 = vmatmul.mubr.bf16.gmra.mxu1 %v4223_v14  ;;  %v2399_v56 = vpop.xlane.xlu0 %2398  ;;  %v9797_v29 = vpop.eup %9796  ;;  %v2557_v42 = vmul.f32 %v9795_v23, %v8270_v31  ;;  %v8276_v14 = vadd.f32 %v13210_v32, %v13195_v1 }
 0x75e   : > { %v3006_v8 = vpop.xlane.xlu1 %3005  ;;  %v9799_v16 = vpop.eup %9798 }
 0x75f   : > { %4201 = vadd.xlane.f32.xlu1 %v4200_v3  ;;  %9812 = vrcp.f32 %v3006_v8  ;;  %v9801_v22 = vpop.eup %9800  ;;  %v2558_v40 = vmul.f32 %v9799_v16, %v13190_v46 }
 0x760   : > { %4204 = vadd.xlane.f32.xlu0 %v4203_v61  ;;  %9814 = vrcp.f32 %v2399_v56  ;;  %v9803_v9 = vpop.eup %9802 }
 0x761   : > { %v3009_v28 = vpop.xlane.xlu0 %3008  ;;  %v2559_v3 = vmul.f32 %v9803_v9, %v8276_v14 }
 0x762   : > { %v2402_v34 = vpop.xlane.xlu1 %2401  ;;  %9816 = vrcp.f32 %v3009_v28 }
 0x763   : > { %4207 = vadd.xlane.f32.xlu1 %v4206_v24  ;;  %9818 = vrcp.f32 %v2402_v34  ;;  %v8282_v34 = vadd.f32 %v13234_v39, %v13226_v12 }
 0x764   : > { %v8361_v63 = vpop.f32.mrf.mxu1  ;;  %v9805_v27 = vpop.eup %9804 }
 0x765   : > { %v2405_v33 = vpop.xlane.xlu0 %2404  ;;  %v9807_v61 = vpop.eup %9806 }
 0x766   : > { %v8362_v15 = vpop.f32.mrf.mxu1  ;;  %v3012_v35 = vpop.xlane.xlu1 %3011  ;;  %v2560_v1 = vmul.f32 %v9807_v61, %v13222_v45  ;;  %v8294_v61 = vadd.f32 %v13274_v50, %v13266_v13  ;;  %v8300_v13 = vadd.f32 %v13290_v37, %v13286_v20 }
 0x767   : > { %v8363_v26 = vadd.f32 %v8362_v15, %v8361_v63  ;;  %9820 = vrcp.f32 %v3012_v35  ;;  %v9809_v17 = vpop.eup %9808 }
 0x768   : > { %v8364_v62 = vpop.f32.mrf.mxu1  ;;  %9822 = vrcp.f32 %v2405_v33  ;;  %v9811_v28 = vpop.eup %9810 }
 0x769   : > { %v3166_v53 = vmul.f32 %v9793_v36, %v8363_v26  ;;  %v2411_v44 = vpop.xlane.xlu0 %2410 }
 0x76a   : > { %v8365_v2 = vpop.f32.mrf.mxu1  ;;  %v2408_v30 = vpop.xlane.xlu1 %2407 }
 0x76b   : > { %v13400_v54 = vadd.f32 %v3166_v53, %v2556_v41  ;;  %v8366_v0 = vadd.f32 %v8365_v2, %v8364_v62  ;;  %v2561_v2 = vmul.f32 %v9811_v28, %v8282_v34 }
 0x76c   : > { %v8367_v25 = vpop.f32.mrf.mxu1  ;;  %v9813_v53 = vpop.eup %9812 }
 0x76d   : > { %v3167_v19 = vmul.f32 %v9797_v29, %v8366_v0  ;;  %v3015_v15 = vpop.xlane.xlu0 %3014  ;;  %v9815_v0 = vpop.eup %9814 }
 0x76e   : > { %v8368_v55 = vpop.f32.mrf.mxu1  ;;  %v2414_v56 = vpop.xlane.xlu1 %2413  ;;  %9824 = vrcp.f32 %v3015_v15  ;;  %v2562_v12 = vmul.f32 %v9815_v0, %v13244_v43 }
 0x76f   : > { %v13402_v38 = vadd.f32 %v3167_v19, %v2557_v42  ;;  %v8369_v52 = vadd.f32 %v8368_v55, %v8367_v25  ;;  %9826 = vrcp.f32 %v2408_v30  ;;  %v9817_v25 = vpop.eup %9816 }
 0x770   : > { %v8370_v7 = vpop.f32.mrf.mxu1  ;;  %v9819_v16 = vpop.eup %9818 }
 0x771   : > { %v3168_v11 = vmul.f32 %v9801_v22, %v8369_v52  ;;  %v3021_v42 = vpop.xlane.xlu0 %3020  ;;  %v8288_v52 = vadd.f32 %v13254_v57, %v13248_v4 }
 0x772   : > { %v8371_v18 = vpop.f32.mrf.mxu1  ;;  %v3018_v23 = vpop.xlane.xlu1 %3017 }
 0x773   : > { %v13407_v58 = vadd.f32 %v3168_v11, %v2558_v40  ;;  %v8372_v51 = vadd.f32 %v8371_v18, %v8370_v7  ;;  %9828 = vrcp.f32 %v3018_v23  ;;  %v2563_v9 = vmul.f32 %v9819_v16, %v8288_v52 }
 0x774   : > { %v8373_v60 = vpop.f32.mrf.mxu1  ;;  %9830 = vrcp.f32 %v2411_v44  ;;  %v9821_v7 = vpop.eup %9820 }
 0x775   : > { %v3169_v8 = vmul.f32 %v9805_v27, %v8372_v51  ;;  %9832 = vrcp.f32 %v3021_v42  ;;  %v9823_v14 = vpop.eup %9822 }
 0x776   : > { %v8374_v24 = vpop.f32.mrf.mxu1  ;;  %v3024_v40 = vpop.xlane.xlu1 %3023  ;;  %9834 = vrcp.f32 %v2414_v56  ;;  %v2564_v4 = vmul.f32 %v9823_v14, %v13262_v10 }
 0x777   : > { %v13409_v46 = vadd.f32 %v3169_v8, %v2559_v3  ;;  %v8375_v63 = vadd.f32 %v8374_v24, %v8373_v60  ;;  %9836 = vrcp.f32 %v3024_v40 }
 0x778   : > { %v8376_v26 = vpop.f32.mrf.mxu1 }
 0x779   : > { %v3170_v32 = vmul.f32 %v9809_v17, %v8375_v63 }
 0x77a   : > { %v8377_v36 = vpop.f32.mrf.mxu1 }
 0x77b   : > { %v13414_v62 = vadd.f32 %v3170_v32, %v2560_v1  ;;  %v8378_v41 = vadd.f32 %v8377_v36, %v8376_v26  ;;  %v9825_v27 = vpop.eup %9824 }
 0x77c   : > { %v8379_v35 = vpop.f32.mrf.mxu1  ;;  %v9827_v3 = vpop.eup %9826 }
 0x77d   : > { %v3171_v31 = vmul.f32 %v9813_v53, %v8378_v41  ;;  %v2565_v15 = vmul.f32 %v9827_v3, %v8294_v61 }
 0x77e   : > { %v8380_v29 = vpop.f32.mrf.mxu1 }
 0x77f   : > { %v13416_v45 = vadd.f32 %v3171_v31, %v2561_v2  ;;  %v8381_v33 = vadd.f32 %v8380_v29, %v8379_v35 }
 0x780   : > { %v8382_v19 = vpop.f32.mrf.mxu1  ;;  %v9829_v63 = vpop.eup %9828 }
 0x781   : > { %v3172_v39 = vmul.f32 %v9817_v25, %v8381_v33  ;;  %v9831_v1 = vpop.eup %9830  ;;  %v3577_v25 = vpop.xlane.xlu0 %3576 }
 0x782   : > { %v8383_v55 = vpop.f32.mrf.mxu1  ;;  %v9833_v34 = vpop.eup %9832  ;;  %v2566_v41 = vmul.f32 %v9831_v1, %v13284_v6  ;;  %9838 = vrcp.f32 %v3577_v25 }
 0x783   : > { %v13421_v22 = vadd.f32 %v3172_v39, %v2562_v12  ;;  %v8384_v30 = vadd.f32 %v8383_v55, %v8382_v19  ;;  %v9835_v23 = vpop.eup %9834  ;;  %v3580_v39 = vpop.xlane.xlu1 %3579 }
 0x784   : > { %v8385_v11 = vpop.f32.mrf.mxu1  ;;  %v9837_v31 = vpop.eup %9836  ;;  %v2567_v29 = vmul.f32 %v9835_v23, %v8300_v13  ;;  %9840 = vrcp.f32 %v3580_v39 }
 0x785   : > { %v3173_v18 = vmul.f32 %v9821_v7, %v8384_v30  ;;  %v3583_v20 = vpop.xlane.xlu0 %3582 }
 0x786   : > { %v8386_v44 = vpop.f32.mrf.mxu1  ;;  %9842 = vrcp.f32 %v3583_v20 }
 0x787   : > { %v13423_v43 = vadd.f32 %v3173_v18, %v2563_v9  ;;  %v8387_v51 = vadd.f32 %v8386_v44, %v8385_v11  ;;  %v3586_v52 = vpop.xlane.xlu1 %3585 }
 0x788   : > { %v8388_v60 = vpop.f32.mrf.mxu1  ;;  %9844 = vrcp.f32 %v3586_v52 }
 0x789   : > { %v3174_v57 = vmul.f32 %v9825_v27, %v8387_v51  ;;  %v3589_v40 = vpop.xlane.xlu0 %3588 }
 0x78a   : > { %v8389_v8 = vpop.f32.mrf.mxu1  ;;  %9846 = vrcp.f32 %v3589_v40 }
 0x78b   : > { %v13428_v24 = vadd.f32 %v3174_v57, %v2564_v4  ;;  %v8390_v56 = vadd.f32 %v8389_v8, %v8388_v60  ;;  %v3592_v18 = vpop.xlane.xlu1 %3591 }
 0x78c   : > { %v8391_v17 = vpop.f32.mrf.mxu1  ;;  %9848 = vrcp.f32 %v3592_v18 }
 0x78d   : > { %v3175_v26 = vmul.f32 %v9829_v63, %v8390_v56  ;;  %v3595_v27 = vpop.xlane.xlu0 %3594 }
 0x78e   : > { %v8392_v32 = vpop.f32.mrf.mxu1  ;;  %9850 = vrcp.f32 %v3595_v27 }
 0x78f   : > { %v13430_v28 = vadd.f32 %v3175_v26, %v2565_v15  ;;  %v8393_v36 = vadd.f32 %v8392_v32, %v8391_v17  ;;  %v9839_v51 = vpop.eup %9838  ;;  %v3598_v3 = vpop.xlane.xlu1 %3597 }
 0x790   : > { %v8394_v10 = vpop.f32.mrf.mxu1  ;;  %9852 = vrcp.f32 %v3598_v3 }
 0x791   : > { %v3176_v53 = vmul.f32 %v9833_v34, %v8393_v36  ;;  %v9841_v56 = vpop.eup %9840 }
 0x792   : > { %v8395_v35 = vpop.f32.mrf.mxu1 }
 0x793   : > { %v13435_v50 = vadd.f32 %v3176_v53, %v2566_v41  ;;  %v8396_v2 = vadd.f32 %v8395_v35, %v8394_v10  ;;  %v9843_v34 = vpop.eup %9842 }
 0x794   : > { %v8397_v0 = vpop.f32.mrf.mxu1 }
 0x795   : > { %v3177_v33 = vmul.f32 %v9837_v31, %v8396_v2  ;;  %v9845_v13 = vpop.eup %9844 }
 0x796   : > { %v8398_v42 = vpop.f32.mrf.mxu1 }
 0x797   : > { %v13437_v19 = vadd.f32 %v3177_v33, %v2567_v29  ;;  %v13439_v12 = vadd.f32 %v8398_v42, %v8397_v0  ;;  %v9847_v42 = vpop.eup %9846 }
 0x798   : > { %v13441_v6 = vpop.f32.mrf.mxu1 }
 0x79a   : > { %v13443_v16 = vpop.f32.mrf.mxu1 }
 0x79c   : > { %v8403_v37 = vpop.f32.mrf.mxu1 }
 0x79e   : > { %v8404_v55 = vpop.f32.mrf.mxu1 }
 0x79f   : > { %v13445_v30 = vadd.f32 %v8404_v55, %v8403_v37 }
 0x7a0   : > { %v13447_v7 = vpop.f32.mrf.mxu1 }
 0x7a2   : > { %v13449_v11 = vpop.f32.mrf.mxu1 }
 0x7a4   : > { %v8457_v9 = vpop.f32.mrf.mxu1 }
 0x7a6   : > { %v8458_v14 = vpop.f32.mrf.mxu1 }
 0x7a7   : > { %v8459_v44 = vadd.f32 %v8458_v14, %v8457_v9  ;;  %v9849_v9 = vpop.eup %9848 }
 0x7a8   : > { %v8460_v60 = vpop.f32.mrf.mxu1  ;;  %v13454_v63 = vpop.xlane.xlu0 %4162 }
 0x7a9   : > { %v3752_v4 = vmul.f32 %v9839_v51, %v8459_v44 }
 0x7aa   : > { %v8461_v57 = vpop.f32.mrf.mxu1 }
 0x7ab   : > { %v13452_v8 = vadd.f32 %v3752_v4, %v13400_v54  ;;  %v8462_v61 = vadd.f32 %v8461_v57, %v8460_v60  ;;  %v9851_v4 = vpop.eup %9850 }
 0x7ac   : > { %v8463_v17 = vpop.f32.mrf.mxu1  ;;  %v13459_v32 = vpop.xlane.xlu1 %4165 }
 0x7ad   : > { %v3753_v15 = vmul.f32 %v9841_v56, %v8462_v61 }
 0x7ae   : > { %v8464_v26 = vpop.f32.mrf.mxu1 }
 0x7af   : > { %v13457_v1 = vadd.f32 %v3753_v15, %v13402_v38  ;;  %v8465_v36 = vadd.f32 %v8464_v26, %v8463_v17  ;;  %v9853_v26 = vpop.eup %9852 }
 0x7b0   : > { %v8466_v10 = vpop.f32.mrf.mxu1  ;;  %v13461_v41 = vpop.xlane.xlu0 %4168 }
 0x7b1   : > { %v3754_v54 = vmul.f32 %v9843_v34, %v8465_v36 }
 0x7b2   : > { %v8467_v53 = vpop.f32.mrf.mxu1 }
 0x7b3   : > { %v13464_v23 = vadd.f32 %v3754_v54, %v13407_v58  ;;  %v8468_v35 = vadd.f32 %v8467_v53, %v8466_v10 }
 0x7b4   : > { %v13466_v2 = vpop.xlane.xlu1 %4171  ;;  %v8469_v31 = vpop.f32.mrf.mxu1 }
 0x7b5   : > { %v3755_v38 = vmul.f32 %v9845_v13, %v8468_v35  ;;  %v3601_v0 = vpop.xlane.xlu0 %3600 }
 0x7b6   : > { %v8470_v29 = vpop.f32.mrf.mxu1  ;;  %9854 = vrcp.f32 %v3601_v0 }
 0x7b7   : > { %v13469_v33 = vadd.f32 %v3755_v38, %v13409_v46  ;;  %v8471_v25 = vadd.f32 %v8470_v29, %v8469_v31 }
 0x7b8   : > { %v3604_v39 = vpop.xlane.xlu1 %3603  ;;  %v8472_v20 = vpop.f32.mrf.mxu1 }
 0x7b9   : > { %v3756_v37 = vmul.f32 %v9847_v42, %v8471_v25  ;;  %v3607_v55 = vpop.xlane.xlu0 %3606  ;;  %9856 = vrcp.f32 %v3604_v39 }
 0x7ba   : > { %v8473_v58 = vpop.f32.mrf.mxu1 }
 0x7bb   : > { %v13472_v52 = vadd.f32 %v3756_v37, %v13414_v62  ;;  %v8474_v40 = vadd.f32 %v8473_v58, %v8472_v20 }
 0x7bc   : > { %v3610_v18 = vpop.xlane.xlu1 %3609  ;;  %v8475_v14 = vpop.f32.mrf.mxu1 }
 0x7bd   : > { %v3757_v44 = vmul.f32 %v9849_v9, %v8474_v40  ;;  %v2417_v51 = vpop.xlane.xlu0 %2416 }
 0x7be   : > { %v8476_v27 = vpop.f32.mrf.mxu1  ;;  %9858 = vrcp.f32 %v2417_v51 }
 0x7bf   : > { %v13475_v46 = vadd.f32 %v3757_v44, %v13416_v45  ;;  %v8477_v60 = vadd.f32 %v8476_v27, %v8475_v14 }
 0x7c0   : > { %v2420_v57 = vpop.xlane.xlu1 %2419  ;;  %v8478_v3 = vpop.f32.mrf.mxu1 }
 0x7c1   : > { %v3758_v61 = vmul.f32 %v9851_v4, %v8477_v60  ;;  %9860 = vrcp.f32 %v2420_v57  ;;  %v3027_v62 = vpop.xlane.xlu0 %3026 }
 0x7c2   : > { %9862 = vrcp.f32 %v3027_v62  ;;  %v8479_v56 = vpop.f32.mrf.mxu1 }
 0x7c3   : > { %9864 = vrcp.f32 %v3607_v55  ;;  %v13478_v17 = vadd.f32 %v3758_v61, %v13421_v22  ;;  %v8480_v15 = vadd.f32 %v8479_v56, %v8478_v3  ;;  %v9855_v13 = vpop.eup %9854  ;;  %v8402_v3 = vadd.f32 %v13443_v16, %v13441_v6 }
 0x7c4   : > { %v3030_v36 = vpop.xlane.xlu1 %3029  ;;  %v8481_v34 = vpop.f32.mrf.mxu1 }
 0x7c5   : > { %v3759_v45 = vmul.f32 %v9853_v26, %v8480_v15  ;;  %9866 = vrcp.f32 %v3030_v36  ;;  %v2423_v10 = vpop.xlane.xlu0 %2422 }
 0x7c6   : > { %v8482_v54 = vpop.f32.mrf.mxu1  ;;  %9868 = vrcp.f32 %v3610_v18  ;;  %v9857_v39 = vpop.eup %9856 }
 0x7c7   : > { %v13481_v53 = vadd.f32 %v3759_v45, %v13423_v43  ;;  %v8483_v35 = vadd.f32 %v8482_v54, %v8481_v34  ;;  %9870 = vrcp.f32 %v2423_v10 }
 0x7c8   : > { %v2426_v31 = vpop.xlane.xlu1 %2425  ;;  %v8484_v38 = vpop.f32.mrf.mxu1 }
 0x7c9   : > { %v3760_v0 = vmul.f32 %v9855_v13, %v8483_v35  ;;  %v3033_v22 = vpop.xlane.xlu0 %3032 }
 0x7ca   : > { %9872 = vrcp.f32 %v3033_v22  ;;  %v8485_v29 = vpop.f32.mrf.mxu1  ;;  %v8408_v22 = vadd.f32 %v13449_v11, %v13447_v7 }
 0x7cb   : > { %v13484_v25 = vadd.f32 %v3760_v0, %v13428_v24  ;;  %9874 = vrcp.f32 %v2426_v31  ;;  %v8486_v42 = vadd.f32 %v8485_v29, %v8484_v38  ;;  %v9859_v55 = vpop.eup %9858  ;;  %v8306_v24 = vadd.f32 %v13301_v47, %v13297_v59 }
 0x7cc   : > { %v3036_v20 = vpop.xlane.xlu1 %3035  ;;  %v8487_v37 = vpop.f32.mrf.mxu1  ;;  %v2568_v4 = vmul.f32 %v9859_v55, %v13294_v21  ;;  %v8312_v0 = vadd.f32 %v13395_v49, %v13393_v5 }
 0x7cd   : > { %v3761_v43 = vmul.f32 %v9857_v39, %v8486_v42  ;;  %9876 = vrcp.f32 %v3036_v20  ;;  %v3613_v58 = vpop.xlane.xlu0 %3612 }
 0x7ce   : > { %v9861_v40 = vpop.eup %9860  ;;  %9878 = vrcp.f32 %v3613_v58  ;;  %v8488_v9 = vpop.f32.mrf.mxu1 }
 0x7cf   : > { %v9863_v18 = vpop.eup %9862  ;;  %v13487_v14 = vadd.f32 %v3761_v43, %v13430_v28  ;;  %v8489_v44 = vadd.f32 %v8488_v9, %v8487_v37  ;;  %v2569_v26 = vmul.f32 %v9861_v40, %v8306_v24 }
 0x7d0   : > { %v9865_v51 = vpop.eup %9864  ;;  %v3616_v27 = vpop.xlane.xlu1 %3615  ;;  %v3178_v57 = vmul.f32 %v9863_v18, %v13439_v12 }
 0x7d1   : > { %v8490_v60 = vpop.f32.mrf.mxu1  ;;  %v3762_v61 = vmul.f32 %v9865_v51, %v8489_v44  ;;  %9880 = vrcp.f32 %v3616_v27  ;;  %v3619_v62 = vpop.xlane.xlu0 %3618 }
 0x7d2   : > { %v9867_v56 = vpop.eup %9866  ;;  %v3194_v15 = vadd.f32 %v3178_v57, %v2568_v4  ;;  %9882 = vrcp.f32 %v3619_v62 }
 0x7d3   : > { %v8491_v28 = vpop.f32.mrf.mxu1  ;;  %v13496_v36 = vadd.f32 %v3762_v61, %v13435_v50  ;;  %v3179_v47 = vmul.f32 %v9867_v56, %v8402_v3  ;;  %v9869_v34 = vpop.eup %9868 }
 0x7d4   : > { %v8492_v59 = vadd.f32 %v8491_v28, %v8490_v60  ;;  %v3622_v21 = vpop.xlane.xlu1 %3621  ;;  %v9871_v12 = vpop.eup %9870 }
 0x7d5   : > { %v8493_v45 = vpop.f32.mrf.mxu1  ;;  %v3195_v54 = vadd.f32 %v3179_v47, %v2569_v26  ;;  %9884 = vrcp.f32 %v3622_v21  ;;  %v2570_v50 = vmul.f32 %v9871_v12, %v13307_v48  ;;  %v4175_v56 = vpop.xlane.xlu0 %4174 }
 0x7d6   : > { %v3763_v10 = vmul.f32 %v9869_v34, %v8492_v59  ;;  %9886 = vrcp.f32 %v13454_v63 }
 0x7d7   : > { %v8494_v6 = vpop.f32.mrf.mxu1  ;;  %v9873_v16 = vpop.eup %9872  ;;  %9888 = vrcp.f32 %v13459_v32 }
 0x7d8   : > { %v13499_v35 = vadd.f32 %v3763_v10, %v13437_v19  ;;  %v9875_v13 = vpop.eup %9874  ;;  %v3180_v38 = vmul.f32 %v9873_v16, %v13445_v30  ;;  %v8495_v42 = vadd.f32 %v8494_v6, %v8493_v45  ;;  %9890 = vrcp.f32 %v13461_v41  ;;  %v13522_v41 = vld [vmem:[%s15472_s6] ss:$0 sm:$0xff]  ;;  %v4178_v21 = vpop.xlane.xlu1 %4177  ;;  %v16223_v16 = vld [vmem:[#allocation21_spill] sm:$0xff] }
 0x7d9   : > { %v8496_v31 = vpop.f32.mrf.mxu1  ;;  %v2571_v19 = vmul.f32 %v9875_v13, %v8312_v0  ;;  %9892 = vrcp.f32 %v13466_v2 }
 0x7da   : > { %v9877_v29 = vpop.eup %9876  ;;  %v3196_v20 = vadd.f32 %v3180_v38, %v2570_v50  ;;  %9894 = vrcp.f32 %v4175_v56  ;;  %v4181_v50 = vpop.xlane.xlu0 %4180 }
 0x7db   : > { %v8497_v39 = vpop.f32.mrf.mxu1  ;;  %v9879_v37 = vpop.eup %9878  ;;  %v3181_v55 = vmul.f32 %v9877_v29, %v8408_v22  ;;  %9896 = vrcp.f32 %v4178_v21 }
 0x7dc   : > { %v3764_v43 = vmul.f32 %v9879_v37, %v8495_v42  ;;  %v8498_v48 = vadd.f32 %v8497_v39, %v8496_v31  ;;  %9898 = vrcp.f32 %v4181_v50  ;;  %v16225_v39 = vld [vmem:[#allocation22_spill] sm:$0xff]  ;;  %v4184_v37 = vpop.xlane.xlu1 %4183 }
 0x7dd   : > { %v8499_v58 = vpop.f32.mrf.mxu1  ;;  %v3197_v40 = vadd.f32 %v3181_v55, %v2571_v19  ;;  %9900 = vrcp.f32 %v4184_v37 }
 0x7de   : > { %v9881_v30 = vpop.eup %9880  ;;  %v13508_v9 = vadd.f32 %v3764_v43, %v3194_v15 }
 0x7df   : > { %v8500_v5 = vpop.f32.mrf.mxu1  ;;  %v3765_v49 = vmul.f32 %v9881_v30, %v8498_v48  ;;  %v9883_v11 = vpop.eup %9882  ;;  %v16227_v30 = vld [vmem:[#allocation23_spill] sm:$0xff] }
 0x7e0   : > { %v8501_v7 = vadd.f32 %v8500_v5, %v8499_v58 }
 0x7e1   : > { %v8502_v18 = vpop.f32.mrf.mxu1  ;;  %v13511_v44 = vadd.f32 %v3765_v49, %v3195_v54  ;;  %v4187_v49 = vpop.xlane.xlu0 %4186 }
 0x7e2   : > { %v3766_v51 = vmul.f32 %v9883_v11, %v8501_v7  ;;  %v9885_v60 = vpop.eup %9884  ;;  %9902 = vrcp.f32 %v4187_v49 }
 0x7e3   : > { %v8503_v63 = vpop.f32.mrf.mxu1  ;;  %v9887_v62 = vpop.eup %9886 }
 0x7e4   : > { %v13514_v24 = vadd.f32 %v3766_v51, %v3196_v20  ;;  %v8504_v27 = vadd.f32 %v8503_v63, %v8502_v18  ;;  %v9889_v34 = vpop.eup %9888 }
 0x7e5   : > { %v8553_v4 = vpop.f32.mrf.mxu1  ;;  %v9891_v31 = vpop.eup %9890 }
 0x7e6   : > { %v3767_v57 = vmul.f32 %v9885_v60, %v8504_v27  ;;  %v16229_v60 = vld [vmem:[#allocation24_spill] sm:$0xff] }
 0x7e7   : > { %v8554_v3 = vpop.f32.mrf.mxu1 }
 0x7e8   : > { %v13517_v32 = vadd.f32 %v3767_v57, %v3197_v40  ;;  %v8555_v61 = vadd.f32 %v8554_v3, %v8553_v4  ;;  %v4190_v57 = vpop.xlane.xlu1 %4189 }
 0x7e9   : > { %v8556_v28 = vpop.f32.mrf.mxu1  ;;  %9904 = vrcp.f32 %v4190_v57 }
 0x7ea   : > { %v4338_v15 = vmul.f32 %v9887_v62, %v8555_v61 }
 0x7eb   : > { %v8557_v26 = vpop.f32.mrf.mxu1 }
 0x7ec   : > { %v4354_v59 = vadd.f32 %v4338_v15, %v13452_v8  ;;  %v8558_v47 = vadd.f32 %v8557_v26, %v8556_v28  ;;  %v16231_v26 = vld [vmem:[#allocation25_spill] sm:$0xff] }
 0x7ed   : > { %v8559_v2 = vpop.f32.mrf.mxu1 }
 0x7ee   : > { %v4339_v45 = vmul.f32 %v9889_v34, %v8558_v47  ;;  %v4377_v12 = vadd.f32 %v13522_v41, %v4354_v59  ;;  %v4193_v47 = vpop.xlane.xlu0 %4192 }
 0x7ef   : > { %v8560_v10 = vpop.f32.mrf.mxu1  ;;  %9906 = vrcp.f32 %v4193_v47 }
 0x7f0   : > { %v4355_v54 = vadd.f32 %v4339_v45, %v13457_v1  ;;  %v8561_v6 = vadd.f32 %v8560_v10, %v8559_v2  ;;  %v13528_v13 = vadd.f32 %v4377_v12, %v16223_v16  ;;  %v9893_v1 = vpop.eup %9892  ;;  %v4196_v16 = vpop.xlane.xlu1 %4195 }
 0x7f1   : > { %v8562_v38 = vpop.f32.mrf.mxu1  ;;  %9908 = vrcp.f32 %v4196_v16 }
 0x7f2   : > { %16224 = vst [vmem:[#allocation79_spill] sm:$0xff] %v13528_v13  ;;  %v4340_v0 = vmul.f32 %v9891_v31, %v8561_v6  ;;  %4411 = vadd.xlane.f32.xlu0 %v13528_v13  ;;  %v4378_v8 = vadd.f32 %v13522_v41, %v4355_v54  ;;  %v16233_v54 = vld [vmem:[#allocation26_spill] sm:$0xff] }
 0x7f3   : > { %v8563_v22 = vpop.f32.mrf.mxu1 }
 0x7f4   : > { %v4356_v29 = vadd.f32 %v4340_v0, %v13464_v23  ;;  %v8564_v42 = vadd.f32 %v8563_v22, %v8562_v38  ;;  %v13534_v20 = vadd.f32 %v4378_v8, %v16225_v39  ;;  %v9895_v23 = vpop.eup %9894  ;;  %v4199_v39 = vpop.xlane.xlu0 %4198 }
 0x7f5   : > { %v8565_v19 = vpop.f32.mrf.mxu1  ;;  %9910 = vrcp.f32 %v4199_v39 }
 0x7f6   : > { %16226 = vst [vmem:[#allocation122_spill] sm:$0xff] %v13534_v20  ;;  %v4341_v55 = vmul.f32 %v9893_v1, %v8564_v42  ;;  %4413 = vadd.xlane.f32.xlu1 %v13534_v20  ;;  %v4379_v43 = vadd.f32 %v13522_v41, %v4356_v29  ;;  %v16235_v29 = vld [vmem:[#allocation27_spill] sm:$0xff] }
 0x7f7   : > { %v8566_v58 = vpop.f32.mrf.mxu1 }
 0x7f8   : > { %v4357_v48 = vadd.f32 %v4341_v55, %v13469_v33  ;;  %v8567_v40 = vadd.f32 %v8566_v58, %v8565_v19  ;;  %v13540_v5 = vadd.f32 %v4379_v43, %v16227_v30  ;;  %v9897_v33 = vpop.eup %9896  ;;  %v4202_v30 = vpop.xlane.xlu1 %4201 }
 0x7f9   : > { %v8568_v7 = vpop.f32.mrf.mxu1  ;;  %9912 = vrcp.f32 %v4202_v30  ;;  %v16249_v30 = vld [vmem:[#allocation42_spill] sm:$0xff] }
 0x7fa   : > { %16228 = vst [vmem:[#allocation125_spill] sm:$0xff] %v13540_v5  ;;  %v4342_v11 = vmul.f32 %v9895_v23, %v8567_v40  ;;  %4415 = vadd.xlane.f32.xlu0 %v13540_v5  ;;  %v4380_v18 = vadd.f32 %v13522_v41, %v4357_v48  ;;  %v16237_v48 = vld [vmem:[#allocation28_spill] sm:$0xff] }
 0x7fb   : > { %v8569_v51 = vpop.f32.mrf.mxu1 }
 0x7fc   : > { %v4358_v63 = vadd.f32 %v4342_v11, %v13472_v52  ;;  %v8570_v27 = vadd.f32 %v8569_v51, %v8568_v7  ;;  %v13546_v4 = vadd.f32 %v4380_v18, %v16229_v60  ;;  %v9899_v52 = vpop.eup %9898 }
 0x7fd   : > { %v8571_v3 = vpop.f32.mrf.mxu1 }
 0x7fe   : > { %16230 = vst [vmem:[#allocation152_spill] sm:$0xff] %v13546_v4  ;;  %v4343_v61 = vmul.f32 %v9897_v33, %v8570_v27  ;;  %4417 = vadd.xlane.f32.xlu1 %v13546_v4  ;;  %v4381_v62 = vadd.f32 %v13522_v41, %v4358_v63  ;;  %v16239_v63 = vld [vmem:[#allocation30_spill] sm:$0xff]  ;;  %v4205_v33 = vpop.xlane.xlu0 %4204 }
 0x7ff   : > { %v8572_v56 = vpop.f32.mrf.mxu1  ;;  %9914 = vrcp.f32 %v4205_v33  ;;  %v16253_v33 = vld [vmem:[#allocation47_spill] sm:$0xff] }
 0x800   : > { %v4359_v28 = vadd.f32 %v4343_v61, %v13475_v46  ;;  %v8573_v15 = vadd.f32 %v8572_v56, %v8571_v3  ;;  %v13552_v59 = vadd.f32 %v4381_v62, %v16231_v26  ;;  %v9901_v46 = vpop.eup %9900 }
 0x801   : > { %v8574_v34 = vpop.f32.mrf.mxu1 }
 0x802   : > { %16232 = vst [vmem:[#allocation154_spill] sm:$0xff] %v13552_v59  ;;  %v4344_v21 = vmul.f32 %v9899_v52, %v8573_v15  ;;  %4419 = vadd.xlane.f32.xlu0 %v13552_v59  ;;  %v4382_v2 = vadd.f32 %v13522_v41, %v4359_v28  ;;  %v16241_v28 = vld [vmem:[#allocation32_spill] sm:$0xff]  ;;  %v4208_v52 = vpop.xlane.xlu1 %4207 }
 0x803   : > { %v8575_v45 = vpop.f32.mrf.mxu1  ;;  %9916 = vrcp.f32 %v4208_v52 }
 0x804   : > { %v4360_v12 = vadd.f32 %v4344_v21, %v13478_v17  ;;  %v8576_v10 = vadd.f32 %v8575_v45, %v8574_v34  ;;  %v13558_v6 = vadd.f32 %v4382_v2, %v16233_v54  ;;  %v9903_v17 = vpop.eup %9902 }
 0x805   : > { %v8577_v31 = vpop.f32.mrf.mxu1 }
 0x806   : > { %16234 = vst [vmem:[#allocation55_spill] sm:$0xff] %v13558_v6  ;;  %v4345_v50 = vmul.f32 %v9901_v46, %v8576_v10  ;;  %4421 = vadd.xlane.f32.xlu1 %v13558_v6  ;;  %v4383_v38 = vadd.f32 %v13522_v41, %v4360_v12  ;;  %v16243_v12 = vld [vmem:[#allocation35_spill] sm:$0xff] }
 0x807   : > { %v8578_v0 = vpop.f32.mrf.mxu1 }
 0x808   : > { %v4361_v8 = vadd.f32 %v4345_v50, %v13481_v53  ;;  %v8579_v22 = vadd.f32 %v8578_v0, %v8577_v31  ;;  %v13564_v42 = vadd.f32 %v4383_v38, %v16235_v29  ;;  %v9905_v53 = vpop.eup %9904  ;;  %v16245_v0 = vld [vmem:[#allocation37_spill] sm:$0xff] }
 0x809   : > { %v8580_v1 = vpop.f32.mrf.mxu1 }
 0x80a   : > { %16236 = vst [vmem:[#allocation221_spill] sm:$0xff] %v13564_v42  ;;  %v4346_v37 = vmul.f32 %v9903_v17, %v8579_v22  ;;  %4423 = vadd.xlane.f32.xlu0 %v13564_v42  ;;  %v4384_v19 = vadd.f32 %v13522_v41, %v4361_v8 }
 0x80b   : > { %v8581_v55 = vpop.f32.mrf.mxu1 }
 0x80c   : > { %v4362_v43 = vadd.f32 %v4346_v37, %v13484_v25  ;;  %v8582_v58 = vadd.f32 %v8581_v55, %v8580_v1  ;;  %v13570_v40 = vadd.f32 %v4384_v19, %v16237_v48  ;;  %v9907_v25 = vpop.eup %9906  ;;  %v16247_v37 = vld [vmem:[#allocation40_spill] sm:$0xff] }
 0x80d   : > { %v8583_v23 = vpop.f32.mrf.mxu1 }
 0x80e   : > { %16238 = vst [vmem:[#allocation118_spill] sm:$0xff] %v13570_v40  ;;  %v4347_v49 = vmul.f32 %v9905_v53, %v8582_v58  ;;  %4425 = vadd.xlane.f32.xlu1 %v13570_v40  ;;  %v4385_v7 = vadd.f32 %v13522_v41, %v4362_v43 }
 0x80f   : > { %v8584_v11 = vpop.f32.mrf.mxu1 }
 0x810   : > { %v4363_v18 = vadd.f32 %v4347_v49, %v13487_v14  ;;  %v8585_v51 = vadd.f32 %v8584_v11, %v8583_v23  ;;  %v13576_v27 = vadd.f32 %v4385_v7, %v16239_v63  ;;  %v9909_v14 = vpop.eup %9908  ;;  %v16251_v63 = vld [vmem:[#allocation45_spill] sm:$0xff] }
 0x811   : > { %v8586_v60 = vpop.f32.mrf.mxu1 }
 0x812   : > { %16240 = vst [vmem:[#allocation121_spill] sm:$0xff] %v13576_v27  ;;  %v4348_v57 = vmul.f32 %v9907_v25, %v8585_v51  ;;  %4427 = vadd.xlane.f32.xlu0 %v13576_v27  ;;  %v4386_v3 = vadd.f32 %v13522_v41, %v4363_v18 }
 0x813   : > { %v8587_v61 = vpop.f32.mrf.mxu1 }
 0x814   : > { %v4364_v62 = vadd.f32 %v4348_v57, %v13496_v36  ;;  %v8588_v56 = vadd.f32 %v8587_v61, %v8586_v60  ;;  %v13582_v15 = vadd.f32 %v4386_v3, %v16241_v28  ;;  %v9911_v36 = vpop.eup %9910 }
 0x815   : > { %v8589_v26 = vpop.f32.mrf.mxu1 }
 0x816   : > { %16242 = vst [vmem:[#allocation148_spill] sm:$0xff] %v13582_v15  ;;  %v4349_v47 = vmul.f32 %v9909_v14, %v8588_v56  ;;  %4429 = vadd.xlane.f32.xlu1 %v13582_v15  ;;  %v4387_v34 = vadd.f32 %v13522_v41, %v4364_v62 }
 0x817   : > { %v8590_v21 = vpop.f32.mrf.mxu1 }
 0x818   : > { %v4365_v2 = vadd.f32 %v4349_v47, %v13499_v35  ;;  %v8591_v45 = vadd.f32 %v8590_v21, %v8589_v26  ;;  %v13588_v10 = vadd.f32 %v4387_v34, %v16243_v12  ;;  %v9913_v35 = vpop.eup %9912 }
 0x819   : > { %v8592_v54 = vpop.f32.mrf.mxu1  ;;  %v9915_v43 = vpop.eup %9914 }
 0x81a   : > { %16244 = vst [vmem:[#allocation150_spill] sm:$0xff] %v13588_v10  ;;  %v4350_v46 = vmul.f32 %v9911_v36, %v8591_v45  ;;  %4431 = vadd.xlane.f32.xlu0 %v13588_v10  ;;  %v4388_v16 = vadd.f32 %v13522_v41, %v4365_v2 }
 0x81b   : > { %v8593_v31 = vpop.f32.mrf.mxu1 }
 0x81c   : > { %v4366_v50 = vadd.f32 %v4350_v46, %v13508_v9  ;;  %v8594_v38 = vadd.f32 %v8593_v31, %v8592_v54  ;;  %v13594_v8 = vadd.f32 %v4388_v16, %v16245_v0 }
 0x81d   : > { %v8595_v29 = vpop.f32.mrf.mxu1 }
 0x81e   : > { %16246 = vst [vmem:[#allocation223_spill] sm:$0xff] %v13594_v8  ;;  %v4351_v22 = vmul.f32 %v9913_v35, %v8594_v38  ;;  %4433 = vadd.xlane.f32.xlu1 %v13594_v8  ;;  %v4389_v17 = vadd.f32 %v13522_v41, %v4366_v50 }
 0x81f   : > { %v8596_v1 = vpop.f32.mrf.mxu1 }
 0x820   : > { %v4367_v39 = vadd.f32 %v4351_v22, %v13511_v44  ;;  %v13600_v19 = vadd.f32 %v4389_v17, %v16247_v37  ;;  %v8597_v55 = vadd.f32 %v8596_v1, %v8595_v29  ;;  %v9917_v44 = vpop.eup %9916 }
 0x821   : > { %v8598_v9 = vpop.f32.mrf.mxu1 }
 0x822   : > { %16248 = vst [vmem:[#allocation224_spill] sm:$0xff] %v13600_v19  ;;  %4435 = vadd.xlane.f32.xlu0 %v13600_v19  ;;  %v4390_v58 = vadd.f32 %v13522_v41, %v4367_v39  ;;  %v4352_v48 = vmul.f32 %v9915_v43, %v8597_v55 }
 0x823   : > { %v8599_v53 = vpop.f32.mrf.mxu1 }
 0x824   : > { %v13605_v23 = vadd.f32 %v4390_v58, %v16249_v30  ;;  %v4368_v49 = vadd.f32 %v4352_v48, %v13514_v24  ;;  %v8600_v7 = vadd.f32 %v8599_v53, %v8598_v9 }
 0x826   : > { %16250 = vst [vmem:[#allocation114_spill] sm:$0xff] %v13605_v23  ;;  %4437 = vadd.xlane.f32.xlu1 %v13605_v23  ;;  %v4353_v11 = vmul.f32 %v9917_v44, %v8600_v7  ;;  %v4391_v18 = vadd.f32 %v13522_v41, %v4368_v49 }
 0x828   : > { %v4369_v51 = vadd.f32 %v4353_v11, %v13517_v32  ;;  %v13612_v25 = vadd.f32 %v4391_v18, %v16251_v63 }
 0x82a   : > { %16252 = vst [vmem:[#allocation117_spill] sm:$0xff] %v13612_v25  ;;  %4439 = vadd.xlane.f32.xlu0 %v13612_v25  ;;  %v4392_v60 = vadd.f32 %v13522_v41, %v4369_v51 }
 0x82c   : > { %v13617_v57 = vadd.f32 %v4392_v60, %v16253_v33 }
 0x82e   : > { %16254 = vst [vmem:[#allocation145_spill] sm:$0xff] %v13617_v57  ;;  %4441 = vadd.xlane.f32.xlu1 %v13617_v57 }
 0x87b   : > { %v4412_v24 = vpop.xlane.xlu0 %4411 }
 0x87c   : > { %v4443_v3 = vmul.f32 0.0078125, %v4412_v24 }
 0x87e   : > { %v13621_v61 = vsub.f32 %v13528_v13, %v4443_v3 }
 0x87f   : > { %v4414_v62 = vpop.xlane.xlu1 %4413 }
 0x880   : > { %v4444_v56 = vmul.f32 0.0078125, %v4414_v62  ;;  %v4475_v32 = vmul.f32 %v13621_v61, %v13621_v61 }
 0x882   : > { %v13626_v28 = vsub.f32 %v13534_v20, %v4444_v56  ;;  %4491 = vadd.xlane.f32.xlu0 %v4475_v32 }
 0x883   : > { %v4416_v41 = vpop.xlane.xlu0 %4415 }
 0x884   : > { %v4445_v14 = vmul.f32 0.0078125, %v4416_v41  ;;  %v4476_v26 = vmul.f32 %v13626_v28, %v13626_v28 }
 0x886   : > { %v13631_v52 = vsub.f32 %v13540_v5, %v4445_v14  ;;  %4493 = vadd.xlane.f32.xlu1 %v4476_v26 }
 0x887   : > { %v4418_v47 = vpop.xlane.xlu1 %4417 }
 0x888   : > { %v4446_v34 = vmul.f32 0.0078125, %v4418_v47  ;;  %v4477_v21 = vmul.f32 %v13631_v52, %v13631_v52 }
 0x88a   : > { %v13636_v2 = vsub.f32 %v13546_v4, %v4446_v34  ;;  %4495 = vadd.xlane.f32.xlu0 %v4477_v21 }
 0x88b   : > { %v4420_v45 = vpop.xlane.xlu0 %4419 }
 0x88c   : > { %v4447_v12 = vmul.f32 0.0078125, %v4420_v45  ;;  %v4478_v36 = vmul.f32 %v13636_v2, %v13636_v2 }
 0x88e   : > { %v13641_v54 = vsub.f32 %v13552_v59, %v4447_v12  ;;  %4497 = vadd.xlane.f32.xlu1 %v4478_v36 }
 0x88f   : > { %v4422_v46 = vpop.xlane.xlu1 %4421 }
 0x890   : > { %v4448_v16 = vmul.f32 0.0078125, %v4422_v46  ;;  %v4479_v31 = vmul.f32 %v13641_v54, %v13641_v54 }
 0x892   : > { %v13646_v50 = vsub.f32 %v13558_v6, %v4448_v16  ;;  %4499 = vadd.xlane.f32.xlu0 %v4479_v31 }
 0x893   : > { %v4424_v38 = vpop.xlane.xlu0 %4423 }
 0x894   : > { %v4449_v0 = vmul.f32 0.0078125, %v4424_v38  ;;  %v4480_v35 = vmul.f32 %v13646_v50, %v13646_v50 }
 0x896   : > { %v13651_v22 = vsub.f32 %v13564_v42, %v4449_v0  ;;  %4501 = vadd.xlane.f32.xlu1 %v4480_v35 }
 0x897   : > { %v4426_v29 = vpop.xlane.xlu1 %4425 }
 0x898   : > { %v4450_v17 = vmul.f32 0.0078125, %v4426_v29  ;;  %v4481_v39 = vmul.f32 %v13651_v22, %v13651_v22 }
 0x89a   : > { %v13656_v1 = vsub.f32 %v13570_v40, %v4450_v17  ;;  %4503 = vadd.xlane.f32.xlu0 %v4481_v39 }
 0x89b   : > { %v4428_v37 = vpop.xlane.xlu0 %4427 }
 0x89c   : > { %v4451_v55 = vmul.f32 0.0078125, %v4428_v37  ;;  %v4482_v43 = vmul.f32 %v13656_v1, %v13656_v1 }
 0x89e   : > { %v13661_v9 = vsub.f32 %v13576_v27, %v4451_v55  ;;  %4505 = vadd.xlane.f32.xlu1 %v4482_v43 }
 0x89f   : > { %v4430_v58 = vpop.xlane.xlu1 %4429 }
 0x8a0   : > { %v4452_v48 = vmul.f32 0.0078125, %v4430_v58  ;;  %v4483_v53 = vmul.f32 %v13661_v9, %v13661_v9 }
 0x8a2   : > { %v13666_v30 = vsub.f32 %v13582_v15, %v4452_v48  ;;  %4507 = vadd.xlane.f32.xlu0 %v4483_v53 }
 0x8a3   : > { %v4432_v49 = vpop.xlane.xlu0 %4431 }
 0x8a4   : > { %v4453_v7 = vmul.f32 0.0078125, %v4432_v49  ;;  %v4484_v44 = vmul.f32 %v13666_v30, %v13666_v30 }
 0x8a6   : > { %v13671_v11 = vsub.f32 %v13588_v10, %v4453_v7  ;;  %4509 = vadd.xlane.f32.xlu1 %v4484_v44 }
 0x8a7   : > { %v4434_v18 = vpop.xlane.xlu1 %4433 }
 0x8a8   : > { %v4454_v51 = vmul.f32 0.0078125, %v4434_v18  ;;  %v4485_v63 = vmul.f32 %v13671_v11, %v13671_v11 }
 0x8aa   : > { %v13676_v60 = vsub.f32 %v13594_v8, %v4454_v51  ;;  %4511 = vadd.xlane.f32.xlu0 %v4485_v63  ;;  %v13704_v51 = vld [vmem:[%s15473_s7] ss:$0 sm:$0xff] }
 0x8ab   : > { %v4436_v33 = vpop.xlane.xlu0 %4435 }
 0x8ac   : > { %v4455_v24 = vmul.f32 0.0078125, %v4436_v33  ;;  %v4486_v3 = vmul.f32 %v13676_v60, %v13676_v60 }
 0x8ae   : > { %v13681_v62 = vsub.f32 %v13600_v19, %v4455_v24  ;;  %4513 = vadd.xlane.f32.xlu1 %v4486_v3 }
 0x8af   : > { %v4438_v56 = vpop.xlane.xlu1 %4437 }
 0x8b0   : > { %v4456_v32 = vmul.f32 0.0078125, %v4438_v56  ;;  %v4487_v41 = vmul.f32 %v13681_v62, %v13681_v62 }
 0x8b2   : > { %v13686_v14 = vsub.f32 %v13605_v23, %v4456_v32  ;;  %4515 = vadd.xlane.f32.xlu0 %v4487_v41 }
 0x8b3   : > { %v4440_v26 = vpop.xlane.xlu0 %4439 }
 0x8b4   : > { %v4488_v47 = vmul.f32 %v13686_v14, %v13686_v14  ;;  %v4457_v34 = vmul.f32 0.0078125, %v4440_v26  ;;  %v13711_v26 = vld [vmem:[%s15474_s8] ss:$0 sm:$0xff] }
 0x8b6   : > { %4517 = vadd.xlane.f32.xlu1 %v4488_v47  ;;  %v13691_v21 = vsub.f32 %v13612_v25, %v4457_v34 }
 0x8b7   : > { %v4442_v45 = vpop.xlane.xlu1 %4441 }
 0x8b8   : > { %v4458_v12 = vmul.f32 0.0078125, %v4442_v45  ;;  %v4489_v36 = vmul.f32 %v13691_v21, %v13691_v21 }
 0x8ba   : > { %v13696_v46 = vsub.f32 %v13617_v57, %v4458_v12  ;;  %4519 = vadd.xlane.f32.xlu0 %v4489_v36 }
 0x8bc   : > { %v4490_v16 = vmul.f32 %v13696_v46, %v13696_v46 }
 0x8be   : > { %4521 = vadd.xlane.f32.xlu1 %v4490_v16 }
 0x90b   : > { %v4492_v31 = vpop.xlane.xlu0 %4491 }
 0x90c   : > { %v4523_v38 = vmul.f32 0.0078125, %v4492_v31 }
 0x90e   : > { %v4539_v0 = vadd.f32 1e-05, %v4523_v38 }
 0x90f   : > { %v4494_v35 = vpop.xlane.xlu1 %4493 }
 0x910   : > { %9918 = vrsqrt.f32 %v4539_v0  ;;  %v4524_v29 = vmul.f32 0.0078125, %v4494_v35 }
 0x912   : > { %v4540_v17 = vadd.f32 1e-05, %v4524_v29 }
 0x913   : > { %v4496_v39 = vpop.xlane.xlu0 %4495 }
 0x914   : > { %9920 = vrsqrt.f32 %v4540_v17  ;;  %v4525_v37 = vmul.f32 0.0078125, %v4496_v39 }
 0x916   : > { %v4541_v55 = vadd.f32 1e-05, %v4525_v37 }
 0x917   : > { %v4498_v43 = vpop.xlane.xlu1 %4497 }
 0x918   : > { %9922 = vrsqrt.f32 %v4541_v55  ;;  %v4526_v58 = vmul.f32 0.0078125, %v4498_v43 }
 0x91a   : > { %v4542_v48 = vadd.f32 1e-05, %v4526_v58 }
 0x91b   : > { %v4500_v53 = vpop.xlane.xlu0 %4499 }
 0x91c   : > { %9924 = vrsqrt.f32 %v4542_v48  ;;  %v4527_v49 = vmul.f32 0.0078125, %v4500_v53 }
 0x91d   : > { %v9919_v7 = vpop.eup %9918 }
 0x91e   : > { %v4543_v44 = vadd.f32 1e-05, %v4527_v49  ;;  %v4571_v18 = vmul.f32 %v9919_v7, %v13621_v61 }
 0x91f   : > { %v4502_v63 = vpop.xlane.xlu1 %4501 }
 0x920   : > { %9926 = vrsqrt.f32 %v4543_v44  ;;  %v4528_v33 = vmul.f32 0.0078125, %v4502_v63  ;;  %v4593_v32 = vmul.f32 %v13704_v51, %v4571_v18 }
 0x921   : > { %v9921_v24 = vpop.eup %9920 }
 0x922   : > { %v4544_v3 = vadd.f32 1e-05, %v4528_v33  ;;  %v4572_v56 = vmul.f32 %v9921_v24, %v13626_v28  ;;  %v4615_v36 = vadd.f32 %v13711_v26, %v4593_v32  ;;  %v16255_v24 = vld [vmem:[#allocation99_spill] sm:$0xff] }
 0x923   : > { %v4504_v41 = vpop.xlane.xlu0 %4503 }
 0x924   : > { %9928 = vrsqrt.f32 %v4544_v3  ;;  %v4529_v61 = vmul.f32 0.0078125, %v4504_v41  ;;  %v4594_v47 = vmul.f32 %v13704_v51, %v4572_v56  ;;  %v16256_v56 = vld [vmem:[#allocation94_spill] sm:$0xff] }
 0x925   : > { %v9923_v34 = vpop.eup %9922 }
 0x926   : > { %v4573_v45 = vmul.f32 %v9923_v34, %v13631_v52  ;;  %v4545_v12 = vadd.f32 1e-05, %v4529_v61  ;;  %v4616_v28 = vadd.f32 %v13711_v26, %v4594_v47 }
 0x927   : > { %v4506_v16 = vpop.xlane.xlu1 %4505 }
 0x928   : > { %9930 = vrsqrt.f32 %v4545_v12  ;;  %v4530_v31 = vmul.f32 0.0078125, %v4506_v16  ;;  %v4631_v38 = vpack.c.bf16 %v4616_v28, %v4615_v36  ;;  %v4595_v35 = vmul.f32 %v13704_v51, %v4573_v45 }
 0x929   : > { %v9925_v0 = vpop.eup %9924 }
 0x92a   : > { %v4574_v29 = vmul.f32 %v9925_v0, %v13636_v2  ;;  %v4546_v17 = vadd.f32 1e-05, %v4530_v31  ;;  %9065 = vmatprep.mubr.bf16.mxu0 %v4631_v38  ;;  %v4617_v58 = vadd.f32 %v13711_v26, %v4595_v35  ;;  %v16257_v0 = vld [vmem:[#allocation105_spill] sm:$0xff] }
 0x92b   : > { %v4508_v39 = vpop.xlane.xlu0 %4507 }
 0x92c   : > { %v4596_v37 = vmul.f32 %v13704_v51, %v4574_v29  ;;  %9932 = vrsqrt.f32 %v4546_v17  ;;  %v4531_v52 = vmul.f32 0.0078125, %v4508_v39  ;;  %v16258_v29 = vld [vmem:[#allocation95_spill] sm:$0xff] }
 0x92d   : > { %v9927_v55 = vpop.eup %9926 }
 0x92e   : > { %v4547_v43 = vadd.f32 1e-05, %v4531_v52  ;;  %v4618_v48 = vadd.f32 %v13711_v26, %v4596_v37  ;;  %v4575_v53 = vmul.f32 %v9927_v55, %v13641_v54 }
 0x92f   : > { %v4510_v49 = vpop.xlane.xlu1 %4509 }
 0x930   : > { %9934 = vrsqrt.f32 %v4547_v43  ;;  %v4532_v7 = vmul.f32 0.0078125, %v4510_v49  ;;  %v4632_v44 = vpack.c.bf16 %v4618_v48, %v4617_v58  ;;  %v4597_v33 = vmul.f32 %v13704_v51, %v4575_v53 }
 0x931   : > { %v9929_v2 = vpop.eup %9928 }
 0x932   : > { %v4548_v18 = vadd.f32 1e-05, %v4532_v7  ;;  %9066 = vmatmul.mubr.bf16.vlgmr.msra.gmra.mxu0 %v4632_v44  ;;  %v4576_v63 = vmul.f32 %v9929_v2, %v13646_v50  ;;  %v4619_v47 = vadd.f32 %v13711_v26, %v4597_v33  ;;  %v16259_v2 = vld [vmem:[#allocation111_spill] sm:$0xff] }
 0x933   : > { %8634 = vmatpush3.bf16.xpose.msra.mxu0 %v16255_v24  ;;  %v4512_v3 = vpop.xlane.xlu0 %4511 }
 0x934   : > { %9936 = vrsqrt.f32 %v4548_v18  ;;  %9226 = vmatprep.subr.msk.bf16.mxu0 %vm2049_vm0, %v16256_v56  ;;  %v4533_v32 = vmul.f32 0.0078125, %v4512_v3  ;;  %v4598_v54 = vmul.f32 %v13704_v51, %v4576_v63  ;;  %v16260_v18 = vld [vmem:[#allocation97_spill] sm:$0xff] }
 0x935   : > { %v9931_v41 = vpop.eup %9930 }
 0x936   : > { %v4549_v61 = vadd.f32 1e-05, %v4533_v32  ;;  %v4620_v34 = vadd.f32 %v13711_v26, %v4598_v54  ;;  %v4577_v50 = vmul.f32 %v9931_v41, %v13651_v22 }
 0x937   : > { %v4514_v45 = vpop.xlane.xlu1 %4513 }
 0x938   : > { %9938 = vrsqrt.f32 %v4549_v61  ;;  %v4534_v12 = vmul.f32 0.0078125, %v4514_v45  ;;  %v4633_v36 = vpack.c.bf16 %v4620_v34, %v4619_v47  ;;  %v4599_v38 = vmul.f32 %v13704_v51, %v4577_v50 }
 0x939   : > { %v9933_v28 = vpop.eup %9932 }
 0x93a   : > { %v4550_v16 = vadd.f32 1e-05, %v4534_v12  ;;  %9069 = vmatprep.mubr.bf16.mxu0 %v4633_v36  ;;  %v4578_v31 = vmul.f32 %v9933_v28, %v13656_v1  ;;  %v4621_v52 = vadd.f32 %v13711_v26, %v4599_v38  ;;  %v16261_v12 = vld [vmem:[#allocation115_spill] sm:$0xff]  ;;  %v16262_v36 = vld [vmem:[#allocation100_spill] sm:$0xff] }
 0x93b   : > { %8636 = vmatpush3.bf16.xpose.msra.mxu0 %v16257_v0  ;;  %v4516_v35 = vpop.xlane.xlu0 %4515 }
 0x93c   : > { %9940 = vrsqrt.f32 %v4550_v16  ;;  %9227 = vmatprep.subr.msk.bf16.mxu0 %vm2049_vm0, %v16258_v29  ;;  %v4535_v17 = vmul.f32 0.0078125, %v4516_v35  ;;  %v4600_v22 = vmul.f32 %v13704_v51, %v4578_v31 }
 0x93d   : > { %v9935_v39 = vpop.eup %9934 }
 0x93e   : > { %v4551_v37 = vadd.f32 1e-05, %v4535_v17  ;;  %v4622_v55 = vadd.f32 %v13711_v26, %v4600_v22  ;;  %v4579_v1 = vmul.f32 %v9935_v39, %v13661_v9  ;;  %v16263_v17 = vld [vmem:[#allocation119_spill] sm:$0xff] }
 0x93f   : > { %v4518_v43 = vpop.xlane.xlu1 %4517  ;;  %v16264_v22 = vld [vmem:[#allocation103_spill] sm:$0xff] }
 0x940   : > { %9942 = vrsqrt.f32 %v4551_v37  ;;  %v4536_v58 = vmul.f32 0.0078125, %v4518_v43  ;;  %v4634_v48 = vpack.c.bf16 %v4622_v55, %v4621_v52  ;;  %v4601_v44 = vmul.f32 %v13704_v51, %v4579_v1 }
 0x941   : > { %v9937_v53 = vpop.eup %9936 }
 0x942   : > { %v4552_v49 = vadd.f32 1e-05, %v4536_v58  ;;  %9070 = vmatmul.mubr.bf16.gmra.mxu0 %v4634_v48  ;;  %v4580_v7 = vmul.f32 %v9937_v53, %v13666_v30  ;;  %v4623_v3 = vadd.f32 %v13711_v26, %v4601_v44  ;;  %v16266_v53 = vld [vmem:[#allocation106_spill] sm:$0xff] }
 0x943   : > { %8638 = vmatpush3.bf16.xpose.msra.mxu0 %v16259_v2  ;;  %v4520_v63 = vpop.xlane.xlu0 %4519 }
 0x944   : > { %9944 = vrsqrt.f32 %v4552_v49  ;;  %9228 = vmatprep.subr.msk.bf16.mxu0 %vm2049_vm0, %v16260_v18  ;;  %v4602_v9 = vmul.f32 %v13704_v51, %v4580_v7  ;;  %v4537_v24 = vmul.f32 0.0078125, %v4520_v63  ;;  %v16268_v18 = vld [vmem:[#allocation80_spill] sm:$0xff]  ;;  %v16269_v63 = vld [vmem:[#allocation109_spill] sm:$0xff] }
 0x945   : > { %v9939_v33 = vpop.eup %9938 }
 0x946   : > { %v4624_v56 = vadd.f32 %v13711_v26, %v4602_v9  ;;  %v4581_v32 = vmul.f32 %v9939_v33, %v13671_v11  ;;  %v4553_v30 = vadd.f32 1e-05, %v4537_v24  ;;  %v16271_v9 = vld [vmem:[#allocation151_spill] sm:$0xff]  ;;  %v16274_v33 = vld [vmem:[#allocation76_spill] sm:$0xff] }
 0x947   : > { %v4522_v54 = vpop.xlane.xlu1 %4521  ;;  %v16275_v24 = vld [vmem:[#allocation71_spill] sm:$0xff] }
 0x948   : > { %v4635_v41 = vpack.c.bf16 %v4624_v56, %v4623_v3  ;;  %9946 = vrsqrt.f32 %v4553_v30  ;;  %v4538_v47 = vmul.f32 0.0078125, %v4522_v54  ;;  %v4603_v50 = vmul.f32 %v13704_v51, %v4581_v32  ;;  %v16276_v3 = vld [vmem:[#allocation73_spill] sm:$0xff]  ;;  %v16277_v56 = vld [vmem:[#allocation87_spill] sm:$0xff]  ;;  %v16278_v32 = vld [vmem:[#allocation68_spill] sm:$0xff] }
 0x949   : > { %v9941_v61 = vpop.eup %9940  ;;  %v16279_v30 = vld [vmem:[#allocation70_spill] sm:$0xff]  ;;  %v16280_v54 = vld [vmem:[#allocation65_spill] sm:$0xff] }
 0x94a   : > { %9073 = vmatprep.mubr.bf16.mxu0 %v4635_v41  ;;  %v4582_v34 = vmul.f32 %v9941_v61, %v13676_v60  ;;  %v4554_v45 = vadd.f32 1e-05, %v4538_v47  ;;  %v4625_v16 = vadd.f32 %v13711_v26, %v4603_v50  ;;  %v16281_v41 = vld [vmem:[#allocation67_spill] sm:$0xff]  ;;  %v16282_v61 = vld [vmem:[#allocation88_spill] sm:$0xff] }
 0x94b   : > { %8640 = vmatpush3.bf16.xpose.msra.mxu0 %v16261_v12  ;;  %v16283_v47 = vld [vmem:[#allocation92_spill] sm:$0xff]  ;;  %v16287_v12 = vld [vmem:[#allocation89_spill] sm:$0xff] }
 0x94c   : > { %9229 = vmatprep.subr.msk.bf16.mxu0 %vm2049_vm0, %v16262_v36  ;;  %v4604_v28 = vmul.f32 %v13704_v51, %v4582_v34  ;;  %9948 = vrsqrt.f32 %v4554_v45  ;;  %v16284_v34 = vld [vmem:[#allocation62_spill] sm:$0xff]  ;;  %v16285_v50 = vld [vmem:[#allocation64_spill] sm:$0xff]  ;;  %v16286_v45 = vld [vmem:[#allocation85_spill] sm:$0xff] }
 0x94d   : > { %v9943_v11 = vpop.eup %9942  ;;  %v16288_v36 = vld [vmem:[#allocation91_spill] sm:$0xff] }
 0x94e   : > { %v4626_v31 = vadd.f32 %v13711_v26, %v4604_v28  ;;  %v4583_v38 = vmul.f32 %v9943_v11, %v13681_v62  ;;  %v16289_v28 = vld [vmem:[#allocation59_spill] sm:$0xff]  ;;  %v16290_v11 = vld [vmem:[#allocation81_spill] sm:$0xff] }
 0x950   : > { %v4636_v0 = vpack.c.bf16 %v4626_v31, %v4625_v16  ;;  %v4605_v29 = vmul.f32 %v13704_v51, %v4583_v38  ;;  %v16291_v16 = vld [vmem:[#allocation166_spill] sm:$0xff]  ;;  %v16293_v38 = vld [vmem:[#allocation93_spill] sm:$0xff] }
 0x951   : > { %v9945_v60 = vpop.eup %9944  ;;  %v16292_v31 = vld [vmem:[#allocation90_spill] sm:$0xff] }
 0x952   : > { %9074 = vmatmul.mubr.bf16.gmra.mxu0 %v4636_v0  ;;  %v4584_v35 = vmul.f32 %v9945_v60, %v13686_v14  ;;  %v4627_v52 = vadd.f32 %v13711_v26, %v4605_v29  ;;  %v16265_v14 = vld [vmem:[#allocation123_spill] sm:$0xff]  ;;  %v16294_v0 = vld [vmem:[#allocation96_spill] sm:$0xff] }
 0x953   : > { %8642 = vmatpush3.bf16.xpose.msra.mxu0 %v16263_v17  ;;  %v13832_v60 = vld [vmem:[%s15476_s10] ss:$0 sm:$0xff] }
 0x954   : > { %9230 = vmatprep.subr.msk.bf16.mxu0 %vm2049_vm0, %v16264_v22  ;;  %v4606_v39 = vmul.f32 %v13704_v51, %v4584_v35 }
 0x955   : > { %v9947_v37 = vpop.eup %9946 }
 0x956   : > { %v4628_v55 = vadd.f32 %v13711_v26, %v4606_v39  ;;  %v4585_v62 = vmul.f32 %v9947_v37, %v13691_v21  ;;  %v16267_v21 = vld [vmem:[#allocation127_spill] sm:$0xff] }
 0x958   : > { %v4637_v1 = vpack.c.bf16 %v4628_v55, %v4627_v52  ;;  %v4607_v48 = vmul.f32 %v13704_v51, %v4585_v62 }
 0x959   : > { %v9949_v43 = vpop.eup %9948 }
 0x95a   : > { %9077 = vmatprep.mubr.bf16.mxu0 %v4637_v1  ;;  %v4586_v58 = vmul.f32 %v9949_v43, %v13696_v46  ;;  %v4629_v7 = vadd.f32 %v13711_v26, %v4607_v48  ;;  %v16270_v46 = vld [vmem:[#allocation132_spill] sm:$0xff] }
 0x95b   : > { %8644 = vmatpush3.bf16.xpose.msra.mxu0 %v16265_v14 }
 0x95c   : > { %9231 = vmatprep.subr.msk.bf16.mxu0 %vm2049_vm0, %v16266_v53  ;;  %v4608_v49 = vmul.f32 %v13704_v51, %v4586_v58  ;;  %v16272_v51 = vld [vmem:[#allocation84_spill] sm:$0xff] }
 0x95e   : > { %v4630_v44 = vadd.f32 %v13711_v26, %v4608_v49  ;;  %v16273_v26 = vld [vmem:[#allocation74_spill] sm:$0xff] }
 0x960   : > { %v4638_v2 = vpack.c.bf16 %v4630_v44, %v4629_v7 }
 0x962   : > { %9078 = vmatmul.mubr.bf16.gmra.mxu0 %v4638_v2 }
 0x963   : > { %8646 = vmatpush3.bf16.xpose.msra.mxu0 %v16267_v21  ;;  %8649 = vmatprep.mubr.msk.bf16.mxu0 %vm2049_vm0, %v16268_v18 }
 0x964   : > { %9232 = vmatprep.subr.msk.bf16.mxu0 %vm2049_vm0, %v16269_v63 }
 0x96b   : > { %8648 = vmatpush3.bf16.xpose.msra.mxu0 %v16270_v46 }
 0x96c   : > { %8761 = vmatprep.subr.bf16.mxu0 %v16271_v9 }
 0x972   : > { %8650 = vmatmul.mubr.msk.bf16.vlgmr.msra.gmra.mxu0 %vm2049_vm0, %v16268_v18 }
 0x973   : > { %8651 = vmatprep.mubr.msk.bf16.mxu0 %vm2049_vm0, %v16272_v51  ;;  %8762 = vmatpush3.bf16.msra.mxu0 %v16273_v26 }
 0x974   : > { %8763 = vmatprep.subr.bf16.mxu0 %v16274_v33 }
 0x977   : > { %8764 = vmatpush3.bf16.msra.mxu0 %v16275_v24 }
 0x978   : > { %8765 = vmatprep.subr.bf16.mxu0 %v16276_v3 }
 0x97a   : > { %8652 = vmatmul.mubr.msk.bf16.gmra.mxu0 %vm2049_vm0, %v16272_v51 }
 0x97b   : > { %8653 = vmatprep.mubr.msk.bf16.mxu0 %vm2049_vm0, %v16277_v56  ;;  %8766 = vmatpush3.bf16.msra.mxu0 %v16278_v32 }
 0x97c   : > { %8767 = vmatprep.subr.bf16.mxu0 %v16279_v30 }
 0x97f   : > { %8768 = vmatpush3.bf16.msra.mxu0 %v16280_v54 }
 0x980   : > { %8769 = vmatprep.subr.bf16.mxu0 %v16281_v41 }
 0x982   : > { %8654 = vmatmul.mubr.msk.bf16.gmra.mxu0 %vm2049_vm0, %v16277_v56 }
 0x983   : > { %8655 = vmatprep.mubr.msk.bf16.mxu0 %vm2049_vm0, %v16282_v61  ;;  %8770 = vmatpush3.bf16.msra.mxu0 %v16283_v47 }
 0x984   : > { %8771 = vmatprep.subr.bf16.mxu0 %v16284_v34 }
 0x987   : > { %8772 = vmatpush3.bf16.msra.mxu0 %v16285_v50 }
 0x988   : > { %8773 = vmatprep.subr.bf16.mxu0 %v16286_v45 }
 0x98a   : > { %8656 = vmatmul.mubr.msk.bf16.gmra.mxu0 %vm2049_vm0, %v16282_v61 }
 0x98b   : > { %8657 = vmatprep.mubr.msk.bf16.mxu0 %vm2049_vm0, %v16287_v12  ;;  %8774 = vmatpush3.bf16.msra.mxu0 %v16288_v36 }
 0x98c   : > { %8775 = vmatprep.subr.bf16.mxu0 %v16289_v28 }
 0x98f   : > { %8776 = vmatpush3.bf16.msra.mxu0 %v16290_v11 }
 0x990   : > { %8857 = vmatprep.subr.bf16.mxu0 %v16291_v16 }
 0x992   : > { %8658 = vmatmul.mubr.msk.bf16.gmra.mxu0 %vm2049_vm0, %v16287_v12 }
 0x993   : > { %8659 = vmatprep.mubr.msk.bf16.mxu0 %vm2049_vm0, %v16292_v31 }
 0x99a   : > { %8660 = vmatmul.mubr.msk.bf16.gmra.mxu0 %vm2049_vm0, %v16292_v31 }
 0x99b   : > { %8661 = vmatprep.mubr.msk.bf16.mxu0 %vm2049_vm0, %v16293_v38 }
 0x9a2   : > { %8662 = vmatmul.mubr.msk.bf16.gmra.mxu0 %vm2049_vm0, %v16293_v38 }
 0x9a3   : > { %8663 = vmatprep.mubr.msk.bf16.mxu0 %vm2049_vm0, %v16294_v0 }
 0x9aa   : > { %8664 = vmatmul.mubr.msk.bf16.gmra.mxu0 %vm2049_vm0, %v16294_v0 }
 0x9f2   : > { %v9067_v35 = vpop.f32.mrf.mxu0 }
 0x9f3   : > { %v4753_v29 = vadd.f32 %v9067_v35, %v13832_v60 }
 0x9f4   : > { %v4744_v17 = vpop.f32.mrf.mxu0 }
 0x9f5   : > { %v4745_v22 = vadd.f32 %v13832_v60, %v4744_v17  ;;  %v4825_v39 = vmul.f32 0.70710677, %v4753_v29  ;;  %v4809_v36 = vmul.f32 0.5, %v4753_v29 }
 0x9f6   : > { %v9068_v37 = vpop.f32.mrf.mxu0 }
 0x9f7   : > { %v4823_v52 = vmul.f32 0.70710677, %v4745_v22  ;;  %v4756_v55 = vadd.f32 %v9068_v37, %v13832_v60  ;;  %v4807_v47 = vmul.f32 0.5, %v4745_v22  ;;  %v16296_v22 = vld [vmem:[#allocation136_spill] sm:$0xff] }
 0x9f8   : > { %v4747_v62 = vpop.f32.mrf.mxu0 }
 0x9f9   : > { %9950 = verf.f32 %v4823_v52  ;;  %v4826_v1 = vmul.f32 0.70710677, %v4756_v55  ;;  %v4748_v43 = vadd.f32 %v13832_v60, %v4747_v62  ;;  %v4810_v54 = vmul.f32 0.5, %v4756_v55  ;;  %v16295_v55 = vld [vmem:[#allocation75_spill] sm:$0xff] }
 0x9fa   : > { %9952 = verf.f32 %v4825_v39 }
 0x9fb   : > { %9954 = verf.f32 %v4826_v1  ;;  %v4824_v14 = vmul.f32 0.70710677, %v4748_v43  ;;  %v4808_v34 = vmul.f32 0.5, %v4748_v43 }
 0x9fd   : > { %9956 = verf.f32 %v4824_v14 }
 0xa02   : > { %v9071_v58 = vpop.f32.mrf.mxu0 }
 0xa03   : > { %v13839_v48 = vadd.f32 %v9071_v58, %v13832_v60 }
 0xa04   : > { %v4760_v53 = vpop.f32.mrf.mxu0 }
 0xa05   : > { %v4829_v49 = vmul.f32 0.70710677, %v13839_v48  ;;  %v4761_v7 = vadd.f32 %v13832_v60, %v4760_v53 }
 0xa06   : > { %v9951_v44 = vpop.eup %9950  ;;  %v9072_v2 = vpop.f32.mrf.mxu0 }
 0xa07   : > { %v9953_v21 = vpop.eup %9952  ;;  %v4827_v46 = vmul.f32 0.70710677, %v4761_v7  ;;  %v4772_v9 = vadd.f32 %v9072_v2, %v13832_v60  ;;  %v4855_v33 = vadd.f32 1.0, %v9951_v44  ;;  %9958 = verf.f32 %v4829_v49  ;;  %v16297_v49 = vld [vmem:[#allocation72_spill] sm:$0xff]  ;;  %v16298_v2 = vld [vmem:[#allocation139_spill] sm:$0xff] }
 0xa08   : > { %v9955_v63 = vpop.eup %9954  ;;  %v4763_v26 = vpop.f32.mrf.mxu0  ;;  %v4857_v30 = vadd.f32 1.0, %v9953_v21 }
 0xa09   : > { %v4858_v24 = vadd.f32 1.0, %v9955_v63  ;;  %v4764_v3 = vadd.f32 %v13832_v60, %v4763_v26  ;;  %9960 = verf.f32 %v4827_v46  ;;  %v4830_v41 = vmul.f32 0.70710677, %v4772_v9 }
 0xa0a   : > { %v9957_v32 = vpop.eup %9956  ;;  %v4871_v11 = vmul.f32 %v4855_v33, %v4807_v47  ;;  %v4873_v35 = vmul.f32 %v4857_v30, %v4809_v36  ;;  %v4814_v26 = vmul.f32 0.5, %v4772_v9  ;;  %v4813_v36 = vmul.f32 0.5, %v13839_v48 }
 0xa0b   : > { %v4856_v50 = vadd.f32 1.0, %v9957_v32  ;;  %v4828_v45 = vmul.f32 0.70710677, %v4764_v3  ;;  %v4874_v28 = vmul.f32 %v4858_v24, %v4810_v54  ;;  %9962 = verf.f32 %v4830_v41 }
 0xa0c   : > { %v4811_v41 = vmul.f32 0.5, %v4761_v7  ;;  %v4812_v47 = vmul.f32 0.5, %v4764_v3  ;;  %v16302_v7 = vld [vmem:[#allocation144_spill] sm:$0xff] }
 0xa0d   : > { %v4872_v16 = vmul.f32 %v4856_v50, %v4808_v34  ;;  %9964 = verf.f32 %v4828_v45  ;;  %v4888_v39 = vpack.c.bf16 %v4874_v28, %v4873_v35  ;;  %v16299_v45 = vld [vmem:[#allocation69_spill] sm:$0xff] }
 0xa0f   : > { %v4887_v17 = vpack.c.bf16 %v4872_v16, %v4871_v11  ;;  %v16300_v11 = vld [vmem:[#allocation141_spill] sm:$0xff] }
 0xa11   : > { %9097 = vmatprep.mubr.bf16.mxu1 %v4887_v17  ;;  %v16301_v17 = vld [vmem:[#allocation66_spill] sm:$0xff] }
 0xa12   : > { %v9075_v37 = vpop.f32.mrf.mxu0  ;;  %9098 = vmatmul.mubr.bf16.vlgmr.msra.gmra.mxu1 %v4888_v39 }
 0xa13   : > { %v13846_v52 = vadd.f32 %v9075_v37, %v13832_v60  ;;  %8666 = vmatpush3.bf16.msra.mxu1 %v16295_v55  ;;  %v16303_v55 = vld [vmem:[#allocation63_spill] sm:$0xff] }
 0xa14   : > { %8667 = vmatprep.subr.bf16.mxu1 %v16296_v22  ;;  %v4776_v62 = vpop.f32.mrf.mxu0  ;;  %v9959_v1 = vpop.eup %9958  ;;  %v16304_v22 = vld [vmem:[#allocation86_spill] sm:$0xff] }
 0xa15   : > { %v4777_v29 = vadd.f32 %v13832_v60, %v4776_v62  ;;  %v4833_v43 = vmul.f32 0.70710677, %v13846_v52  ;;  %v4861_v32 = vadd.f32 1.0, %v9959_v1 }
 0xa16   : > { %v9076_v14 = vpop.f32.mrf.mxu0  ;;  %v9961_v58 = vpop.eup %9960 }
 0xa17   : > { %v4831_v53 = vmul.f32 0.70710677, %v4777_v29  ;;  %8668 = vmatpush3.bf16.msra.mxu1 %v16297_v49  ;;  %v4788_v44 = vadd.f32 %v9076_v14, %v13832_v60  ;;  %v4859_v46 = vadd.f32 1.0, %v9961_v58  ;;  %v4877_v35 = vmul.f32 %v4861_v32, %v4813_v36  ;;  %v16305_v49 = vld [vmem:[#allocation60_spill] sm:$0xff] }
 0xa18   : > { %8669 = vmatprep.subr.bf16.mxu1 %v16298_v2  ;;  %v4779_v21 = vpop.f32.mrf.mxu0  ;;  %v9963_v63 = vpop.eup %9962 }
 0xa19   : > { %9966 = verf.f32 %v4831_v53  ;;  %v4780_v33 = vadd.f32 %v13832_v60, %v4779_v21  ;;  %v4862_v30 = vadd.f32 1.0, %v9963_v63  ;;  %v4834_v54 = vmul.f32 0.70710677, %v4788_v44  ;;  %v16306_v63 = vld [vmem:[#allocation82_spill] sm:$0xff] }
 0xa1a   : > { %v9965_v24 = vpop.eup %9964  ;;  %9968 = verf.f32 %v4833_v43  ;;  %v4875_v9 = vmul.f32 %v4859_v46, %v4811_v41  ;;  %v4818_v32 = vmul.f32 0.5, %v4788_v44 }
 0xa1b   : > { %v4860_v34 = vadd.f32 1.0, %v9965_v24  ;;  %v4832_v50 = vmul.f32 0.70710677, %v4780_v33  ;;  %8670 = vmatpush3.bf16.msra.mxu1 %v16299_v45  ;;  %v4878_v28 = vmul.f32 %v4862_v30, %v4814_v26  ;;  %9970 = verf.f32 %v4834_v54 }
 0xa1c   : > { %8671 = vmatprep.subr.bf16.mxu1 %v16300_v11  ;;  %v4815_v26 = vmul.f32 0.5, %v4777_v29  ;;  %v4817_v11 = vmul.f32 0.5, %v13846_v52  ;;  %v16308_v29 = vld [vmem:[#allocation78_spill] sm:$0xff] }
 0xa1d   : > { %v4876_v16 = vmul.f32 %v4860_v34, %v4812_v47  ;;  %9972 = verf.f32 %v4832_v50  ;;  %v4890_v37 = vpack.c.bf16 %v4878_v28, %v4877_v35  ;;  %v4816_v50 = vmul.f32 0.5, %v4780_v33  ;;  %v16307_v28 = vld [vmem:[#allocation57_spill] sm:$0xff] }
 0xa1f   : > { %8672 = vmatpush3.bf16.msra.mxu1 %v16301_v17  ;;  %v4889_v39 = vpack.c.bf16 %v4876_v16, %v4875_v9 }
 0xa20   : > { %8673 = vmatprep.subr.bf16.mxu1 %v16302_v7  ;;  %v16310_v7 = vld [vmem:[#allocation161_spill] sm:$0xff] }
 0xa21   : > { %9101 = vmatprep.mubr.bf16.mxu1 %v4889_v39  ;;  %v16309_v39 = vld [vmem:[#allocation54_spill] sm:$0xff] }
 0xa22   : > { %9102 = vmatmul.mubr.bf16.gmra.mxu1 %v4890_v37  ;;  %v9079_v3 = vpop.f32.mrf.mxu0 }
 0xa23   : > { %8674 = vmatpush3.bf16.msra.mxu1 %v16303_v55  ;;  %v4801_v48 = vadd.f32 %v9079_v3, %v13832_v60 }
 0xa24   : > { %8675 = vmatprep.subr.bf16.mxu1 %v16304_v22  ;;  %v4792_v62 = vpop.f32.mrf.mxu0 }
 0xa25   : > { %v4837_v43 = vmul.f32 0.70710677, %v4801_v48  ;;  %v4793_v14 = vadd.f32 %v13832_v60, %v4792_v62 }
 0xa26   : > { %v9967_v1 = vpop.eup %9966  ;;  %v9080_v53 = vpop.f32.mrf.mxu0 }
 0xa27   : > { %v9969_v58 = vpop.eup %9968  ;;  %8676 = vmatpush3.bf16.msra.mxu1 %v16305_v49  ;;  %v4835_v2 = vmul.f32 0.70710677, %v4793_v14  ;;  %v4804_v21 = vadd.f32 %v9080_v53, %v13832_v60  ;;  %v4863_v24 = vadd.f32 1.0, %v9967_v1  ;;  %9974 = verf.f32 %v4837_v43 }
 0xa28   : > { %8677 = vmatprep.subr.bf16.mxu1 %v16306_v63  ;;  %v9971_v46 = vpop.eup %9970  ;;  %v4795_v30 = vpop.f32.mrf.mxu0  ;;  %v4865_v41 = vadd.f32 1.0, %v9969_v58 }
 0xa29   : > { %v4866_v47 = vadd.f32 1.0, %v9971_v46  ;;  %v4838_v34 = vmul.f32 0.70710677, %v4804_v21  ;;  %9976 = verf.f32 %v4835_v2  ;;  %v4796_v36 = vadd.f32 %v13832_v60, %v4795_v30 }
 0xa2a   : > { %v9973_v54 = vpop.eup %9972  ;;  %v4879_v44 = vmul.f32 %v4863_v24, %v4815_v26  ;;  %v4881_v17 = vmul.f32 %v4865_v41, %v4817_v11  ;;  %v4822_v26 = vmul.f32 0.5, %v4804_v21  ;;  %v4819_v24 = vmul.f32 0.5, %v4793_v14 }
 0xa2b   : > { %v4864_v45 = vadd.f32 1.0, %v9973_v54  ;;  %8678 = vmatpush3.bf16.msra.mxu1 %v16307_v28  ;;  %v4882_v9 = vmul.f32 %v4866_v47, %v4818_v32  ;;  %9978 = verf.f32 %v4838_v34  ;;  %v4836_v35 = vmul.f32 0.70710677, %v4796_v36 }
 0xa2c   : > { %8679 = vmatprep.subr.bf16.mxu1 %v16308_v29  ;;  %v4820_v32 = vmul.f32 0.5, %v4796_v36  ;;  %v4821_v41 = vmul.f32 0.5, %v4801_v48 }
 0xa2d   : > { %v4880_v16 = vmul.f32 %v4864_v45, %v4816_v50  ;;  %9980 = verf.f32 %v4836_v35  ;;  %v4892_v37 = vpack.c.bf16 %v4882_v9, %v4881_v17 }
 0xa2f   : > { %8680 = vmatpush3.bf16.msra.mxu1 %v16309_v39  ;;  %v4891_v33 = vpack.c.bf16 %v4880_v16, %v4879_v44 }
 0xa30   : > { %9233 = vmatprep.subr.msk.bf16.mxu1 %vm2049_vm0, %v16310_v7 }
 0xa31   : > { %9105 = vmatprep.mubr.bf16.mxu1 %v4891_v33 }
 0xa32   : > { %9106 = vmatmul.mubr.bf16.gmra.mxu1 %v4892_v37  ;;  %v13875_v60 = vpop.f32.mrf.mxu0 }
 0xa34   : > { %v13877_v52 = vpop.f32.mrf.mxu0  ;;  %v9975_v55 = vpop.eup %9974 }
 0xa35   : > { %v5264_v3 = vmax.f32 %v13875_v60, %v13877_v52  ;;  %v4869_v46 = vadd.f32 1.0, %v9975_v55 }
 0xa36   : > { %v13881_v22 = vpop.f32.mrf.mxu0  ;;  %v9977_v62 = vpop.eup %9976 }
 0xa37   : > { %5265 = vmax.xlane.f32.xlu0 %v5264_v3  ;;  %v4867_v49 = vadd.f32 1.0, %v9977_v62  ;;  %v4885_v11 = vmul.f32 %v4869_v46, %v4821_v41 }
 0xa38   : > { %v9979_v1 = vpop.eup %9978  ;;  %v13883_v43 = vpop.f32.mrf.mxu0 }
 0xa39   : > { %v4870_v58 = vadd.f32 1.0, %v9979_v1  ;;  %v5267_v53 = vmax.f32 %v13881_v22, %v13883_v43  ;;  %v4883_v50 = vmul.f32 %v4867_v49, %v4819_v24 }
 0xa3a   : > { %v13887_v2 = vpop.f32.mrf.mxu0  ;;  %v9981_v63 = vpop.eup %9980 }
 0xa3b   : > { %5268 = vmax.xlane.f32.xlu1 %v5267_v53  ;;  %v4868_v30 = vadd.f32 1.0, %v9981_v63  ;;  %v4886_v47 = vmul.f32 %v4870_v58, %v4822_v26 }
 0xa3c   : > { %v13889_v54 = vpop.f32.mrf.mxu0 }
 0xa3d   : > { %v5270_v34 = vmax.f32 %v13887_v2, %v13889_v54  ;;  %v4884_v45 = vmul.f32 %v4868_v30, %v4820_v32  ;;  %v4894_v29 = vpack.c.bf16 %v4886_v47, %v4885_v11 }
 0xa3e   : > { %v13893_v28 = vpop.f32.mrf.mxu0 }
 0xa3f   : > { %5271 = vmax.xlane.f32.xlu0 %v5270_v34  ;;  %v4893_v21 = vpack.c.bf16 %v4884_v45, %v4883_v50 }
 0xa40   : > { %v13895_v9 = vpop.f32.mrf.mxu0 }
 0xa41   : > { %v5273_v14 = vmax.f32 %v13893_v28, %v13895_v9  ;;  %9109 = vmatprep.mubr.bf16.mxu1 %v4893_v21 }
 0xa42   : > { %v13899_v36 = vpop.f32.mrf.mxu0  ;;  %9110 = vmatmul.mubr.bf16.gmra.mxu1 %v4894_v29 }
 0xa43   : > { %5274 = vmax.xlane.f32.xlu1 %v5273_v14 }
 0xa44   : > { %v13901_v48 = vpop.f32.mrf.mxu0 }
 0xa45   : > { %v5276_v44 = vmax.f32 %v13899_v36, %v13901_v48 }
 0xa46   : > { %v13905_v16 = vpop.f32.mrf.mxu0 }
 0xa47   : > { %5277 = vmax.xlane.f32.xlu0 %v5276_v44 }
 0xa48   : > { %v13907_v35 = vpop.f32.mrf.mxu0 }
 0xa49   : > { %v5279_v17 = vmax.f32 %v13905_v16, %v13907_v35 }
 0xa4a   : > { %v13911_v39 = vpop.f32.mrf.mxu0 }
 0xa4b   : > { %5280 = vmax.xlane.f32.xlu1 %v5279_v17 }
 0xa4c   : > { %v13913_v33 = vpop.f32.mrf.mxu0 }
 0xa4d   : > { %v5282_v37 = vmax.f32 %v13911_v39, %v13913_v33 }
 0xa4e   : > { %v13917_v7 = vpop.f32.mrf.mxu0 }
 0xa4f   : > { %5283 = vmax.xlane.f32.xlu0 %v5282_v37 }
 0xa50   : > { %v13919_v3 = vpop.f32.mrf.mxu0 }
 0xa51   : > { %v5285_v55 = vmax.f32 %v13917_v7, %v13919_v3 }
 0xa52   : > { %v13923_v62 = vpop.f32.mrf.mxu0 }
 0xa53   : > { %5286 = vmax.xlane.f32.xlu1 %v5285_v55 }
 0xa54   : > { %v13925_v1 = vpop.f32.mrf.mxu0 }
 0xa55   : > { %v5288_v58 = vmax.f32 %v13923_v62, %v13925_v1 }
 0xa56   : > { %v13929_v53 = vpop.f32.mrf.mxu0 }
 0xa57   : > { %5289 = vmax.xlane.f32.xlu0 %v5288_v58 }
 0xa58   : > { %v13931_v49 = vpop.f32.mrf.mxu0 }
 0xa59   : > { %v5291_v63 = vmax.f32 %v13929_v53, %v13931_v49 }
 0xa5a   : > { %v13935_v46 = vpop.f32.mrf.mxu0 }
 0xa5b   : > { %5292 = vmax.xlane.f32.xlu1 %v5291_v63 }
 0xa5c   : > { %v13937_v26 = vpop.f32.mrf.mxu0 }
 0xa5d   : > { %v5294_v24 = vmax.f32 %v13935_v46, %v13937_v26 }
 0xa5e   : > { %v13941_v32 = vpop.f32.mrf.mxu0 }
 0xa5f   : > { %5295 = vmax.xlane.f32.xlu0 %v5294_v24 }
 0xa60   : > { %v13943_v30 = vpop.f32.mrf.mxu0 }
 0xa61   : > { %v5297_v41 = vmax.f32 %v13941_v32, %v13943_v30 }
 0xa62   : > { %v13947_v47 = vpop.f32.mrf.mxu0 }
 0xa63   : > { %5298 = vmax.xlane.f32.xlu1 %v5297_v41 }
 0xa64   : > { %v13949_v34 = vpop.f32.mrf.mxu0 }
 0xa65   : > { %v5300_v50 = vmax.f32 %v13947_v47, %v13949_v34 }
 0xa66   : > { %v13953_v45 = vpop.f32.mrf.mxu0 }
 0xa67   : > { %5301 = vmax.xlane.f32.xlu0 %v5300_v50 }
 0xa68   : > { %v13955_v11 = vpop.f32.mrf.mxu0 }
 0xa69   : > { %v5303_v21 = vmax.f32 %v13953_v45, %v13955_v11 }
 0xa6a   : > { %v13959_v29 = vpop.f32.mrf.mxu0 }
 0xa6b   : > { %5304 = vmax.xlane.f32.xlu1 %v5303_v21 }
 0xa6c   : > { %v13961_v14 = vpop.f32.mrf.mxu0 }
 0xa6d   : > { %v5306_v44 = vmax.f32 %v13959_v29, %v13961_v14 }
 0xa6e   : > { %v13965_v17 = vpop.f32.mrf.mxu0 }
 0xa6f   : > { %5307 = vmax.xlane.f32.xlu0 %v5306_v44 }
 0xa70   : > { %v13967_v37 = vpop.f32.mrf.mxu0 }
 0xa71   : > { %v5309_v55 = vmax.f32 %v13965_v17, %v13967_v37 }
 0xa73   : > { %5310 = vmax.xlane.f32.xlu1 %v5309_v55 }
 0xa84   : > { %5627 = vrot.lane.b32.xlu1 %v16272_v51, %s10679_s2 }
 0xa85   : > { %5625 = vrot.lane.b32.xlu0 %v16268_v18, %s10679_s2 }
 0xa88   : > { %5629 = vrot.lane.b32.xlu1 %v16277_v56, %s10679_s2 }
 0xa89   : > { %5631 = vrot.lane.b32.xlu0 %v16282_v61, %s10679_s2 }
 0xa8c   : > { %5633 = vrot.lane.b32.xlu1 %v16287_v12, %s10679_s2 }
 0xa8d   : > { %5635 = vrot.lane.b32.xlu0 %v16292_v31, %s10679_s2 }
 0xa90   : > { %5637 = vrot.lane.b32.xlu1 %v16293_v38, %s10679_s2 }
 0xa91   : > { %5639 = vrot.lane.b32.xlu0 %v16294_v0, %s10679_s2 }
 0xa94   : > { %6131 = vrot.lane.b32.xlu1 %v16268_v18, %s10680_s3 }
 0xa95   : > { %6133 = vrot.lane.b32.xlu0 %v16272_v51, %s10680_s3 }
 0xa98   : > { %6135 = vrot.lane.b32.xlu1 %v16277_v56, %s10680_s3 }
 0xa99   : > { %6137 = vrot.lane.b32.xlu0 %v16282_v61, %s10680_s3 }
 0xa9c   : > { %6139 = vrot.lane.b32.xlu1 %v16287_v12, %s10680_s3 }
 0xa9d   : > { %6141 = vrot.lane.b32.xlu0 %v16292_v31, %s10680_s3 }
 0xaa0   : > { %6143 = vrot.lane.b32.xlu1 %v16293_v38, %s10680_s3 }
 0xaa1   : > { %6145 = vrot.lane.b32.xlu0 %v16294_v0, %s10680_s3  ;;  %s15420_s3 = scalar_lea.hbm %s15479_s13, %s8216_s27 }
 0xaa4   : > { %6637 = vrot.lane.b32.xlu1 %v16268_v18, %s10681_s23 }
 0xaa5   : > { %6639 = vrot.lane.b32.xlu0 %v16272_v51, %s10681_s23 }
 0xaa8   : > { %6641 = vrot.lane.b32.xlu1 %v16277_v56, %s10681_s23 }
 0xaa9   : > { %6643 = vrot.lane.b32.xlu0 %v16282_v61, %s10681_s23 }
 0xaac   : > { %6645 = vrot.lane.b32.xlu1 %v16287_v12, %s10681_s23 }
 0xaad   : > { %6647 = vrot.lane.b32.xlu0 %v16292_v31, %s10681_s23 }
 0xab0   : > { %6649 = vrot.lane.b32.xlu1 %v16293_v38, %s10681_s23 }
 0xab1   : > { %6651 = vrot.lane.b32.xlu0 %v16294_v0, %s10681_s23  ;;  %s7901_s23 = scalar_lea.sflag [#allocation4], %s10923_s20 }
 0xac0   : > { %v5266_v18 = vpop.xlane.xlu0 %5265 }
 0xac1   : > { %v5312_v51 = vsub.f32 %v13875_v60, %v5266_v18  ;;  %v5313_v56 = vsub.f32 %v13877_v52, %v5266_v18 }
 0xac3   : > { %v5344_v58 = vmul.f32 1.442695, %v5312_v51  ;;  %v5346_v63 = vmul.f32 1.442695, %v5313_v56 }
 0xac4   : > { %v5269_v61 = vpop.xlane.xlu1 %5268 }
 0xac5   : > { %9982 = vpow2.f32 %v5344_v58  ;;  %v5314_v12 = vsub.f32 %v13881_v22, %v5269_v61  ;;  %v5315_v24 = vsub.f32 %v13883_v43, %v5269_v61 }
 0xac6   : > { %9984 = vpow2.f32 %v5346_v63 }
 0xac7   : > { %v5348_v31 = vmul.f32 1.442695, %v5314_v12  ;;  %v5350_v41 = vmul.f32 1.442695, %v5315_v24 }
 0xac8   : > { %v5272_v38 = vpop.xlane.xlu0 %5271 }
 0xac9   : > { %9986 = vpow2.f32 %v5348_v31  ;;  %v5316_v0 = vsub.f32 %v13887_v2, %v5272_v38  ;;  %v5317_v50 = vsub.f32 %v13889_v54, %v5272_v38 }
 0xaca   : > { %9988 = vpow2.f32 %v5350_v41 }
 0xacb   : > { %v5352_v60 = vmul.f32 1.442695, %v5316_v0  ;;  %v5354_v52 = vmul.f32 1.442695, %v5317_v50 }
 0xacc   : > { %v5275_v21 = vpop.xlane.xlu1 %5274 }
 0xacd   : > { %9990 = vpow2.f32 %v5352_v60  ;;  %v5318_v44 = vsub.f32 %v13893_v28, %v5275_v21  ;;  %v5319_v22 = vsub.f32 %v13895_v9, %v5275_v21 }
 0xace   : > { %9992 = vpow2.f32 %v5354_v52 }
 0xacf   : > { %v5356_v43 = vmul.f32 1.442695, %v5318_v44  ;;  %v5358_v55 = vmul.f32 1.442695, %v5319_v22  ;;  %v16311_v22 = vld [vmem:[#allocation163_spill] sm:$0xff] }
 0xad0   : > { %v5278_v18 = vpop.xlane.xlu0 %5277 }
 0xad1   : > { %9994 = vpow2.f32 %v5356_v43  ;;  %v5320_v51 = vsub.f32 %v13899_v36, %v5278_v18  ;;  %v5321_v2 = vsub.f32 %v13901_v48, %v5278_v18  ;;  %v16312_v18 = vld [vmem:[#allocation159_spill] sm:$0xff] }
 0xad2   : > { %v9983_v56 = vpop.eup %9982  ;;  %9996 = vpow2.f32 %v5358_v55 }
 0xad3   : > { %v9985_v54 = vpop.eup %9984  ;;  %v5360_v58 = vmul.f32 1.442695, %v5320_v51  ;;  %v5362_v63 = vmul.f32 1.442695, %v5321_v2 }
 0xad4   : > { %v5281_v61 = vpop.xlane.xlu1 %5280  ;;  %v14029_v12 = vadd.f32 %v9985_v54, %v9983_v56 }
 0xad5   : > { %9998 = vpow2.f32 %v5360_v58  ;;  %v5322_v28 = vsub.f32 %v13905_v16, %v5281_v61  ;;  %v5323_v9 = vsub.f32 %v13907_v35, %v5281_v61 }
 0xad6   : > { %v9987_v24 = vpop.eup %9986  ;;  %10000 = vpow2.f32 %v5362_v63 }
 0xad7   : > { %v9989_v31 = vpop.eup %9988  ;;  %v5364_v41 = vmul.f32 1.442695, %v5322_v28  ;;  %v5366_v36 = vmul.f32 1.442695, %v5323_v9  ;;  %v5456_v38 = vpack.c.bf16 %v9987_v24, %v9983_v56 }
 0xad8   : > { %v5284_v48 = vpop.xlane.xlu0 %5283  ;;  %v5457_v0 = vpack.c.bf16 %v9989_v31, %v9985_v54  ;;  %v14033_v50 = vadd.f32 %v9989_v31, %v9987_v24 }
 0xad9   : > { %10002 = vpow2.f32 %v5364_v41  ;;  %v5324_v60 = vsub.f32 %v13911_v39, %v5284_v48  ;;  %v5325_v52 = vsub.f32 %v13913_v33, %v5284_v48 }
 0xada   : > { %v9991_v21 = vpop.eup %9990  ;;  %10004 = vpow2.f32 %v5366_v36  ;;  %5504 = vmatprep.mubr.bf16.mxu1 %v5457_v0  ;;  %v16313_v36 = vld [vmem:[#allocation167_spill] sm:$0xff]  ;;  %v16314_v0 = vld [vmem:[#allocation164_spill] sm:$0xff] }
 0xadb   : > { %v9993_v16 = vpop.eup %9992  ;;  %v5368_v35 = vmul.f32 1.442695, %v5324_v60  ;;  %v5370_v44 = vmul.f32 1.442695, %v5325_v52  ;;  %5505 = vmatmul.mubr.bf16.vlgmr.msra.gmra.mxu1 %v5456_v38 }
 0xadc   : > { %8730 = vmatpush3.bf16.xpose.msra.mxu1 %v16311_v22  ;;  %v5287_v43 = vpop.xlane.xlu1 %5286  ;;  %v14038_v55 = vadd.f32 %v9993_v16, %v9991_v21 }
 0xadd   : > { %10006 = vpow2.f32 %v5368_v35  ;;  %9234 = vmatprep.subr.msk.bf16.mxu1 %vm2049_vm0, %v16312_v18  ;;  %v5326_v39 = vsub.f32 %v13917_v7, %v5287_v43  ;;  %v5327_v33 = vsub.f32 %v13919_v3, %v5287_v43 }
 0xade   : > { %v9995_v51 = vpop.eup %9994  ;;  %10008 = vpow2.f32 %v5370_v44 }
 0xadf   : > { %v9997_v2 = vpop.eup %9996  ;;  %v5372_v56 = vmul.f32 1.442695, %v5326_v39  ;;  %v5374_v54 = vmul.f32 1.442695, %v5327_v33  ;;  %v5458_v58 = vpack.c.bf16 %v9995_v51, %v9991_v21 }
 0xae0   : > { %v5290_v63 = vpop.xlane.xlu0 %5289  ;;  %v5459_v61 = vpack.c.bf16 %v9997_v2, %v9993_v16  ;;  %v14044_v28 = vadd.f32 %v9997_v2, %v9995_v51  ;;  %v16315_v2 = vld [vmem:[#allocation170_spill] sm:$0xff] }
 0xae1   : > { %10010 = vpow2.f32 %v5372_v56  ;;  %v5328_v9 = vsub.f32 %v13923_v62, %v5290_v63  ;;  %v5329_v24 = vsub.f32 %v13925_v1, %v5290_v63 }
 0xae2   : > { %v9999_v31 = vpop.eup %9998  ;;  %10012 = vpow2.f32 %v5374_v54  ;;  %5512 = vmatprep.mubr.bf16.mxu1 %v5459_v61 }
 0xae3   : > { %v10001_v7 = vpop.eup %10000  ;;  %v5376_v3 = vmul.f32 1.442695, %v5328_v9  ;;  %v5378_v41 = vmul.f32 1.442695, %v5329_v24  ;;  %5513 = vmatmul.mubr.bf16.gmra.mxu1 %v5458_v58  ;;  %v16316_v58 = vld [vmem:[#allocation168_spill] sm:$0xff] }
 0xae4   : > { %8732 = vmatpush3.bf16.xpose.msra.mxu1 %v16313_v36  ;;  %v5293_v38 = vpop.xlane.xlu1 %5292  ;;  %v14049_v48 = vadd.f32 %v10001_v7, %v9999_v31 }
 0xae5   : > { %10014 = vpow2.f32 %v5376_v3  ;;  %9235 = vmatprep.subr.msk.bf16.mxu1 %vm2049_vm0, %v16314_v0  ;;  %v5330_v62 = vsub.f32 %v13929_v53, %v5293_v38  ;;  %v5331_v1 = vsub.f32 %v13931_v49, %v5293_v38 }
 0xae6   : > { %v10003_v60 = vpop.eup %10002  ;;  %10016 = vpow2.f32 %v5378_v41 }
 0xae7   : > { %v10005_v52 = vpop.eup %10004  ;;  %v5380_v21 = vmul.f32 1.442695, %v5330_v62  ;;  %v5382_v16 = vmul.f32 1.442695, %v5331_v1  ;;  %v5460_v35 = vpack.c.bf16 %v10003_v60, %v9999_v31  ;;  %v16317_v1 = vld [vmem:[#allocation172_spill] sm:$0xff] }
 0xae8   : > { %v5296_v44 = vpop.xlane.xlu0 %5295  ;;  %v5461_v22 = vpack.c.bf16 %v10005_v52, %v10001_v7  ;;  %v14055_v43 = vadd.f32 %v10005_v52, %v10003_v60 }
 0xae9   : > { %10018 = vpow2.f32 %v5380_v21  ;;  %v5332_v18 = vsub.f32 %v13935_v46, %v5296_v44  ;;  %v5333_v39 = vsub.f32 %v13937_v26, %v5296_v44  ;;  %v16319_v21 = vld [vmem:[#allocation169_spill] sm:$0xff] }
 0xaea   : > { %v10007_v33 = vpop.eup %10006  ;;  %10020 = vpow2.f32 %v5382_v16  ;;  %5520 = vmatprep.mubr.bf16.mxu1 %v5461_v22 }
 0xaeb   : > { %v10009_v53 = vpop.eup %10008  ;;  %v5384_v49 = vmul.f32 1.442695, %v5332_v18  ;;  %v5386_v51 = vmul.f32 1.442695, %v5333_v39  ;;  %5521 = vmatmul.mubr.bf16.gmra.mxu1 %v5460_v35 }
 0xaec   : > { %8734 = vmatpush3.bf16.xpose.msra.mxu1 %v16315_v2  ;;  %v5299_v56 = vpop.xlane.xlu1 %5298  ;;  %v14060_v54 = vadd.f32 %v10009_v53, %v10007_v33 }
 0xaed   : > { %10022 = vpow2.f32 %v5384_v49  ;;  %9236 = vmatprep.subr.msk.bf16.mxu1 %vm2049_vm0, %v16316_v58  ;;  %v5334_v46 = vsub.f32 %v13941_v32, %v5299_v56  ;;  %v5335_v26 = vsub.f32 %v13943_v30, %v5299_v56  ;;  %v16321_v58 = vld [vmem:[#allocation174_spill] sm:$0xff] }
 0xaee   : > { %v10011_v63 = vpop.eup %10010  ;;  %10024 = vpow2.f32 %v5386_v51 }
 0xaef   : > { %v10013_v61 = vpop.eup %10012  ;;  %v5388_v9 = vmul.f32 1.442695, %v5334_v46  ;;  %v5390_v24 = vmul.f32 1.442695, %v5335_v26  ;;  %v5462_v31 = vpack.c.bf16 %v10011_v63, %v10007_v33 }
 0xaf0   : > { %v5302_v7 = vpop.xlane.xlu0 %5301  ;;  %v5463_v3 = vpack.c.bf16 %v10013_v61, %v10009_v53  ;;  %v14066_v41 = vadd.f32 %v10013_v61, %v10011_v63  ;;  %v16323_v63 = vld [vmem:[#allocation171_spill] sm:$0xff] }
 0xaf1   : > { %10026 = vpow2.f32 %v5388_v9  ;;  %v5336_v36 = vsub.f32 %v13947_v47, %v5302_v7  ;;  %v5337_v38 = vsub.f32 %v13949_v34, %v5302_v7 }
 0xaf2   : > { %v10015_v0 = vpop.eup %10014  ;;  %10028 = vpow2.f32 %v5390_v24  ;;  %5528 = vmatprep.mubr.bf16.mxu1 %v5463_v3 }
 0xaf3   : > { %v10017_v32 = vpop.eup %10016  ;;  %v5392_v30 = vmul.f32 1.442695, %v5336_v36  ;;  %v5394_v62 = vmul.f32 1.442695, %v5337_v38  ;;  %5529 = vmatmul.mubr.bf16.gmra.mxu1 %v5462_v31 }
 0xaf4   : > { %8736 = vmatpush3.bf16.xpose.msra.mxu1 %v16317_v1  ;;  %v5305_v60 = vpop.xlane.xlu1 %5304  ;;  %v14071_v52 = vadd.f32 %v10017_v32, %v10015_v0 }
 0xaf5   : > { %10030 = vpow2.f32 %v5392_v30  ;;  %9237 = vmatprep.subr.msk.bf16.mxu1 %vm2049_vm0, %v16319_v21  ;;  %v5338_v47 = vsub.f32 %v13953_v45, %v5305_v60  ;;  %v5339_v34 = vsub.f32 %v13955_v11, %v5305_v60 }
 0xaf6   : > { %16318 = vst [vmem:[#allocation147_spill] sm:$0xff] %v14071_v52  ;;  %v10019_v16 = vpop.eup %10018  ;;  %10032 = vpow2.f32 %v5394_v62 }
 0xaf7   : > { %v10021_v35 = vpop.eup %10020  ;;  %v5396_v44 = vmul.f32 1.442695, %v5338_v47  ;;  %v5398_v22 = vmul.f32 1.442695, %v5339_v34  ;;  %v5464_v18 = vpack.c.bf16 %v10019_v16, %v10015_v0 }
 0xaf8   : > { %v5308_v39 = vpop.xlane.xlu0 %5307  ;;  %v5465_v33 = vpack.c.bf16 %v10021_v35, %v10017_v32  ;;  %v14077_v53 = vadd.f32 %v10021_v35, %v10019_v16  ;;  %v16325_v32 = vld [vmem:[#allocation176_spill] sm:$0xff]  ;;  %v16329_v16 = vld [vmem:[#allocation178_spill] sm:$0xff] }
 0xaf9   : > { %10034 = vpow2.f32 %v5396_v44  ;;  %v5340_v49 = vsub.f32 %v13959_v29, %v5308_v39  ;;  %v5341_v51 = vsub.f32 %v13961_v14, %v5308_v39  ;;  %v16331_v44 = vld [vmem:[#allocation175_spill] sm:$0xff] }
 0xafa   : > { %16320 = vst [vmem:[#allocation226_spill] sm:$0xff] %v14077_v53  ;;  %v10023_v2 = vpop.eup %10022  ;;  %10036 = vpow2.f32 %v5398_v22  ;;  %5536 = vmatprep.mubr.bf16.mxu1 %v5465_v33 }
 0xafb   : > { %v10025_v45 = vpop.eup %10024  ;;  %v5400_v11 = vmul.f32 1.442695, %v5340_v49  ;;  %v5402_v56 = vmul.f32 1.442695, %v5341_v51  ;;  %5537 = vmatmul.mubr.bf16.gmra.mxu1 %v5464_v18 }
 0xafc   : > { %8738 = vmatpush3.bf16.xpose.msra.mxu1 %v16321_v58  ;;  %v5311_v46 = vpop.xlane.xlu1 %5310  ;;  %v14082_v26 = vadd.f32 %v10025_v45, %v10023_v2  ;;  %v5626_v51 = vpop.permute.xlu0 %5625  ;;  %v16336_v58 = vld [vmem:[#allocation179_spill] sm:$0xff] }
 0xafd   : > { %10038 = vpow2.f32 %v5400_v11  ;;  %9238 = vmatprep.subr.msk.bf16.mxu1 %vm2049_vm0, %v16323_v63  ;;  %v5342_v29 = vsub.f32 %v13965_v17, %v5311_v46  ;;  %v5343_v14 = vsub.f32 %v13967_v37, %v5311_v46  ;;  %v16327_v37 = vld [vmem:[#allocation173_spill] sm:$0xff]  ;;  %v16337_v63 = vld [vmem:[#allocation184_spill] sm:$0xff] }
 0xafe   : > { %16322 = vst [vmem:[#allocation227_spill] sm:$0xff] %v14082_v26  ;;  %v10027_v61 = vpop.eup %10026  ;;  %10040 = vpow2.f32 %v5402_v56  ;;  %v16335_v56 = vld [vmem:[#allocation182_spill] sm:$0xff] }
 0xaff   : > { %v10029_v9 = vpop.eup %10028  ;;  %v5404_v24 = vmul.f32 1.442695, %v5342_v29  ;;  %v5406_v31 = vmul.f32 1.442695, %v5343_v14  ;;  %v5466_v7 = vpack.c.bf16 %v10027_v61, %v10023_v2  ;;  %v16333_v2 = vld [vmem:[#allocation180_spill] sm:$0xff]  ;;  %v16338_v29 = vld [vmem:[#allocation181_spill] sm:$0xff] }
 0xb00   : > { %v5467_v3 = vpack.c.bf16 %v10029_v9, %v10025_v45  ;;  %v14088_v36 = vadd.f32 %v10029_v9, %v10027_v61  ;;  %v16334_v45 = vld [vmem:[#allocation177_spill] sm:$0xff]  ;;  %v5628_v11 = vpop.permute.xlu1 %5627  ;;  %v5632_v14 = vpop.permute.xlu0 %5631  ;;  %v16339_v61 = vld [vmem:[#allocation186_spill] sm:$0xff]  ;;  %v16340_v9 = vld [vmem:[#allocation183_spill] sm:$0xff] }
 0xb01   : > { %10042 = vpow2.f32 %v5404_v24 }
 0xb02   : > { %16324 = vst [vmem:[#allocation110_spill] sm:$0xff] %v14088_v36  ;;  %v10031_v38 = vpop.eup %10030  ;;  %10044 = vpow2.f32 %v5406_v31  ;;  %5544 = vmatprep.mubr.bf16.mxu1 %v5467_v3  ;;  %v16341_v31 = vld [vmem:[#allocation188_spill] sm:$0xff] }
 0xb03   : > { %v10033_v0 = vpop.eup %10032  ;;  %5545 = vmatmul.mubr.bf16.gmra.mxu1 %v5466_v7  ;;  %v16342_v7 = vld [vmem:[#allocation185_spill] sm:$0xff] }
 0xb04   : > { %8740 = vmatpush3.bf16.xpose.msra.mxu1 %v16325_v32  ;;  %v14091_v17 = vadd.f32 %v10033_v0, %v10031_v38  ;;  %v5630_v46 = vpop.permute.xlu1 %5629  ;;  %v5636_v3 = vpop.permute.xlu0 %5635 }
 0xb05   : > { %9239 = vmatprep.subr.msk.bf16.mxu1 %vm2049_vm0, %v16327_v37  ;;  %v16345_v37 = vld [vmem:[#allocation191_spill] sm:$0xff] }
 0xb06   : > { %16326 = vst [vmem:[#allocation113_spill] sm:$0xff] %v14091_v17  ;;  %v10035_v30 = vpop.eup %10034 }
 0xb07   : > { %v10037_v62 = vpop.eup %10036  ;;  %v5468_v1 = vpack.c.bf16 %v10035_v30, %v10031_v38  ;;  %v16343_v38 = vld [vmem:[#allocation189_spill] sm:$0xff] }
 0xb08   : > { %v5469_v60 = vpack.c.bf16 %v10037_v62, %v10033_v0  ;;  %v14095_v21 = vadd.f32 %v10037_v62, %v10035_v30  ;;  %v5634_v24 = vpop.permute.xlu1 %5633  ;;  %v16344_v0 = vld [vmem:[#allocation187_spill] sm:$0xff]  ;;  %v16346_v30 = vld [vmem:[#allocation190_spill] sm:$0xff]  ;;  %v5640_v62 = vpop.permute.xlu0 %5639 }
 0xb0a   : > { %16328 = vst [vmem:[#allocation140_spill] sm:$0xff] %v14095_v21  ;;  %v10039_v47 = vpop.eup %10038  ;;  %5552 = vmatprep.mubr.bf16.mxu1 %v5469_v60  ;;  %v16348_v60 = vld [vmem:[#allocation192_spill] sm:$0xff] }
 0xb0b   : > { %v10041_v34 = vpop.eup %10040  ;;  %5553 = vmatmul.mubr.bf16.gmra.mxu1 %v5468_v1  ;;  %v16347_v1 = vld [vmem:[#allocation193_spill] sm:$0xff] }
 0xb0c   : > { %8742 = vmatpush3.bf16.xpose.msra.mxu1 %v16329_v16  ;;  %v14098_v35 = vadd.f32 %v10041_v34, %v10039_v47  ;;  %v5638_v32 = vpop.permute.xlu1 %5637  ;;  %v16350_v16 = vld [vmem:[#allocation194_spill] sm:$0xff] }
 0xb0d   : > { %9240 = vmatprep.subr.msk.bf16.mxu1 %vm2049_vm0, %v16331_v44  ;;  %v6134_v44 = vpop.permute.xlu0 %6133 }
 0xb0e   : > { %16330 = vst [vmem:[#allocation143_spill] sm:$0xff] %v14098_v35  ;;  %v10043_v22 = vpop.eup %10042 }
 0xb0f   : > { %v10045_v18 = vpop.eup %10044  ;;  %v5470_v39 = vpack.c.bf16 %v10043_v22, %v10039_v47 }
 0xb10   : > { %v5471_v33 = vpack.c.bf16 %v10045_v18, %v10041_v34  ;;  %v14102_v49 = vadd.f32 %v10045_v18, %v10043_v22  ;;  %v6132_v47 = vpop.permute.xlu1 %6131  ;;  %v16349_v34 = vld [vmem:[#allocation195_spill] sm:$0xff]  ;;  %v16351_v22 = vld [vmem:[#allocation197_spill] sm:$0xff]  ;;  %v16352_v18 = vld [vmem:[#allocation196_spill] sm:$0xff] }
 0xb12   : > { %16332 = vst [vmem:[#allocation228_spill] sm:$0xff] %v14102_v49  ;;  %5560 = vmatprep.mubr.bf16.mxu1 %v5471_v33 }
 0xb13   : > { %5561 = vmatmul.mubr.bf16.gmra.mxu1 %v5470_v39  ;;  %v14153_v39 = vpop.f32.mrf.mxu1 }
 0xb14   : > { %8744 = vmatpush3.bf16.xpose.msra.mxu1 %v16333_v2  ;;  %8745 = vmatprep.mubr.msk.bf16.mxu1 %vm2049_vm0, %v5626_v51  ;;  %16353 = vst [vmem:[#allocation229_spill] sm:$0xff] %v14153_v39  ;;  %v6136_v33 = vpop.permute.xlu1 %6135  ;;  %v16355_v2 = vld [vmem:[#allocation198_spill] sm:$0xff] }
 0xb15   : > { %9241 = vmatprep.subr.msk.bf16.mxu1 %vm2049_vm0, %v16334_v45  ;;  %v14160_v45 = vpop.f32.mrf.mxu1 }
 0xb16   : > { %16356 = vst [vmem:[#allocation104_spill] sm:$0xff] %v14160_v45 }
 0xb1b   : > { %8746 = vmatmul.mubr.msk.bf16.vlgmr.msra.gmra.mxu1 %vm2049_vm0, %v5626_v51  ;;  %v16354_v51 = vld [vmem:[#allocation199_spill] sm:$0xff] }
 0xb1c   : > { %8826 = vmatpush3.bf16.xpose.msra.mxu1 %v16335_v56  ;;  %8747 = vmatprep.mubr.msk.bf16.mxu1 %vm2049_vm0, %v5628_v11  ;;  %v6138_v56 = vpop.permute.xlu0 %6137 }
 0xb1d   : > { %9242 = vmatprep.subr.msk.bf16.mxu1 %vm2049_vm0, %v16336_v58  ;;  %v16358_v58 = vld [vmem:[#allocation201_spill] sm:$0xff] }
 0xb23   : > { %8748 = vmatmul.mubr.msk.bf16.gmra.mxu1 %vm2049_vm0, %v5628_v11  ;;  %v14162_v11 = vpop.f32.mrf.mxu1 }
 0xb24   : > { %8828 = vmatpush3.bf16.xpose.msra.mxu1 %v16337_v63  ;;  %8749 = vmatprep.mubr.msk.bf16.mxu1 %vm2049_vm0, %v5630_v46  ;;  %16357 = vst [vmem:[#allocation108_spill] sm:$0xff] %v14162_v11 }
 0xb25   : > { %9243 = vmatprep.subr.msk.bf16.mxu1 %vm2049_vm0, %v16338_v29  ;;  %v14169_v63 = vpop.f32.mrf.mxu1 }
 0xb26   : > { %16360 = vst [vmem:[#allocation135_spill] sm:$0xff] %v14169_v63 }
 0xb27   : > { %v14171_v29 = vpop.f32.mrf.mxu1 }
 0xb28   : > { %16361 = vst [vmem:[#allocation138_spill] sm:$0xff] %v14171_v29 }
 0xb2b   : > { %8750 = vmatmul.mubr.msk.bf16.gmra.mxu1 %vm2049_vm0, %v5630_v46  ;;  %v16359_v46 = vld [vmem:[#allocation200_spill] sm:$0xff] }
 0xb2c   : > { %8830 = vmatpush3.bf16.xpose.msra.mxu1 %v16339_v61  ;;  %8751 = vmatprep.mubr.msk.bf16.mxu1 %vm2049_vm0, %v5632_v14  ;;  %v16362_v61 = vld [vmem:[#allocation203_spill] sm:$0xff] }
 0xb2d   : > { %9244 = vmatprep.subr.msk.bf16.mxu1 %vm2049_vm0, %v16340_v9  ;;  %v14176_v9 = vpop.f32.mrf.mxu1 }
 0xb2e   : > { %16363 = vst [vmem:[#allocation230_spill] sm:$0xff] %v14176_v9 }
 0xb33   : > { %8752 = vmatmul.mubr.msk.bf16.gmra.mxu1 %vm2049_vm0, %v5632_v14  ;;  %v6140_v14 = vpop.permute.xlu1 %6139 }
 0xb34   : > { %8832 = vmatpush3.bf16.xpose.msra.mxu1 %v16341_v31  ;;  %8753 = vmatprep.mubr.msk.bf16.mxu1 %vm2049_vm0, %v5634_v24  ;;  %v14180_v31 = vpop.f32.mrf.mxu1 }
 0xb35   : > { %9245 = vmatprep.subr.msk.bf16.mxu1 %vm2049_vm0, %v16342_v7  ;;  %16365 = vst [vmem:[#allocation231_spill] sm:$0xff] %v14180_v31  ;;  %v6142_v7 = vpop.permute.xlu0 %6141 }
 0xb3b   : > { %8754 = vmatmul.mubr.msk.bf16.gmra.mxu1 %vm2049_vm0, %v5634_v24  ;;  %v16364_v24 = vld [vmem:[#allocation202_spill] sm:$0xff] }
 0xb3c   : > { %8834 = vmatpush3.bf16.xpose.msra.mxu1 %v16343_v38  ;;  %8755 = vmatprep.mubr.msk.bf16.mxu1 %vm2049_vm0, %v5636_v3  ;;  %v14185_v38 = vpop.f32.mrf.mxu1 }
 0xb3d   : > { %9246 = vmatprep.subr.msk.bf16.mxu1 %vm2049_vm0, %v16344_v0  ;;  %16367 = vst [vmem:[#allocation98_spill] sm:$0xff] %v14185_v38  ;;  %v16368_v0 = vld [vmem:[#allocation204_spill] sm:$0xff] }
 0xb43   : > { %8756 = vmatmul.mubr.msk.bf16.gmra.mxu1 %vm2049_vm0, %v5636_v3  ;;  %v16366_v3 = vld [vmem:[#allocation205_spill] sm:$0xff] }
 0xb44   : > { %8836 = vmatpush3.bf16.xpose.msra.mxu1 %v16345_v37  ;;  %8757 = vmatprep.mubr.msk.bf16.mxu1 %vm2049_vm0, %v5638_v32 }
 0xb45   : > { %9247 = vmatprep.subr.msk.bf16.mxu1 %vm2049_vm0, %v16346_v30  ;;  %v6144_v30 = vpop.permute.xlu1 %6143 }
 0xb4b   : > { %8758 = vmatmul.mubr.msk.bf16.gmra.mxu1 %vm2049_vm0, %v5638_v32  ;;  %v14189_v32 = vpop.f32.mrf.mxu1 }
 0xb4c   : > { %8838 = vmatpush3.bf16.xpose.msra.mxu1 %v16347_v1  ;;  %8759 = vmatprep.mubr.msk.bf16.mxu1 %vm2049_vm0, %v5640_v62  ;;  %16369 = vst [vmem:[#allocation102_spill] sm:$0xff] %v14189_v32  ;;  %v16372_v1 = vld [vmem:[#allocation207_spill] sm:$0xff] }
 0xb4d   : > { %9248 = vmatprep.subr.msk.bf16.mxu1 %vm2049_vm0, %v16348_v60  ;;  %v14191_v37 = vpop.f32.mrf.mxu1 }
 0xb4e   : > { %16370 = vst [vmem:[#allocation232_spill] sm:$0xff] %v14191_v37 }
 0xb4f   : > { %v14198_v60 = vpop.f32.mrf.mxu1 }
 0xb50   : > { %16373 = vst [vmem:[#allocation233_spill] sm:$0xff] %v14198_v60 }
 0xb53   : > { %8760 = vmatmul.mubr.msk.bf16.gmra.mxu1 %vm2049_vm0, %v5640_v62  ;;  %v16371_v62 = vld [vmem:[#allocation206_spill] sm:$0xff] }
 0xb54   : > { %8840 = vmatpush3.bf16.xpose.msra.mxu1 %v16349_v34  ;;  %8841 = vmatprep.mubr.msk.bf16.mxu1 %vm2049_vm0, %v6132_v47  ;;  %v6146_v34 = vpop.permute.xlu0 %6145 }
 0xb55   : > { %9249 = vmatprep.subr.msk.bf16.mxu1 %vm2049_vm0, %v16350_v16  ;;  %v16375_v16 = vld [vmem:[#allocation208_spill] sm:$0xff] }
 0xb5b   : > { %8842 = vmatmul.mubr.msk.bf16.vlgmr.msra.gmra.mxu1 %vm2049_vm0, %v6132_v47  ;;  %v14200_v47 = vpop.f32.mrf.mxu1 }
 0xb5c   : > { %8922 = vmatpush3.bf16.xpose.msra.mxu1 %v16351_v22  ;;  %8843 = vmatprep.mubr.msk.bf16.mxu1 %vm2049_vm0, %v6134_v44  ;;  %16374 = vst [vmem:[#allocation234_spill] sm:$0xff] %v14200_v47  ;;  %v16377_v22 = vld [vmem:[#allocation209_spill] sm:$0xff] }
 0xb5d   : > { %9250 = vmatprep.subr.msk.bf16.mxu1 %vm2049_vm0, %v16352_v18 }
 0xb63   : > { %8844 = vmatmul.mubr.msk.bf16.gmra.mxu1 %vm2049_vm0, %v6134_v44  ;;  %v14205_v44 = vpop.f32.mrf.mxu1 }
 0xb64   : > { %8924 = vmatpush3.bf16.xpose.msra.mxu1 %v16354_v51  ;;  %8845 = vmatprep.mubr.msk.bf16.mxu1 %vm2049_vm0, %v6136_v33  ;;  %16376 = vst [vmem:[#allocation235_spill] sm:$0xff] %v14205_v44  ;;  %v16379_v51 = vld [vmem:[#allocation210_spill] sm:$0xff] }
 0xb65   : > { %9251 = vmatprep.subr.msk.bf16.mxu1 %vm2049_vm0, %v16355_v2  ;;  %v14209_v18 = vpop.f32.mrf.mxu1 }
 0xb66   : > { %16378 = vst [vmem:[#allocation236_spill] sm:$0xff] %v14209_v18 }
 0xb67   : > { %v14214_v2 = vpop.f32.mrf.mxu1 }
 0xb68   : > { %16380 = vst [vmem:[#allocation237_spill] sm:$0xff] %v14214_v2 }
 0xb6b   : > { %8846 = vmatmul.mubr.msk.bf16.gmra.mxu1 %vm2049_vm0, %v6136_v33  ;;  %v6638_v33 = vpop.permute.xlu1 %6637 }
 0xb6c   : > { %8926 = vmatpush3.bf16.xpose.msra.mxu1 %v16358_v58  ;;  %8847 = vmatprep.mubr.msk.bf16.mxu1 %vm2049_vm0, %v6138_v56  ;;  %v6640_v58 = vpop.permute.xlu0 %6639 }
 0xb6d   : > { %9252 = vmatprep.subr.msk.bf16.mxu1 %vm2049_vm0, %v16359_v46 }
 0xb73   : > { %8848 = vmatmul.mubr.msk.bf16.gmra.mxu1 %vm2049_vm0, %v6138_v56  ;;  %v14216_v56 = vpop.f32.mrf.mxu1 }
 0xb74   : > { %8928 = vmatpush3.bf16.xpose.msra.mxu1 %v16362_v61  ;;  %8849 = vmatprep.mubr.msk.bf16.mxu1 %vm2049_vm0, %v6140_v14  ;;  %16381 = vst [vmem:[#allocation238_spill] sm:$0xff] %v14216_v56 }
 0xb75   : > { %9253 = vmatprep.subr.msk.bf16.mxu1 %vm2049_vm0, %v16364_v24 }
 0xb7b   : > { %8850 = vmatmul.mubr.msk.bf16.gmra.mxu1 %vm2049_vm0, %v6140_v14 }
 0xb7c   : > { %8930 = vmatpush3.bf16.xpose.msra.mxu1 %v16366_v3  ;;  %8851 = vmatprep.mubr.msk.bf16.mxu1 %vm2049_vm0, %v6142_v7 }
 0xb7d   : > { %9254 = vmatprep.subr.msk.bf16.mxu1 %vm2049_vm0, %v16368_v0  ;;  %v6642_v0 = vpop.permute.xlu1 %6641 }
 0xb81   : > { %v6646_v57 = vpop.permute.xlu1 %6645 }
 0xb83   : > { %8852 = vmatmul.mubr.msk.bf16.gmra.mxu1 %vm2049_vm0, %v6142_v7 }
 0xb84   : > { %8932 = vmatpush3.bf16.xpose.msra.mxu1 %v16371_v62  ;;  %8853 = vmatprep.mubr.msk.bf16.mxu1 %vm2049_vm0, %v6144_v30 }
 0xb85   : > { %9255 = vmatprep.subr.msk.bf16.mxu1 %vm2049_vm0, %v16372_v1  ;;  %v6650_v23 = vpop.permute.xlu1 %6649 }
 0xb8b   : > { %8854 = vmatmul.mubr.msk.bf16.gmra.mxu1 %vm2049_vm0, %v6144_v30 }
 0xb8c   : > { %8934 = vmatpush3.bf16.xpose.msra.mxu1 %v16375_v16  ;;  %8855 = vmatprep.mubr.msk.bf16.mxu1 %vm2049_vm0, %v6146_v34 }
 0xb8d   : > { %9256 = vmatprep.subr.msk.bf16.mxu1 %vm2049_vm0, %v16377_v22 }
 0xb93   : > { %8856 = vmatmul.mubr.msk.bf16.gmra.mxu1 %vm2049_vm0, %v6146_v34 }
 0xb94   : > { %8936 = vmatpush3.bf16.xpose.msra.mxu1 %v16379_v51  ;;  %8937 = vmatprep.mubr.msk.bf16.mxu1 %vm2049_vm0, %v6638_v33 }
 0xb9b   : > { %v8681_v46 = vpop.f32.mrf.mxu1  ;;  %8938 = vmatmul.mubr.msk.bf16.vlgmr.msra.gmra.mxu1 %vm2049_vm0, %v6638_v33  ;;  %v6644_v33 = vpop.permute.xlu0 %6643 }
 0xb9c   : > { %8939 = vmatprep.mubr.msk.bf16.mxu1 %vm2049_vm0, %v6640_v58 }
 0xb9d   : > { %v8682_v14 = vpop.f32.mrf.mxu1 }
 0xb9e   : > { %v14220_v61 = vadd.f32 %v8682_v14, %v8681_v46 }
 0xb9f   : > { %v8684_v24 = vpop.f32.mrf.mxu1  ;;  %v6648_v25 = vpop.permute.xlu0 %6647 }
 0xba0   : > { %16382 = vst [vmem:[#allocation239_spill] sm:$0xff] %v14220_v61 }
 0xba1   : > { %v8685_v7 = vpop.f32.mrf.mxu1 }
 0xba2   : > { %v14222_v3 = vadd.f32 %v8685_v7, %v8684_v24 }
 0xba3   : > { %v8687_v30 = vpop.f32.mrf.mxu1  ;;  %8940 = vmatmul.mubr.msk.bf16.gmra.mxu1 %vm2049_vm0, %v6640_v58  ;;  %v6652_v44 = vpop.permute.xlu0 %6651 }
 0xba4   : > { %16383 = vst [vmem:[#allocation240_spill] sm:$0xff] %v14222_v3  ;;  %8941 = vmatprep.mubr.msk.bf16.mxu1 %vm2049_vm0, %v6642_v0 }
 0xba5   : > { %v8688_v62 = vpop.f32.mrf.mxu1 }
 0xba6   : > { %v14226_v1 = vadd.f32 %v8688_v62, %v8687_v30 }
 0xba7   : > { %v8690_v34 = vpop.f32.mrf.mxu1 }
 0xba8   : > { %16384 = vst [vmem:[#allocation241_spill] sm:$0xff] %v14226_v1 }
 0xba9   : > { %v8691_v16 = vpop.f32.mrf.mxu1 }
 0xbaa   : > { %v14228_v22 = vadd.f32 %v8691_v16, %v8690_v34 }
 0xbab   : > { %v8693_v51 = vpop.f32.mrf.mxu1  ;;  %8942 = vmatmul.mubr.msk.bf16.gmra.mxu1 %vm2049_vm0, %v6642_v0 }
 0xbac   : > { %16385 = vst [vmem:[#allocation242_spill] sm:$0xff] %v14228_v22  ;;  %8943 = vmatprep.mubr.msk.bf16.mxu1 %vm2049_vm0, %v6644_v33 }
 0xbad   : > { %v8694_v46 = vpop.f32.mrf.mxu1 }
 0xbae   : > { %v14232_v14 = vadd.f32 %v8694_v46, %v8693_v51 }
 0xbaf   : > { %v8696_v24 = vpop.f32.mrf.mxu1 }
 0xbb0   : > { %16386 = vst [vmem:[#allocation243_spill] sm:$0xff] %v14232_v14 }
 0xbb1   : > { %v8697_v58 = vpop.f32.mrf.mxu1 }
 0xbb2   : > { %v14234_v7 = vadd.f32 %v8697_v58, %v8696_v24 }
 0xbb3   : > { %v8699_v30 = vpop.f32.mrf.mxu1  ;;  %8944 = vmatmul.mubr.msk.bf16.gmra.mxu1 %vm2049_vm0, %v6644_v33 }
 0xbb4   : > { %16387 = vst [vmem:[#allocation244_spill] sm:$0xff] %v14234_v7  ;;  %8945 = vmatprep.mubr.msk.bf16.mxu1 %vm2049_vm0, %v6646_v57 }
 0xbb5   : > { %v8700_v62 = vpop.f32.mrf.mxu1 }
 0xbb6   : > { %v14238_v34 = vadd.f32 %v8700_v62, %v8699_v30 }
 0xbb7   : > { %v8702_v16 = vpop.f32.mrf.mxu1 }
 0xbb8   : > { %16388 = vst [vmem:[#allocation245_spill] sm:$0xff] %v14238_v34 }
 0xbb9   : > { %v8703_v0 = vpop.f32.mrf.mxu1 }
 0xbba   : > { %v14240_v2 = vadd.f32 %v8703_v0, %v8702_v16 }
 0xbbb   : > { %v8705_v51 = vpop.f32.mrf.mxu1  ;;  %8946 = vmatmul.mubr.msk.bf16.gmra.mxu1 %vm2049_vm0, %v6646_v57 }
 0xbbc   : > { %16389 = vst [vmem:[#allocation246_spill] sm:$0xff] %v14240_v2  ;;  %8947 = vmatprep.mubr.msk.bf16.mxu1 %vm2049_vm0, %v6648_v25 }
 0xbbd   : > { %v8706_v46 = vpop.f32.mrf.mxu1 }
 0xbbe   : > { %v14244_v24 = vadd.f32 %v8706_v46, %v8705_v51 }
 0xbbf   : > { %v14246_v58 = vpop.f32.mrf.mxu1 }
 0xbc0   : > { %16390 = vst [vmem:[#allocation247_spill] sm:$0xff] %v14244_v24  ;;  %16391 = vst [vmem:[#allocation248_spill] sm:$0xff] %v14246_v58 }
 0xbc1   : > { %v14248_v33 = vpop.f32.mrf.mxu1 }
 0xbc2   : > { %16392 = vst [vmem:[#allocation249_spill] sm:$0xff] %v14248_v33 }
 0xbc3   : > { %v8711_v30 = vpop.f32.mrf.mxu1  ;;  %8948 = vmatmul.mubr.msk.bf16.gmra.mxu1 %vm2049_vm0, %v6648_v25 }
 0xbc4   : > { %8949 = vmatprep.mubr.msk.bf16.mxu1 %vm2049_vm0, %v6650_v23 }
 0xbc5   : > { %v8712_v62 = vpop.f32.mrf.mxu1 }
 0xbc6   : > { %v14252_v16 = vadd.f32 %v8712_v62, %v8711_v30 }
 0xbc7   : > { %v14254_v0 = vpop.f32.mrf.mxu1 }
 0xbc8   : > { %16393 = vst [vmem:[#allocation250_spill] sm:$0xff] %v14252_v16  ;;  %16394 = vst [vmem:[#allocation251_spill] sm:$0xff] %v14254_v0 }
 0xbc9   : > { %v14256_v57 = vpop.f32.mrf.mxu1 }
 0xbca   : > { %16395 = vst [vmem:[#allocation252_spill] sm:$0xff] %v14256_v57 }
 0xbcb   : > { %v8717_v51 = vpop.f32.mrf.mxu1  ;;  %8950 = vmatmul.mubr.msk.bf16.gmra.mxu1 %vm2049_vm0, %v6650_v23 }
 0xbcc   : > { %8951 = vmatprep.mubr.msk.bf16.mxu1 %vm2049_vm0, %v6652_v44 }
 0xbcd   : > { %v8718_v46 = vpop.f32.mrf.mxu1 }
 0xbce   : > { %v14260_v56 = vadd.f32 %v8718_v46, %v8717_v51 }
 0xbcf   : > { %v14262_v19 = vpop.f32.mrf.mxu1 }
 0xbd0   : > { %16396 = vst [vmem:[#allocation253_spill] sm:$0xff] %v14260_v56  ;;  %16397 = vst [vmem:[#allocation212_spill] sm:$0xff] %v14262_v19 }
 0xbd1   : > { %v14264_v25 = vpop.f32.mrf.mxu1 }
 0xbd2   : > { %16398 = vst [vmem:[#allocation254_spill] sm:$0xff] %v14264_v25 }
 0xbd3   : > { %v8723_v18 = vpop.f32.mrf.mxu1  ;;  %8952 = vmatmul.mubr.msk.bf16.gmra.mxu1 %vm2049_vm0, %v6652_v44 }
 0xbd5   : > { %v8724_v30 = vpop.f32.mrf.mxu1 }
 0xbd6   : > { %v14267_v62 = vadd.f32 %v8724_v30, %v8723_v18 }
 0xbd7   : > { %v14269_v8 = vpop.f32.mrf.mxu1 }
 0xbd8   : > { %16399 = vst [vmem:[#allocation213_spill] sm:$0xff] %v14267_v62  ;;  %16400 = vst [vmem:[#allocation214_spill] sm:$0xff] %v14269_v8 }
 0xbd9   : > { %v14271_v60 = vpop.f32.mrf.mxu1 }
 0xbda   : > { %16401 = vst [vmem:[#allocation58_spill] sm:$0xff] %v14271_v60 }
 0xbdb   : > { %v14273_v23 = vpop.f32.mrf.mxu1 }
 0xbdd   : > { %v14275_v10 = vpop.f32.mrf.mxu1 }
 0xbde   : > { %v5778_v51 = vmax.f32 %v14273_v23, %v14275_v10 }
 0xbdf   : > { %v14279_v46 = vpop.f32.mrf.mxu1 }
 0xbe0   : > { %5779 = vmax.xlane.f32.xlu1 %v5778_v51 }
 0xbe1   : > { %v14281_v15 = vpop.f32.mrf.mxu1 }
 0xbe2   : > { %v5781_v44 = vmax.f32 %v14279_v46, %v14281_v15 }
 0xbe3   : > { %v14285_v18 = vpop.f32.mrf.mxu1 }
 0xbe4   : > { %5782 = vmax.xlane.f32.xlu0 %v5781_v44 }
 0xbe5   : > { %v14287_v30 = vpop.f32.mrf.mxu1 }
 0xbe6   : > { %v5784_v32 = vmax.f32 %v14285_v18, %v14287_v30 }
 0xbe7   : > { %v14291_v47 = vpop.f32.mrf.mxu1 }
 0xbe8   : > { %5785 = vmax.xlane.f32.xlu0 %v5784_v32 }
 0xbe9   : > { %v14293_v27 = vpop.f32.mrf.mxu1 }
 0xbea   : > { %v5787_v51 = vmax.f32 %v14291_v47, %v14293_v27 }
 0xbeb   : > { %v14297_v37 = vpop.f32.mrf.mxu1 }
 0xbec   : > { %5788 = vmax.xlane.f32.xlu1 %v5787_v51 }
 0xbed   : > { %v14299_v40 = vpop.f32.mrf.mxu1 }
 0xbee   : > { %v5790_v44 = vmax.f32 %v14297_v37, %v14299_v40 }
 0xbef   : > { %v14303_v31 = vpop.f32.mrf.mxu1 }
 0xbf0   : > { %5791 = vmax.xlane.f32.xlu0 %v5790_v44 }
 0xbf1   : > { %v14305_v42 = vpop.f32.mrf.mxu1 }
 0xbf2   : > { %v5793_v32 = vmax.f32 %v14303_v31, %v14305_v42 }
 0xbf3   : > { %v14309_v6 = vpop.f32.mrf.mxu1 }
 0xbf4   : > { %5794 = vmax.xlane.f32.xlu1 %v5793_v32 }
 0xbf5   : > { %v14311_v29 = vpop.f32.mrf.mxu1 }
 0xbf6   : > { %v5796_v51 = vmax.f32 %v14309_v6, %v14311_v29 }
 0xbf7   : > { %v14315_v38 = vpop.f32.mrf.mxu1 }
 0xbf8   : > { %5797 = vmax.xlane.f32.xlu0 %v5796_v51 }
 0xbf9   : > { %v14317_v59 = vpop.f32.mrf.mxu1 }
 0xbfa   : > { %v5799_v44 = vmax.f32 %v14315_v38, %v14317_v59 }
 0xbfb   : > { %v14321_v9 = vpop.f32.mrf.mxu1 }
 0xbfc   : > { %5800 = vmax.xlane.f32.xlu1 %v5799_v44 }
 0xbfd   : > { %v14323_v4 = vpop.f32.mrf.mxu1 }
 0xbfe   : > { %v5802_v32 = vmax.f32 %v14321_v9, %v14323_v4 }
 0xbff   : > { %v14327_v11 = vpop.f32.mrf.mxu1 }
 0xc00   : > { %5803 = vmax.xlane.f32.xlu0 %v5802_v32 }
 0xc01   : > { %v14329_v5 = vpop.f32.mrf.mxu1 }
 0xc02   : > { %v5805_v51 = vmax.f32 %v14327_v11, %v14329_v5 }
 0xc03   : > { %v14333_v20 = vpop.f32.mrf.mxu1 }
 0xc04   : > { %5806 = vmax.xlane.f32.xlu1 %v5805_v51 }
 0xc05   : > { %v14335_v39 = vpop.f32.mrf.mxu1 }
 0xc06   : > { %v5808_v44 = vmax.f32 %v14333_v20, %v14335_v39 }
 0xc07   : > { %v14339_v63 = vpop.f32.mrf.mxu1 }
 0xc08   : > { %5809 = vmax.xlane.f32.xlu0 %v5808_v44 }
 0xc09   : > { %v14341_v13 = vpop.f32.mrf.mxu1 }
 0xc0a   : > { %v5811_v32 = vmax.f32 %v14339_v63, %v14341_v13 }
 0xc0b   : > { %v14345_v45 = vpop.f32.mrf.mxu1 }
 0xc0c   : > { %5812 = vmax.xlane.f32.xlu1 %v5811_v32 }
 0xc0d   : > { %v14347_v60 = vpop.f32.mrf.mxu1 }
 0xc0e   : > { %v5814_v51 = vmax.f32 %v14345_v45, %v14347_v60 }
 0xc0f   : > { %v14351_v8 = vpop.f32.mrf.mxu1 }
 0xc10   : > { %5815 = vmax.xlane.f32.xlu0 %v5814_v51 }
 0xc11   : > { %v14353_v62 = vpop.f32.mrf.mxu1 }
 0xc12   : > { %v5817_v44 = vmax.f32 %v14351_v8, %v14353_v62 }
 0xc13   : > { %v14357_v25 = vpop.f32.mrf.mxu1 }
 0xc14   : > { %5818 = vmax.xlane.f32.xlu1 %v5817_v44 }
 0xc15   : > { %v14359_v19 = vpop.f32.mrf.mxu1 }
 0xc16   : > { %v5820_v32 = vmax.f32 %v14357_v25, %v14359_v19 }
 0xc17   : > { %v14363_v56 = vpop.f32.mrf.mxu1 }
 0xc18   : > { %5821 = vmax.xlane.f32.xlu0 %v5820_v32 }
 0xc19   : > { %v14365_v57 = vpop.f32.mrf.mxu1 }
 0xc1a   : > { %v5823_v51 = vmax.f32 %v14363_v56, %v14365_v57 }
 0xc1b   : > { %v14369_v0 = vpop.f32.mrf.mxu1 }
 0xc1c   : > { %5824 = vmax.xlane.f32.xlu1 %v5823_v51 }
 0xc1d   : > { %v14371_v16 = vpop.f32.mrf.mxu1 }
 0xc1e   : > { %v6284_v44 = vmax.f32 %v14369_v0, %v14371_v16 }
 0xc1f   : > { %v14375_v33 = vpop.f32.mrf.mxu1 }
 0xc20   : > { %6285 = vmax.xlane.f32.xlu0 %v6284_v44 }
 0xc21   : > { %v14377_v58 = vpop.f32.mrf.mxu1 }
 0xc22   : > { %v6287_v32 = vmax.f32 %v14375_v33, %v14377_v58 }
 0xc23   : > { %v14381_v24 = vpop.f32.mrf.mxu1 }
 0xc24   : > { %6288 = vmax.xlane.f32.xlu1 %v6287_v32 }
 0xc25   : > { %v14383_v2 = vpop.f32.mrf.mxu1 }
 0xc26   : > { %v6290_v51 = vmax.f32 %v14381_v24, %v14383_v2 }
 0xc27   : > { %v14387_v34 = vpop.f32.mrf.mxu1 }
 0xc28   : > { %6291 = vmax.xlane.f32.xlu0 %v6290_v51 }
 0xc29   : > { %v14389_v7 = vpop.f32.mrf.mxu1 }
 0xc2a   : > { %v6293_v44 = vmax.f32 %v14387_v34, %v14389_v7 }
 0xc2b   : > { %v14393_v14 = vpop.f32.mrf.mxu1 }
 0xc2c   : > { %6294 = vmax.xlane.f32.xlu1 %v6293_v44 }
 0xc2d   : > { %v14395_v22 = vpop.f32.mrf.mxu1 }
 0xc2e   : > { %v6296_v32 = vmax.f32 %v14393_v14, %v14395_v22 }
 0xc2f   : > { %v14399_v1 = vpop.f32.mrf.mxu1 }
 0xc30   : > { %16402 = vst [vmem:[#allocation255_spill] sm:$0xff] %v14399_v1  ;;  %6297 = vmax.xlane.f32.xlu0 %v6296_v32 }
 0xc31   : > { %v14401_v3 = vpop.f32.mrf.mxu1 }
 0xc32   : > { %16403 = vst [vmem:[#allocation256_spill] sm:$0xff] %v14401_v3  ;;  %v6299_v51 = vmax.f32 %v14399_v1, %v14401_v3 }
 0xc33   : > { %v14405_v61 = vpop.f32.mrf.mxu1 }
 0xc34   : > { %16404 = vst [vmem:[#allocation53_spill] sm:$0xff] %v14405_v61  ;;  %6300 = vmax.xlane.f32.xlu1 %v6299_v51 }
 0xc35   : > { %v14407_v49 = vpop.f32.mrf.mxu1 }
 0xc36   : > { %16405 = vst [vmem:[#allocation257_spill] sm:$0xff] %v14407_v49  ;;  %v6302_v44 = vmax.f32 %v14405_v61, %v14407_v49 }
 0xc37   : > { %v14411_v21 = vpop.f32.mrf.mxu1 }
 0xc38   : > { %16406 = vst [vmem:[#allocation258_spill] sm:$0xff] %v14411_v21  ;;  %6303 = vmax.xlane.f32.xlu0 %v6302_v44 }
 0xc39   : > { %v14413_v35 = vpop.f32.mrf.mxu1 }
 0xc3a   : > { %16407 = vst [vmem:[#allocation222_spill] sm:$0xff] %v14413_v35  ;;  %v6305_v32 = vmax.f32 %v14411_v21, %v14413_v35 }
 0xc3b   : > { %v14417_v36 = vpop.f32.mrf.mxu1 }
 0xc3c   : > { %16408 = vst [vmem:[#allocation215_spill] sm:$0xff] %v14417_v36  ;;  %6306 = vmax.xlane.f32.xlu1 %v6305_v32 }
 0xc3d   : > { %v14419_v17 = vpop.f32.mrf.mxu1 }
 0xc3e   : > { %16409 = vst [vmem:[#allocation259_spill] sm:$0xff] %v14419_v17  ;;  %v6308_v51 = vmax.f32 %v14417_v36, %v14419_v17 }
 0xc3f   : > { %v14423_v53 = vpop.f32.mrf.mxu1 }
 0xc40   : > { %16410 = vst [vmem:[#allocation225_spill] sm:$0xff] %v14423_v53  ;;  %6309 = vmax.xlane.f32.xlu0 %v6308_v51 }
 0xc41   : > { %v14425_v49 = vpop.f32.mrf.mxu1 }
 0xc42   : > { %16411 = vst [vmem:[#allocation131_spill] sm:$0xff] %v14425_v49  ;;  %v6311_v44 = vmax.f32 %v14423_v53, %v14425_v49 }
 0xc43   : > { %v14429_v61 = vpop.f32.mrf.mxu1 }
 0xc44   : > { %16412 = vst [vmem:[#allocation216_spill] sm:$0xff] %v14429_v61  ;;  %6312 = vmax.xlane.f32.xlu1 %v6311_v44 }
 0xc45   : > { %v14431_v35 = vpop.f32.mrf.mxu1 }
 0xc46   : > { %16413 = vst [vmem:[#allocation217_spill] sm:$0xff] %v14431_v35  ;;  %v6314_v32 = vmax.f32 %v14429_v61, %v14431_v35 }
 0xc47   : > { %v14435_v21 = vpop.f32.mrf.mxu1 }
 0xc48   : > { %16414 = vst [vmem:[#allocation218_spill] sm:$0xff] %v14435_v21  ;;  %6315 = vmax.xlane.f32.xlu0 %v6314_v32 }
 0xc49   : > { %v14437_v17 = vpop.f32.mrf.mxu1 }
 0xc4a   : > { %16415 = vst [vmem:[#allocation21_spill] sm:$0xff] %v14437_v17  ;;  %v6317_v51 = vmax.f32 %v14435_v21, %v14437_v17 }
 0xc4b   : > { %v14441_v36 = vpop.f32.mrf.mxu1 }
 0xc4c   : > { %16416 = vst [vmem:[#allocation22_spill] sm:$0xff] %v14441_v36  ;;  %6318 = vmax.xlane.f32.xlu1 %v6317_v51 }
 0xc4d   : > { %v14443_v49 = vpop.f32.mrf.mxu1 }
 0xc4e   : > { %16417 = vst [vmem:[#allocation23_spill] sm:$0xff] %v14443_v49  ;;  %v6320_v44 = vmax.f32 %v14441_v36, %v14443_v49 }
 0xc4f   : > { %v14447_v53 = vpop.f32.mrf.mxu1 }
 0xc50   : > { %16418 = vst [vmem:[#allocation24_spill] sm:$0xff] %v14447_v53  ;;  %6321 = vmax.xlane.f32.xlu0 %v6320_v44 }
 0xc51   : > { %v14449_v35 = vpop.f32.mrf.mxu1 }
 0xc52   : > { %16419 = vst [vmem:[#allocation25_spill] sm:$0xff] %v14449_v35  ;;  %v6323_v32 = vmax.f32 %v14447_v53, %v14449_v35 }
 0xc53   : > { %v14453_v61 = vpop.f32.mrf.mxu1 }
 0xc54   : > { %16420 = vst [vmem:[#allocation26_spill] sm:$0xff] %v14453_v61  ;;  %6324 = vmax.xlane.f32.xlu1 %v6323_v32 }
 0xc55   : > { %v14455_v17 = vpop.f32.mrf.mxu1 }
 0xc56   : > { %16421 = vst [vmem:[#allocation27_spill] sm:$0xff] %v14455_v17  ;;  %v6326_v51 = vmax.f32 %v14453_v61, %v14455_v17 }
 0xc57   : > { %v14459_v21 = vpop.f32.mrf.mxu1 }
 0xc58   : > { %16422 = vst [vmem:[#allocation28_spill] sm:$0xff] %v14459_v21  ;;  %6327 = vmax.xlane.f32.xlu0 %v6326_v51 }
 0xc59   : > { %v14461_v49 = vpop.f32.mrf.mxu1 }
 0xc5a   : > { %16423 = vst [vmem:[#allocation30_spill] sm:$0xff] %v14461_v49  ;;  %v6329_v44 = vmax.f32 %v14459_v21, %v14461_v49 }
 0xc5b   : > { %v14465_v36 = vpop.f32.mrf.mxu1 }
 0xc5c   : > { %16424 = vst [vmem:[#allocation32_spill] sm:$0xff] %v14465_v36  ;;  %6330 = vmax.xlane.f32.xlu1 %v6329_v44 }
 0xc5d   : > { %v14467_v35 = vpop.f32.mrf.mxu1 }
 0xc5e   : > { %16425 = vst [vmem:[#allocation35_spill] sm:$0xff] %v14467_v35  ;;  %v6790_v32 = vmax.f32 %v14465_v36, %v14467_v35 }
 0xc5f   : > { %v14471_v53 = vpop.f32.mrf.mxu1 }
 0xc60   : > { %16426 = vst [vmem:[#allocation37_spill] sm:$0xff] %v14471_v53  ;;  %6791 = vmax.xlane.f32.xlu0 %v6790_v32 }
 0xc61   : > { %v14473_v17 = vpop.f32.mrf.mxu1 }
 0xc62   : > { %16427 = vst [vmem:[#allocation40_spill] sm:$0xff] %v14473_v17  ;;  %v6793_v51 = vmax.f32 %v14471_v53, %v14473_v17 }
 0xc63   : > { %v14477_v61 = vpop.f32.mrf.mxu1 }
 0xc64   : > { %16428 = vst [vmem:[#allocation42_spill] sm:$0xff] %v14477_v61  ;;  %6794 = vmax.xlane.f32.xlu1 %v6793_v51 }
 0xc65   : > { %v14479_v49 = vpop.f32.mrf.mxu1 }
 0xc66   : > { %16429 = vst [vmem:[#allocation45_spill] sm:$0xff] %v14479_v49  ;;  %v6796_v44 = vmax.f32 %v14477_v61, %v14479_v49 }
 0xc67   : > { %v14483_v21 = vpop.f32.mrf.mxu1 }
 0xc68   : > { %6797 = vmax.xlane.f32.xlu0 %v6796_v44 }
 0xc69   : > { %v5780_v35 = vpop.xlane.xlu1 %5779  ;;  %v14485_v36 = vpop.f32.mrf.mxu1 }
 0xc6a   : > { %v5826_v32 = vsub.f32 %v14273_v23, %v5780_v35  ;;  %v5827_v26 = vsub.f32 %v14275_v10, %v5780_v35  ;;  %v6799_v17 = vmax.f32 %v14483_v21, %v14485_v36 }
 0xc6b   : > { %v14491_v53 = vpop.f32.mrf.mxu1 }
 0xc6c   : > { %v5858_v51 = vmul.f32 1.442695, %v5826_v32  ;;  %6800 = vmax.xlane.f32.xlu1 %v6799_v17  ;;  %v5860_v3 = vmul.f32 1.442695, %v5827_v26 }
 0xc6d   : > { %v5783_v1 = vpop.xlane.xlu0 %5782  ;;  %v14493_v49 = vpop.f32.mrf.mxu1 }
 0xc6e   : > { %16430 = vst [vmem:[#allocation47_spill] sm:$0xff] %v14493_v49  ;;  %v5828_v44 = vsub.f32 %v14279_v46, %v5783_v1  ;;  %v5829_v61 = vsub.f32 %v14281_v15, %v5783_v1  ;;  %v6802_v23 = vmax.f32 %v14491_v53, %v14493_v49  ;;  %10046 = vpow2.f32 %v5858_v51 }
 0xc6f   : > { %v14499_v52 = vpop.f32.mrf.mxu1  ;;  %10048 = vpow2.f32 %v5860_v3 }
 0xc70   : > { %v5862_v10 = vmul.f32 1.442695, %v5828_v44  ;;  %v5864_v35 = vmul.f32 1.442695, %v5829_v61  ;;  %6803 = vmax.xlane.f32.xlu0 %v6802_v23 }
 0xc71   : > { %v5786_v32 = vpop.xlane.xlu0 %5785  ;;  %v14501_v17 = vpop.f32.mrf.mxu1 }
 0xc72   : > { %10050 = vpow2.f32 %v5862_v10  ;;  %v5830_v26 = vsub.f32 %v14285_v18, %v5786_v32  ;;  %v5831_v46 = vsub.f32 %v14287_v30, %v5786_v32  ;;  %v6805_v15 = vmax.f32 %v14499_v52, %v14501_v17 }
 0xc73   : > { %10052 = vpow2.f32 %v5864_v35  ;;  %v14507_v1 = vpop.f32.mrf.mxu1 }
 0xc74   : > { %v5866_v49 = vmul.f32 1.442695, %v5830_v26  ;;  %6806 = vmax.xlane.f32.xlu1 %v6805_v15  ;;  %v5868_v51 = vmul.f32 1.442695, %v5831_v46 }
 0xc75   : > { %v5789_v61 = vpop.xlane.xlu1 %5788  ;;  %v14509_v44 = vpop.f32.mrf.mxu1 }
 0xc76   : > { %16431 = vst [vmem:[#allocation99_spill] sm:$0xff] %v14509_v44  ;;  %v5832_v3 = vsub.f32 %v14291_v47, %v5789_v61  ;;  %v5833_v23 = vsub.f32 %v14293_v27, %v5789_v61  ;;  %v6808_v18 = vmax.f32 %v14507_v1, %v14509_v44  ;;  %10054 = vpow2.f32 %v5866_v49 }
 0xc77   : > { %v14515_v30 = vpop.f32.mrf.mxu1  ;;  %10056 = vpow2.f32 %v5868_v51 }
 0xc78   : > { %16432 = vst [vmem:[#allocation94_spill] sm:$0xff] %v14515_v30  ;;  %v5870_v10 = vmul.f32 1.442695, %v5832_v3  ;;  %v5872_v35 = vmul.f32 1.442695, %v5833_v23  ;;  %6809 = vmax.xlane.f32.xlu0 %v6808_v18 }
 0xc79   : > { %v5792_v32 = vpop.xlane.xlu0 %5791  ;;  %v14517_v26 = vpop.f32.mrf.mxu1 }
 0xc7a   : > { %16433 = vst [vmem:[#allocation105_spill] sm:$0xff] %v14517_v26  ;;  %10058 = vpow2.f32 %v5870_v10  ;;  %v5834_v46 = vsub.f32 %v14297_v37, %v5792_v32  ;;  %v5835_v47 = vsub.f32 %v14299_v40, %v5792_v32  ;;  %v6811_v27 = vmax.f32 %v14515_v30, %v14517_v26 }
 0xc7b   : > { %10060 = vpow2.f32 %v5872_v35  ;;  %v14523_v15 = vpop.f32.mrf.mxu1  ;;  %v14525_v49 = vpop.eup %10046 }
 0xc7c   : > { %16434 = vst [vmem:[#allocation95_spill] sm:$0xff] %v14523_v15  ;;  %v5874_v61 = vmul.f32 1.442695, %v5834_v46  ;;  %6812 = vmax.xlane.f32.xlu1 %v6811_v27  ;;  %v5876_v3 = vmul.f32 1.442695, %v5835_v47  ;;  %v14529_v18 = vpop.eup %10048 }
 0xc7d   : > { %v5795_v51 = vpop.xlane.xlu1 %5794  ;;  %v14527_v23 = vpop.f32.mrf.mxu1 }
 0xc7e   : > { %16435 = vst [vmem:[#allocation111_spill] sm:$0xff] %v14527_v23  ;;  %v5836_v37 = vsub.f32 %v14303_v31, %v5795_v51  ;;  %v5837_v40 = vsub.f32 %v14305_v42, %v5795_v51  ;;  %v6814_v10 = vmax.f32 %v14523_v15, %v14527_v23  ;;  %10062 = vpow2.f32 %v5874_v61  ;;  %v16439_v15 = vld [vmem:[#allocation133_spill] sm:$0xff] }
 0xc7f   : > { %v14535_v35 = vpop.eup %10050  ;;  %v14537_v32 = vpop.f32.mrf.mxu1  ;;  %10064 = vpow2.f32 %v5876_v3 }
 0xc80   : > { %16436 = vst [vmem:[#allocation97_spill] sm:$0xff] %v14537_v32  ;;  %v14539_v46 = vpop.eup %10052  ;;  %v5878_v47 = vmul.f32 1.442695, %v5836_v37  ;;  %v5880_v27 = vmul.f32 1.442695, %v5837_v40  ;;  %6815 = vmax.xlane.f32.xlu0 %v6814_v10  ;;  %v5970_v26 = vpack.c.bf16 %v14535_v35, %v14525_v49 }
 0xc81   : > { %v5798_v31 = vpop.xlane.xlu0 %5797  ;;  %v14543_v30 = vpop.f32.mrf.mxu1  ;;  %v5971_v42 = vpack.c.bf16 %v14539_v46, %v14529_v18 }
 0xc82   : > { %16437 = vst [vmem:[#allocation115_spill] sm:$0xff] %v14543_v30  ;;  %10066 = vpow2.f32 %v5878_v47  ;;  %v5838_v51 = vsub.f32 %v14309_v6, %v5798_v31  ;;  %v5839_v23 = vsub.f32 %v14311_v29, %v5798_v31  ;;  %v6817_v61 = vmax.f32 %v14537_v32, %v14543_v30  ;;  %v16441_v29 = vld [vmem:[#allocation160_spill] sm:$0xff] }
 0xc83   : > { %10068 = vpow2.f32 %v5880_v27  ;;  %6018 = vmatprep.mubr.bf16.mxu0 %v5971_v42  ;;  %v14551_v37 = vpop.f32.mrf.mxu1  ;;  %v14553_v3 = vpop.eup %10054 }
 0xc84   : > { %16438 = vst [vmem:[#allocation100_spill] sm:$0xff] %v14551_v37  ;;  %v5882_v40 = vmul.f32 1.442695, %v5838_v51  ;;  %6019 = vmatmul.mubr.bf16.vlgmr.msra.gmra.mxu0 %v5970_v26  ;;  %6818 = vmax.xlane.f32.xlu1 %v6817_v61  ;;  %v5884_v10 = vmul.f32 1.442695, %v5839_v23  ;;  %v14558_v6 = vpop.eup %10056 }
 0xc85   : > { %8858 = vmatpush3.bf16.msra.mxu0 %v16439_v15  ;;  %v5801_v47 = vpop.xlane.xlu1 %5800  ;;  %v14556_v44 = vpop.f32.mrf.mxu1 }
 0xc86   : > { %16440 = vst [vmem:[#allocation119_spill] sm:$0xff] %v14556_v44  ;;  %8859 = vmatprep.subr.bf16.mxu0 %v16441_v29  ;;  %v5840_v27 = vsub.f32 %v14315_v38, %v5801_v47  ;;  %v5841_v31 = vsub.f32 %v14317_v59, %v5801_v47  ;;  %v6820_v26 = vmax.f32 %v14551_v37, %v14556_v44  ;;  %10070 = vpow2.f32 %v5882_v40  ;;  %v16443_v38 = vld [vmem:[#allocation128_spill] sm:$0xff] }
 0xc87   : > { %v14565_v42 = vpop.eup %10058  ;;  %v14567_v51 = vpop.f32.mrf.mxu1  ;;  %10072 = vpow2.f32 %v5884_v10  ;;  %v16445_v37 = vld [vmem:[#allocation156_spill] sm:$0xff] }
 0xc88   : > { %16442 = vst [vmem:[#allocation103_spill] sm:$0xff] %v14567_v51  ;;  %v14569_v23 = vpop.eup %10060  ;;  %v5886_v15 = vmul.f32 1.442695, %v5840_v27  ;;  %v5888_v61 = vmul.f32 1.442695, %v5841_v31  ;;  %6821 = vmax.xlane.f32.xlu0 %v6820_v26  ;;  %v5972_v29 = vpack.c.bf16 %v14565_v42, %v14553_v3 }
 0xc89   : > { %8860 = vmatpush3.bf16.msra.mxu0 %v16443_v38  ;;  %v5804_v59 = vpop.xlane.xlu0 %5803  ;;  %v14574_v47 = vpop.f32.mrf.mxu1  ;;  %v5973_v44 = vpack.c.bf16 %v14569_v23, %v14558_v6 }
 0xc8a   : > { %16444 = vst [vmem:[#allocation123_spill] sm:$0xff] %v14574_v47  ;;  %10074 = vpow2.f32 %v5886_v15  ;;  %8861 = vmatprep.subr.bf16.mxu0 %v16445_v37  ;;  %v5842_v40 = vsub.f32 %v14321_v9, %v5804_v59  ;;  %v5843_v27 = vsub.f32 %v14323_v4, %v5804_v59  ;;  %v6823_v31 = vmax.f32 %v14567_v51, %v14574_v47  ;;  %v16447_v15 = vld [vmem:[#allocation124_spill] sm:$0xff]  ;;  %v16449_v4 = vld [vmem:[#allocation153_spill] sm:$0xff] }
 0xc8b   : > { %10076 = vpow2.f32 %v5888_v61  ;;  %6026 = vmatprep.mubr.bf16.mxu0 %v5973_v44  ;;  %v14583_v10 = vpop.f32.mrf.mxu1  ;;  %v14585_v38 = vpop.eup %10062 }
 0xc8c   : > { %16446 = vst [vmem:[#allocation106_spill] sm:$0xff] %v14583_v10  ;;  %v5890_v26 = vmul.f32 1.442695, %v5842_v40  ;;  %6027 = vmatmul.mubr.bf16.gmra.mxu0 %v5972_v29  ;;  %6824 = vmax.xlane.f32.xlu1 %v6823_v31  ;;  %v5892_v30 = vmul.f32 1.442695, %v5843_v27  ;;  %v14590_v9 = vpop.eup %10064 }
 0xc8d   : > { %8862 = vmatpush3.bf16.msra.mxu0 %v16447_v15  ;;  %v5807_v37 = vpop.xlane.xlu1 %5806  ;;  %v14588_v32 = vpop.f32.mrf.mxu1 }
 0xc8e   : > { %16448 = vst [vmem:[#allocation127_spill] sm:$0xff] %v14588_v32  ;;  %8863 = vmatprep.subr.bf16.mxu0 %v16449_v4  ;;  %v5844_v61 = vsub.f32 %v14327_v11, %v5807_v37  ;;  %v5845_v44 = vsub.f32 %v14329_v5, %v5807_v37  ;;  %v6826_v29 = vmax.f32 %v14583_v10, %v14588_v32  ;;  %10078 = vpow2.f32 %v5890_v26  ;;  %v16450_v11 = vld [vmem:[#allocation120_spill] sm:$0xff]  ;;  %v16452_v10 = vld [vmem:[#allocation149_spill] sm:$0xff] }
 0xc8f   : > { %v14597_v59 = vpop.eup %10066  ;;  %v14599_v40 = vpop.f32.mrf.mxu1  ;;  %10080 = vpow2.f32 %v5892_v30 }
 0xc90   : > { %v14601_v27 = vpop.eup %10068  ;;  %v5894_v31 = vmul.f32 1.442695, %v5844_v61  ;;  %v5896_v15 = vmul.f32 1.442695, %v5845_v44  ;;  %6827 = vmax.xlane.f32.xlu0 %v6826_v29  ;;  %v5974_v4 = vpack.c.bf16 %v14597_v59, %v14585_v38 }
 0xc91   : > { %8864 = vmatpush3.bf16.msra.mxu0 %v16450_v11  ;;  %v5810_v5 = vpop.xlane.xlu0 %5809  ;;  %v14606_v37 = vpop.f32.mrf.mxu1  ;;  %v5975_v32 = vpack.c.bf16 %v14601_v27, %v14590_v9 }
 0xc92   : > { %16451 = vst [vmem:[#allocation80_spill] sm:$0xff] %v14606_v37  ;;  %10082 = vpow2.f32 %v5894_v31  ;;  %8865 = vmatprep.subr.bf16.mxu0 %v16452_v10  ;;  %v5846_v26 = vsub.f32 %v14333_v20, %v5810_v5  ;;  %v5847_v61 = vsub.f32 %v14335_v39, %v5810_v5  ;;  %v6829_v44 = vmax.f32 %v14599_v40, %v14606_v37  ;;  %v16454_v31 = vld [vmem:[#allocation116_spill] sm:$0xff]  ;;  %v16456_v39 = vld [vmem:[#allocation146_spill] sm:$0xff]  ;;  %v16459_v37 = vld [vmem:[#allocation107_spill] sm:$0xff] }
 0xc93   : > { %10084 = vpow2.f32 %v5896_v15  ;;  %6034 = vmatprep.mubr.bf16.mxu0 %v5975_v32  ;;  %v14615_v30 = vpop.f32.mrf.mxu1  ;;  %v14617_v11 = vpop.eup %10070 }
 0xc94   : > { %16453 = vst [vmem:[#allocation109_spill] sm:$0xff] %v14615_v30  ;;  %v5898_v29 = vmul.f32 1.442695, %v5846_v26  ;;  %6035 = vmatmul.mubr.bf16.gmra.mxu0 %v5974_v4  ;;  %6830 = vmax.xlane.f32.xlu1 %v6829_v44  ;;  %v5900_v47 = vmul.f32 1.442695, %v5847_v61  ;;  %v14622_v20 = vpop.eup %10072 }
 0xc95   : > { %8866 = vmatpush3.bf16.msra.mxu0 %v16454_v31  ;;  %v5813_v10 = vpop.xlane.xlu1 %5812  ;;  %v14620_v51 = vpop.f32.mrf.mxu1 }
 0xc96   : > { %16455 = vst [vmem:[#allocation132_spill] sm:$0xff] %v14620_v51  ;;  %8867 = vmatprep.subr.bf16.mxu0 %v16456_v39  ;;  %v5848_v15 = vsub.f32 %v14339_v63, %v5813_v10  ;;  %v5849_v32 = vsub.f32 %v14341_v13, %v5813_v10  ;;  %v6832_v4 = vmax.f32 %v14615_v30, %v14620_v51  ;;  %10086 = vpow2.f32 %v5898_v29  ;;  %v16457_v63 = vld [vmem:[#allocation112_spill] sm:$0xff]  ;;  %v16458_v30 = vld [vmem:[#allocation142_spill] sm:$0xff] }
 0xc97   : > { %v14629_v5 = vpop.eup %10074  ;;  %v14631_v26 = vpop.f32.mrf.mxu1  ;;  %10088 = vpow2.f32 %v5900_v47 }
 0xc98   : > { %v14633_v61 = vpop.eup %10076  ;;  %v5902_v44 = vmul.f32 1.442695, %v5848_v15  ;;  %v5904_v31 = vmul.f32 1.442695, %v5849_v32  ;;  %6833 = vmax.xlane.f32.xlu0 %v6832_v4  ;;  %v5976_v39 = vpack.c.bf16 %v14629_v5, %v14617_v11 }
 0xc99   : > { %8868 = vmatpush3.bf16.msra.mxu0 %v16457_v63  ;;  %v5816_v13 = vpop.xlane.xlu0 %5815  ;;  %v14638_v10 = vpop.f32.mrf.mxu1  ;;  %v5977_v51 = vpack.c.bf16 %v14633_v61, %v14622_v20 }
 0xc9a   : > { %10090 = vpow2.f32 %v5902_v44  ;;  %8869 = vmatprep.subr.bf16.mxu0 %v16458_v30  ;;  %v5850_v29 = vsub.f32 %v14345_v45, %v5816_v13  ;;  %v5851_v15 = vsub.f32 %v14347_v60, %v5816_v13  ;;  %v6835_v32 = vmax.f32 %v14631_v26, %v14638_v10  ;;  %v16460_v45 = vld [vmem:[#allocation137_spill] sm:$0xff] }
 0xc9b   : > { %10092 = vpow2.f32 %v5904_v31  ;;  %6042 = vmatprep.mubr.bf16.mxu0 %v5977_v51  ;;  %v14648_v4 = vpop.eup %10078  ;;  %v5922_v51 = vadd.f32 %v14529_v18, %v14525_v49  ;;  %v16462_v49 = vld [vmem:[#allocation219_spill] sm:$0xff] }
 0xc9c   : > { %v5906_v47 = vmul.f32 1.442695, %v5850_v29  ;;  %6043 = vmatmul.mubr.bf16.gmra.mxu0 %v5976_v39  ;;  %5409 = vadd.xlane.f32.xlu0 %v14029_v12  ;;  %v5908_v63 = vmul.f32 1.442695, %v5851_v15  ;;  %v14651_v44 = vpop.eup %10080  ;;  %v16461_v15 = vld [vmem:[#allocation101_spill] sm:$0xff] }
 0xc9d   : > { %8870 = vmatpush3.bf16.msra.mxu0 %v16459_v37  ;;  %6836 = vmax.xlane.f32.xlu1 %v6835_v32  ;;  %v5819_v30 = vpop.xlane.xlu1 %5818 }
 0xc9e   : > { %8871 = vmatprep.subr.bf16.mxu0 %v16460_v45  ;;  %v5852_v60 = vsub.f32 %v14351_v8, %v5819_v30  ;;  %v5853_v31 = vsub.f32 %v14353_v62, %v5819_v30  ;;  %10094 = vpow2.f32 %v5906_v47  ;;  %v5925_v47 = vadd.f32 %v14539_v46, %v14535_v35 }
 0xc9f   : > { %v14658_v39 = vpop.eup %10082  ;;  %10096 = vpow2.f32 %v5908_v63 }
 0xca0   : > { %v14660_v12 = vpop.eup %10084  ;;  %v5910_v13 = vmul.f32 1.442695, %v5852_v60  ;;  %v5912_v37 = vmul.f32 1.442695, %v5853_v31  ;;  %5923 = vadd.xlane.f32.xlu0 %v5922_v51  ;;  %v5978_v29 = vpack.c.bf16 %v14658_v39, %v14648_v4  ;;  %v5928_v31 = vadd.f32 %v14558_v6, %v14553_v3 }
 0xca1   : > { %8872 = vmatpush3.bf16.msra.mxu0 %v16461_v15  ;;  %5412 = vadd.xlane.f32.xlu1 %v14033_v50  ;;  %v5822_v8 = vpop.xlane.xlu0 %5821  ;;  %v5979_v62 = vpack.c.bf16 %v14660_v12, %v14651_v44 }
 0xca2   : > { %10098 = vpow2.f32 %v5910_v13  ;;  %8953 = vmatprep.subr.bf16.mxu0 %v16462_v49  ;;  %v5854_v18 = vsub.f32 %v14357_v25, %v5822_v8  ;;  %v5855_v32 = vsub.f32 %v14359_v19, %v5822_v8  ;;  %v5934_v49 = vadd.f32 %v14590_v9, %v14585_v38 }
 0xca3   : > { %10100 = vpow2.f32 %v5912_v37  ;;  %6050 = vmatprep.mubr.bf16.mxu0 %v5979_v62  ;;  %v14674_v50 = vpop.eup %10086  ;;  %v5931_v37 = vadd.f32 %v14569_v23, %v14565_v42 }
 0xca4   : > { %v5914_v63 = vmul.f32 1.442695, %v5854_v18  ;;  %6051 = vmatmul.mubr.bf16.gmra.mxu0 %v5978_v29  ;;  %5415 = vadd.xlane.f32.xlu0 %v14038_v55  ;;  %v5916_v30 = vmul.f32 1.442695, %v5855_v32  ;;  %v14676_v60 = vpop.eup %10088 }
 0xca5   : > { %5926 = vadd.xlane.f32.xlu1 %v5925_v47  ;;  %v5825_v45 = vpop.xlane.xlu1 %5824  ;;  %v5937_v47 = vadd.f32 %v14601_v27, %v14597_v59 }
 0xca6   : > { %v5856_v25 = vsub.f32 %v14363_v56, %v5825_v45  ;;  %v5857_v19 = vsub.f32 %v14365_v57, %v5825_v45  ;;  %10102 = vpow2.f32 %v5914_v63 }
 0xca7   : > { %v14682_v51 = vpop.eup %10090  ;;  %10104 = vpow2.f32 %v5916_v30 }
 0xca8   : > { %v14684_v35 = vpop.eup %10092  ;;  %v5918_v55 = vmul.f32 1.442695, %v5856_v25  ;;  %v5920_v46 = vmul.f32 1.442695, %v5857_v19  ;;  %5929 = vadd.xlane.f32.xlu0 %v5928_v31  ;;  %v5980_v13 = vpack.c.bf16 %v14682_v51, %v14674_v50  ;;  %v5940_v19 = vadd.f32 %v14622_v20, %v14617_v11 }
 0xca9   : > { %5418 = vadd.xlane.f32.xlu1 %v14044_v28  ;;  %v6286_v56 = vpop.xlane.xlu0 %6285  ;;  %v5981_v57 = vpack.c.bf16 %v14684_v35, %v14676_v60 }
 0xcaa   : > { %10106 = vpow2.f32 %v5918_v55  ;;  %v6332_v3 = vsub.f32 %v14369_v0, %v6286_v56  ;;  %v6333_v6 = vsub.f32 %v14371_v16, %v6286_v56  ;;  %v16463_v56 = vld [vmem:[#allocation147_spill] sm:$0xff] }
 0xcab   : > { %10108 = vpow2.f32 %v5920_v46  ;;  %6058 = vmatprep.mubr.bf16.mxu0 %v5981_v57  ;;  %v14696_v15 = vpop.eup %10094  ;;  %v5943_v46 = vadd.f32 %v14633_v61, %v14629_v5 }
 0xcac   : > { %v6364_v29 = vmul.f32 1.442695, %v6332_v3  ;;  %6059 = vmatmul.mubr.bf16.gmra.mxu0 %v5980_v13  ;;  %5421 = vadd.xlane.f32.xlu0 %v14049_v48  ;;  %v6366_v28 = vmul.f32 1.442695, %v6333_v6  ;;  %v14698_v62 = vpop.eup %10096 }
 0xcad   : > { %5932 = vadd.xlane.f32.xlu1 %v5931_v37  ;;  %v6289_v8 = vpop.xlane.xlu1 %6288  ;;  %v16464_v37 = vld [vmem:[#allocation255_spill] sm:$0xff] }
 0xcae   : > { %v6334_v0 = vsub.f32 %v14375_v33, %v6289_v8  ;;  %v6335_v16 = vsub.f32 %v14377_v58, %v6289_v8  ;;  %10110 = vpow2.f32 %v6364_v29  ;;  %v16465_v29 = vld [vmem:[#allocation256_spill] sm:$0xff] }
 0xcaf   : > { %v14704_v18 = vpop.eup %10098  ;;  %10112 = vpow2.f32 %v6366_v28 }
 0xcb0   : > { %v14706_v42 = vpop.eup %10100  ;;  %v6368_v48 = vmul.f32 1.442695, %v6334_v0  ;;  %v6370_v23 = vmul.f32 1.442695, %v6335_v16  ;;  %5935 = vadd.xlane.f32.xlu0 %v5934_v49  ;;  %v5982_v32 = vpack.c.bf16 %v14704_v18, %v14696_v15  ;;  %v16466_v0 = vld [vmem:[#allocation227_spill] sm:$0xff]  ;;  %v16467_v49 = vld [vmem:[#allocation226_spill] sm:$0xff] }
 0xcb1   : > { %5424 = vadd.xlane.f32.xlu1 %v14055_v43  ;;  %v6292_v33 = vpop.xlane.xlu0 %6291  ;;  %v5983_v58 = vpack.c.bf16 %v14706_v42, %v14698_v62 }
 0xcb2   : > { %10114 = vpow2.f32 %v6368_v48  ;;  %v6336_v38 = vsub.f32 %v14381_v24, %v6292_v33  ;;  %v6337_v9 = vsub.f32 %v14383_v2, %v6292_v33 }
 0xcb3   : > { %10116 = vpow2.f32 %v6370_v23  ;;  %6066 = vmatprep.mubr.bf16.mxu0 %v5983_v58  ;;  %v14718_v30 = vpop.eup %10102  ;;  %v16469_v58 = vld [vmem:[#allocation257_spill] sm:$0xff] }
 0xcb4   : > { %v6372_v63 = vmul.f32 1.442695, %v6336_v38  ;;  %6067 = vmatmul.mubr.bf16.gmra.mxu0 %v5982_v32  ;;  %5427 = vadd.xlane.f32.xlu0 %v14060_v54  ;;  %v6374_v43 = vmul.f32 1.442695, %v6337_v9  ;;  %v14720_v25 = vpop.eup %10104  ;;  %v16468_v32 = vld [vmem:[#allocation53_spill] sm:$0xff] }
 0xcb5   : > { %5938 = vadd.xlane.f32.xlu1 %v5937_v47  ;;  %v6295_v45 = vpop.xlane.xlu1 %6294  ;;  %v16470_v47 = vld [vmem:[#allocation113_spill] sm:$0xff] }
 0xcb6   : > { %v6338_v24 = vsub.f32 %v14387_v34, %v6295_v45  ;;  %v6339_v2 = vsub.f32 %v14389_v7, %v6295_v45  ;;  %10118 = vpow2.f32 %v6372_v63  ;;  %v16471_v45 = vld [vmem:[#allocation220_spill] sm:$0xff] }
 0xcb7   : > { %v14726_v31 = vpop.eup %10106  ;;  %10120 = vpow2.f32 %v6374_v43 }
 0xcb8   : > { %v14728_v59 = vpop.eup %10108  ;;  %v6376_v54 = vmul.f32 1.442695, %v6338_v24  ;;  %v6378_v27 = vmul.f32 1.442695, %v6339_v2  ;;  %5941 = vadd.xlane.f32.xlu0 %v5940_v19  ;;  %v5984_v55 = vpack.c.bf16 %v14726_v31, %v14718_v30  ;;  %v16472_v24 = vld [vmem:[#allocation110_spill] sm:$0xff] }
 0xcb9   : > { %5430 = vadd.xlane.f32.xlu1 %v14066_v41  ;;  %v6298_v34 = vpop.xlane.xlu0 %6297  ;;  %v5985_v7 = vpack.c.bf16 %v14728_v59, %v14720_v25 }
 0xcba   : > { %10122 = vpow2.f32 %v6376_v54  ;;  %v6340_v11 = vsub.f32 %v14393_v14, %v6298_v34  ;;  %v6341_v20 = vsub.f32 %v14395_v22, %v6298_v34  ;;  %v16473_v54 = vld [vmem:[#allocation165_spill] sm:$0xff]  ;;  %v16475_v34 = vld [vmem:[#allocation222_spill] sm:$0xff] }
 0xcbb   : > { %10124 = vpow2.f32 %v6378_v27  ;;  %6074 = vmatprep.mubr.bf16.mxu0 %v5985_v7  ;;  %v14740_v57 = vpop.eup %10110  ;;  %v16474_v27 = vld [vmem:[#allocation258_spill] sm:$0xff] }
 0xcbc   : > { %v6380_v13 = vmul.f32 1.442695, %v6340_v11  ;;  %6075 = vmatmul.mubr.bf16.gmra.mxu0 %v5984_v55  ;;  %5433 = vadd.xlane.f32.xlu0 %v16463_v56  ;;  %v6382_v41 = vmul.f32 1.442695, %v6341_v20  ;;  %v14742_v6 = vpop.eup %10112  ;;  %v16476_v56 = vld [vmem:[#allocation143_spill] sm:$0xff] }
 0xcbd   : > { %5944 = vadd.xlane.f32.xlu1 %v5943_v46  ;;  %v6301_v3 = vpop.xlane.xlu1 %6300 }
 0xcbe   : > { %v6342_v14 = vsub.f32 %v16464_v37, %v6301_v3  ;;  %v6343_v22 = vsub.f32 %v16465_v29, %v6301_v3  ;;  %10126 = vpow2.f32 %v6380_v13  ;;  %v16477_v3 = vld [vmem:[#allocation211_spill] sm:$0xff]  ;;  %v16478_v37 = vld [vmem:[#allocation140_spill] sm:$0xff] }
 0xcbf   : > { %v14746_v28 = vpop.eup %10114  ;;  %10128 = vpow2.f32 %v6382_v41 }
 0xcc0   : > { %v14748_v8 = vpop.eup %10116  ;;  %v6384_v5 = vmul.f32 1.442695, %v6342_v14  ;;  %v6386_v61 = vmul.f32 1.442695, %v6343_v22  ;;  %5439 = vadd.xlane.f32.xlu0 %v16466_v0  ;;  %v6476_v16 = vpack.c.bf16 %v14746_v28, %v14740_v57  ;;  %v16479_v22 = vld [vmem:[#allocation61_spill] sm:$0xff]  ;;  %v16481_v0 = vld [vmem:[#allocation259_spill] sm:$0xff] }
 0xcc1   : > { %5436 = vadd.xlane.f32.xlu1 %v16467_v49  ;;  %v6304_v48 = vpop.xlane.xlu0 %6303  ;;  %v6477_v23 = vpack.c.bf16 %v14748_v8, %v14742_v6  ;;  %v5946_v49 = vadd.f32 %v14651_v44, %v14648_v4  ;;  %v16486_v4 = vld [vmem:[#allocation131_spill] sm:$0xff] }
 0xcc2   : > { %10130 = vpow2.f32 %v6384_v5  ;;  %v6344_v33 = vsub.f32 %v16468_v32, %v6304_v48  ;;  %v6345_v38 = vsub.f32 %v16469_v58, %v6304_v48  ;;  %v16480_v5 = vld [vmem:[#allocation215_spill] sm:$0xff]  ;;  %v16483_v58 = vld [vmem:[#allocation228_spill] sm:$0xff] }
 0xcc3   : > { %10132 = vpow2.f32 %v6386_v61  ;;  %6524 = vmatprep.mubr.bf16.mxu0 %v6477_v23  ;;  %v14759_v63 = vpop.eup %10118 }
 0xcc4   : > { %v6388_v9 = vmul.f32 1.442695, %v6344_v33  ;;  %6525 = vmatmul.mubr.bf16.vlgmr.msra.gmra.mxu0 %v6476_v16  ;;  %5445 = vadd.xlane.f32.xlu0 %v16470_v47  ;;  %v6390_v43 = vmul.f32 1.442695, %v6345_v38  ;;  %v14763_v19 = vpop.eup %10120  ;;  %v16482_v33 = vld [vmem:[#allocation130_spill] sm:$0xff] }
 0xcc5   : > { %8954 = vmatpush3.bf16.msra.mxu0 %v16471_v45  ;;  %5442 = vadd.xlane.f32.xlu1 %v16472_v24  ;;  %v6307_v2 = vpop.xlane.xlu1 %6306  ;;  %v16484_v47 = vld [vmem:[#allocation134_spill] sm:$0xff]  ;;  %v5952_v24 = vadd.f32 %v14676_v60, %v14674_v50 }
 0xcc6   : > { %8955 = vmatprep.subr.bf16.mxu0 %v16473_v54  ;;  %v6346_v55 = vsub.f32 %v16474_v27, %v6307_v2  ;;  %v6347_v7 = vsub.f32 %v16475_v34, %v6307_v2  ;;  %10134 = vpow2.f32 %v6388_v9  ;;  %v5949_v54 = vadd.f32 %v14660_v12, %v14658_v39  ;;  %v16488_v60 = vld [vmem:[#allocation162_spill] sm:$0xff]  ;;  %v16489_v39 = vld [vmem:[#allocation216_spill] sm:$0xff] }
 0xcc7   : > { %v14768_v11 = vpop.eup %10122  ;;  %10136 = vpow2.f32 %v6390_v43  ;;  %v16485_v43 = vld [vmem:[#allocation225_spill] sm:$0xff] }
 0xcc8   : > { %v14770_v20 = vpop.eup %10124  ;;  %v6392_v46 = vmul.f32 1.442695, %v6346_v55  ;;  %v6394_v13 = vmul.f32 1.442695, %v6347_v7  ;;  %5451 = vadd.xlane.f32.xlu0 %v16476_v56  ;;  %v6478_v41 = vpack.c.bf16 %v14768_v11, %v14759_v63  ;;  %v16490_v56 = vld [vmem:[#allocation217_spill] sm:$0xff] }
 0xcc9   : > { %8956 = vmatpush3.bf16.msra.mxu0 %v16477_v3  ;;  %5448 = vadd.xlane.f32.xlu1 %v16478_v37  ;;  %v6310_v14 = vpop.xlane.xlu0 %6309  ;;  %v6479_v29 = vpack.c.bf16 %v14770_v20, %v14763_v19  ;;  %v5958_v3 = vadd.f32 %v14698_v62, %v14696_v15  ;;  %v5955_v37 = vadd.f32 %v14684_v35, %v14682_v51  ;;  %v16493_v15 = vld [vmem:[#allocation218_spill] sm:$0xff] }
 0xcca   : > { %10138 = vpow2.f32 %v6392_v46  ;;  %8957 = vmatprep.subr.bf16.mxu0 %v16479_v22  ;;  %v6348_v61 = vsub.f32 %v16480_v5, %v6310_v14  ;;  %v6349_v16 = vsub.f32 %v16481_v0, %v6310_v14  ;;  %v16487_v46 = vld [vmem:[#allocation158_spill] sm:$0xff]  ;;  %v16491_v5 = vld [vmem:[#allocation83_spill] sm:$0xff]  ;;  %v5964_v51 = vadd.f32 %v14720_v25, %v14718_v30  ;;  %v16496_v25 = vld [vmem:[#allocation129_spill] sm:$0xff] }
 0xccb   : > { %10140 = vpow2.f32 %v6394_v13  ;;  %6532 = vmatprep.mubr.bf16.mxu0 %v6479_v29  ;;  %v14784_v23 = vpop.eup %10126 }
 0xccc   : > { %v6396_v48 = vmul.f32 1.442695, %v6348_v61  ;;  %6533 = vmatmul.mubr.bf16.gmra.mxu0 %v6478_v41  ;;  %5947 = vadd.xlane.f32.xlu0 %v5946_v49  ;;  %v6398_v32 = vmul.f32 1.442695, %v6349_v16  ;;  %v14788_v9 = vpop.eup %10128  ;;  %v16492_v16 = vld [vmem:[#allocation56_spill] sm:$0xff]  ;;  %v16494_v49 = vld [vmem:[#allocation21_spill] sm:$0xff] }
 0xccd   : > { %8958 = vmatpush3.bf16.msra.mxu0 %v16482_v33  ;;  %5454 = vadd.xlane.f32.xlu1 %v16483_v58  ;;  %v6313_v38 = vpop.xlane.xlu1 %6312 }
 0xcce   : > { %8959 = vmatprep.subr.bf16.mxu0 %v16484_v47  ;;  %v6350_v45 = vsub.f32 %v16485_v43, %v6313_v38  ;;  %v6351_v44 = vsub.f32 %v16486_v4, %v6313_v38  ;;  %10142 = vpow2.f32 %v6396_v48  ;;  %v16495_v43 = vld [vmem:[#allocation126_spill] sm:$0xff]  ;;  %v16498_v4 = vld [vmem:[#allocation23_spill] sm:$0xff] }
 0xccf   : > { %v14795_v2 = vpop.eup %10130  ;;  %10144 = vpow2.f32 %v6398_v32  ;;  %v5961_v32 = vadd.f32 %v14706_v42, %v14704_v18  ;;  %v16497_v18 = vld [vmem:[#allocation22_spill] sm:$0xff] }
 0xcd0   : > { %v14799_v27 = vpop.eup %10132  ;;  %v6400_v55 = vmul.f32 1.442695, %v6350_v45  ;;  %v6402_v34 = vmul.f32 1.442695, %v6351_v44  ;;  %5953 = vadd.xlane.f32.xlu0 %v5952_v24  ;;  %v6480_v7 = vpack.c.bf16 %v14795_v2, %v14784_v23  ;;  %v6428_v24 = vadd.f32 %v14742_v6, %v14740_v57  ;;  %v16502_v57 = vld [vmem:[#allocation25_spill] sm:$0xff] }
 0xcd1   : > { %8960 = vmatpush3.bf16.msra.mxu0 %v16487_v46  ;;  %5950 = vadd.xlane.f32.xlu1 %v5949_v54  ;;  %v6316_v13 = vpop.xlane.xlu0 %6315  ;;  %v6481_v50 = vpack.c.bf16 %v14799_v27, %v14788_v9  ;;  %v5967_v54 = vadd.f32 %v14728_v59, %v14726_v31  ;;  %v16499_v46 = vld [vmem:[#allocation155_spill] sm:$0xff]  ;;  %v6431_v59 = vadd.f32 %v14748_v8, %v14746_v28 }
 0xcd2   : > { %10146 = vpow2.f32 %v6400_v55  ;;  %8961 = vmatprep.subr.bf16.mxu0 %v16488_v60  ;;  %v6352_v12 = vsub.f32 %v16489_v39, %v6316_v13  ;;  %v6353_v41 = vsub.f32 %v16490_v56, %v6316_v13  ;;  %v16500_v60 = vld [vmem:[#allocation157_spill] sm:$0xff]  ;;  %v16501_v39 = vld [vmem:[#allocation24_spill] sm:$0xff]  ;;  %v6434_v56 = vadd.f32 %v14763_v19, %v14759_v63  ;;  %v16504_v63 = vld [vmem:[#allocation26_spill] sm:$0xff] }
 0xcd3   : > { %10148 = vpow2.f32 %v6402_v34  ;;  %6540 = vmatprep.mubr.bf16.mxu0 %v6481_v50  ;;  %v14813_v29 = vpop.eup %10134  ;;  %v6440_v28 = vadd.f32 %v14788_v9, %v14784_v23  ;;  %v6437_v8 = vadd.f32 %v14770_v20, %v14768_v11  ;;  %v6443_v11 = vadd.f32 %v14799_v27, %v14795_v2 }
 0xcd4   : > { %v6404_v14 = vmul.f32 1.442695, %v6352_v12  ;;  %6541 = vmatmul.mubr.bf16.gmra.mxu0 %v6480_v7  ;;  %5959 = vadd.xlane.f32.xlu0 %v5958_v3  ;;  %v6406_v22 = vmul.f32 1.442695, %v6353_v41  ;;  %v14816_v0 = vpop.eup %10136 }
 0xcd5   : > { %8962 = vmatpush3.bf16.msra.mxu0 %v16491_v5  ;;  %5956 = vadd.xlane.f32.xlu1 %v5955_v37  ;;  %v6319_v61 = vpop.xlane.xlu1 %6318  ;;  %v6446_v23 = vadd.f32 %v14816_v0, %v14813_v29 }
 0xcd6   : > { %8963 = vmatprep.subr.bf16.mxu0 %v16492_v16  ;;  %v6354_v62 = vsub.f32 %v16493_v15, %v6319_v61  ;;  %v6355_v48 = vsub.f32 %v16494_v49, %v6319_v61  ;;  %10150 = vpow2.f32 %v6404_v14  ;;  %v16505_v16 = vld [vmem:[#allocation27_spill] sm:$0xff] }
 0xcd7   : > { %v14823_v35 = vpop.eup %10138  ;;  %10152 = vpow2.f32 %v6406_v22  ;;  %v16503_v22 = vld [vmem:[#allocation77_spill] sm:$0xff] }
 0xcd8   : > { %v14827_v33 = vpop.eup %10140  ;;  %v6408_v58 = vmul.f32 1.442695, %v6354_v62  ;;  %v6410_v38 = vmul.f32 1.442695, %v6355_v48  ;;  %5965 = vadd.xlane.f32.xlu0 %v5964_v51  ;;  %v6482_v47 = vpack.c.bf16 %v14823_v35, %v14813_v29 }
 0xcd9   : > { %8964 = vmatpush3.bf16.msra.mxu0 %v16495_v43  ;;  %5962 = vadd.xlane.f32.xlu1 %v5961_v32  ;;  %v6322_v45 = vpop.xlane.xlu0 %6321  ;;  %v6483_v30 = vpack.c.bf16 %v14827_v33, %v14816_v0  ;;  %v6449_v29 = vadd.f32 %v14827_v33, %v14823_v35 }
 0xcda   : > { %10154 = vpow2.f32 %v6408_v58  ;;  %8965 = vmatprep.subr.bf16.mxu0 %v16496_v25  ;;  %v6356_v42 = vsub.f32 %v16497_v18, %v6322_v45  ;;  %v6357_v44 = vsub.f32 %v16498_v4, %v6322_v45  ;;  %v16506_v58 = vld [vmem:[#allocation28_spill] sm:$0xff] }
 0xcdb   : > { %10156 = vpow2.f32 %v6410_v38  ;;  %6548 = vmatprep.mubr.bf16.mxu0 %v6483_v30  ;;  %v10143_v34 = vpop.eup %10142  ;;  %v16508_v4 = vld [vmem:[#allocation32_spill] sm:$0xff] }
 0xcdc   : > { %v6412_v55 = vmul.f32 1.442695, %v6356_v42  ;;  %6549 = vmatmul.mubr.bf16.gmra.mxu0 %v6482_v47  ;;  %6429 = vadd.xlane.f32.xlu0 %v6428_v24  ;;  %v6414_v7 = vmul.f32 1.442695, %v6357_v44  ;;  %v10145_v50 = vpop.eup %10144  ;;  %v16507_v47 = vld [vmem:[#allocation30_spill] sm:$0xff]  ;;  %v16509_v24 = vld [vmem:[#allocation35_spill] sm:$0xff] }
 0xcdd   : > { %8966 = vmatpush3.bf16.msra.mxu0 %v16499_v46  ;;  %5968 = vadd.xlane.f32.xlu1 %v5967_v54  ;;  %v6325_v13 = vpop.xlane.xlu1 %6324 }
 0xcde   : > { %8967 = vmatprep.subr.bf16.mxu0 %v16500_v60  ;;  %v6358_v12 = vsub.f32 %v16501_v39, %v6325_v13  ;;  %v6359_v6 = vsub.f32 %v16502_v57, %v6325_v13  ;;  %10158 = vpow2.f32 %v6412_v55  ;;  %v6452_v55 = vadd.f32 %v10145_v50, %v10143_v34  ;;  %v16510_v13 = vld [vmem:[#allocation37_spill] sm:$0xff]  ;;  %v16511_v39 = vld [vmem:[#allocation40_spill] sm:$0xff] }
 0xcdf   : > { %v14847_v31 = vpop.eup %10146  ;;  %10160 = vpow2.f32 %v6414_v7 }
 0xce0   : > { %v10149_v41 = vpop.eup %10148  ;;  %v6416_v3 = vmul.f32 1.442695, %v6358_v12  ;;  %v6418_v37 = vmul.f32 1.442695, %v6359_v6  ;;  %6435 = vadd.xlane.f32.xlu0 %v6434_v56  ;;  %v6484_v14 = vpack.c.bf16 %v14847_v31, %v10143_v34 }
 0xce1   : > { %8968 = vmatpush3.bf16.msra.mxu0 %v16503_v22  ;;  %6432 = vadd.xlane.f32.xlu1 %v6431_v59  ;;  %v6328_v5 = vpop.xlane.xlu0 %6327  ;;  %v6485_v61 = vpack.c.bf16 %v10149_v41, %v10145_v50  ;;  %v6455_v50 = vadd.f32 %v10149_v41, %v14847_v31  ;;  %v16513_v22 = vld [vmem:[#allocation45_spill] sm:$0xff] }
 0xce2   : > { %10162 = vpow2.f32 %v6416_v3  ;;  %v6360_v19 = vsub.f32 %v16504_v63, %v6328_v5  ;;  %v6361_v15 = vsub.f32 %v16505_v16, %v6328_v5 }
 0xce3   : > { %10164 = vpow2.f32 %v6418_v37  ;;  %6556 = vmatprep.mubr.bf16.mxu0 %v6485_v61  ;;  %v10151_v48 = vpop.eup %10150  ;;  %v16512_v37 = vld [vmem:[#allocation42_spill] sm:$0xff] }
 0xce4   : > { %v6420_v62 = vmul.f32 1.442695, %v6360_v19  ;;  %v6422_v49 = vmul.f32 1.442695, %v6361_v15  ;;  %6557 = vmatmul.mubr.bf16.gmra.mxu0 %v6484_v14  ;;  %6441 = vadd.xlane.f32.xlu0 %v6440_v28  ;;  %v10153_v32 = vpop.eup %10152 }
 0xce5   : > { %6438 = vadd.xlane.f32.xlu1 %v6437_v8  ;;  %v6331_v51 = vpop.xlane.xlu1 %6330  ;;  %v6458_v57 = vadd.f32 %v10153_v32, %v10151_v48 }
 0xce6   : > { %10166 = vpow2.f32 %v6420_v62  ;;  %v6362_v38 = vsub.f32 %v16506_v58, %v6331_v51  ;;  %v6363_v43 = vsub.f32 %v16507_v47, %v6331_v51 }
 0xce7   : > { %v10155_v9 = vpop.eup %10154  ;;  %10168 = vpow2.f32 %v6422_v49 }
 0xce8   : > { %v10157_v20 = vpop.eup %10156  ;;  %v6424_v45 = vmul.f32 1.442695, %v6362_v38  ;;  %v6426_v30 = vmul.f32 1.442695, %v6363_v43  ;;  %6447 = vadd.xlane.f32.xlu0 %v6446_v23  ;;  %v6486_v25 = vpack.c.bf16 %v10155_v9, %v10151_v48 }
 0xce9   : > { %6444 = vadd.xlane.f32.xlu1 %v6443_v11  ;;  %v6792_v18 = vpop.xlane.xlu0 %6791  ;;  %v6487_v42 = vpack.c.bf16 %v10157_v20, %v10153_v32  ;;  %v6461_v19 = vadd.f32 %v10157_v20, %v10155_v9  ;;  %v16514_v9 = vld [vmem:[#allocation47_spill] sm:$0xff] }
 0xcea   : > { %10170 = vpow2.f32 %v6424_v45  ;;  %v6838_v44 = vsub.f32 %v16508_v4, %v6792_v18  ;;  %v6839_v54 = vsub.f32 %v16509_v24, %v6792_v18 }
 0xceb   : > { %10172 = vpow2.f32 %v6426_v30  ;;  %6564 = vmatprep.mubr.bf16.mxu0 %v6487_v42  ;;  %v10159_v0 = vpop.eup %10158 }
 0xcec   : > { %v6870_v2 = vmul.f32 1.442695, %v6838_v44  ;;  %v6872_v27 = vmul.f32 1.442695, %v6839_v54  ;;  %6565 = vmatmul.mubr.bf16.gmra.mxu0 %v6486_v25  ;;  %6453 = vadd.xlane.f32.xlu0 %v6452_v55  ;;  %v10161_v46 = vpop.eup %10160 }
 0xced   : > { %6450 = vadd.xlane.f32.xlu1 %v6449_v29  ;;  %v6795_v7 = vpop.xlane.xlu1 %6794  ;;  %v6464_v61 = vadd.f32 %v10161_v46, %v10159_v0 }
 0xcee   : > { %10174 = vpow2.f32 %v6870_v2  ;;  %v6840_v60 = vsub.f32 %v16510_v13, %v6795_v7  ;;  %v6841_v12 = vsub.f32 %v16511_v39, %v6795_v7  ;;  %v16515_v7 = vld [vmem:[#allocation99_spill] sm:$0xff] }
 0xcef   : > { %v10163_v34 = vpop.eup %10162  ;;  %10176 = vpow2.f32 %v6872_v27 }
 0xcf0   : > { %v10165_v6 = vpop.eup %10164  ;;  %v6874_v35 = vmul.f32 1.442695, %v6840_v60  ;;  %v6876_v33 = vmul.f32 1.442695, %v6841_v12  ;;  %6459 = vadd.xlane.f32.xlu0 %v6458_v57  ;;  %v6488_v56 = vpack.c.bf16 %v10163_v34, %v10159_v0  ;;  %v16516_v57 = vld [vmem:[#allocation94_spill] sm:$0xff] }
 0xcf1   : > { %6456 = vadd.xlane.f32.xlu1 %v6455_v50  ;;  %v6798_v59 = vpop.xlane.xlu0 %6797  ;;  %v6489_v3 = vpack.c.bf16 %v10165_v6, %v10161_v46  ;;  %v6467_v48 = vadd.f32 %v10165_v6, %v10163_v34  ;;  %v16517_v50 = vld [vmem:[#allocation105_spill] sm:$0xff] }
 0xcf2   : > { %10178 = vpow2.f32 %v6874_v35  ;;  %v6842_v14 = vsub.f32 %v16512_v37, %v6798_v59  ;;  %v6843_v5 = vsub.f32 %v16513_v22, %v6798_v59  ;;  %v16518_v22 = vld [vmem:[#allocation95_spill] sm:$0xff] }
 0xcf3   : > { %v10167_v63 = vpop.eup %10166  ;;  %10180 = vpow2.f32 %v6876_v33  ;;  %6572 = vmatprep.mubr.bf16.mxu0 %v6489_v3 }
 0xcf4   : > { %v10169_v16 = vpop.eup %10168  ;;  %v6878_v31 = vmul.f32 1.442695, %v6842_v14  ;;  %v6880_v41 = vmul.f32 1.442695, %v6843_v5  ;;  %6573 = vmatmul.mubr.bf16.gmra.mxu0 %v6488_v56  ;;  %6465 = vadd.xlane.f32.xlu0 %v6464_v61  ;;  %v16519_v61 = vld [vmem:[#allocation111_spill] sm:$0xff] }
 0xcf5   : > { %6462 = vadd.xlane.f32.xlu1 %v6461_v19  ;;  %v6801_v15 = vpop.xlane.xlu1 %6800  ;;  %v6470_v62 = vadd.f32 %v10169_v16, %v10167_v63 }
 0xcf6   : > { %10182 = vpow2.f32 %v6878_v31  ;;  %v6844_v28 = vsub.f32 %v14483_v21, %v6801_v15  ;;  %v6845_v8 = vsub.f32 %v14485_v36, %v6801_v15 }
 0xcf7   : > { %v10171_v49 = vpop.eup %10170  ;;  %10184 = vpow2.f32 %v6880_v41 }
 0xcf8   : > { %v10173_v51 = vpop.eup %10172  ;;  %v6882_v32 = vmul.f32 1.442695, %v6844_v28  ;;  %v6884_v58 = vmul.f32 1.442695, %v6845_v8  ;;  %6471 = vadd.xlane.f32.xlu0 %v6470_v62  ;;  %v6490_v38 = vpack.c.bf16 %v10171_v49, %v10167_v63  ;;  %v16520_v8 = vld [vmem:[#allocation97_spill] sm:$0xff] }
 0xcf9   : > { %6468 = vadd.xlane.f32.xlu1 %v6467_v48  ;;  %v6804_v47 = vpop.xlane.xlu0 %6803  ;;  %v6491_v43 = vpack.c.bf16 %v10173_v51, %v10169_v16  ;;  %v6473_v36 = vadd.f32 %v10173_v51, %v10171_v49  ;;  %v16521_v49 = vld [vmem:[#allocation115_spill] sm:$0xff] }
 0xcfa   : > { %10186 = vpow2.f32 %v6882_v32  ;;  %v6846_v23 = vsub.f32 %v14491_v53, %v6804_v47  ;;  %v6847_v11 = vsub.f32 %v16514_v9, %v6804_v47 }
 0xcfb   : > { %v10175_v21 = vpop.eup %10174  ;;  %10188 = vpow2.f32 %v6884_v58  ;;  %6580 = vmatprep.mubr.bf16.mxu0 %v6491_v43 }
 0xcfc   : > { %v10177_v20 = vpop.eup %10176  ;;  %v6886_v45 = vmul.f32 1.442695, %v6846_v23  ;;  %v6888_v30 = vmul.f32 1.442695, %v6847_v11  ;;  %6581 = vmatmul.mubr.bf16.gmra.mxu0 %v6490_v38  ;;  %v16522_v11 = vld [vmem:[#allocation100_spill] sm:$0xff] }
 0xcfd   : > { %6474 = vadd.xlane.f32.xlu1 %v6473_v36  ;;  %v6807_v25 = vpop.xlane.xlu1 %6806  ;;  %v6934_v18 = vadd.f32 %v10177_v20, %v10175_v21  ;;  %v16523_v36 = vld [vmem:[#allocation119_spill] sm:$0xff] }
 0xcfe   : > { %10190 = vpow2.f32 %v6886_v45  ;;  %v6848_v42 = vsub.f32 %v14499_v52, %v6807_v25  ;;  %v6849_v4 = vsub.f32 %v14501_v17, %v6807_v25 }
 0xcff   : > { %v10179_v44 = vpop.eup %10178  ;;  %10192 = vpow2.f32 %v6888_v30  ;;  %6935 = vadd.xlane.f32.xlu0 %v6934_v18 }
 0xd00   : > { %v10181_v53 = vpop.eup %10180  ;;  %v6890_v24 = vmul.f32 1.442695, %v6848_v42  ;;  %v6892_v54 = vmul.f32 1.442695, %v6849_v4  ;;  %v6982_v55 = vpack.c.bf16 %v10179_v44, %v10175_v21 }
 0xd01   : > { %v6810_v29 = vpop.xlane.xlu0 %6809  ;;  %v6983_v2 = vpack.c.bf16 %v10181_v53, %v10177_v20  ;;  %v6937_v27 = vadd.f32 %v10181_v53, %v10179_v44  ;;  %v16524_v44 = vld [vmem:[#allocation103_spill] sm:$0xff] }
 0xd02   : > { %10194 = vpow2.f32 %v6890_v24  ;;  %v6850_v0 = vsub.f32 %v14507_v1, %v6810_v29  ;;  %v6851_v46 = vsub.f32 %v16515_v7, %v6810_v29  ;;  %v16525_v24 = vld [vmem:[#allocation123_spill] sm:$0xff] }
 0xd03   : > { %v10183_v13 = vpop.eup %10182  ;;  %10196 = vpow2.f32 %v6892_v54  ;;  %7030 = vmatprep.mubr.bf16.mxu0 %v6983_v2  ;;  %6938 = vadd.xlane.f32.xlu1 %v6937_v27 }
 0xd04   : > { %v10185_v52 = vpop.eup %10184  ;;  %v6894_v17 = vmul.f32 1.442695, %v6850_v0  ;;  %v6896_v60 = vmul.f32 1.442695, %v6851_v46  ;;  %7031 = vmatmul.mubr.bf16.vlgmr.msra.gmra.mxu0 %v6982_v55 }
 0xd05   : > { %v6813_v39 = vpop.xlane.xlu1 %6812  ;;  %v6940_v12 = vadd.f32 %v10185_v52, %v10183_v13 }
 0xd06   : > { %10198 = vpow2.f32 %v6894_v17  ;;  %v6852_v34 = vsub.f32 %v16516_v57, %v6813_v39  ;;  %v6853_v6 = vsub.f32 %v16517_v50, %v6813_v39 }
 0xd07   : > { %v10187_v35 = vpop.eup %10186  ;;  %10200 = vpow2.f32 %v6896_v60  ;;  %6941 = vadd.xlane.f32.xlu0 %v6940_v12  ;;  %v16527_v60 = vld [vmem:[#allocation127_spill] sm:$0xff] }
 0xd08   : > { %v10189_v1 = vpop.eup %10188  ;;  %v6898_v33 = vmul.f32 1.442695, %v6852_v34  ;;  %v6900_v56 = vmul.f32 1.442695, %v6853_v6  ;;  %v6984_v59 = vpack.c.bf16 %v10187_v35, %v10183_v13 }
 0xd09   : > { %v6816_v3 = vpop.xlane.xlu0 %6815  ;;  %v6985_v37 = vpack.c.bf16 %v10189_v1, %v10185_v52  ;;  %v6943_v14 = vadd.f32 %v10189_v1, %v10187_v35  ;;  %v16526_v52 = vld [vmem:[#allocation106_spill] sm:$0xff] }
 0xd0a   : > { %10202 = vpow2.f32 %v6898_v33  ;;  %v6854_v5 = vsub.f32 %v16518_v22, %v6816_v3  ;;  %v6855_v63 = vsub.f32 %v16519_v61, %v6816_v3  ;;  %v16528_v33 = vld [vmem:[#allocation80_spill] sm:$0xff] }
 0xd0b   : > { %v10191_v19 = vpop.eup %10190  ;;  %10204 = vpow2.f32 %v6900_v56  ;;  %7038 = vmatprep.mubr.bf16.mxu0 %v6985_v37  ;;  %6944 = vadd.xlane.f32.xlu1 %v6943_v14 }
 0xd0c   : > { %v10193_v16 = vpop.eup %10192  ;;  %v6902_v31 = vmul.f32 1.442695, %v6854_v5  ;;  %v6904_v41 = vmul.f32 1.442695, %v6855_v63  ;;  %7039 = vmatmul.mubr.bf16.gmra.mxu0 %v6984_v59 }
 0xd0d   : > { %v6819_v15 = vpop.xlane.xlu1 %6818  ;;  %v6946_v28 = vadd.f32 %v10193_v16, %v10191_v19 }
 0xd0e   : > { %10206 = vpow2.f32 %v6902_v31  ;;  %v6856_v62 = vsub.f32 %v16520_v8, %v6819_v15  ;;  %v6857_v48 = vsub.f32 %v16521_v49, %v6819_v15  ;;  %v16530_v31 = vld [vmem:[#allocation132_spill] sm:$0xff] }
 0xd0f   : > { %v10195_v51 = vpop.eup %10194  ;;  %10208 = vpow2.f32 %v6904_v41  ;;  %6947 = vadd.xlane.f32.xlu0 %v6946_v28 }
 0xd10   : > { %v10197_v32 = vpop.eup %10196  ;;  %v6906_v58 = vmul.f32 1.442695, %v6856_v62  ;;  %v6908_v38 = vmul.f32 1.442695, %v6857_v48  ;;  %v6986_v47 = vpack.c.bf16 %v10195_v51, %v10191_v19  ;;  %v16529_v19 = vld [vmem:[#allocation109_spill] sm:$0xff] }
 0xd11   : > { %v6822_v43 = vpop.xlane.xlu0 %6821  ;;  %v6987_v23 = vpack.c.bf16 %v10197_v32, %v10193_v16  ;;  %v6949_v9 = vadd.f32 %v10197_v32, %v10195_v51 }
 0xd12   : > { %10210 = vpow2.f32 %v6906_v58  ;;  %v6858_v21 = vsub.f32 %v16522_v11, %v6822_v43  ;;  %v6859_v20 = vsub.f32 %v16523_v36, %v6822_v43 }
 0xd13   : > { %v10199_v45 = vpop.eup %10198  ;;  %10212 = vpow2.f32 %v6908_v38  ;;  %7046 = vmatprep.mubr.bf16.mxu0 %v6987_v23  ;;  %6950 = vadd.xlane.f32.xlu1 %v6949_v9 }
 0xd14   : > { %v10201_v30 = vpop.eup %10200  ;;  %v6910_v25 = vmul.f32 1.442695, %v6858_v21  ;;  %v6912_v18 = vmul.f32 1.442695, %v6859_v20  ;;  %7047 = vmatmul.mubr.bf16.gmra.mxu0 %v6986_v47 }
 0xd15   : > { %v6825_v42 = vpop.xlane.xlu1 %6824  ;;  %v6952_v4 = vadd.f32 %v10201_v30, %v10199_v45 }
 0xd16   : > { %10214 = vpow2.f32 %v6910_v25  ;;  %v6860_v53 = vsub.f32 %v16524_v44, %v6825_v42  ;;  %v6861_v54 = vsub.f32 %v16525_v24, %v6825_v42 }
 0xd17   : > { %v10203_v55 = vpop.eup %10202  ;;  %10216 = vpow2.f32 %v6912_v18  ;;  %6953 = vadd.xlane.f32.xlu0 %v6952_v4 }
 0xd18   : > { %v10205_v29 = vpop.eup %10204  ;;  %v6914_v2 = vmul.f32 1.442695, %v6860_v53  ;;  %v6916_v27 = vmul.f32 1.442695, %v6861_v54  ;;  %v6988_v0 = vpack.c.bf16 %v10203_v55, %v10199_v45 }
 0xd19   : > { %v6828_v7 = vpop.xlane.xlu0 %6827  ;;  %v6989_v46 = vpack.c.bf16 %v10205_v29, %v10201_v30  ;;  %v6955_v13 = vadd.f32 %v10205_v29, %v10203_v55 }
 0xd1a   : > { %10218 = vpow2.f32 %v6914_v2  ;;  %v6862_v17 = vsub.f32 %v16526_v52, %v6828_v7  ;;  %v6863_v39 = vsub.f32 %v16527_v60, %v6828_v7  ;;  %v16531_v7 = vld [vmem:[#allocation239_spill] sm:$0xff] }
 0xd1b   : > { %v10207_v12 = vpop.eup %10206  ;;  %10220 = vpow2.f32 %v6916_v27  ;;  %7054 = vmatprep.mubr.bf16.mxu0 %v6989_v46  ;;  %6956 = vadd.xlane.f32.xlu1 %v6955_v13 }
 0xd1c   : > { %v10209_v57 = vpop.eup %10208  ;;  %v6918_v34 = vmul.f32 1.442695, %v6862_v17  ;;  %v6920_v50 = vmul.f32 1.442695, %v6863_v39  ;;  %7055 = vmatmul.mubr.bf16.gmra.mxu0 %v6988_v0 }
 0xd1d   : > { %v6831_v6 = vpop.xlane.xlu1 %6830  ;;  %v6958_v35 = vadd.f32 %v10209_v57, %v10207_v12 }
 0xd1e   : > { %10222 = vpow2.f32 %v6918_v34  ;;  %v6864_v1 = vsub.f32 %v14599_v40, %v6831_v6  ;;  %v6865_v56 = vsub.f32 %v16528_v33, %v6831_v6  ;;  %v16532_v6 = vld [vmem:[#allocation240_spill] sm:$0xff] }
 0xd1f   : > { %v10211_v59 = vpop.eup %10210  ;;  %10224 = vpow2.f32 %v6920_v50  ;;  %6959 = vadd.xlane.f32.xlu0 %v6958_v35 }
 0xd20   : > { %v10213_v3 = vpop.eup %10212  ;;  %v6922_v37 = vmul.f32 1.442695, %v6864_v1  ;;  %v6924_v14 = vmul.f32 1.442695, %v6865_v56  ;;  %v6990_v22 = vpack.c.bf16 %v10211_v59, %v10207_v12  ;;  %v16533_v1 = vld [vmem:[#allocation241_spill] sm:$0xff] }
 0xd21   : > { %v6834_v5 = vpop.xlane.xlu0 %6833  ;;  %v6991_v61 = vpack.c.bf16 %v10213_v3, %v10209_v57  ;;  %v6961_v63 = vadd.f32 %v10213_v3, %v10211_v59 }
 0xd22   : > { %10226 = vpow2.f32 %v6922_v37  ;;  %v6866_v16 = vsub.f32 %v16529_v19, %v6834_v5  ;;  %v6867_v41 = vsub.f32 %v16530_v31, %v6834_v5  ;;  %v16535_v19 = vld [vmem:[#allocation243_spill] sm:$0xff] }
 0xd23   : > { %v10215_v15 = vpop.eup %10214  ;;  %10228 = vpow2.f32 %v6924_v14  ;;  %7062 = vmatprep.mubr.bf16.mxu0 %v6991_v61  ;;  %6962 = vadd.xlane.f32.xlu1 %v6961_v63  ;;  %v16534_v14 = vld [vmem:[#allocation242_spill] sm:$0xff] }
 0xd24   : > { %v10217_v40 = vpop.eup %10216  ;;  %v6926_v28 = vmul.f32 1.442695, %v6866_v16  ;;  %v6928_v8 = vmul.f32 1.442695, %v6867_v41  ;;  %7063 = vmatmul.mubr.bf16.gmra.mxu0 %v6990_v22 }
 0xd25   : > { %v5410_v62 = vpop.xlane.xlu0 %5409  ;;  %v6964_v49 = vadd.f32 %v10217_v40, %v10215_v15 }
 0xd26   : > { %10230 = vpow2.f32 %v6926_v28  ;;  %v6837_v48 = vpop.xlane.xlu1 %6836 }
 0xd27   : > { %v10219_v51 = vpop.eup %10218  ;;  %10232 = vpow2.f32 %v6928_v8  ;;  %v6868_v32 = vsub.f32 %v14631_v26, %v6837_v48  ;;  %v6869_v58 = vsub.f32 %v14638_v10, %v6837_v48  ;;  %6965 = vadd.xlane.f32.xlu0 %v6964_v49 }
 0xd28   : > { %v10221_v38 = vpop.eup %10220  ;;  %10234 = vrcp.f32 %v5410_v62  ;;  %v6992_v47 = vpack.c.bf16 %v10219_v51, %v10215_v15 }
 0xd29   : > { %v6930_v43 = vmul.f32 1.442695, %v6868_v32  ;;  %v6932_v23 = vmul.f32 1.442695, %v6869_v58  ;;  %v5924_v9 = vpop.xlane.xlu0 %5923  ;;  %v6993_v11 = vpack.c.bf16 %v10221_v38, %v10217_v40  ;;  %v6967_v21 = vadd.f32 %v10221_v38, %v10219_v51  ;;  %v16536_v51 = vld [vmem:[#allocation244_spill] sm:$0xff] }
 0xd2a   : > { %v5413_v36 = vpop.xlane.xlu1 %5412 }
 0xd2b   : > { %v10223_v20 = vpop.eup %10222  ;;  %10236 = vpow2.f32 %v6930_v43  ;;  %7070 = vmatprep.mubr.bf16.mxu0 %v6993_v11  ;;  %6968 = vadd.xlane.f32.xlu1 %v6967_v21  ;;  %v16537_v21 = vld [vmem:[#allocation245_spill] sm:$0xff] }
 0xd2c   : > { %v10225_v45 = vpop.eup %10224  ;;  %10238 = vpow2.f32 %v6932_v23  ;;  %7071 = vmatmul.mubr.bf16.gmra.mxu0 %v6992_v47 }
 0xd2d   : > { %10240 = vrcp.f32 %v5413_v36  ;;  %v5416_v26 = vpop.xlane.xlu0 %5415  ;;  %v6970_v10 = vadd.f32 %v10225_v45, %v10223_v20 }
 0xd2e   : > { %10242 = vrcp.f32 %v5416_v26  ;;  %v5927_v30 = vpop.xlane.xlu1 %5926 }
 0xd2f   : > { %v10227_v25 = vpop.eup %10226  ;;  %6971 = vadd.xlane.f32.xlu0 %v6970_v10 }
 0xd30   : > { %v10229_v18 = vpop.eup %10228  ;;  %v6994_v42 = vpack.c.bf16 %v10227_v25, %v10223_v20 }
 0xd31   : > { %v5930_v4 = vpop.xlane.xlu0 %5929  ;;  %v6995_v44 = vpack.c.bf16 %v10229_v18, %v10225_v45  ;;  %v6973_v53 = vadd.f32 %v10229_v18, %v10227_v25 }
 0xd32   : > { %v5419_v24 = vpop.xlane.xlu1 %5418 }
 0xd33   : > { %v10231_v54 = vpop.eup %10230  ;;  %10244 = vrcp.f32 %v5419_v24  ;;  %7078 = vmatprep.mubr.bf16.mxu0 %v6995_v44  ;;  %6974 = vadd.xlane.f32.xlu1 %v6973_v53  ;;  %v16538_v24 = vld [vmem:[#allocation246_spill] sm:$0xff] }
 0xd34   : > { %v10233_v55 = vpop.eup %10232  ;;  %7079 = vmatmul.mubr.bf16.gmra.mxu0 %v6994_v42 }
 0xd35   : > { %v10235_v29 = vpop.eup %10234  ;;  %v5422_v2 = vpop.xlane.xlu0 %5421  ;;  %v6976_v27 = vadd.f32 %v10233_v55, %v10231_v54 }
 0xd36   : > { %10246 = vrcp.f32 %v5422_v2  ;;  %v5933_v0 = vpop.xlane.xlu1 %5932  ;;  %v5585_v46 = vmul.f32 %v10235_v29, %v16531_v7 }
 0xd37   : > { %6977 = vadd.xlane.f32.xlu0 %v6976_v27  ;;  %10248 = vrcp.f32 %v5924_v9 }
 0xd38   : > { %v10237_v13 = vpop.eup %10236 }
 0xd39   : > { %v10239_v52 = vpop.eup %10238  ;;  %v5936_v17 = vpop.xlane.xlu0 %5935  ;;  %v6996_v60 = vpack.c.bf16 %v10237_v13, %v10231_v54 }
 0xd3a   : > { %v10241_v39 = vpop.eup %10240  ;;  %v5425_v12 = vpop.xlane.xlu1 %5424  ;;  %v6997_v57 = vpack.c.bf16 %v10239_v52, %v10233_v55  ;;  %v6979_v34 = vadd.f32 %v10239_v52, %v10237_v13  ;;  %v16539_v13 = vld [vmem:[#allocation247_spill] sm:$0xff] }
 0xd3b   : > { %v10243_v50 = vpop.eup %10242  ;;  %10250 = vrcp.f32 %v5425_v12  ;;  %v5586_v35 = vmul.f32 %v10241_v39, %v16532_v6 }
 0xd3c   : > { %7086 = vmatprep.mubr.bf16.mxu0 %v6997_v57  ;;  %6980 = vadd.xlane.f32.xlu1 %v6979_v34  ;;  %v5587_v33 = vmul.f32 %v10243_v50, %v16533_v1  ;;  %v16540_v34 = vld [vmem:[#allocation248_spill] sm:$0xff]  ;;  %v16541_v50 = vld [vmem:[#allocation249_spill] sm:$0xff] }
 0xd3d   : > { %7087 = vmatmul.mubr.bf16.gmra.mxu0 %v6996_v60  ;;  %v5428_v56 = vpop.xlane.xlu0 %5427  ;;  %v8710_v6 = vadd.f32 %v16541_v50, %v16540_v34 }
 0xd3e   : > { %10252 = vrcp.f32 %v5428_v56  ;;  %v5939_v59 = vpop.xlane.xlu1 %5938 }
 0xd3f   : > { %10254 = vrcp.f32 %v5927_v30 }
 0xd40   : > { %v10245_v3 = vpop.eup %10244  ;;  %10256 = vrcp.f32 %v5930_v4 }
 0xd41   : > { %v5942_v37 = vpop.xlane.xlu0 %5941  ;;  %v14904_v22 = vmul.f32 %v10245_v3, %v16534_v14  ;;  %v16542_v3 = vld [vmem:[#allocation250_spill] sm:$0xff] }
 0xd42   : > { %v5431_v5 = vpop.xlane.xlu1 %5430 }
 0xd43   : > { %v10247_v61 = vpop.eup %10246  ;;  %10258 = vrcp.f32 %v5431_v5 }
 0xd44   : > { %v8777_v63 = vpop.f32.mrf.mxu0  ;;  %v14907_v16 = vmul.f32 %v10247_v61, %v16535_v19  ;;  %v10249_v40 = vpop.eup %10248 }
 0xd45   : > { %v5434_v31 = vpop.xlane.xlu0 %5433 }
 0xd46   : > { %v8778_v41 = vpop.f32.mrf.mxu0  ;;  %10260 = vrcp.f32 %v5434_v31  ;;  %v5945_v15 = vpop.xlane.xlu1 %5944  ;;  %v16543_v31 = vld [vmem:[#allocation251_spill] sm:$0xff] }
 0xd47   : > { %10262 = vrcp.f32 %v5933_v0  ;;  %v8779_v28 = vadd.f32 %v8778_v41, %v8777_v63  ;;  %v16544_v41 = vld [vmem:[#allocation252_spill] sm:$0xff] }
 0xd48   : > { %v10251_v8 = vpop.eup %10250  ;;  %v8780_v62 = vpop.f32.mrf.mxu0  ;;  %10264 = vrcp.f32 %v5936_v17 }
 0xd49   : > { %v6099_v49 = vmul.f32 %v10249_v40, %v8779_v28  ;;  %v5440_v48 = vpop.xlane.xlu0 %5439  ;;  %v14910_v32 = vmul.f32 %v10251_v8, %v16536_v51 }
 0xd4a   : > { %v8781_v58 = vpop.f32.mrf.mxu0  ;;  %10266 = vrcp.f32 %v5440_v48  ;;  %v5437_v38 = vpop.xlane.xlu1 %5436 }
 0xd4b   : > { %v10253_v47 = vpop.eup %10252  ;;  %v14912_v43 = vadd.f32 %v6099_v49, %v5585_v46  ;;  %v8782_v23 = vadd.f32 %v8781_v58, %v8780_v62  ;;  %10268 = vrcp.f32 %v5437_v38  ;;  %v16545_v49 = vld [vmem:[#allocation253_spill] sm:$0xff] }
 0xd4c   : > { %v10255_v9 = vpop.eup %10254  ;;  %v8783_v11 = vpop.f32.mrf.mxu0  ;;  %v14915_v36 = vmul.f32 %v10253_v47, %v16537_v21  ;;  %10270 = vrcp.f32 %v5939_v59 }
 0xd4d   : > { %v6100_v20 = vmul.f32 %v10255_v9, %v8782_v23  ;;  %v5446_v45 = vpop.xlane.xlu0 %5445  ;;  %v10257_v30 = vpop.eup %10256  ;;  %v16546_v9 = vld [vmem:[#allocation212_spill] sm:$0xff] }
 0xd4e   : > { %v8784_v26 = vpop.f32.mrf.mxu0  ;;  %10272 = vrcp.f32 %v5446_v45  ;;  %v5443_v10 = vpop.xlane.xlu1 %5442 }
 0xd4f   : > { %v14917_v25 = vadd.f32 %v6100_v20, %v5586_v35  ;;  %v8785_v18 = vadd.f32 %v8784_v26, %v8783_v11  ;;  %10274 = vrcp.f32 %v5443_v10  ;;  %v16547_v11 = vld [vmem:[#allocation254_spill] sm:$0xff] }
 0xd50   : > { %v10259_v42 = vpop.eup %10258  ;;  %v8786_v4 = vpop.f32.mrf.mxu0  ;;  %10276 = vrcp.f32 %v5942_v37  ;;  %v8722_v21 = vadd.f32 %v16547_v11, %v16546_v9 }
 0xd51   : > { %v6101_v44 = vmul.f32 %v10257_v30, %v8785_v18  ;;  %v5452_v53 = vpop.xlane.xlu0 %5451  ;;  %v14920_v54 = vmul.f32 %v10259_v42, %v16538_v24  ;;  %v16548_v30 = vld [vmem:[#allocation213_spill] sm:$0xff]  ;;  %v16549_v24 = vld [vmem:[#allocation214_spill] sm:$0xff] }
 0xd52   : > { %v8787_v55 = vpop.f32.mrf.mxu0  ;;  %10278 = vrcp.f32 %v5452_v53  ;;  %v5449_v29 = vpop.xlane.xlu1 %5448 }
 0xd53   : > { %v10261_v2 = vpop.eup %10260  ;;  %v14922_v27 = vadd.f32 %v6101_v44, %v5587_v33  ;;  %v8788_v0 = vadd.f32 %v8787_v55, %v8786_v4  ;;  %10280 = vrcp.f32 %v5449_v29  ;;  %v16550_v55 = vld [vmem:[#allocation58_spill] sm:$0xff] }
 0xd54   : > { %v10263_v7 = vpop.eup %10262  ;;  %v8789_v46 = vpop.f32.mrf.mxu0  ;;  %v14925_v52 = vmul.f32 %v10261_v2, %v16539_v13  ;;  %10282 = vrcp.f32 %v5945_v15  ;;  %v8716_v15 = vadd.f32 %v16544_v41, %v16543_v31  ;;  %v8728_v29 = vadd.f32 %v16550_v55, %v16549_v24 }
 0xd55   : > { %v6102_v17 = vmul.f32 %v10263_v7, %v8788_v0  ;;  %v10265_v60 = vpop.eup %10264  ;;  %v5948_v56 = vpop.xlane.xlu0 %5947 }
 0xd56   : > { %v8790_v39 = vpop.f32.mrf.mxu0  ;;  %v5455_v12 = vpop.xlane.xlu1 %5454 }
 0xd57   : > { %v10267_v57 = vpop.eup %10266  ;;  %v14930_v35 = vadd.f32 %v6102_v17, %v14904_v22  ;;  %v8791_v1 = vadd.f32 %v8790_v39, %v8789_v46  ;;  %10284 = vrcp.f32 %v5455_v12 }
 0xd58   : > { %v10269_v33 = vpop.eup %10268  ;;  %v8792_v59 = vpop.f32.mrf.mxu0  ;;  %v14933_v37 = vmul.f32 %v10267_v57, %v16542_v3  ;;  %10286 = vrcp.f32 %v5948_v56 }
 0xd59   : > { %v6103_v14 = vmul.f32 %v10265_v60, %v8791_v1  ;;  %v5594_v5 = vmul.f32 %v10269_v33, %v8710_v6  ;;  %v10271_v61 = vpop.eup %10270  ;;  %v5954_v26 = vpop.xlane.xlu0 %5953 }
 0xd5a   : > { %v8793_v63 = vpop.f32.mrf.mxu0  ;;  %v5951_v8 = vpop.xlane.xlu1 %5950 }
 0xd5b   : > { %v10273_v19 = vpop.eup %10272  ;;  %v14938_v40 = vadd.f32 %v6103_v14, %v14907_v16  ;;  %v8794_v22 = vadd.f32 %v8793_v63, %v8792_v59  ;;  %10288 = vrcp.f32 %v5951_v8 }
 0xd5c   : > { %v10275_v28 = vpop.eup %10274  ;;  %v8795_v62 = vpop.f32.mrf.mxu0  ;;  %v14941_v48 = vmul.f32 %v10273_v19, %v16545_v49  ;;  %10290 = vrcp.f32 %v5954_v26 }
 0xd5d   : > { %v6104_v51 = vmul.f32 %v10271_v61, %v8794_v22  ;;  %v5596_v58 = vmul.f32 %v10275_v28, %v8716_v15  ;;  %v10277_v38 = vpop.eup %10276  ;;  %v5960_v34 = vpop.xlane.xlu0 %5959 }
 0xd5e   : > { %v8796_v47 = vpop.f32.mrf.mxu0  ;;  %v5957_v7 = vpop.xlane.xlu1 %5956 }
 0xd5f   : > { %v10279_v23 = vpop.eup %10278  ;;  %v14946_v20 = vadd.f32 %v6104_v51, %v14910_v32  ;;  %v8797_v16 = vadd.f32 %v8796_v47, %v8795_v62  ;;  %10292 = vrcp.f32 %v5957_v7 }
 0xd60   : > { %v10281_v45 = vpop.eup %10280  ;;  %v8798_v10 = vpop.f32.mrf.mxu0  ;;  %v14949_v18 = vmul.f32 %v10279_v23, %v16548_v30  ;;  %10294 = vrcp.f32 %v5960_v34 }
 0xd61   : > { %v6105_v42 = vmul.f32 %v10277_v38, %v8797_v16  ;;  %v5598_v4 = vmul.f32 %v10281_v45, %v8722_v21  ;;  %v10283_v53 = vpop.eup %10282  ;;  %v5966_v31 = vpop.xlane.xlu0 %5965 }
 0xd62   : > { %v8799_v44 = vpop.f32.mrf.mxu0  ;;  %v5963_v59 = vpop.xlane.xlu1 %5962 }
 0xd63   : > { %v14954_v2 = vadd.f32 %v6105_v42, %v14915_v36  ;;  %v8800_v32 = vadd.f32 %v8799_v44, %v8798_v10  ;;  %10296 = vrcp.f32 %v5963_v59 }
 0xd64   : > { %v10285_v0 = vpop.eup %10284  ;;  %v8801_v46 = vpop.f32.mrf.mxu0  ;;  %10298 = vrcp.f32 %v5966_v31 }
 0xd65   : > { %v6106_v13 = vmul.f32 %v10283_v53, %v8800_v32  ;;  %v14956_v17 = vmul.f32 %v10285_v0, %v8728_v29  ;;  %v10287_v57 = vpop.eup %10286  ;;  %v6430_v9 = vpop.xlane.xlu0 %6429 }
 0xd66   : > { %v8802_v60 = vpop.f32.mrf.mxu0  ;;  %v5969_v62 = vpop.xlane.xlu1 %5968 }
 0xd67   : > { %v14959_v39 = vadd.f32 %v6106_v13, %v14920_v54  ;;  %v8803_v12 = vadd.f32 %v8802_v60, %v8801_v46  ;;  %10300 = vrcp.f32 %v5969_v62 }
 0xd68   : > { %v8804_v50 = vpop.f32.mrf.mxu0  ;;  %v10289_v56 = vpop.eup %10288  ;;  %10302 = vrcp.f32 %v6430_v9 }
 0xd69   : > { %v6107_v6 = vmul.f32 %v10287_v57, %v8803_v12  ;;  %v10291_v19 = vpop.eup %10290  ;;  %v6436_v55 = vpop.xlane.xlu0 %6435 }
 0xd6a   : > { %v8805_v1 = vpop.f32.mrf.mxu0  ;;  %v6433_v10 = vpop.xlane.xlu1 %6432 }
 0xd6b   : > { %v14962_v36 = vadd.f32 %v6107_v6, %v14925_v52  ;;  %v8806_v33 = vadd.f32 %v8805_v1, %v8804_v50  ;;  %10304 = vrcp.f32 %v6433_v10 }
 0xd6c   : > { %v8807_v3 = vpop.f32.mrf.mxu0  ;;  %v10293_v8 = vpop.eup %10292  ;;  %10306 = vrcp.f32 %v6436_v55 }
 0xd6d   : > { %v6108_v14 = vmul.f32 %v10289_v56, %v8806_v33  ;;  %v10295_v23 = vpop.eup %10294  ;;  %v6442_v6 = vpop.xlane.xlu0 %6441 }
 0xd6e   : > { %v8808_v61 = vpop.f32.mrf.mxu0  ;;  %v6439_v13 = vpop.xlane.xlu1 %6438 }
 0xd6f   : > { %v14964_v63 = vadd.f32 %v6108_v14, %v5594_v5  ;;  %v8809_v54 = vadd.f32 %v8808_v61, %v8807_v3  ;;  %10308 = vrcp.f32 %v6439_v13 }
 0xd70   : > { %v8810_v41 = vpop.f32.mrf.mxu0  ;;  %v10297_v26 = vpop.eup %10296  ;;  %10310 = vrcp.f32 %v6442_v6 }
 0xd71   : > { %v6109_v15 = vmul.f32 %v10291_v19, %v8809_v54  ;;  %v10299_v24 = vpop.eup %10298 }
 0xd72   : > { %v8811_v22 = vpop.f32.mrf.mxu0  ;;  %v6445_v14 = vpop.xlane.xlu1 %6444 }
 0xd73   : > { %v14967_v28 = vadd.f32 %v6109_v15, %v14933_v37  ;;  %v8812_v52 = vadd.f32 %v8811_v22, %v8810_v41  ;;  %10312 = vrcp.f32 %v6445_v14  ;;  %v6448_v15 = vpop.xlane.xlu0 %6447 }
 0xd74   : > { %v8813_v49 = vpop.f32.mrf.mxu0  ;;  %v10301_v46 = vpop.eup %10300  ;;  %10314 = vrcp.f32 %v6448_v15 }
 0xd75   : > { %v6110_v51 = vmul.f32 %v10293_v8, %v8812_v52  ;;  %v10303_v50 = vpop.eup %10302 }
 0xd76   : > { %v8814_v38 = vpop.f32.mrf.mxu0 }
 0xd77   : > { %v14969_v47 = vadd.f32 %v6110_v51, %v5596_v58  ;;  %v8815_v5 = vadd.f32 %v8814_v38, %v8813_v49  ;;  %v6451_v51 = vpop.xlane.xlu1 %6450 }
 0xd78   : > { %v8816_v11 = vpop.f32.mrf.mxu0  ;;  %v10305_v3 = vpop.eup %10304  ;;  %10316 = vrcp.f32 %v6451_v51 }
 0xd79   : > { %v6111_v21 = vmul.f32 %v10295_v23, %v8815_v5  ;;  %v10307_v41 = vpop.eup %10306 }
 0xd7a   : > { %v8817_v16 = vpop.f32.mrf.mxu0 }
 0xd7b   : > { %v14972_v45 = vadd.f32 %v6111_v21, %v14941_v48  ;;  %v8818_v37 = vadd.f32 %v8817_v16, %v8816_v11  ;;  %v6454_v21 = vpop.xlane.xlu0 %6453 }
 0xd7c   : > { %v8819_v30 = vpop.f32.mrf.mxu0  ;;  %v10309_v49 = vpop.eup %10308  ;;  %10318 = vrcp.f32 %v6454_v21 }
 0xd7d   : > { %v6112_v42 = vmul.f32 %v10297_v26, %v8818_v37  ;;  %v10311_v11 = vpop.eup %10310 }
 0xd7e   : > { %v8820_v44 = vpop.f32.mrf.mxu0 }
 0xd7f   : > { %v14974_v53 = vadd.f32 %v6112_v42, %v5598_v4  ;;  %v8821_v58 = vadd.f32 %v8820_v44, %v8819_v30  ;;  %v6457_v42 = vpop.xlane.xlu1 %6456 }
 0xd80   : > { %v8822_v29 = vpop.f32.mrf.mxu0  ;;  %v10313_v30 = vpop.eup %10312  ;;  %10320 = vrcp.f32 %v6457_v42 }
 0xd81   : > { %v6113_v32 = vmul.f32 %v10299_v24, %v8821_v58 }
 0xd82   : > { %v8823_v0 = vpop.f32.mrf.mxu0 }
 0xd83   : > { %v14977_v7 = vadd.f32 %v6113_v32, %v14949_v18  ;;  %v8824_v48 = vadd.f32 %v8823_v0, %v8822_v29  ;;  %v10315_v29 = vpop.eup %10314  ;;  %v6460_v32 = vpop.xlane.xlu0 %6459 }
 0xd84   : > { %v8873_v60 = vpop.f32.mrf.mxu0  ;;  %10322 = vrcp.f32 %v6460_v32 }
 0xd85   : > { %v6114_v12 = vmul.f32 %v10301_v46, %v8824_v48 }
 0xd86   : > { %v8874_v57 = vpop.f32.mrf.mxu0 }
 0xd87   : > { %v14980_v4 = vadd.f32 %v6114_v12, %v14956_v17  ;;  %v8875_v34 = vadd.f32 %v8874_v57, %v8873_v60  ;;  %v10317_v60 = vpop.eup %10316  ;;  %v6463_v12 = vpop.xlane.xlu1 %6462 }
 0xd88   : > { %v8876_v1 = vpop.f32.mrf.mxu0  ;;  %10324 = vrcp.f32 %v6463_v12 }
 0xd89   : > { %v6605_v33 = vmul.f32 %v10303_v50, %v8875_v34 }
 0xd8a   : > { %v8877_v56 = vpop.f32.mrf.mxu0 }
 0xd8b   : > { %v14983_v18 = vadd.f32 %v6605_v33, %v14912_v43  ;;  %v8878_v59 = vadd.f32 %v8877_v56, %v8876_v1  ;;  %v10319_v1 = vpop.eup %10318  ;;  %v6466_v33 = vpop.xlane.xlu0 %6465 }
 0xd8c   : > { %v8879_v61 = vpop.f32.mrf.mxu0  ;;  %10326 = vrcp.f32 %v6466_v33 }
 0xd8d   : > { %v6606_v54 = vmul.f32 %v10305_v3, %v8878_v59 }
 0xd8e   : > { %v8880_v19 = vpop.f32.mrf.mxu0 }
 0xd8f   : > { %v14986_v17 = vadd.f32 %v6606_v54, %v14917_v25  ;;  %v8881_v31 = vadd.f32 %v8880_v19, %v8879_v61  ;;  %v10321_v61 = vpop.eup %10320  ;;  %v6469_v54 = vpop.xlane.xlu1 %6468 }
 0xd90   : > { %v8882_v22 = vpop.f32.mrf.mxu0  ;;  %10328 = vrcp.f32 %v6469_v54 }
 0xd91   : > { %v6607_v52 = vmul.f32 %v10307_v41, %v8881_v31 }
 0xd92   : > { %v8883_v8 = vpop.f32.mrf.mxu0 }
 0xd93   : > { %v14989_v43 = vadd.f32 %v6607_v52, %v14922_v27  ;;  %v8884_v62 = vadd.f32 %v8883_v8, %v8882_v22  ;;  %v10323_v22 = vpop.eup %10322  ;;  %v6472_v52 = vpop.xlane.xlu0 %6471 }
 0xd94   : > { %v8885_v38 = vpop.f32.mrf.mxu0  ;;  %10330 = vrcp.f32 %v6472_v52 }
 0xd95   : > { %v6608_v5 = vmul.f32 %v10309_v49, %v8884_v62 }
 0xd96   : > { %v8886_v23 = vpop.f32.mrf.mxu0 }
 0xd97   : > { %v14992_v25 = vadd.f32 %v6608_v5, %v14930_v35  ;;  %v8887_v9 = vadd.f32 %v8886_v23, %v8885_v38  ;;  %v10325_v38 = vpop.eup %10324  ;;  %v6475_v5 = vpop.xlane.xlu1 %6474 }
 0xd98   : > { %v8888_v16 = vpop.f32.mrf.mxu0  ;;  %10332 = vrcp.f32 %v6475_v5 }
 0xd99   : > { %v6609_v37 = vmul.f32 %v10311_v11, %v8887_v9 }
 0xd9a   : > { %v8889_v26 = vpop.f32.mrf.mxu0 }
 0xd9b   : > { %v14995_v27 = vadd.f32 %v6609_v37, %v14938_v40  ;;  %v8890_v10 = vadd.f32 %v8889_v26, %v8888_v16  ;;  %v10327_v16 = vpop.eup %10326  ;;  %v6936_v37 = vpop.xlane.xlu0 %6935 }
 0xd9c   : > { %v8891_v44 = vpop.f32.mrf.mxu0  ;;  %10334 = vrcp.f32 %v6936_v37  ;;  %v16552_v37 = vld [vmem:[#allocation31_spill] sm:$0xff] }
 0xd9d   : > { %v6610_v58 = vmul.f32 %v10313_v30, %v8890_v10 }
 0xd9e   : > { %v8892_v24 = vpop.f32.mrf.mxu0 }
 0xd9f   : > { %v14998_v35 = vadd.f32 %v6610_v58, %v14946_v20  ;;  %v8893_v55 = vadd.f32 %v8892_v24, %v8891_v44  ;;  %v10329_v44 = vpop.eup %10328  ;;  %v6939_v58 = vpop.xlane.xlu1 %6938 }
 0xda0   : > { %v8894_v0 = vpop.f32.mrf.mxu0  ;;  %10336 = vrcp.f32 %v6939_v58 }
 0xda1   : > { %v6611_v48 = vmul.f32 %v10315_v29, %v8893_v55 }
 0xda2   : > { %v8895_v46 = vpop.f32.mrf.mxu0 }
 0xda3   : > { %v15001_v40 = vadd.f32 %v6611_v48, %v14954_v2  ;;  %v8896_v13 = vadd.f32 %v8895_v46, %v8894_v0  ;;  %v10331_v0 = vpop.eup %10330  ;;  %v6942_v48 = vpop.xlane.xlu0 %6941 }
 0xda4   : > { %v8897_v57 = vpop.f32.mrf.mxu0  ;;  %10338 = vrcp.f32 %v6942_v48 }
 0xda5   : > { %v6612_v34 = vmul.f32 %v10317_v60, %v8896_v13 }
 0xda6   : > { %v8898_v50 = vpop.f32.mrf.mxu0 }
 0xda7   : > { %v15004_v20 = vadd.f32 %v6612_v34, %v14959_v39  ;;  %v8899_v6 = vadd.f32 %v8898_v50, %v8897_v57  ;;  %v10333_v57 = vpop.eup %10332  ;;  %v6945_v34 = vpop.xlane.xlu1 %6944 }
 0xda8   : > { %v8900_v56 = vpop.f32.mrf.mxu0  ;;  %10340 = vrcp.f32 %v6945_v34  ;;  %v16554_v34 = vld [vmem:[#allocation34_spill] sm:$0xff] }
 0xda9   : > { %v6613_v59 = vmul.f32 %v10319_v1, %v8899_v6 }
 0xdaa   : > { %v8901_v3 = vpop.f32.mrf.mxu0 }
 0xdab   : > { %v15007_v2 = vadd.f32 %v6613_v59, %v14962_v36  ;;  %v8902_v14 = vadd.f32 %v8901_v3, %v8900_v56  ;;  %v10335_v56 = vpop.eup %10334  ;;  %v6948_v59 = vpop.xlane.xlu0 %6947 }
 0xdac   : > { %v8903_v19 = vpop.f32.mrf.mxu0  ;;  %10342 = vrcp.f32 %v6948_v59 }
 0xdad   : > { %v6614_v31 = vmul.f32 %v10321_v61, %v8902_v14 }
 0xdae   : > { %v8904_v41 = vpop.f32.mrf.mxu0 }
 0xdaf   : > { %v15010_v39 = vadd.f32 %v6614_v31, %v14964_v63  ;;  %v8905_v15 = vadd.f32 %v8904_v41, %v8903_v19  ;;  %v10337_v31 = vpop.eup %10336  ;;  %v6951_v41 = vpop.xlane.xlu1 %6950 }
 0xdb0   : > { %v8906_v8 = vpop.f32.mrf.mxu0  ;;  %10344 = vrcp.f32 %v6951_v41  ;;  %v6954_v5 = vpop.xlane.xlu0 %6953 }
 0xdb1   : > { %v6615_v62 = vmul.f32 %v10323_v22, %v8905_v15  ;;  %10346 = vrcp.f32 %v6954_v5 }
 0xdb2   : > { %v8907_v49 = vpop.f32.mrf.mxu0 }
 0xdb3   : > { %v15013_v36 = vadd.f32 %v6615_v62, %v14967_v28  ;;  %v8908_v51 = vadd.f32 %v8907_v49, %v8906_v8  ;;  %v16551_v49 = vld [vmem:[#allocation29_spill] sm:$0xff] }
 0xdb4   : > { %v8909_v23 = vpop.f32.mrf.mxu0 }
 0xdb5   : > { %v6616_v9 = vmul.f32 %v10325_v38, %v8908_v51  ;;  %v10339_v38 = vpop.eup %10338 }
 0xdb6   : > { %v8910_v11 = vpop.f32.mrf.mxu0 }
 0xdb7   : > { %v15016_v63 = vadd.f32 %v6616_v9, %v14969_v47  ;;  %v8911_v21 = vadd.f32 %v8910_v11, %v8909_v23 }
 0xdb8   : > { %v8912_v26 = vpop.f32.mrf.mxu0 }
 0xdb9   : > { %v6617_v10 = vmul.f32 %v10327_v16, %v8911_v21 }
 0xdba   : > { %v8913_v30 = vpop.f32.mrf.mxu0 }
 0xdbb   : > { %v15019_v28 = vadd.f32 %v6617_v10, %v14972_v45  ;;  %v8914_v42 = vadd.f32 %v8913_v30, %v8912_v26  ;;  %v6957_v10 = vpop.xlane.xlu1 %6956 }
 0xdbc   : > { %v8915_v24 = vpop.f32.mrf.mxu0  ;;  %10348 = vrcp.f32 %v6957_v10 }
 0xdbd   : > { %v6618_v55 = vmul.f32 %v10329_v44, %v8914_v42 }
 0xdbe   : > { %v8916_v29 = vpop.f32.mrf.mxu0 }
 0xdbf   : > { %v15022_v47 = vadd.f32 %v6618_v55, %v14974_v53  ;;  %v8917_v32 = vadd.f32 %v8916_v29, %v8915_v24  ;;  %v16553_v29 = vld [vmem:[#allocation33_spill] sm:$0xff] }
 0xdc0   : > { %v8918_v46 = vpop.f32.mrf.mxu0 }
 0xdc1   : > { %v6619_v13 = vmul.f32 %v10331_v0, %v8917_v32  ;;  %v6960_v0 = vpop.xlane.xlu0 %6959 }
 0xdc2   : > { %v8919_v60 = vpop.f32.mrf.mxu0  ;;  %10350 = vrcp.f32 %v6960_v0 }
 0xdc3   : > { %v15025_v45 = vadd.f32 %v6619_v13, %v14977_v7  ;;  %v8920_v12 = vadd.f32 %v8919_v60, %v8918_v46  ;;  %v15033_v7 = vld [vmem:[%s15472_s6] ss:$0 sm:$0xff] }
 0xdc4   : > { %v8969_v50 = vpop.f32.mrf.mxu0 }
 0xdc5   : > { %v6620_v6 = vmul.f32 %v10333_v57, %v8920_v12 }
 0xdc6   : > { %v8970_v1 = vpop.f32.mrf.mxu0 }
 0xdc7   : > { %v15028_v53 = vadd.f32 %v6620_v6, %v14980_v4  ;;  %v8971_v33 = vadd.f32 %v8970_v1, %v8969_v50  ;;  %v6963_v6 = vpop.xlane.xlu1 %6962 }
 0xdc8   : > { %v8972_v3 = vpop.f32.mrf.mxu0  ;;  %10352 = vrcp.f32 %v6963_v6 }
 0xdc9   : > { %v7111_v14 = vmul.f32 %v10335_v56, %v8971_v33 }
 0xdca   : > { %v8973_v61 = vpop.f32.mrf.mxu0 }
 0xdcb   : > { %v7127_v54 = vadd.f32 %v7111_v14, %v14983_v18  ;;  %v8974_v19 = vadd.f32 %v8973_v61, %v8972_v3  ;;  %v16555_v61 = vld [vmem:[#allocation36_spill] sm:$0xff] }
 0xdcc   : > { %v8975_v15 = vpop.f32.mrf.mxu0 }
 0xdcd   : > { %v7112_v4 = vmul.f32 %v10337_v31, %v8974_v19  ;;  %v7150_v22 = vadd.f32 %v15033_v7, %v7127_v54  ;;  %v6966_v19 = vpop.xlane.xlu0 %6965 }
 0xdce   : > { %v8976_v52 = vpop.f32.mrf.mxu0  ;;  %10354 = vrcp.f32 %v6966_v19 }
 0xdcf   : > { %v7128_v8 = vadd.f32 %v7112_v4, %v14986_v17  ;;  %v8977_v62 = vadd.f32 %v8976_v52, %v8975_v15  ;;  %v15039_v51 = vadd.f32 %v7150_v22, %v16551_v49  ;;  %v10341_v17 = vpop.eup %10340  ;;  %v6969_v49 = vpop.xlane.xlu1 %6968 }
 0xdd0   : > { %v8978_v23 = vpop.f32.mrf.mxu0  ;;  %10356 = vrcp.f32 %v6969_v49 }
 0xdd1   : > { %v7113_v9 = vmul.f32 %v10339_v38, %v8977_v62  ;;  %7184 = vadd.xlane.f32.xlu0 %v15039_v51  ;;  %v7151_v18 = vadd.f32 %v15033_v7, %v7128_v8  ;;  %v16556_v8 = vld [vmem:[#allocation38_spill] sm:$0xff] }
 0xdd2   : > { %v8979_v11 = vpop.f32.mrf.mxu0 }
 0xdd3   : > { %v7129_v21 = vadd.f32 %v7113_v9, %v14989_v43  ;;  %v8980_v16 = vadd.f32 %v8979_v11, %v8978_v23  ;;  %v15045_v26 = vadd.f32 %v7151_v18, %v16552_v37  ;;  %v10343_v43 = vpop.eup %10342  ;;  %v6972_v37 = vpop.xlane.xlu0 %6971 }
 0xdd4   : > { %v8981_v30 = vpop.f32.mrf.mxu0  ;;  %10358 = vrcp.f32 %v6972_v37 }
 0xdd5   : > { %v7114_v42 = vmul.f32 %v10341_v17, %v8980_v16  ;;  %7186 = vadd.xlane.f32.xlu1 %v15045_v26  ;;  %v7152_v44 = vadd.f32 %v15033_v7, %v7129_v21  ;;  %v16557_v21 = vld [vmem:[#allocation39_spill] sm:$0xff] }
 0xdd6   : > { %v8982_v58 = vpop.f32.mrf.mxu0 }
 0xdd7   : > { %v7130_v24 = vadd.f32 %v7114_v42, %v14992_v25  ;;  %v8983_v55 = vadd.f32 %v8982_v58, %v8981_v30  ;;  %v15051_v32 = vadd.f32 %v7152_v44, %v16553_v29  ;;  %v10345_v25 = vpop.eup %10344  ;;  %v6975_v29 = vpop.xlane.xlu1 %6974 }
 0xdd8   : > { %v8984_v48 = vpop.f32.mrf.mxu0  ;;  %10360 = vrcp.f32 %v6975_v29  ;;  %v16564_v29 = vld [vmem:[#allocation50_spill] sm:$0xff] }
 0xdd9   : > { %v7115_v46 = vmul.f32 %v10343_v43, %v8983_v55  ;;  %7188 = vadd.xlane.f32.xlu0 %v15051_v32  ;;  %v7153_v13 = vadd.f32 %v15033_v7, %v7130_v24  ;;  %v16558_v24 = vld [vmem:[#allocation41_spill] sm:$0xff] }
 0xdda   : > { %v8985_v60 = vpop.f32.mrf.mxu0 }
 0xddb   : > { %v7131_v12 = vadd.f32 %v7115_v46, %v14995_v27  ;;  %v8986_v57 = vadd.f32 %v8985_v60, %v8984_v48  ;;  %v15057_v50 = vadd.f32 %v7153_v13, %v16554_v34  ;;  %v10347_v27 = vpop.eup %10346 }
 0xddc   : > { %v8987_v1 = vpop.f32.mrf.mxu0 }
 0xddd   : > { %v7116_v33 = vmul.f32 %v10345_v25, %v8986_v57  ;;  %7190 = vadd.xlane.f32.xlu1 %v15057_v50  ;;  %v7154_v56 = vadd.f32 %v15033_v7, %v7131_v12  ;;  %v16559_v12 = vld [vmem:[#allocation43_spill] sm:$0xff]  ;;  %v6978_v25 = vpop.xlane.xlu0 %6977 }
 0xdde   : > { %v8988_v59 = vpop.f32.mrf.mxu0  ;;  %10362 = vrcp.f32 %v6978_v25  ;;  %v16566_v25 = vld [vmem:[#allocation52_spill] sm:$0xff] }
 0xddf   : > { %v7132_v3 = vadd.f32 %v7116_v33, %v14998_v35  ;;  %v8989_v14 = vadd.f32 %v8988_v59, %v8987_v1  ;;  %v15063_v54 = vadd.f32 %v7154_v56, %v16555_v61  ;;  %v10349_v35 = vpop.eup %10348 }
 0xde0   : > { %v8990_v31 = vpop.f32.mrf.mxu0 }
 0xde1   : > { %v7117_v41 = vmul.f32 %v10347_v27, %v8989_v14  ;;  %7192 = vadd.xlane.f32.xlu0 %v15063_v54  ;;  %v7155_v15 = vadd.f32 %v15033_v7, %v7132_v3  ;;  %v16560_v3 = vld [vmem:[#allocation44_spill] sm:$0xff]  ;;  %v6981_v27 = vpop.xlane.xlu1 %6980 }
 0xde2   : > { %v8991_v4 = vpop.f32.mrf.mxu0  ;;  %10364 = vrcp.f32 %v6981_v27 }
 0xde3   : > { %v7133_v22 = vadd.f32 %v7117_v41, %v15001_v40  ;;  %v8992_v52 = vadd.f32 %v8991_v4, %v8990_v31  ;;  %v15069_v62 = vadd.f32 %v7155_v15, %v16556_v8  ;;  %v10351_v40 = vpop.eup %10350 }
 0xde4   : > { %v8993_v38 = vpop.f32.mrf.mxu0 }
 0xde5   : > { %v7118_v5 = vmul.f32 %v10349_v35, %v8992_v52  ;;  %7194 = vadd.xlane.f32.xlu1 %v15069_v62  ;;  %v7156_v23 = vadd.f32 %v15033_v7, %v7133_v22  ;;  %v16561_v22 = vld [vmem:[#allocation46_spill] sm:$0xff] }
 0xde6   : > { %v8994_v9 = vpop.f32.mrf.mxu0 }
 0xde7   : > { %v7134_v18 = vadd.f32 %v7118_v5, %v15004_v20  ;;  %v8995_v11 = vadd.f32 %v8994_v9, %v8993_v38  ;;  %v15075_v16 = vadd.f32 %v7156_v23, %v16557_v21  ;;  %v10353_v20 = vpop.eup %10352  ;;  %v16562_v9 = vld [vmem:[#allocation48_spill] sm:$0xff] }
 0xde8   : > { %v8996_v17 = vpop.f32.mrf.mxu0 }
 0xde9   : > { %v7119_v10 = vmul.f32 %v10351_v40, %v8995_v11  ;;  %7196 = vadd.xlane.f32.xlu0 %v15075_v16  ;;  %v7157_v30 = vadd.f32 %v15033_v7, %v7134_v18 }
 0xdea   : > { %v8997_v42 = vpop.f32.mrf.mxu0 }
 0xdeb   : > { %v7135_v44 = vadd.f32 %v7119_v10, %v15007_v2  ;;  %v8998_v58 = vadd.f32 %v8997_v42, %v8996_v17  ;;  %v15081_v55 = vadd.f32 %v7157_v30, %v16558_v24  ;;  %v10355_v2 = vpop.eup %10354  ;;  %v16563_v10 = vld [vmem:[#allocation49_spill] sm:$0xff] }
 0xdec   : > { %v8999_v43 = vpop.f32.mrf.mxu0 }
 0xded   : > { %v7120_v0 = vmul.f32 %v10353_v20, %v8998_v58  ;;  %7198 = vadd.xlane.f32.xlu1 %v15081_v55  ;;  %v7158_v48 = vadd.f32 %v15033_v7, %v7135_v44 }
 0xdee   : > { %v9000_v46 = vpop.f32.mrf.mxu0 }
 0xdef   : > { %v7136_v13 = vadd.f32 %v7120_v0, %v15010_v39  ;;  %v9001_v60 = vadd.f32 %v9000_v46, %v8999_v43  ;;  %v15087_v57 = vadd.f32 %v7158_v48, %v16559_v12  ;;  %v10357_v39 = vpop.eup %10356  ;;  %v16565_v12 = vld [vmem:[#allocation51_spill] sm:$0xff] }
 0xdf0   : > { %v9002_v34 = vpop.f32.mrf.mxu0 }
 0xdf1   : > { %v7121_v6 = vmul.f32 %v10355_v2, %v9001_v60  ;;  %7200 = vadd.xlane.f32.xlu0 %v15087_v57  ;;  %v7159_v1 = vadd.f32 %v15033_v7, %v7136_v13 }
 0xdf2   : > { %v9003_v33 = vpop.f32.mrf.mxu0 }
 0xdf3   : > { %v7137_v56 = vadd.f32 %v7121_v6, %v15013_v36  ;;  %v9004_v59 = vadd.f32 %v9003_v33, %v9002_v34  ;;  %v15093_v14 = vadd.f32 %v7159_v1, %v16560_v3  ;;  %v10359_v36 = vpop.eup %10358 }
 0xdf4   : > { %v9005_v61 = vpop.f32.mrf.mxu0 }
 0xdf5   : > { %v7122_v19 = vmul.f32 %v10357_v39, %v9004_v59  ;;  %7202 = vadd.xlane.f32.xlu1 %v15093_v14  ;;  %v7160_v31 = vadd.f32 %v15033_v7, %v7137_v56 }
 0xdf6   : > { %v9006_v41 = vpop.f32.mrf.mxu0 }
 0xdf7   : > { %v7138_v15 = vadd.f32 %v7122_v19, %v15016_v63  ;;  %v9007_v4 = vadd.f32 %v9006_v41, %v9005_v61  ;;  %v15099_v52 = vadd.f32 %v7160_v31, %v16561_v22  ;;  %v10361_v63 = vpop.eup %10360 }
 0xdf8   : > { %v9008_v8 = vpop.f32.mrf.mxu0  ;;  %v10363_v44 = vpop.eup %10362 }
 0xdf9   : > { %v7123_v35 = vmul.f32 %v10359_v36, %v9007_v4  ;;  %7204 = vadd.xlane.f32.xlu0 %v15099_v52  ;;  %v7161_v49 = vadd.f32 %v15033_v7, %v7138_v15 }
 0xdfa   : > { %v9009_v38 = vpop.f32.mrf.mxu0 }
 0xdfb   : > { %v7139_v5 = vadd.f32 %v7123_v35, %v15019_v28  ;;  %v9010_v23 = vadd.f32 %v9009_v38, %v9008_v8  ;;  %v15105_v18 = vadd.f32 %v7161_v49, %v16562_v9 }
 0xdfd   : > { %v7124_v11 = vmul.f32 %v10361_v63, %v9010_v23  ;;  %v9011_v21 = vpop.f32.mrf.mxu0  ;;  %7206 = vadd.xlane.f32.xlu1 %v15105_v18  ;;  %v7162_v40 = vadd.f32 %v15033_v7, %v7139_v5  ;;  %v9454_v23 = vld [vmem:[#allocation10 + $0x38] sm:$0xff]  }
 0xdfe   : > { %9113 = vmatprep.subr.bf16.mxu1 %v9454_v23 }
 0xdff   : > { %v7140_v37 = vadd.f32 %v7124_v11, %v15022_v47  ;;  %v9012_v17 = vpop.f32.mrf.mxu0  ;;  %v15111_v30 = vadd.f32 %v7162_v40, %v16563_v10  ;;  %v10365_v47 = vpop.eup %10364  ;;  %9114 = vmatpush3.bf16.msra.mxu1 %v9454_v23  ;;  %v9455_v40 = vld [vmem:[#allocation10 + $0x30] sm:$0xff]  }
 0xe00   : > { %v9013_v42 = vadd.f32 %v9012_v17, %v9011_v21  ;;  %9115 = vmatprep.subr.bf16.mxu1 %v9455_v40 }
 0xe01   : > { %v9014_v28 = vpop.f32.mrf.mxu0  ;;  %7208 = vadd.xlane.f32.xlu0 %v15111_v30  ;;  %v7163_v58 = vadd.f32 %v15033_v7, %v7140_v37 }
 0xe02   : > { %v7125_v24 = vmul.f32 %v10363_v44, %v9013_v42  ;;  %v9456_v44 = vld [vmem:[#allocation10 + $0x28] sm:$0xff]  }
 0xe03   : > { %v9015_v20 = vpop.f32.mrf.mxu0  ;;  %v15116_v43 = vadd.f32 %v7163_v58, %v16564_v29  ;;  %9116 = vmatpush3.bf16.msra.mxu1 %v9455_v40  ;;  %v9457_v29 = vld [vmem:[#allocation10 + $0x20] sm:$0xff]  }
 0xe04   : > { %v7141_v0 = vadd.f32 %v7125_v24, %v15025_v45  ;;  %v9016_v48 = vadd.f32 %v9015_v20, %v9014_v28  ;;  %9117 = vmatprep.subr.bf16.mxu1 %v9456_v44 }
 0xe05   : > { %7210 = vadd.xlane.f32.xlu1 %v15116_v43 }
 0xe06   : > { %v7126_v46 = vmul.f32 %v10365_v47, %v9016_v48  ;;  %v7164_v13 = vadd.f32 %v15033_v7, %v7141_v0 }
 0xe07   : > { %9118 = vmatpush3.bf16.msra.mxu1 %v9456_v44  ;;  %v16567_v44 = vld [vmem:[#allocation104_spill] sm:$0xff] }
 0xe08   : > { %v7142_v60 = vadd.f32 %v7126_v46, %v15028_v53  ;;  %v15123_v2 = vadd.f32 %v7164_v13, %v16565_v12  ;;  %9119 = vmatprep.subr.bf16.mxu1 %v9457_v29  ;;  %v9458_v13 = vld [vmem:[#allocation10 + $0x18] sm:$0xff]  }
 0xe0a   : > { %7212 = vadd.xlane.f32.xlu0 %v15123_v2  ;;  %v7165_v34 = vadd.f32 %v15033_v7, %v7142_v60 }
 0xe0b   : > { %9120 = vmatpush3.bf16.msra.mxu1 %v9457_v29  ;;  %v16569_v29 = vld [vmem:[#allocation135_spill] sm:$0xff] }
 0xe0c   : > { %v15128_v6 = vadd.f32 %v7165_v34, %v16566_v25  ;;  %9121 = vmatprep.subr.bf16.mxu1 %v9458_v13 }
 0xe0e   : > { %7214 = vadd.xlane.f32.xlu1 %v15128_v6 }
 0xe0f   : > { %9122 = vmatpush3.bf16.msra.mxu1 %v9458_v13  ;;  %v16571_v13 = vld [vmem:[#allocation122_spill] sm:$0xff] }
 0xe5a   : > { %v7185_v45 = vpop.xlane.xlu0 %7184 }
 0xe5b   : > { %v7216_v1 = vmul.f32 0.0078125, %v7185_v45  ;;  %v9459_v45 = vld [vmem:[#allocation10 + $0x10] sm:$0xff]  }
 0xe5c   : > { %9123 = vmatprep.subr.bf16.mxu1 %v9459_v45 }
 0xe5d   : > { %v15132_v33 = vsub.f32 %v15039_v51, %v7216_v1  ;;  %9124 = vmatpush3.bf16.msra.mxu1 %v9459_v45  ;;  %v16573_v45 = vld [vmem:[#allocation108_spill] sm:$0xff] }
 0xe5e   : > { %v7187_v56 = vpop.xlane.xlu1 %7186 }
 0xe5f   : > { %v7217_v59 = vmul.f32 0.0078125, %v7187_v56  ;;  %v7248_v53 = vmul.f32 %v15132_v33, %v15132_v33 }
 0xe61   : > { %v15137_v3 = vsub.f32 %v15045_v26, %v7217_v59  ;;  %7264 = vadd.xlane.f32.xlu0 %v7248_v53 }
 0xe62   : > { %v7189_v7 = vpop.xlane.xlu0 %7188 }
 0xe63   : > { %v7218_v39 = vmul.f32 0.0078125, %v7189_v7  ;;  %v7249_v61 = vmul.f32 %v15137_v3, %v15137_v3  ;;  %v9460_v7 = vld [vmem:[#allocation10 + $0x8] sm:$0xff]  }
 0xe64   : > { %9125 = vmatprep.subr.bf16.mxu1 %v9460_v7 }
 0xe65   : > { %v15142_v27 = vsub.f32 %v15051_v32, %v7218_v39  ;;  %7266 = vadd.xlane.f32.xlu1 %v7249_v61  ;;  %9126 = vmatpush3.bf16.msra.mxu1 %v9460_v7  ;;  %v16575_v7 = vld [vmem:[#allocation230_spill] sm:$0xff] }
 0xe66   : > { %v7191_v19 = vpop.xlane.xlu1 %7190 }
 0xe67   : > { %v7219_v31 = vmul.f32 0.0078125, %v7191_v19  ;;  %v7250_v41 = vmul.f32 %v15142_v27, %v15142_v27 }
 0xe69   : > { %v15147_v15 = vsub.f32 %v15057_v50, %v7219_v31  ;;  %7268 = vadd.xlane.f32.xlu0 %v7250_v41  ;;  %v9461_v41 = vld [vmem:[#allocation10] sm:$0xff]  }
 0xe6a   : > { %v7193_v4 = vpop.xlane.xlu0 %7192  ;;  %9127 = vmatprep.subr.bf16.mxu1 %v9461_v41 }
 0xe6b   : > { %v7220_v22 = vmul.f32 0.0078125, %v7193_v4  ;;  %v7251_v36 = vmul.f32 %v15147_v15, %v15147_v15  ;;  %9128 = vmatpush3.bf16.msra.mxu1 %v9461_v41  ;;  %v16577_v41 = vld [vmem:[#allocation98_spill] sm:$0xff] }
 0xe6d   : > { %v15152_v8 = vsub.f32 %v15063_v54, %v7220_v22  ;;  %7270 = vadd.xlane.f32.xlu1 %v7251_v36 }
 0xe6e   : > { %v7195_v35 = vpop.xlane.xlu1 %7194 }
 0xe6f   : > { %v7221_v49 = vmul.f32 0.0078125, %v7195_v35  ;;  %v7252_v38 = vmul.f32 %v15152_v8, %v15152_v8 }
 0xe71   : > { %v15157_v5 = vsub.f32 %v15069_v62, %v7221_v49  ;;  %7272 = vadd.xlane.f32.xlu0 %v7252_v38 }
 0xe72   : > { %v7197_v9 = vpop.xlane.xlu0 %7196 }
 0xe73   : > { %v7222_v63 = vmul.f32 0.0078125, %v7197_v9  ;;  %v7253_v11 = vmul.f32 %v15157_v5, %v15157_v5 }
 0xe75   : > { %v15162_v21 = vsub.f32 %v15075_v16, %v7222_v63  ;;  %7274 = vadd.xlane.f32.xlu1 %v7253_v11 }
 0xe76   : > { %v7199_v37 = vpop.xlane.xlu1 %7198 }
 0xe77   : > { %v7223_v17 = vmul.f32 0.0078125, %v7199_v37  ;;  %v7254_v10 = vmul.f32 %v15162_v21, %v15162_v21 }
 0xe79   : > { %v15167_v42 = vsub.f32 %v15081_v55, %v7223_v17  ;;  %7276 = vadd.xlane.f32.xlu0 %v7254_v10  ;;  %v15214_v10 = vld [vmem:[%s15478_s12] ss:$0 sm:$0xff] }
 0xe7a   : > { %v7201_v28 = vpop.xlane.xlu0 %7200 }
 0xe7b   : > { %v7224_v58 = vmul.f32 0.0078125, %v7201_v28  ;;  %v7255_v24 = vmul.f32 %v15167_v42, %v15167_v42  ;;  %v5001_v28 = vadd.f32 %v15214_v10, %v16567_v44 }
 0xe7d   : > { %v15172_v20 = vsub.f32 %v15087_v57, %v7224_v58  ;;  %7278 = vadd.xlane.f32.xlu1 %v7255_v24  ;;  %v16568_v58 = vld [vmem:[#allocation79_spill] sm:$0xff] }
 0xe7e   : > { %v7203_v0 = vpop.xlane.xlu1 %7202  ;;  %v5063_v24 = vadd.f32 %v5001_v28, %v16568_v58  ;;  %v16583_v28 = vld [vmem:[#allocation232_spill] sm:$0xff] }
 0xe7f   : > { %v7225_v48 = vmul.f32 0.0078125, %v7203_v0  ;;  %v7256_v47 = vmul.f32 %v15172_v20, %v15172_v20  ;;  %v5004_v0 = vadd.f32 %v15214_v10, %v16569_v29  ;;  %v5033_v58 = vadd.f32 %v15214_v10, %v16583_v28 }
 0xe81   : > { %v15177_v46 = vsub.f32 %v15093_v14, %v7225_v48  ;;  %7280 = vadd.xlane.f32.xlu0 %v7256_v47  ;;  %v16570_v48 = vld [vmem:[#allocation229_spill] sm:$0xff] }
 0xe82   : > { %v7205_v60 = vpop.xlane.xlu0 %7204  ;;  %v5009_v47 = vadd.f32 %v16570_v48, %v15214_v10 }
 0xe83   : > { %v7226_v12 = vmul.f32 0.0078125, %v7205_v60  ;;  %v7257_v34 = vmul.f32 %v15177_v46, %v15177_v46  ;;  %v5064_v60 = vadd.f32 %v5004_v0, %v16571_v13  ;;  %v16585_v0 = vld [vmem:[#allocation234_spill] sm:$0xff] }
 0xe84   : > { %v5036_v48 = vadd.f32 %v15214_v10, %v16585_v0  ;;  %v16595_v0 = vld [vmem:[#allocation114_spill] sm:$0xff] }
 0xe85   : > { %v15182_v25 = vsub.f32 %v15099_v52, %v7226_v12  ;;  %7282 = vadd.xlane.f32.xlu1 %v7257_v34  ;;  %v16572_v12 = vld [vmem:[#allocation125_spill] sm:$0xff] }
 0xe86   : > { %v7207_v1 = vpop.xlane.xlu1 %7206  ;;  %v5065_v34 = vadd.f32 %v5009_v47, %v16572_v12  ;;  %v16586_v47 = vld [vmem:[#allocation102_spill] sm:$0xff] }
 0xe87   : > { %v7227_v56 = vmul.f32 0.0078125, %v7207_v1  ;;  %v7258_v59 = vmul.f32 %v15182_v25, %v15182_v25  ;;  %v5012_v1 = vadd.f32 %v16573_v45, %v15214_v10  ;;  %v5041_v13 = vadd.f32 %v16586_v47, %v15214_v10 }
 0xe89   : > { %v15187_v53 = vsub.f32 %v15105_v18, %v7227_v56  ;;  %7284 = vadd.xlane.f32.xlu0 %v7258_v59  ;;  %v16574_v56 = vld [vmem:[#allocation152_spill] sm:$0xff] }
 0xe8a   : > { %v7209_v39 = vpop.xlane.xlu0 %7208  ;;  %v5066_v59 = vadd.f32 %v5012_v1, %v16574_v56  ;;  %v16588_v1 = vld [vmem:[#allocation150_spill] sm:$0xff] }
 0xe8b   : > { %v7228_v61 = vmul.f32 0.0078125, %v7209_v39  ;;  %v7259_v19 = vmul.f32 %v15187_v53, %v15187_v53  ;;  %v5017_v39 = vadd.f32 %v15214_v10, %v16575_v7  ;;  %v5073_v56 = vadd.f32 %v5041_v13, %v16588_v1  ;;  %v16597_v1 = vld [vmem:[#allocation237_spill] sm:$0xff] }
 0xe8d   : > { %v15192_v31 = vsub.f32 %v15111_v30, %v7228_v61  ;;  %7286 = vadd.xlane.f32.xlu1 %v7259_v19  ;;  %v16576_v61 = vld [vmem:[#allocation154_spill] sm:$0xff] }
 0xe8e   : > { %v7211_v4 = vpop.xlane.xlu1 %7210  ;;  %v5067_v19 = vadd.f32 %v5017_v39, %v16576_v61 }
 0xe8f   : > { %v7229_v22 = vmul.f32 0.0078125, %v7211_v4  ;;  %v7260_v36 = vmul.f32 %v15192_v31, %v15192_v31  ;;  %v5020_v4 = vadd.f32 %v15214_v10, %v16577_v41  ;;  %v16590_v41 = vld [vmem:[#allocation223_spill] sm:$0xff] }
 0xe91   : > { %v15197_v35 = vsub.f32 %v15116_v43, %v7229_v22  ;;  %7288 = vadd.xlane.f32.xlu0 %v7260_v36  ;;  %v16578_v22 = vld [vmem:[#allocation138_spill] sm:$0xff] }
 0xe92   : > { %v5025_v36 = vadd.f32 %v16578_v22, %v15214_v10  ;;  %v16591_v22 = vld [vmem:[#allocation236_spill] sm:$0xff] }
 0xe93   : > { %v7213_v49 = vpop.xlane.xlu0 %7212  ;;  %v7261_v38 = vmul.f32 %v15197_v35, %v15197_v35 }
 0xe94   : > { %v7230_v23 = vmul.f32 0.0078125, %v7213_v49  ;;  %v16579_v49 = vld [vmem:[#allocation55_spill] sm:$0xff] }
 0xe95   : > { %7290 = vadd.xlane.f32.xlu1 %v7261_v38  ;;  %v5068_v38 = vadd.f32 %v5020_v4, %v16579_v49 }
 0xe96   : > { %v15202_v9 = vsub.f32 %v15123_v2, %v7230_v23  ;;  %v16580_v23 = vld [vmem:[#allocation221_spill] sm:$0xff] }
 0xe97   : > { %v7215_v63 = vpop.xlane.xlu1 %7214 }
 0xe98   : > { %v7231_v11 = vmul.f32 0.0078125, %v7215_v63  ;;  %v7262_v40 = vmul.f32 %v15202_v9, %v15202_v9  ;;  %v5069_v63 = vadd.f32 %v5025_v36, %v16580_v23  ;;  %v5049_v36 = vadd.f32 %v15214_v10, %v16591_v22 }
 0xe9a   : > { %v15207_v37 = vsub.f32 %v15128_v6, %v7231_v11  ;;  %7292 = vadd.xlane.f32.xlu0 %v7262_v40  ;;  %v16581_v11 = vld [vmem:[#allocation231_spill] sm:$0xff] }
 0xe9b   : > { %v5028_v40 = vadd.f32 %v16581_v11, %v15214_v10 }
 0xe9c   : > { %v7263_v17 = vmul.f32 %v15207_v37, %v15207_v37 }
 0xe9e   : > { %7294 = vadd.xlane.f32.xlu1 %v7263_v17  ;;  %v16582_v17 = vld [vmem:[#allocation118_spill] sm:$0xff] }
 0xe9f   : > { %v5070_v44 = vadd.f32 %v5028_v40, %v16582_v17  ;;  %v16593_v40 = vld [vmem:[#allocation238_spill] sm:$0xff] }
 0xea0   : > { %v5052_v17 = vadd.f32 %v15214_v10, %v16593_v40 }
 0xec7   : > { %5079 = vxpose.xlu0.b32.start [1/16] %v5063_v24, 128  ;;  %v16584_v24 = vld [vmem:[#allocation121_spill] sm:$0xff] }
 0xec8   : > { %v5071_v29 = vadd.f32 %v5033_v58, %v16584_v24  ;;  %v16594_v24 = vld [vmem:[#allocation235_spill] sm:$0xff] }
 0xecb   : > { %5080 = vxpose.xlu0.b32.cont [2/16] %v5064_v60, 128  ;;  %v16587_v60 = vld [vmem:[#allocation148_spill] sm:$0xff] }
 0xecc   : > { %v5072_v12 = vadd.f32 %v5036_v48, %v16587_v60  ;;  %v5076_v48 = vadd.f32 %v5052_v17, %v16595_v0 }
 0xecf   : > { %5081 = vxpose.xlu0.b32.cont [3/16] %v5065_v34, 128 }
 0xed3   : > { %5082 = vxpose.xlu0.b32.cont [4/16] %v5066_v59, 128  ;;  %v16589_v59 = vld [vmem:[#allocation233_spill] sm:$0xff] }
 0xed4   : > { %v5044_v7 = vadd.f32 %v16589_v59, %v15214_v10 }
 0xed6   : > { %v5074_v4 = vadd.f32 %v5044_v7, %v16590_v41 }
 0xed7   : > { %5083 = vxpose.xlu0.b32.cont [5/16] %v5067_v19, 128 }
 0xedb   : > { %5084 = vxpose.xlu0.b32.cont [6/16] %v5068_v38, 128 }
 0xedf   : > { %5085 = vxpose.xlu0.b32.cont [7/16] %v5069_v63, 128  ;;  %v16592_v63 = vld [vmem:[#allocation224_spill] sm:$0xff] }
 0xee0   : > { %v5075_v11 = vadd.f32 %v5049_v36, %v16592_v63 }
 0xee3   : > { %5086 = vxpose.xlu0.b32.cont [8/16] %v5070_v44, 128 }
 0xee7   : > { %5087 = vxpose.xlu0.b32.cont [9/16] %v5071_v29, 128  ;;  %v5057_v29 = vadd.f32 %v16594_v24, %v15214_v10 }
 0xeea   : > { %v7265_v34 = vpop.xlane.xlu0 %7264 }
 0xeeb   : > { %5088 = vxpose.xlu0.b32.cont [10/16] %v5072_v12, 128  ;;  %v7296_v45 = vmul.f32 0.0078125, %v7265_v34  ;;  %v16596_v34 = vld [vmem:[#allocation117_spill] sm:$0xff] }
 0xeed   : > { %v7312_v39 = vadd.f32 1e-05, %v7296_v45  ;;  %v5077_v45 = vadd.f32 %v5057_v29, %v16596_v34 }
 0xeee   : > { %v7267_v61 = vpop.xlane.xlu1 %7266 }
 0xeef   : > { %10366 = vrsqrt.f32 %v7312_v39  ;;  %v7297_v19 = vmul.f32 0.0078125, %v7267_v61  ;;  %5089 = vxpose.xlu0.b32.cont [11/16] %v5073_v56, 128  ;;  %v5060_v56 = vadd.f32 %v16597_v1, %v15214_v10  ;;  %v15267_v39 = vld [vmem:[%s15473_s7] ss:$0 sm:$0xff] }
 0xef1   : > { %v7313_v49 = vadd.f32 1e-05, %v7297_v19 }
 0xef2   : > { %v7269_v38 = vpop.xlane.xlu0 %7268 }
 0xef3   : > { %10368 = vrsqrt.f32 %v7313_v49  ;;  %5090 = vxpose.xlu0.b32.cont [12/16] %v5074_v4, 128  ;;  %v7298_v23 = vmul.f32 0.0078125, %v7269_v38  ;;  %v16598_v4 = vld [vmem:[#allocation145_spill] sm:$0xff] }
 0xef4   : > { %v5078_v22 = vadd.f32 %v5060_v56, %v16598_v4 }
 0xef5   : > { %v7314_v44 = vadd.f32 1e-05, %v7298_v23 }
 0xef6   : > { %v7271_v28 = vpop.xlane.xlu1 %7270 }
 0xef7   : > { %10370 = vrsqrt.f32 %v7314_v44  ;;  %v7299_v58 = vmul.f32 0.0078125, %v7271_v28  ;;  %5091 = vxpose.xlu0.b32.cont [13/16] %v5075_v11, 128 }
 0xef9   : > { %v7315_v47 = vadd.f32 1e-05, %v7299_v58 }
 0xefa   : > { %v7273_v13 = vpop.xlane.xlu0 %7272 }
 0xefb   : > { %10372 = vrsqrt.f32 %v7315_v47  ;;  %v7300_v60 = vmul.f32 0.0078125, %v7273_v13  ;;  %5092 = vxpose.xlu0.b32.cont [14/16] %v5076_v48, 128 }
 0xefc   : > { %v10367_v12 = vpop.eup %10366 }
 0xefd   : > { %v7316_v59 = vadd.f32 1e-05, %v7300_v60  ;;  %v7344_v7 = vmul.f32 %v10367_v12, %v15132_v33  ;;  %v15275_v33 = vld [vmem:[%s15474_s8] ss:$0 sm:$0xff] }
 0xefe   : > { %v7275_v61 = vpop.xlane.xlu1 %7274 }
 0xeff   : > { %10374 = vrsqrt.f32 %v7316_v59  ;;  %v7301_v19 = vmul.f32 0.0078125, %v7275_v61  ;;  %5093 = vxpose.xlu0.b32.cont [15/16] %v5077_v45, 128  ;;  %v7366_v10 = vmul.f32 %v15267_v39, %v7344_v7 }
 0xf00   : > { %v10369_v41 = vpop.eup %10368 }
 0xf01   : > { %v7317_v36 = vadd.f32 1e-05, %v7301_v19  ;;  %v7345_v49 = vmul.f32 %v10369_v41, %v15137_v3  ;;  %v7388_v44 = vadd.f32 %v15275_v33, %v7366_v10 }
 0xf02   : > { %v7277_v38 = vpop.xlane.xlu0 %7276 }
 0xf03   : > { %10376 = vrsqrt.f32 %v7317_v36  ;;  %v7302_v23 = vmul.f32 0.0078125, %v7277_v38  ;;  %5094 = vxpose.xlu0.b32.end [16/16] %v5078_v22, 128  ;;  %v7367_v63 = vmul.f32 %v15267_v39, %v7345_v49 }
 0xf04   : > { %v10371_v11 = vpop.eup %10370 }
 0xf05   : > { %v7346_v40 = vmul.f32 %v10371_v11, %v15142_v27  ;;  %v7318_v17 = vadd.f32 1e-05, %v7302_v23  ;;  %v7389_v3 = vadd.f32 %v15275_v33, %v7367_v63 }
 0xf06   : > { %v7279_v28 = vpop.xlane.xlu1 %7278 }
 0xf07   : > { %10378 = vrsqrt.f32 %v7318_v17  ;;  %v7303_v58 = vmul.f32 0.0078125, %v7279_v28  ;;  %v7404_v24 = vpack.c.bf16 %v7389_v3, %v7388_v44  ;;  %v7368_v0 = vmul.f32 %v15267_v39, %v7346_v40 }
 0xf08   : > { %v10373_v29 = vpop.eup %10372 }
 0xf09   : > { %v7347_v48 = vmul.f32 %v10373_v29, %v15147_v15  ;;  %v7319_v47 = vadd.f32 1e-05, %v7303_v58  ;;  %9129 = vmatprep.mubr.bf16.mxu1 %v7404_v24  ;;  %v7390_v45 = vadd.f32 %v15275_v33, %v7368_v0 }
 0xf0a   : > { %v7281_v13 = vpop.xlane.xlu0 %7280 }
 0xf0b   : > { %v7369_v60 = vmul.f32 %v15267_v39, %v7347_v48  ;;  %10380 = vrsqrt.f32 %v7319_v47  ;;  %v7304_v27 = vmul.f32 0.0078125, %v7281_v13 }
 0xf0c   : > { %v10375_v12 = vpop.eup %10374 }
 0xf0d   : > { %v7320_v34 = vadd.f32 1e-05, %v7304_v27  ;;  %v7391_v1 = vadd.f32 %v15275_v33, %v7369_v60  ;;  %v7348_v56 = vmul.f32 %v10375_v12, %v15152_v8 }
 0xf0e   : > { %v7283_v59 = vpop.xlane.xlu1 %7282 }
 0xf0f   : > { %10382 = vrsqrt.f32 %v7320_v34  ;;  %v7305_v7 = vmul.f32 0.0078125, %v7283_v59  ;;  %v7405_v61 = vpack.c.bf16 %v7391_v1, %v7390_v45  ;;  %v7370_v4 = vmul.f32 %v15267_v39, %v7348_v56 }
 0xf10   : > { %v10377_v15 = vpop.eup %10376 }
 0xf11   : > { %v7321_v19 = vadd.f32 1e-05, %v7305_v7  ;;  %9130 = vmatmul.mubr.bf16.vlgmr.msra.gmra.mxu1 %v7405_v61  ;;  %v7349_v41 = vmul.f32 %v10377_v15, %v15157_v5  ;;  %v7392_v8 = vadd.f32 %v15275_v33, %v7370_v4 }
 0xf12   : > { %v7285_v22 = vpop.xlane.xlu0 %7284 }
 0xf13   : > { %10384 = vrsqrt.f32 %v7321_v19  ;;  %v7306_v36 = vmul.f32 0.0078125, %v7285_v22  ;;  %v7371_v49 = vmul.f32 %v15267_v39, %v7349_v41 }
 0xf14   : > { %v10379_v10 = vpop.eup %10378 }
 0xf15   : > { %v7322_v38 = vadd.f32 1e-05, %v7306_v36  ;;  %v7393_v23 = vadd.f32 %v15275_v33, %v7371_v49  ;;  %v7350_v63 = vmul.f32 %v10379_v10, %v15162_v21 }
 0xf16   : > { %v7287_v11 = vpop.xlane.xlu1 %7286 }
 0xf17   : > { %10386 = vrsqrt.f32 %v7322_v38  ;;  %v7307_v40 = vmul.f32 0.0078125, %v7287_v11  ;;  %v7406_v17 = vpack.c.bf16 %v7393_v23, %v7392_v8  ;;  %v7372_v28 = vmul.f32 %v15267_v39, %v7350_v63 }
 0xf18   : > { %v10381_v5 = vpop.eup %10380 }
 0xf19   : > { %v7323_v44 = vadd.f32 1e-05, %v7307_v40  ;;  %9133 = vmatprep.mubr.bf16.mxu1 %v7406_v17  ;;  %v7351_v3 = vmul.f32 %v10381_v5, %v15167_v42  ;;  %v7394_v21 = vadd.f32 %v15275_v33, %v7372_v28 }
 0xf1a   : > { %v7289_v58 = vpop.xlane.xlu0 %7288 }
 0xf1b   : > { %10388 = vrsqrt.f32 %v7323_v44  ;;  %v7308_v24 = vmul.f32 0.0078125, %v7289_v58  ;;  %v7373_v29 = vmul.f32 %v15267_v39, %v7351_v3 }
 0xf1c   : > { %v10383_v0 = vpop.eup %10382 }
 0xf1d   : > { %v7324_v48 = vadd.f32 1e-05, %v7308_v24  ;;  %v7395_v47 = vadd.f32 %v15275_v33, %v7373_v29  ;;  %v7352_v13 = vmul.f32 %v10383_v0, %v15172_v20 }
 0xf1e   : > { %v7291_v60 = vpop.xlane.xlu1 %7290 }
 0xf1f   : > { %10390 = vrsqrt.f32 %v7324_v48  ;;  %v7309_v27 = vmul.f32 0.0078125, %v7291_v60  ;;  %v7407_v12 = vpack.c.bf16 %v7395_v47, %v7394_v21  ;;  %v7374_v1 = vmul.f32 %v15267_v39, %v7352_v13  ;;  %v9462_v60 = vld [vmem:[#allocation11 + $0x38] sm:$0xff]  }
 0xf20   : > { %v10385_v42 = vpop.eup %10384  ;;  %9145 = vmatprep.subr.bf16.mxu0 %v9462_v60  ;;  %9177 = vmatprep.subr.bf16.mxu1 %v9462_v60 }
 0xf21   : > { %v7325_v34 = vadd.f32 1e-05, %v7309_v27  ;;  %9134 = vmatmul.mubr.bf16.gmra.mxu1 %v7407_v12  ;;  %v7353_v45 = vmul.f32 %v10385_v42, %v15177_v46  ;;  %v7396_v15 = vadd.f32 %v15275_v33, %v7374_v1  ;;  %9146 = vmatpush3.bf16.msra.mxu0 %v9462_v60  ;;  %v9467_v27 = vld [vmem:[#allocation11 + $0x10] sm:$0xff]   ;;  %v9468_v12 = vld [vmem:[#allocation11 + $0x8] sm:$0xff]   ;;  %v9469_v42 = vld [vmem:[#allocation11] sm:$0xff]  }
 0xf22   : > { %9185 = vmatpush3.bf16.msra.mxu1 %v9462_v60 }
 0xf23   : > { %10392 = vrsqrt.f32 %v7325_v34  ;;  %v7293_v56 = vpop.xlane.xlu0 %7292  ;;  %v7375_v59 = vmul.f32 %v15267_v39, %v7353_v45  ;;  %v15325_v34 = vld [vmem:[%s15476_s10] ss:$0 sm:$0xff] }
 0xf24   : > { %v10387_v7 = vpop.eup %10386  ;;  %v7310_v61 = vmul.f32 0.0078125, %v7293_v56 }
 0xf25   : > { %v7397_v20 = vadd.f32 %v15275_v33, %v7375_v59  ;;  %v7354_v19 = vmul.f32 %v10387_v7, %v15182_v25 }
 0xf26   : > { %v7326_v41 = vadd.f32 1e-05, %v7310_v61 }
 0xf27   : > { %v7295_v4 = vpop.xlane.xlu1 %7294  ;;  %v7408_v22 = vpack.c.bf16 %v7397_v20, %v7396_v15  ;;  %v7376_v10 = vmul.f32 %v15267_v39, %v7354_v19 }
 0xf28   : > { %v10389_v36 = vpop.eup %10388  ;;  %10394 = vrsqrt.f32 %v7326_v41  ;;  %v7311_v46 = vmul.f32 0.0078125, %v7295_v4 }
 0xf29   : > { %9137 = vmatprep.mubr.bf16.mxu1 %v7408_v22  ;;  %v7355_v49 = vmul.f32 %v10389_v36, %v15187_v53  ;;  %v7398_v63 = vadd.f32 %v15275_v33, %v7376_v10 }
 0xf2a   : > { %v7327_v38 = vadd.f32 1e-05, %v7311_v46 }
 0xf2b   : > { %v7377_v8 = vmul.f32 %v15267_v39, %v7355_v49 }
 0xf2c   : > { %v10391_v23 = vpop.eup %10390  ;;  %10396 = vrsqrt.f32 %v7327_v38 }
 0xf2d   : > { %v7399_v25 = vadd.f32 %v15275_v33, %v7377_v8  ;;  %v7356_v11 = vmul.f32 %v10391_v23, %v15192_v31 }
 0xf2f   : > { %v7409_v40 = vpack.c.bf16 %v7399_v25, %v7398_v63  ;;  %v7378_v53 = vmul.f32 %v15267_v39, %v7356_v11 }
 0xf30   : > { %v10393_v17 = vpop.eup %10392 }
 0xf31   : > { %9138 = vmatmul.mubr.bf16.gmra.mxu1 %v7409_v40  ;;  %v7357_v5 = vmul.f32 %v10393_v17, %v15197_v35  ;;  %v7400_v28 = vadd.f32 %v15275_v33, %v7378_v53 }
 0xf33   : > { %v7379_v44 = vmul.f32 %v15267_v39, %v7357_v5 }
 0xf35   : > { %v10395_v3 = vpop.eup %10394  ;;  %v7401_v58 = vadd.f32 %v15275_v33, %v7379_v44 }
 0xf36   : > { %v7358_v24 = vmul.f32 %v10395_v3, %v15202_v9  ;;  %v9463_v9 = vld [vmem:[#allocation11 + $0x30] sm:$0xff]  }
 0xf37   : > { %v7410_v29 = vpack.c.bf16 %v7401_v58, %v7400_v28  ;;  %9147 = vmatprep.subr.bf16.mxu0 %v9463_v9  ;;  %9178 = vmatprep.subr.bf16.mxu1 %v9463_v9 }
 0xf38   : > { %v7380_v48 = vmul.f32 %v15267_v39, %v7358_v24  ;;  %9148 = vmatpush3.bf16.msra.mxu0 %v9463_v9  ;;  %9186 = vmatpush3.bf16.msra.mxu1 %v9463_v9 }
 0xf39   : > { %v10397_v0 = vpop.eup %10396  ;;  %9141 = vmatprep.mubr.bf16.mxu1 %v7410_v29 }
 0xf3a   : > { %v7359_v31 = vmul.f32 %v10397_v0, %v15207_v37  ;;  %v7402_v21 = vadd.f32 %v15275_v33, %v7380_v48  ;;  %v9464_v37 = vld [vmem:[#allocation11 + $0x28] sm:$0xff]  }
 0xf3b   : > { %9149 = vmatprep.subr.bf16.mxu0 %v9464_v37  ;;  %9179 = vmatprep.subr.bf16.mxu1 %v9464_v37 }
 0xf3c   : > { %v7381_v35 = vmul.f32 %v15267_v39, %v7359_v31  ;;  %9150 = vmatpush3.bf16.msra.mxu0 %v9464_v37  ;;  %9187 = vmatpush3.bf16.msra.mxu1 %v9464_v37  ;;  %v9465_v39 = vld [vmem:[#allocation11 + $0x20] sm:$0xff]  }
 0xf3d   : > { %9151 = vmatprep.subr.bf16.mxu0 %v9465_v39  ;;  %9180 = vmatprep.subr.bf16.mxu1 %v9465_v39 }
 0xf3e   : > { %v7403_v47 = vadd.f32 %v15275_v33, %v7381_v35  ;;  %v9466_v33 = vld [vmem:[#allocation11 + $0x18] sm:$0xff]  }
 0xf40   : > { %v7411_v13 = vpack.c.bf16 %v7403_v47, %v7402_v21  ;;  %9152 = vmatpush3.bf16.msra.mxu0 %v9465_v39  ;;  %9188 = vmatpush3.bf16.msra.mxu1 %v9465_v39 }
 0xf41   : > { %9153 = vmatprep.subr.bf16.mxu0 %v9466_v33  ;;  %9181 = vmatprep.subr.bf16.mxu1 %v9466_v33 }
 0xf42   : > { %9142 = vmatmul.mubr.bf16.gmra.mxu1 %v7411_v13 }
 0xf44   : > { %9154 = vmatpush3.bf16.msra.mxu0 %v9466_v33  ;;  %9189 = vmatpush3.bf16.msra.mxu1 %v9466_v33 }
 0xf45   : > { %9155 = vmatprep.subr.bf16.mxu0 %v9467_v27  ;;  %9182 = vmatprep.subr.bf16.mxu1 %v9467_v27 }
 0xf48   : > { %9156 = vmatpush3.bf16.msra.mxu0 %v9467_v27  ;;  %9190 = vmatpush3.bf16.msra.mxu1 %v9467_v27 }
 0xf49   : > { %9157 = vmatprep.subr.bf16.mxu0 %v9468_v12  ;;  %9183 = vmatprep.subr.bf16.mxu1 %v9468_v12 }
 0xf4c   : > { %9158 = vmatpush3.bf16.msra.mxu0 %v9468_v12  ;;  %9191 = vmatpush3.bf16.msra.mxu1 %v9468_v12 }
 0xf4d   : > { %9159 = vmatprep.subr.bf16.mxu0 %v9469_v42  ;;  %9184 = vmatprep.subr.bf16.mxu1 %v9469_v42 }
 0xf50   : > { %9160 = vmatpush3.bf16.msra.mxu0 %v9469_v42  ;;  %9192 = vmatpush3.bf16.msra.mxu1 %v9469_v42 }
 0xfd1   : > { %v9131_v45 = vpop.f32.mrf.mxu1 }
 0xfd2   : > { %v7526_v1 = vadd.f32 %v9131_v45, %v15325_v34 }
 0xfd3   : > { %v7517_v56 = vpop.f32.mrf.mxu1 }
 0xfd4   : > { %v7518_v59 = vadd.f32 %v15325_v34, %v7517_v56  ;;  %v7598_v7 = vmul.f32 0.70710677, %v7526_v1  ;;  %v7582_v35 = vmul.f32 0.5, %v7526_v1 }
 0xfd5   : > { %v9132_v61 = vpop.f32.mrf.mxu1 }
 0xfd6   : > { %v7596_v15 = vmul.f32 0.70710677, %v7518_v59  ;;  %v7529_v20 = vadd.f32 %v9132_v61, %v15325_v34  ;;  %v7580_v29 = vmul.f32 0.5, %v7518_v59 }
 0xfd7   : > { %v7520_v19 = vpop.f32.mrf.mxu1 }
 0xfd8   : > { %10398 = verf.f32 %v7596_v15  ;;  %v7599_v41 = vmul.f32 0.70710677, %v7529_v20  ;;  %v7521_v4 = vadd.f32 %v15325_v34, %v7520_v19  ;;  %v7583_v58 = vmul.f32 0.5, %v7529_v20 }
 0xfd9   : > { %10400 = verf.f32 %v7598_v7 }
 0xfda   : > { %10402 = verf.f32 %v7599_v41  ;;  %v7597_v22 = vmul.f32 0.70710677, %v7521_v4  ;;  %v7581_v0 = vmul.f32 0.5, %v7521_v4 }
 0xfdc   : > { %10404 = verf.f32 %v7597_v22 }
 0xfe1   : > { %v9135_v36 = vpop.f32.mrf.mxu1 }
 0xfe2   : > { %v7542_v46 = vadd.f32 %v9135_v36, %v15325_v34 }
 0xfe3   : > { %v7533_v49 = vpop.f32.mrf.mxu1 }
 0xfe4   : > { %v7602_v10 = vmul.f32 0.70710677, %v7542_v46  ;;  %v7534_v38 = vadd.f32 %v15325_v34, %v7533_v49 }
 0xfe5   : > { %v10399_v8 = vpop.eup %10398  ;;  %v9136_v23 = vpop.f32.mrf.mxu1 }
 0xfe6   : > { %v10401_v63 = vpop.eup %10400  ;;  %v7600_v11 = vmul.f32 0.70710677, %v7534_v38  ;;  %v7545_v40 = vadd.f32 %v9136_v23, %v15325_v34  ;;  %v7628_v5 = vadd.f32 1.0, %v10399_v8  ;;  %10406 = verf.f32 %v7602_v10 }
 0xfe7   : > { %v10403_v25 = vpop.eup %10402  ;;  %v7536_v17 = vpop.f32.mrf.mxu1  ;;  %v7630_v28 = vadd.f32 1.0, %v10401_v63  ;;  %v7584_v10 = vmul.f32 0.5, %v7534_v38 }
 0xfe8   : > { %v7631_v53 = vadd.f32 1.0, %v10403_v25  ;;  %v7537_v44 = vadd.f32 %v15325_v34, %v7536_v17  ;;  %10408 = verf.f32 %v7600_v11  ;;  %v7603_v24 = vmul.f32 0.70710677, %v7545_v40 }
 0xfe9   : > { %v10405_v3 = vpop.eup %10404  ;;  %v7644_v47 = vmul.f32 %v7628_v5, %v7580_v29  ;;  %v7646_v60 = vmul.f32 %v7630_v28, %v7582_v35  ;;  %v7587_v19 = vmul.f32 0.5, %v7545_v40  ;;  %v7586_v25 = vmul.f32 0.5, %v7542_v46 }
 0xfea   : > { %v7629_v31 = vadd.f32 1.0, %v10405_v3  ;;  %v7601_v48 = vmul.f32 0.70710677, %v7537_v44  ;;  %v7647_v21 = vmul.f32 %v7631_v53, %v7583_v58  ;;  %10410 = verf.f32 %v7603_v24 }
 0xfeb   : > { %v7585_v8 = vmul.f32 0.5, %v7537_v44 }
 0xfec   : > { %v7645_v13 = vmul.f32 %v7629_v31, %v7581_v0  ;;  %10412 = verf.f32 %v7601_v48  ;;  %v7661_v37 = vpack.c.bf16 %v7647_v21, %v7646_v60 }
 0xfee   : > { %v7660_v9 = vpack.c.bf16 %v7645_v13, %v7644_v47 }
 0xff0   : > { %9161 = vmatprep.mubr.bf16.mxu0 %v7660_v9 }
 0xff1   : > { %v9139_v39 = vpop.f32.mrf.mxu1  ;;  %9162 = vmatmul.mubr.bf16.vlgmr.msra.gmra.mxu0 %v7661_v37 }
 0xff2   : > { %v7558_v33 = vadd.f32 %v9139_v39, %v15325_v34 }
 0xff3   : > { %v7549_v27 = vpop.f32.mrf.mxu1  ;;  %v10407_v42 = vpop.eup %10406 }
 0xff4   : > { %v7550_v12 = vadd.f32 %v15325_v34, %v7549_v27  ;;  %v7606_v45 = vmul.f32 0.70710677, %v7558_v33  ;;  %v7634_v22 = vadd.f32 1.0, %v10407_v42 }
 0xff5   : > { %v9140_v56 = vpop.f32.mrf.mxu1  ;;  %v10409_v1 = vpop.eup %10408 }
 0xff6   : > { %v7604_v59 = vmul.f32 0.70710677, %v7550_v12  ;;  %v7561_v7 = vadd.f32 %v9140_v56, %v15325_v34  ;;  %v7632_v20 = vadd.f32 1.0, %v10409_v1  ;;  %v7650_v53 = vmul.f32 %v7634_v22, %v7586_v25 }
 0xff7   : > { %v7552_v61 = vpop.f32.mrf.mxu1  ;;  %v10411_v15 = vpop.eup %10410  ;;  %v7588_v21 = vmul.f32 0.5, %v7550_v12  ;;  %v7590_v1 = vmul.f32 0.5, %v7558_v33 }
 0xff8   : > { %10414 = verf.f32 %v7604_v59  ;;  %v7553_v41 = vadd.f32 %v15325_v34, %v7552_v61  ;;  %v7635_v36 = vadd.f32 1.0, %v10411_v15  ;;  %v7607_v49 = vmul.f32 0.70710677, %v7561_v7 }
 0xff9   : > { %v10413_v4 = vpop.eup %10412  ;;  %10416 = verf.f32 %v7606_v45  ;;  %v7648_v17 = vmul.f32 %v7632_v20, %v7584_v10  ;;  %v7591_v13 = vmul.f32 0.5, %v7561_v7 }
 0xffa   : > { %v7633_v23 = vadd.f32 1.0, %v10413_v4  ;;  %v7605_v63 = vmul.f32 0.70710677, %v7553_v41  ;;  %v7651_v11 = vmul.f32 %v7635_v36, %v7587_v19  ;;  %10418 = verf.f32 %v7607_v49 }
 0xffb   : > { %v7589_v42 = vmul.f32 0.5, %v7553_v41 }
 0xffc   : > { %v7649_v5 = vmul.f32 %v7633_v23, %v7585_v8  ;;  %10420 = verf.f32 %v7605_v63  ;;  %v7663_v3 = vpack.c.bf16 %v7651_v11, %v7650_v53 }
 0xffe   : > { %v7662_v40 = vpack.c.bf16 %v7649_v5, %v7648_v17 }
0x1000   : > { %9165 = vmatprep.mubr.bf16.mxu0 %v7662_v40 }
0x1001   : > { %9166 = vmatmul.mubr.bf16.gmra.mxu0 %v7663_v3 }
0x1002   : > { %v9143_v28 = vpop.f32.mrf.mxu1 }
0x1003   : > { %v7574_v58 = vadd.f32 %v9143_v28, %v15325_v34 }
0x1004   : > { %v7565_v24 = vpop.f32.mrf.mxu1 }
0x1005   : > { %v10415_v29 = vpop.eup %10414  ;;  %v7610_v38 = vmul.f32 0.70710677, %v7574_v58  ;;  %v7566_v44 = vadd.f32 %v15325_v34, %v7565_v24  ;;  %v7594_v25 = vmul.f32 0.5, %v7574_v58  ;;  %v15346_v24 = vld [vmem:[%s15478_s12] ss:$0 sm:$0xff] }
0x1006   : > { %v10417_v0 = vpop.eup %10416  ;;  %v9144_v46 = vpop.f32.mrf.mxu1  ;;  %v7636_v47 = vadd.f32 1.0, %v10415_v29 }
0x1007   : > { %v7608_v31 = vmul.f32 0.70710677, %v7566_v44  ;;  %v7577_v48 = vadd.f32 %v9144_v46, %v15325_v34  ;;  %v10419_v35 = vpop.eup %10418  ;;  %v7638_v37 = vadd.f32 1.0, %v10417_v0  ;;  %10422 = verf.f32 %v7610_v38  ;;  %v5095_v0 = vpop.trf.xlu0 }
0x1008   : > { %v7568_v60 = vpop.f32.mrf.mxu1  ;;  %v7639_v39 = vadd.f32 1.0, %v10419_v35  ;;  %v7652_v61 = vmul.f32 %v7636_v47, %v7588_v21  ;;  %v7592_v33 = vmul.f32 0.5, %v7566_v44  ;;  %5111 = vst [vmem:[%s15352_s9] sm:$0xff] %v5095_v0 }
0x1009   : > { %v10421_v9 = vpop.eup %10420  ;;  %v7611_v27 = vmul.f32 0.70710677, %v7577_v48  ;;  %10424 = verf.f32 %v7608_v31  ;;  %v7569_v56 = vadd.f32 %v15325_v34, %v7568_v60  ;;  %v7654_v12 = vmul.f32 %v7638_v37, %v7590_v1 }
0x100a   : > { %v7637_v45 = vadd.f32 1.0, %v10421_v9  ;;  %v7655_v59 = vmul.f32 %v7639_v39, %v7591_v13  ;;  %v7595_v34 = vmul.f32 0.5, %v7577_v48 }
0x100b   : > { %10426 = verf.f32 %v7611_v27  ;;  %v7609_v20 = vmul.f32 0.70710677, %v7569_v56  ;;  %v7593_v23 = vmul.f32 0.5, %v7569_v56  ;;  %v5096_v21 = vpop.trf.xlu0 }
0x100c   : > { %v7653_v15 = vmul.f32 %v7637_v45, %v7589_v42  ;;  %v7665_v19 = vpack.c.bf16 %v7655_v59, %v7654_v12  ;;  %5112 = vst [vmem:[%s15352_s9 + $0x10] sm:$0xff] %v5096_v21 }
0x100d   : > { %10428 = verf.f32 %v7609_v20 }
0x100e   : > { %v7664_v7 = vpack.c.bf16 %v7653_v15, %v7652_v61 }
0x100f   : > { %v5097_v13 = vpop.trf.xlu0 }
0x1010   : > { %9169 = vmatprep.mubr.bf16.mxu1 %v7664_v7  ;;  %5113 = vst [vmem:[%s15352_s9 + $0x20] sm:$0xff] %v5097_v13 }
0x1011   : > { %9170 = vmatmul.mubr.bf16.vlgmr.msra.gmra.mxu1 %v7665_v19 }
0x1013   : > { %v5098_v37 = vpop.trf.xlu0 }
0x1014   : > { %v10423_v4 = vpop.eup %10422  ;;  %5114 = vst [vmem:[%s15352_s9 + $0x30] sm:$0xff] %v5098_v37 }
0x1015   : > { %v7642_v8 = vadd.f32 1.0, %v10423_v4 }
0x1016   : > { %v10425_v22 = vpop.eup %10424 }
0x1017   : > { %v7640_v49 = vadd.f32 1.0, %v10425_v22  ;;  %v7658_v53 = vmul.f32 %v7642_v8, %v7594_v25  ;;  %v5099_v42 = vpop.trf.xlu0 }
0x1018   : > { %v10427_v36 = vpop.eup %10426  ;;  %5115 = vst [vmem:[%s15352_s9 + $0x40] sm:$0xff] %v5099_v42 }
0x1019   : > { %v7643_v41 = vadd.f32 1.0, %v10427_v36  ;;  %v7656_v17 = vmul.f32 %v7640_v49, %v7592_v33 }
0x101a   : > { %v10429_v10 = vpop.eup %10428 }
0x101b   : > { %v7641_v63 = vadd.f32 1.0, %v10429_v10  ;;  %v7659_v11 = vmul.f32 %v7643_v41, %v7595_v34  ;;  %v5100_v59 = vpop.trf.xlu0 }
0x101c   : > { %5116 = vst [vmem:[%s15352_s9 + $0x50] sm:$0xff] %v5100_v59 }
0x101d   : > { %v7657_v5 = vmul.f32 %v7641_v63, %v7593_v23  ;;  %v7667_v3 = vpack.c.bf16 %v7659_v11, %v7658_v53 }
0x101f   : > { %v7666_v40 = vpack.c.bf16 %v7657_v5, %v7656_v17 }
0x1021   : > { %9173 = vmatprep.mubr.bf16.mxu1 %v7666_v40 }
0x1022   : > { %9174 = vmatmul.mubr.bf16.gmra.mxu1 %v7667_v3 }
0x10b1   : > { %v9163_v28 = vpop.f32.mrf.mxu0 }
0x10b2   : > { %v7782_v48 = vadd.f32 %v9163_v28, %v15346_v24 }
0x10b3   : > { %v7773_v29 = vpop.f32.mrf.mxu0 }
0x10b4   : > { %v7774_v38 = vadd.f32 %v15346_v24, %v7773_v29 }
0x10b5   : > { %v9164_v44 = vpop.f32.mrf.mxu0 }
0x10b6   : > { %v7836_v58 = vadd.f32 %v7774_v38, %v15039_v51  ;;  %v7838_v51 = vadd.f32 %v7782_v48, %v15051_v32  ;;  %v7785_v47 = vadd.f32 %v9164_v44, %v15346_v24 }
0x10b7   : > { %v7776_v46 = vpop.f32.mrf.mxu0 }
0x10b8   : > { %v7777_v31 = vadd.f32 %v15346_v24, %v7776_v46  ;;  %7852 = vxpose.xlu1.b32.start [1/16] %v7836_v58, 128  ;;  %v7839_v9 = vadd.f32 %v7785_v47, %v15057_v50 }
0x10ba   : > { %v7837_v35 = vadd.f32 %v7777_v31, %v15045_v26 }
0x10bc   : > { %7853 = vxpose.xlu1.b32.cont [2/16] %v7837_v35, 128 }
0x10c0   : > { %7854 = vxpose.xlu1.b32.cont [3/16] %v7838_v51, 128 }
0x10c1   : > { %v9167_v60 = vpop.f32.mrf.mxu0 }
0x10c2   : > { %v7798_v50 = vadd.f32 %v9167_v60, %v15346_v24 }
0x10c3   : > { %v7789_v39 = vpop.f32.mrf.mxu0 }
0x10c4   : > { %v7790_v26 = vadd.f32 %v15346_v24, %v7789_v39  ;;  %7855 = vxpose.xlu1.b32.cont [4/16] %v7839_v9, 128  ;;  %v7842_v61 = vadd.f32 %v7798_v50, %v15075_v16 }
0x10c5   : > { %v9168_v27 = vpop.f32.mrf.mxu0 }
0x10c6   : > { %v7840_v32 = vadd.f32 %v7790_v26, %v15063_v54  ;;  %v7801_v15 = vadd.f32 %v9168_v27, %v15346_v24  ;;  %v5101_v54 = vpop.trf.xlu0 }
0x10c7   : > { %v7792_v45 = vpop.f32.mrf.mxu0  ;;  %5117 = vst [vmem:[%s15352_s9 + $0x60] sm:$0xff] %v5101_v54 }
0x10c8   : > { %v7793_v56 = vadd.f32 %v15346_v24, %v7792_v45  ;;  %7856 = vxpose.xlu1.b32.cont [5/16] %v7840_v32, 128  ;;  %v7843_v12 = vadd.f32 %v7801_v15, %v15081_v55 }
0x10ca   : > { %v7841_v1 = vadd.f32 %v7793_v56, %v15069_v62  ;;  %v5102_v7 = vpop.trf.xlu0 }
0x10cb   : > { %5118 = vst [vmem:[%s15352_s9 + $0x70] sm:$0xff] %v5102_v7 }
0x10cc   : > { %7857 = vxpose.xlu1.b32.cont [6/16] %v7841_v1, 128 }
0x10ce   : > { %v5103_v22 = vpop.trf.xlu0 }
0x10cf   : > { %5119 = vst [vmem:[%s15352_s9 + $0x80] sm:$0xff] %v5103_v22 }
0x10d0   : > { %7858 = vxpose.xlu1.b32.cont [7/16] %v7842_v61, 128 }
0x10d1   : > { %v9171_v20 = vpop.f32.mrf.mxu1 }
0x10d2   : > { %v7814_v55 = vadd.f32 %v9171_v20, %v15346_v24  ;;  %v5104_v10 = vpop.trf.xlu0 }
0x10d3   : > { %v7805_v19 = vpop.f32.mrf.mxu1  ;;  %5120 = vst [vmem:[%s15352_s9 + $0x90] sm:$0xff] %v5104_v10 }
0x10d4   : > { %v7806_v62 = vadd.f32 %v15346_v24, %v7805_v19  ;;  %7859 = vxpose.xlu1.b32.cont [8/16] %v7843_v12, 128  ;;  %v7846_v8 = vadd.f32 %v7814_v55, %v15099_v52 }
0x10d5   : > { %v9172_v4 = vpop.f32.mrf.mxu1 }
0x10d6   : > { %v7844_v16 = vadd.f32 %v7806_v62, %v15087_v57  ;;  %v7817_v34 = vadd.f32 %v9172_v4, %v15346_v24  ;;  %v5105_v57 = vpop.trf.xlu0 }
0x10d7   : > { %v7808_v36 = vpop.f32.mrf.mxu1  ;;  %5121 = vst [vmem:[%s15352_s9 + $0xa0] sm:$0xff] %v5105_v57 }
0x10d8   : > { %v7809_v41 = vadd.f32 %v15346_v24, %v7808_v36  ;;  %7860 = vxpose.xlu1.b32.cont [9/16] %v7844_v16, 128  ;;  %v7847_v33 = vadd.f32 %v7817_v34, %v15105_v18 }
0x10da   : > { %v7845_v49 = vadd.f32 %v7809_v41, %v15093_v14  ;;  %v5106_v23 = vpop.trf.xlu0 }
0x10db   : > { %5122 = vst [vmem:[%s15352_s9 + $0xb0] sm:$0xff] %v5106_v23 }
0x10dc   : > { %7861 = vxpose.xlu1.b32.cont [10/16] %v7845_v49, 128 }
0x10de   : > { %v5107_v11 = vpop.trf.xlu0 }
0x10df   : > { %5123 = vst [vmem:[%s15352_s9 + $0xc0] sm:$0xff] %v5107_v11 }
0x10e0   : > { %7862 = vxpose.xlu1.b32.cont [11/16] %v7846_v8, 128 }
0x10e2   : > { %v9175_v63 = vpop.f32.mrf.mxu1  ;;  %v5108_v18 = vpop.trf.xlu0 }
0x10e3   : > { %5124 = vst [vmem:[%s15352_s9 + $0xd0] sm:$0xff] %v5108_v18  ;;  %v7830_v40 = vadd.f32 %v9175_v63, %v15346_v24 }
0x10e4   : > { %7863 = vxpose.xlu1.b32.cont [12/16] %v7847_v33, 128  ;;  %v7821_v14 = vpop.f32.mrf.mxu1 }
0x10e5   : > { %v7822_v25 = vadd.f32 %v15346_v24, %v7821_v14  ;;  %v7850_v29 = vadd.f32 %v7830_v40, %v15123_v2 }
0x10e6   : > { %v9176_v17 = vpop.f32.mrf.mxu1  ;;  %v5109_v28 = vpop.trf.xlu0 }
0x10e7   : > { %v7848_v52 = vadd.f32 %v7822_v25, %v15111_v30  ;;  %5125 = vst [vmem:[%s15352_s9 + $0xe0] sm:$0xff] %v5109_v28  ;;  %v7833_v30 = vadd.f32 %v9176_v17, %v15346_v24 }
0x10e8   : > { %v7824_v5 = vpop.f32.mrf.mxu1 }
0x10e9   : > { %v7825_v53 = vadd.f32 %v15346_v24, %v7824_v5  ;;  %7864 = vxpose.xlu1.b32.cont [13/16] %v7848_v52, 128  ;;  %v7851_v44 = vadd.f32 %v7833_v30, %v15128_v6 }
0x10ea   : > { %v5110_v38 = vpop.trf.xlu0 }
0x10eb   : > { %v7849_v3 = vadd.f32 %v7825_v53, %v15116_v43  ;;  %5126 = vst [vmem:[%s15352_s9 + $0xf0] sm:$0xff] %v5110_v38 }
0x10ed   : > { %7865 = vxpose.xlu1.b32.cont [14/16] %v7849_v3, 128 }
0x10f1   : > { %7866 = vxpose.xlu1.b32.cont [15/16] %v7850_v29, 128 }
0x10f5   : > { %7867 = vxpose.xlu1.b32.end [16/16] %v7851_v44, 128 }
0x1135   : > { %v7868_v43 = vpop.trf.xlu1 }
0x1136   : > { %7884 = vst [vmem:[%s15352_s9 + $0x8] sm:$0xff] %v7868_v43 }
0x1139   : > { %v7869_v58 = vpop.trf.xlu1 }
0x113a   : > { %7885 = vst [vmem:[%s15352_s9 + $0x18] sm:$0xff] %v7869_v58 }
0x113d   : > { %v7870_v0 = vpop.trf.xlu1 }
0x113e   : > { %7886 = vst [vmem:[%s15352_s9 + $0x28] sm:$0xff] %v7870_v0 }
0x1141   : > { %v7871_v2 = vpop.trf.xlu1 }
0x1142   : > { %7887 = vst [vmem:[%s15352_s9 + $0x38] sm:$0xff] %v7871_v2 }
0x1145   : > { %v7872_v24 = vpop.trf.xlu1 }
0x1146   : > { %7888 = vst [vmem:[%s15352_s9 + $0x48] sm:$0xff] %v7872_v24 }
0x1149   : > { %v7873_v46 = vpop.trf.xlu1 }
0x114a   : > { %7889 = vst [vmem:[%s15352_s9 + $0x58] sm:$0xff] %v7873_v46 }
0x114d   : > { %v7874_v6 = vpop.trf.xlu1 }
0x114e   : > { %7890 = vst [vmem:[%s15352_s9 + $0x68] sm:$0xff] %v7874_v6 }
0x1151   : > { %v7875_v31 = vpop.trf.xlu1 }
0x1152   : > { %7891 = vst [vmem:[%s15352_s9 + $0x78] sm:$0xff] %v7875_v31 }
0x1155   : > { %v7876_v48 = vpop.trf.xlu1 }
0x1156   : > { %7892 = vst [vmem:[%s15352_s9 + $0x88] sm:$0xff] %v7876_v48 }
0x1159   : > { %v7877_v35 = vpop.trf.xlu1 }
0x115a   : > { %7893 = vst [vmem:[%s15352_s9 + $0x98] sm:$0xff] %v7877_v35 }
0x115d   : > { %v7878_v21 = vpop.trf.xlu1 }
0x115e   : > { %7894 = vst [vmem:[%s15352_s9 + $0xa8] sm:$0xff] %v7878_v21 }
0x1161   : > { %v7879_v51 = vpop.trf.xlu1 }
0x1162   : > { %7895 = vst [vmem:[%s15352_s9 + $0xb8] sm:$0xff] %v7879_v51 }
0x1165   : > { %v7880_v47 = vpop.trf.xlu1 }
0x1166   : > { %7896 = vst [vmem:[%s15352_s9 + $0xc8] sm:$0xff] %v7880_v47 }
0x1169   : > { %v7881_v13 = vpop.trf.xlu1 }
0x116a   : > { %7897 = vst [vmem:[%s15352_s9 + $0xd8] sm:$0xff] %v7881_v13 }
0x116d   : > { %v7882_v60 = vpop.trf.xlu1 }
0x116e   : > { %7898 = vst [vmem:[%s15352_s9 + $0xe8] sm:$0xff] %v7882_v60 }
0x1171   : > { %v7883_v9 = vpop.trf.xlu1 }
0x1172   : > { %7899 = vst [vmem:[%s15352_s9 + $0xf8] sm:$0xff] %v7883_v9 }
0x1173   : > { %10601 = shalt.err (!%p10598_p3)
}
0x1174   : > { %s10602_s17 = scalar_lea.hbm %s15420_s3, 4096  ;;  %s10606_s5 = scalar_lea.hbm %s15479_s13, 8192 }
0x1175   : > { %p10603_p4 = scmp.ne.s32.totalorder %s15420_s3, %s10602_s17  ;;  %p10607_p2 = scmp.lt.s32.totalorder %s15420_s3, %s15479_s13 }
0x1176   : > { %p10608_p7 = scmp.lt.s32.totalorder %s10606_s5, %s10602_s17 }
0x1177   : > { %p10604_p12 = pnand %p10603_p4, %p16599_p10 }
0x1178   : > { %p10609_p8 = por %p10608_p7, %p10607_p2 }
0x1179   : > { %p10605_p6 = pneg %p10604_p12 }
0x117b   : > { %p10610_p11 = pnand %p10609_p8, %p10605_p6 }
0x117d   : > { %10613 = shalt.err (!%p10610_p11)
}
0x117e   : > { %s10683_s29 = smov 256   ;;  %s10684_s2 = smov 16  }
0x117f   : > { %9279 = dma.vmem_to_hbm [thread:$0]  (%p16599_p10), %s15422_s15, 4096, %s15420_s3, %s7901_s23, %s10683_s29, %s10683_s29, %s10684_s2  }
0x1180 PF: > { %s7929_s24 = sand.u32 1, %s10652_s25   ;;  %p16600_p13 = scmp.ne.s32.totalorder %s15791_s16, 0 }
0x1181   : > { %p16601_p0 = scmp.ge.s32.totalorder %s10664_s28, 2  ;;  %s7930_s14 = scalar_lea.sflag [#allocation4], %s7929_s24 }
0x1183   : > { %p9302_p5 = pnand %p16601_p0, %p16600_p13 }
0x1185   : > { %p9303_p9 = pneg %p9302_p5 }
0x1187   : > { %10647 = dma.done.wait (%p9303_p9), %s7930_s14, 4096  }
0x1188   : > { %10649 = vsyncadd (%p9303_p9), %s7930_s14, 4294963200  ;;  %s16602_s19 = sld [smem:[#allocation19_spill]]  ;;  %p29_p1 = scmp.ge.s32.totalorder %s10854_s18, 4  }
0x1189   : > { %s16603_s27 = sld [smem:[#allocation20_spill]]  ;;  %s16604_s25 = smov %s10656_s26 }
0x118a   : > { %s16606_s28 = smov %s10854_s18  ;;  %31 = sbr.rel (!%p29_p1) target bundleno = 14 (0xe), region = 137 }
0x118e   : > { %s16605_s26 = smov %s16602_s19 }
0x118f   :  { %7935 = vsyncpa [#allocation3], 1 }
0x1190   :  { %7937 = vsyncpa [#allocation3 + $0x1], 1 }
0x1191   :  { %7938 = vsyncpa [#allocation6], 1 }
0x1192   :  { %7939 = vsyncpa [#allocation9], 1 }
0x1193   :  { %7940 = vsyncpa [#allocation12], 1 }
0x1194   :  { %7941 = vsyncpa [#allocation4], 1 }
0x1195   :  { %7943 = vsyncpa [#allocation4 + $0x1], 1 }

</bundles_post_ra>
